<compile_context>
chip_gen: v7x
topology: tpu7x:2x2x1
jax: 0.10.0
libtpu: 0.0.40
codegen_flags: <defaults>
</compile_context>

<pallas_src>
import math

import jax
import jax.numpy as jnp
from jax import lax
from jax.experimental import pallas as pl
from jax.experimental.pallas import tpu as pltpu


def _make_kernel(num_heads, head_dim):
    H, Dh = num_heads, head_dim
    C = H * Dh

    def kernel(x_ref, w_in_ref, b_in_ref, w_out_ref, b_out_ref, o_ref):
        # x_ref : (1, C, S) bf16   channel-major tokens for this batch
        # w_in  : (3C, C)  bf16    packed [q;k;v] in-proj, q rows pre-scaled
        # b_in  : (3C, 1)  f32
        # w_out : (C, C)   bf16
        # b_out : (C, 1)   f32
        # o_ref : (1, C, S) f32    NCHW-ordered output slab
        xt = x_ref[0]                                            # (C, S)

        # Fused QKV projection: (3C, C) @ (C, S) -> (3C, S), f32 accumulation.
        qkv = jnp.dot(w_in_ref[...], xt,
                      preferred_element_type=jnp.float32) + b_in_ref[...]

        ctx_parts = []
        for h in range(H):                   # static unroll over heads (H small)
            qT = qkv[h * Dh:(h + 1) * Dh, :].astype(jnp.bfloat16)          # (Dh, S)
            kT = qkv[C + h * Dh:C + (h + 1) * Dh, :].astype(jnp.bfloat16)  # (Dh, S)
            vT = qkv[2 * C + h * Dh:2 * C + (h + 1) * Dh, :].astype(jnp.bfloat16)

            # Key-major scores: s[j, i] = k_j . q_i  -> (S_k, S_q).
            s = lax.dot_general(kT, qT, (((0,), (0,)), ((), ())),
                                preferred_element_type=jnp.float32)
            # Softmax over keys (axis 0); stats land as lane-dense (1, S_q) rows.
            m = jnp.max(s, axis=0, keepdims=True)                 # (1, S_q)
            p = jnp.exp(s - m)                                    # un-normalized
            l = jnp.sum(p, axis=0, keepdims=True)                 # (1, S_q)

            # ctxT[d, i] = sum_j v[d, j] * p[j, i]  -> (Dh, S_q), plain MXU A@B.
            ctxT = lax.dot_general(vT, p.astype(jnp.bfloat16),
                                   (((1,), (0,)), ((), ())),
                                   preferred_element_type=jnp.float32)
            # Deferred softmax normalization: Dh*S multiplies + EUP reciprocal.
            ctx_parts.append(ctxT * pl.reciprocal(l, approx=True))

        # Stack heads back into channel order: (C, S).
        ctx = jnp.concatenate(ctx_parts, axis=0)

        # Fused output projection: (C, C) @ (C, S) + bias.
        out = jnp.dot(w_out_ref[...], ctx.astype(jnp.bfloat16),
                      preferred_element_type=jnp.float32) + b_out_ref[...]
        o_ref[0] = out.astype(o_ref.dtype)

    return kernel


def nn_self_attn(x, params, num_heads):
    """x: (b, c, w, h) float32. Returns (b, c, w, h) — NNSelfAttn.forward."""
    b, c, w, h = x.shape
    C = c
    H = num_heads
    assert C % H == 0, "dim must be divisible by num_heads"
    Dh = C // H
    S = w * h

    w_in = jnp.asarray(params["in_proj_weight"], jnp.float32)    # (3C, C) [q;k;v]
    b_in = jnp.asarray(params["in_proj_bias"], jnp.float32)      # (3C,)
    w_out = jnp.asarray(params["out_proj_weight"], jnp.float32)  # (C, C)
    b_out = jnp.asarray(params["out_proj_bias"], jnp.float32)    # (C,)

    scale = 1.0 / math.sqrt(Dh)
    # One-time weight prep (tiny): fold the 1/sqrt(Dh) query scale into the q
    # rows of the packed in-proj; bf16 for the MXU operands, biases stay f32.
    w_in_packed = jnp.concatenate([w_in[:C] * scale, w_in[C:]], axis=0)
    b_in_packed = jnp.concatenate([b_in[:C] * scale, b_in[C:]],
                                  axis=0).reshape(3 * C, 1)
    w_in_bf = w_in_packed.astype(jnp.bfloat16)
    w_out_bf = w_out.astype(jnp.bfloat16)
    bo = b_out.reshape(C, 1)

    # NCHW -> (b, C, S): contiguous reshape only (no transpose); bf16 halves
    # the activation DMA bytes (f32 accumulation happens in-kernel).
    xt = x.reshape(b, C, S).astype(jnp.bfloat16)

    out = pl.pallas_call(
        _make_kernel(H, Dh),
        out_shape=jax.ShapeDtypeStruct((b, C, S), x.dtype),
        grid=(b,),
        in_specs=[
            pl.BlockSpec((1, C, S), lambda bb: (bb, 0, 0)),   # x (per batch)
            pl.BlockSpec((3 * C, C), lambda bb: (0, 0)),      # packed in-proj W
            pl.BlockSpec((3 * C, 1), lambda bb: (0, 0)),      # packed in-proj b
            pl.BlockSpec((C, C), lambda bb: (0, 0)),          # out-proj W
            pl.BlockSpec((C, 1), lambda bb: (0, 0)),          # out-proj b
        ],
        out_specs=pl.BlockSpec((1, C, S), lambda bb: (bb, 0, 0)),
        compiler_params=pltpu.CompilerParams(
            dimension_semantics=("parallel",)),
    )(xt, w_in_bf, b_in_packed, w_out_bf, bo)

    # (b, C, S) -> NCHW: contiguous reshape only.
    return out.reshape(b, C, w, h)


def init_params(key, dim):
    """Deterministic init (xavier-ish in-proj like PyTorch MHA; nonzero biases
    so the bias paths of the kernel are actually exercised)."""
    k1, k2, k3, k4 = jax.random.split(key, 4)
    lim_in = math.sqrt(6.0 / (dim + 3 * dim))
    lim_out = 1.0 / math.sqrt(dim)
    return {
        "in_proj_weight": jax.random.uniform(k1, (3 * dim, dim), jnp.float32,
                                             -lim_in, lim_in),
        "in_proj_bias": jax.random.uniform(k2, (3 * dim,), jnp.float32, -0.1, 0.1),
        "out_proj_weight": jax.random.uniform(k3, (dim, dim), jnp.float32,
                                              -lim_out, lim_out),
        "out_proj_bias": jax.random.uniform(k4, (dim,), jnp.float32, -0.1, 0.1),
    }


def _reference(x, params, num_heads):
    """Pure-JAX (f32, HIGHEST precision) reproduction of the PyTorch forward."""
    b, c, w, h = x.shape
    H, Dh, S = num_heads, c // num_heads, w * h
    xs = jnp.transpose(x.reshape(b, c, S), (0, 2, 1))            # (b, S, C)
    qkv = jnp.einsum("bsc,dc->bsd", xs, params["in_proj_weight"],
                     precision=lax.Precision.HIGHEST) + params["in_proj_bias"]
    q, k, v = jnp.split(qkv, 3, axis=-1)
    split = lambda t: jnp.transpose(t.reshape(b, S, H, Dh), (0, 2, 1, 3))
    q, k, v = split(q) / math.sqrt(Dh), split(k), split(v)
    s = jnp.einsum("bhqd,bhkd->bhqk", q, k, precision=lax.Precision.HIGHEST)
    p = jax.nn.softmax(s, axis=-1)
    ctx = jnp.einsum("bhqk,bhkd->bhqd", p, v, precision=lax.Precision.HIGHEST)
    ctx = jnp.transpose(ctx, (0, 2, 1, 3)).reshape(b, S, c)
    out = jnp.einsum("bsc,dc->bsd", ctx, params["out_proj_weight"],
                     precision=lax.Precision.HIGHEST) + params["out_proj_bias"]
    return jnp.transpose(out, (0, 2, 1)).reshape(b, c, w, h)


if __name__ == "__main__":
    key = jax.random.PRNGKey(0)
    kx, kp = jax.random.split(key)

    # dim must be divisible by num_heads=8 -> dim=32; spatial 16x16 -> S=256
    # (multiple of 128, so every streamed block is lane-dense).
    b, c, w, h = 2, 32, 16, 16
    num_heads = 8

    x = jax.random.normal(kx, (b, c, w, h), dtype=jnp.float32)
    params = init_params(kp, c)

    out = nn_self_attn(x, params, num_heads)
    out = jax.block_until_ready(out)

    ref = _reference(x, params, num_heads)
    assert out.shape == (b, c, w, h)
    # Tolerance accounts for bf16 MXU operands (f32 accumulation / f32 softmax);
    # observed error is a few e-3 against the f32 HIGHEST-precision reference.
    max_err = jnp.max(jnp.abs(out - ref))
    assert jnp.allclose(out, ref, atol=2e-2, rtol=2e-2), (
        f"mismatch vs reference, max abs err {max_err}")

    print("KERNEL_OK")
</pallas_src>

<mosaic_0001>
module attributes {stable_mosaic.version = 11 : i64} {
  func.func @kernel(%arg0: i32, %arg1: memref<1x32x256xbf16, #tpu.memory_space<vmem>>, %arg2: memref<96x32xbf16, #tpu.memory_space<vmem>>, %arg3: memref<96x1xf32, #tpu.memory_space<vmem>>, %arg4: memref<32x32xbf16, #tpu.memory_space<vmem>>, %arg5: memref<32x1xf32, #tpu.memory_space<vmem>>, %arg6: memref<1x32x256xf32, #tpu.memory_space<vmem>>) attributes {dimension_semantics = [#tpu.dimension_semantics<parallel>], iteration_bounds = array<i64: 2>, scalar_prefetch = 0 : i64, scratch_operands = 0 : i64, tpu.core_type = #tpu.core_type<tc>, window_params = [{transform_indices = @transform_0, window_bounds = array<i64: 1, 32, 256>}, {pipeline_mode = #tpu.pipeline_mode<synchronous>, transform_indices = @transform_1, window_bounds = array<i64: 96, 32>}, {pipeline_mode = #tpu.pipeline_mode<synchronous>, transform_indices = @transform_2, window_bounds = array<i64: 96, 1>}, {pipeline_mode = #tpu.pipeline_mode<synchronous>, transform_indices = @transform_3, window_bounds = array<i64: 32, 32>}, {pipeline_mode = #tpu.pipeline_mode<synchronous>, transform_indices = @transform_4, window_bounds = array<i64: 32, 1>}, {transform_indices = @transform_5, window_bounds = array<i64: 1, 32, 256>}]} {
    %c0 = arith.constant 0 : index
    %c0_0 = arith.constant 0 : index
    %c0_1 = arith.constant 0 : index
    %0 = vector.load %arg1[%c0, %c0_0, %c0_1] : memref<1x32x256xbf16, #tpu.memory_space<vmem>>, vector<1x32x256xbf16>
    %1 = vector.shape_cast %0 : vector<1x32x256xbf16> to vector<32x256xbf16>
    %c0_2 = arith.constant 0 : index
    %c0_3 = arith.constant 0 : index
    %2 = vector.load %arg2[%c0_2, %c0_3] : memref<96x32xbf16, #tpu.memory_space<vmem>>, vector<96x32xbf16>
    %cst = arith.constant dense<0.000000e+00> : vector<96x256xf32>
    %3 = tpu.matmul %2, %1, %cst {dimension_numbers = #tpu.dot_dimension_numbers<[1], [0], [0], [1], [0, 0, 1, 1], [], []>} : vector<96x32xbf16>, vector<32x256xbf16>, vector<96x256xf32> -> vector<96x256xf32>
    %c0_4 = arith.constant 0 : index
    %c0_5 = arith.constant 0 : index
    %4 = vector.load %arg3[%c0_4, %c0_5] : memref<96x1xf32, #tpu.memory_space<vmem>>, vector<96x1xf32>
    %5 = vector.broadcast %4 : vector<96x1xf32> to vector<96x256xf32>
    %6 = arith.addf %3, %5 : vector<96x256xf32>
    %7 = vector.extract_strided_slice %6 {offsets = [0, 0], sizes = [4, 256], strides = [1, 1]} : vector<96x256xf32> to vector<4x256xf32>
    %8 = arith.truncf %7 : vector<4x256xf32> to vector<4x256xbf16>
    %9 = vector.extract_strided_slice %6 {offsets = [32, 0], sizes = [4, 256], strides = [1, 1]} : vector<96x256xf32> to vector<4x256xf32>
    %10 = arith.truncf %9 : vector<4x256xf32> to vector<4x256xbf16>
    %11 = vector.extract_strided_slice %6 {offsets = [64, 0], sizes = [4, 256], strides = [1, 1]} : vector<96x256xf32> to vector<4x256xf32>
    %12 = arith.truncf %11 : vector<4x256xf32> to vector<4x256xbf16>
    %cst_6 = arith.constant dense<0.000000e+00> : vector<256x256xf32>
    %13 = tpu.matmul %10, %8, %cst_6 {dimension_numbers = #tpu.dot_dimension_numbers<[0], [0], [1], [1], [0, 1, 1, 1], [], []>} : vector<4x256xbf16>, vector<4x256xbf16>, vector<256x256xf32> -> vector<256x256xf32>
    %cst_7 = arith.constant dense<0xFF800000> : vector<256xf32>
    %14 = vector.multi_reduction <maximumf>, %13, %cst_7 [0] : vector<256x256xf32> to vector<256xf32>
    %15 = vector.shape_cast %14 : vector<256xf32> to vector<1x256xf32>
    %16 = vector.broadcast %15 : vector<1x256xf32> to vector<256x256xf32>
    %17 = arith.subf %13, %16 : vector<256x256xf32>
    %18 = math.exp %17 : vector<256x256xf32>
    %cst_8 = arith.constant dense<0.000000e+00> : vector<256xf32>
    %19 = vector.multi_reduction <add>, %18, %cst_8 [0] : vector<256x256xf32> to vector<256xf32>
    %20 = vector.shape_cast %19 : vector<256xf32> to vector<1x256xf32>
    %21 = arith.truncf %18 : vector<256x256xf32> to vector<256x256xbf16>
    %cst_9 = arith.constant dense<0.000000e+00> : vector<4x256xf32>
    %22 = tpu.matmul %12, %21, %cst_9 {dimension_numbers = #tpu.dot_dimension_numbers<[1], [0], [0], [1], [0, 0, 1, 1], [], []>} : vector<4x256xbf16>, vector<256x256xbf16>, vector<4x256xf32> -> vector<4x256xf32>
    %23 = tpu.reciprocal %20 {approx = true} : vector<1x256xf32> -> vector<1x256xf32>
    %24 = vector.broadcast %23 : vector<1x256xf32> to vector<4x256xf32>
    %25 = arith.mulf %22, %24 : vector<4x256xf32>
    %26 = vector.extract_strided_slice %6 {offsets = [4, 0], sizes = [4, 256], strides = [1, 1]} : vector<96x256xf32> to vector<4x256xf32>
    %27 = arith.truncf %26 : vector<4x256xf32> to vector<4x256xbf16>
    %28 = vector.extract_strided_slice %6 {offsets = [36, 0], sizes = [4, 256], strides = [1, 1]} : vector<96x256xf32> to vector<4x256xf32>
    %29 = arith.truncf %28 : vector<4x256xf32> to vector<4x256xbf16>
    %30 = vector.extract_strided_slice %6 {offsets = [68, 0], sizes = [4, 256], strides = [1, 1]} : vector<96x256xf32> to vector<4x256xf32>
    %31 = arith.truncf %30 : vector<4x256xf32> to vector<4x256xbf16>
    %cst_10 = arith.constant dense<0.000000e+00> : vector<256x256xf32>
    %32 = tpu.matmul %29, %27, %cst_10 {dimension_numbers = #tpu.dot_dimension_numbers<[0], [0], [1], [1], [0, 1, 1, 1], [], []>} : vector<4x256xbf16>, vector<4x256xbf16>, vector<256x256xf32> -> vector<256x256xf32>
    %cst_11 = arith.constant dense<0xFF800000> : vector<256xf32>
    %33 = vector.multi_reduction <maximumf>, %32, %cst_11 [0] : vector<256x256xf32> to vector<256xf32>
    %34 = vector.shape_cast %33 : vector<256xf32> to vector<1x256xf32>
    %35 = vector.broadcast %34 : vector<1x256xf32> to vector<256x256xf32>
    %36 = arith.subf %32, %35 : vector<256x256xf32>
    %37 = math.exp %36 : vector<256x256xf32>
    %cst_12 = arith.constant dense<0.000000e+00> : vector<256xf32>
    %38 = vector.multi_reduction <add>, %37, %cst_12 [0] : vector<256x256xf32> to vector<256xf32>
    %39 = vector.shape_cast %38 : vector<256xf32> to vector<1x256xf32>
    %40 = arith.truncf %37 : vector<256x256xf32> to vector<256x256xbf16>
    %cst_13 = arith.constant dense<0.000000e+00> : vector<4x256xf32>
    %41 = tpu.matmul %31, %40, %cst_13 {dimension_numbers = #tpu.dot_dimension_numbers<[1], [0], [0], [1], [0, 0, 1, 1], [], []>} : vector<4x256xbf16>, vector<256x256xbf16>, vector<4x256xf32> -> vector<4x256xf32>
    %42 = tpu.reciprocal %39 {approx = true} : vector<1x256xf32> -> vector<1x256xf32>
    %43 = vector.broadcast %42 : vector<1x256xf32> to vector<4x256xf32>
    %44 = arith.mulf %41, %43 : vector<4x256xf32>
    %45 = vector.extract_strided_slice %6 {offsets = [8, 0], sizes = [4, 256], strides = [1, 1]} : vector<96x256xf32> to vector<4x256xf32>
    %46 = arith.truncf %45 : vector<4x256xf32> to vector<4x256xbf16>
    %47 = vector.extract_strided_slice %6 {offsets = [40, 0], sizes = [4, 256], strides = [1, 1]} : vector<96x256xf32> to vector<4x256xf32>
    %48 = arith.truncf %47 : vector<4x256xf32> to vector<4x256xbf16>
    %49 = vector.extract_strided_slice %6 {offsets = [72, 0], sizes = [4, 256], strides = [1, 1]} : vector<96x256xf32> to vector<4x256xf32>
    %50 = arith.truncf %49 : vector<4x256xf32> to vector<4x256xbf16>
    %cst_14 = arith.constant dense<0.000000e+00> : vector<256x256xf32>
    %51 = tpu.matmul %48, %46, %cst_14 {dimension_numbers = #tpu.dot_dimension_numbers<[0], [0], [1], [1], [0, 1, 1, 1], [], []>} : vector<4x256xbf16>, vector<4x256xbf16>, vector<256x256xf32> -> vector<256x256xf32>
    %cst_15 = arith.constant dense<0xFF800000> : vector<256xf32>
    %52 = vector.multi_reduction <maximumf>, %51, %cst_15 [0] : vector<256x256xf32> to vector<256xf32>
    %53 = vector.shape_cast %52 : vector<256xf32> to vector<1x256xf32>
    %54 = vector.broadcast %53 : vector<1x256xf32> to vector<256x256xf32>
    %55 = arith.subf %51, %54 : vector<256x256xf32>
    %56 = math.exp %55 : vector<256x256xf32>
    %cst_16 = arith.constant dense<0.000000e+00> : vector<256xf32>
    %57 = vector.multi_reduction <add>, %56, %cst_16 [0] : vector<256x256xf32> to vector<256xf32>
    %58 = vector.shape_cast %57 : vector<256xf32> to vector<1x256xf32>
    %59 = arith.truncf %56 : vector<256x256xf32> to vector<256x256xbf16>
    %cst_17 = arith.constant dense<0.000000e+00> : vector<4x256xf32>
    %60 = tpu.matmul %50, %59, %cst_17 {dimension_numbers = #tpu.dot_dimension_numbers<[1], [0], [0], [1], [0, 0, 1, 1], [], []>} : vector<4x256xbf16>, vector<256x256xbf16>, vector<4x256xf32> -> vector<4x256xf32>
    %61 = tpu.reciprocal %58 {approx = true} : vector<1x256xf32> -> vector<1x256xf32>
    %62 = vector.broadcast %61 : vector<1x256xf32> to vector<4x256xf32>
    %63 = arith.mulf %60, %62 : vector<4x256xf32>
    %64 = vector.extract_strided_slice %6 {offsets = [12, 0], sizes = [4, 256], strides = [1, 1]} : vector<96x256xf32> to vector<4x256xf32>
    %65 = arith.truncf %64 : vector<4x256xf32> to vector<4x256xbf16>
    %66 = vector.extract_strided_slice %6 {offsets = [44, 0], sizes = [4, 256], strides = [1, 1]} : vector<96x256xf32> to vector<4x256xf32>
    %67 = arith.truncf %66 : vector<4x256xf32> to vector<4x256xbf16>
    %68 = vector.extract_strided_slice %6 {offsets = [76, 0], sizes = [4, 256], strides = [1, 1]} : vector<96x256xf32> to vector<4x256xf32>
    %69 = arith.truncf %68 : vector<4x256xf32> to vector<4x256xbf16>
    %cst_18 = arith.constant dense<0.000000e+00> : vector<256x256xf32>
    %70 = tpu.matmul %67, %65, %cst_18 {dimension_numbers = #tpu.dot_dimension_numbers<[0], [0], [1], [1], [0, 1, 1, 1], [], []>} : vector<4x256xbf16>, vector<4x256xbf16>, vector<256x256xf32> -> vector<256x256xf32>
    %cst_19 = arith.constant dense<0xFF800000> : vector<256xf32>
    %71 = vector.multi_reduction <maximumf>, %70, %cst_19 [0] : vector<256x256xf32> to vector<256xf32>
    %72 = vector.shape_cast %71 : vector<256xf32> to vector<1x256xf32>
    %73 = vector.broadcast %72 : vector<1x256xf32> to vector<256x256xf32>
    %74 = arith.subf %70, %73 : vector<256x256xf32>
    %75 = math.exp %74 : vector<256x256xf32>
    %cst_20 = arith.constant dense<0.000000e+00> : vector<256xf32>
    %76 = vector.multi_reduction <add>, %75, %cst_20 [0] : vector<256x256xf32> to vector<256xf32>
    %77 = vector.shape_cast %76 : vector<256xf32> to vector<1x256xf32>
    %78 = arith.truncf %75 : vector<256x256xf32> to vector<256x256xbf16>
    %cst_21 = arith.constant dense<0.000000e+00> : vector<4x256xf32>
    %79 = tpu.matmul %69, %78, %cst_21 {dimension_numbers = #tpu.dot_dimension_numbers<[1], [0], [0], [1], [0, 0, 1, 1], [], []>} : vector<4x256xbf16>, vector<256x256xbf16>, vector<4x256xf32> -> vector<4x256xf32>
    %80 = tpu.reciprocal %77 {approx = true} : vector<1x256xf32> -> vector<1x256xf32>
    %81 = vector.broadcast %80 : vector<1x256xf32> to vector<4x256xf32>
    %82 = arith.mulf %79, %81 : vector<4x256xf32>
    %83 = vector.extract_strided_slice %6 {offsets = [16, 0], sizes = [4, 256], strides = [1, 1]} : vector<96x256xf32> to vector<4x256xf32>
    %84 = arith.truncf %83 : vector<4x256xf32> to vector<4x256xbf16>
    %85 = vector.extract_strided_slice %6 {offsets = [48, 0], sizes = [4, 256], strides = [1, 1]} : vector<96x256xf32> to vector<4x256xf32>
    %86 = arith.truncf %85 : vector<4x256xf32> to vector<4x256xbf16>
    %87 = vector.extract_strided_slice %6 {offsets = [80, 0], sizes = [4, 256], strides = [1, 1]} : vector<96x256xf32> to vector<4x256xf32>
    %88 = arith.truncf %87 : vector<4x256xf32> to vector<4x256xbf16>
    %cst_22 = arith.constant dense<0.000000e+00> : vector<256x256xf32>
    %89 = tpu.matmul %86, %84, %cst_22 {dimension_numbers = #tpu.dot_dimension_numbers<[0], [0], [1], [1], [0, 1, 1, 1], [], []>} : vector<4x256xbf16>, vector<4x256xbf16>, vector<256x256xf32> -> vector<256x256xf32>
    %cst_23 = arith.constant dense<0xFF800000> : vector<256xf32>
    %90 = vector.multi_reduction <maximumf>, %89, %cst_23 [0] : vector<256x256xf32> to vector<256xf32>
    %91 = vector.shape_cast %90 : vector<256xf32> to vector<1x256xf32>
    %92 = vector.broadcast %91 : vector<1x256xf32> to vector<256x256xf32>
    %93 = arith.subf %89, %92 : vector<256x256xf32>
    %94 = math.exp %93 : vector<256x256xf32>
    %cst_24 = arith.constant dense<0.000000e+00> : vector<256xf32>
    %95 = vector.multi_reduction <add>, %94, %cst_24 [0] : vector<256x256xf32> to vector<256xf32>
    %96 = vector.shape_cast %95 : vector<256xf32> to vector<1x256xf32>
    %97 = arith.truncf %94 : vector<256x256xf32> to vector<256x256xbf16>
    %cst_25 = arith.constant dense<0.000000e+00> : vector<4x256xf32>
    %98 = tpu.matmul %88, %97, %cst_25 {dimension_numbers = #tpu.dot_dimension_numbers<[1], [0], [0], [1], [0, 0, 1, 1], [], []>} : vector<4x256xbf16>, vector<256x256xbf16>, vector<4x256xf32> -> vector<4x256xf32>
    %99 = tpu.reciprocal %96 {approx = true} : vector<1x256xf32> -> vector<1x256xf32>
    %100 = vector.broadcast %99 : vector<1x256xf32> to vector<4x256xf32>
    %101 = arith.mulf %98, %100 : vector<4x256xf32>
    %102 = vector.extract_strided_slice %6 {offsets = [20, 0], sizes = [4, 256], strides = [1, 1]} : vector<96x256xf32> to vector<4x256xf32>
    %103 = arith.truncf %102 : vector<4x256xf32> to vector<4x256xbf16>
    %104 = vector.extract_strided_slice %6 {offsets = [52, 0], sizes = [4, 256], strides = [1, 1]} : vector<96x256xf32> to vector<4x256xf32>
    %105 = arith.truncf %104 : vector<4x256xf32> to vector<4x256xbf16>
    %106 = vector.extract_strided_slice %6 {offsets = [84, 0], sizes = [4, 256], strides = [1, 1]} : vector<96x256xf32> to vector<4x256xf32>
    %107 = arith.truncf %106 : vector<4x256xf32> to vector<4x256xbf16>
    %cst_26 = arith.constant dense<0.000000e+00> : vector<256x256xf32>
    %108 = tpu.matmul %105, %103, %cst_26 {dimension_numbers = #tpu.dot_dimension_numbers<[0], [0], [1], [1], [0, 1, 1, 1], [], []>} : vector<4x256xbf16>, vector<4x256xbf16>, vector<256x256xf32> -> vector<256x256xf32>
    %cst_27 = arith.constant dense<0xFF800000> : vector<256xf32>
    %109 = vector.multi_reduction <maximumf>, %108, %cst_27 [0] : vector<256x256xf32> to vector<256xf32>
    %110 = vector.shape_cast %109 : vector<256xf32> to vector<1x256xf32>
    %111 = vector.broadcast %110 : vector<1x256xf32> to vector<256x256xf32>
    %112 = arith.subf %108, %111 : vector<256x256xf32>
    %113 = math.exp %112 : vector<256x256xf32>
    %cst_28 = arith.constant dense<0.000000e+00> : vector<256xf32>
    %114 = vector.multi_reduction <add>, %113, %cst_28 [0] : vector<256x256xf32> to vector<256xf32>
    %115 = vector.shape_cast %114 : vector<256xf32> to vector<1x256xf32>
    %116 = arith.truncf %113 : vector<256x256xf32> to vector<256x256xbf16>
    %cst_29 = arith.constant dense<0.000000e+00> : vector<4x256xf32>
    %117 = tpu.matmul %107, %116, %cst_29 {dimension_numbers = #tpu.dot_dimension_numbers<[1], [0], [0], [1], [0, 0, 1, 1], [], []>} : vector<4x256xbf16>, vector<256x256xbf16>, vector<4x256xf32> -> vector<4x256xf32>
    %118 = tpu.reciprocal %115 {approx = true} : vector<1x256xf32> -> vector<1x256xf32>
    %119 = vector.broadcast %118 : vector<1x256xf32> to vector<4x256xf32>
    %120 = arith.mulf %117, %119 : vector<4x256xf32>
    %121 = vector.extract_strided_slice %6 {offsets = [24, 0], sizes = [4, 256], strides = [1, 1]} : vector<96x256xf32> to vector<4x256xf32>
    %122 = arith.truncf %121 : vector<4x256xf32> to vector<4x256xbf16>
    %123 = vector.extract_strided_slice %6 {offsets = [56, 0], sizes = [4, 256], strides = [1, 1]} : vector<96x256xf32> to vector<4x256xf32>
    %124 = arith.truncf %123 : vector<4x256xf32> to vector<4x256xbf16>
    %125 = vector.extract_strided_slice %6 {offsets = [88, 0], sizes = [4, 256], strides = [1, 1]} : vector<96x256xf32> to vector<4x256xf32>
    %126 = arith.truncf %125 : vector<4x256xf32> to vector<4x256xbf16>
    %cst_30 = arith.constant dense<0.000000e+00> : vector<256x256xf32>
    %127 = tpu.matmul %124, %122, %cst_30 {dimension_numbers = #tpu.dot_dimension_numbers<[0], [0], [1], [1], [0, 1, 1, 1], [], []>} : vector<4x256xbf16>, vector<4x256xbf16>, vector<256x256xf32> -> vector<256x256xf32>
    %cst_31 = arith.constant dense<0xFF800000> : vector<256xf32>
    %128 = vector.multi_reduction <maximumf>, %127, %cst_31 [0] : vector<256x256xf32> to vector<256xf32>
    %129 = vector.shape_cast %128 : vector<256xf32> to vector<1x256xf32>
    %130 = vector.broadcast %129 : vector<1x256xf32> to vector<256x256xf32>
    %131 = arith.subf %127, %130 : vector<256x256xf32>
    %132 = math.exp %131 : vector<256x256xf32>
    %cst_32 = arith.constant dense<0.000000e+00> : vector<256xf32>
    %133 = vector.multi_reduction <add>, %132, %cst_32 [0] : vector<256x256xf32> to vector<256xf32>
    %134 = vector.shape_cast %133 : vector<256xf32> to vector<1x256xf32>
    %135 = arith.truncf %132 : vector<256x256xf32> to vector<256x256xbf16>
    %cst_33 = arith.constant dense<0.000000e+00> : vector<4x256xf32>
    %136 = tpu.matmul %126, %135, %cst_33 {dimension_numbers = #tpu.dot_dimension_numbers<[1], [0], [0], [1], [0, 0, 1, 1], [], []>} : vector<4x256xbf16>, vector<256x256xbf16>, vector<4x256xf32> -> vector<4x256xf32>
    %137 = tpu.reciprocal %134 {approx = true} : vector<1x256xf32> -> vector<1x256xf32>
    %138 = vector.broadcast %137 : vector<1x256xf32> to vector<4x256xf32>
    %139 = arith.mulf %136, %138 : vector<4x256xf32>
    %140 = vector.extract_strided_slice %6 {offsets = [28, 0], sizes = [4, 256], strides = [1, 1]} : vector<96x256xf32> to vector<4x256xf32>
    %141 = arith.truncf %140 : vector<4x256xf32> to vector<4x256xbf16>
    %142 = vector.extract_strided_slice %6 {offsets = [60, 0], sizes = [4, 256], strides = [1, 1]} : vector<96x256xf32> to vector<4x256xf32>
    %143 = arith.truncf %142 : vector<4x256xf32> to vector<4x256xbf16>
    %144 = vector.extract_strided_slice %6 {offsets = [92, 0], sizes = [4, 256], strides = [1, 1]} : vector<96x256xf32> to vector<4x256xf32>
    %145 = arith.truncf %144 : vector<4x256xf32> to vector<4x256xbf16>
    %cst_34 = arith.constant dense<0.000000e+00> : vector<256x256xf32>
    %146 = tpu.matmul %143, %141, %cst_34 {dimension_numbers = #tpu.dot_dimension_numbers<[0], [0], [1], [1], [0, 1, 1, 1], [], []>} : vector<4x256xbf16>, vector<4x256xbf16>, vector<256x256xf32> -> vector<256x256xf32>
    %cst_35 = arith.constant dense<0xFF800000> : vector<256xf32>
    %147 = vector.multi_reduction <maximumf>, %146, %cst_35 [0] : vector<256x256xf32> to vector<256xf32>
    %148 = vector.shape_cast %147 : vector<256xf32> to vector<1x256xf32>
    %149 = vector.broadcast %148 : vector<1x256xf32> to vector<256x256xf32>
    %150 = arith.subf %146, %149 : vector<256x256xf32>
    %151 = math.exp %150 : vector<256x256xf32>
    %cst_36 = arith.constant dense<0.000000e+00> : vector<256xf32>
    %152 = vector.multi_reduction <add>, %151, %cst_36 [0] : vector<256x256xf32> to vector<256xf32>
    %153 = vector.shape_cast %152 : vector<256xf32> to vector<1x256xf32>
    %154 = arith.truncf %151 : vector<256x256xf32> to vector<256x256xbf16>
    %cst_37 = arith.constant dense<0.000000e+00> : vector<4x256xf32>
    %155 = tpu.matmul %145, %154, %cst_37 {dimension_numbers = #tpu.dot_dimension_numbers<[1], [0], [0], [1], [0, 0, 1, 1], [], []>} : vector<4x256xbf16>, vector<256x256xbf16>, vector<4x256xf32> -> vector<4x256xf32>
    %156 = tpu.reciprocal %153 {approx = true} : vector<1x256xf32> -> vector<1x256xf32>
    %157 = vector.broadcast %156 : vector<1x256xf32> to vector<4x256xf32>
    %158 = arith.mulf %155, %157 : vector<4x256xf32>
    %159 = tpu.concatenate %25, %44, %63, %82, %101, %120, %139, %158 in 0 : vector<4x256xf32>, vector<4x256xf32>, vector<4x256xf32>, vector<4x256xf32>, vector<4x256xf32>, vector<4x256xf32>, vector<4x256xf32>, vector<4x256xf32> -> vector<32x256xf32>
    %c0_38 = arith.constant 0 : index
    %c0_39 = arith.constant 0 : index
    %160 = vector.load %arg4[%c0_38, %c0_39] : memref<32x32xbf16, #tpu.memory_space<vmem>>, vector<32x32xbf16>
    %161 = arith.truncf %159 : vector<32x256xf32> to vector<32x256xbf16>
    %cst_40 = arith.constant dense<0.000000e+00> : vector<32x256xf32>
    %162 = tpu.matmul %160, %161, %cst_40 {dimension_numbers = #tpu.dot_dimension_numbers<[1], [0], [0], [1], [0, 0, 1, 1], [], []>} : vector<32x32xbf16>, vector<32x256xbf16>, vector<32x256xf32> -> vector<32x256xf32>
    %c0_41 = arith.constant 0 : index
    %c0_42 = arith.constant 0 : index
    %163 = vector.load %arg5[%c0_41, %c0_42] : memref<32x1xf32, #tpu.memory_space<vmem>>, vector<32x1xf32>
    %164 = vector.broadcast %163 : vector<32x1xf32> to vector<32x256xf32>
    %165 = arith.addf %162, %164 : vector<32x256xf32>
    %c0_43 = arith.constant 0 : index
    %c0_44 = arith.constant 0 : index
    %c0_45 = arith.constant 0 : index
    %166 = vector.load %arg6[%c0_43, %c0_44, %c0_45] : memref<1x32x256xf32, #tpu.memory_space<vmem>>, vector<1x32x256xf32>
    %167 = vector.shape_cast %166 : vector<1x32x256xf32> to vector<32x256xf32>
    %168 = vector.shape_cast %165 : vector<32x256xf32> to vector<1x32x256xf32>
    tpu.vector_store %arg6[%c0_43, %c0_44, %c0_45], %168 {strides = array<i32>} : memref<1x32x256xf32, #tpu.memory_space<vmem>>, vector<1x32x256xf32>,
    return
  }
  func.func @transform_0(%arg0: i32) -> (i32, i32, i32) {
    %c0_i32 = arith.constant 0 : i32
    %c0_i32_0 = arith.constant 0 : i32
    %c0_i32_1 = arith.constant 0 : i32
    return %arg0, %c0_i32, %c0_i32_0 : i32, i32, i32
  }
  func.func @transform_1(%arg0: i32) -> (i32, i32) {
    %c0_i32 = arith.constant 0 : i32
    %c0_i32_0 = arith.constant 0 : i32
    %c0_i32_1 = arith.constant 0 : i32
    return %c0_i32, %c0_i32_0 : i32, i32
  }
  func.func @transform_2(%arg0: i32) -> (i32, i32) {
    %c0_i32 = arith.constant 0 : i32
    %c0_i32_0 = arith.constant 0 : i32
    %c0_i32_1 = arith.constant 0 : i32
    return %c0_i32, %c0_i32_0 : i32, i32
  }
  func.func @transform_3(%arg0: i32) -> (i32, i32) {
    %c0_i32 = arith.constant 0 : i32
    %c0_i32_0 = arith.constant 0 : i32
    %c0_i32_1 = arith.constant 0 : i32
    return %c0_i32, %c0_i32_0 : i32, i32
  }
  func.func @transform_4(%arg0: i32) -> (i32, i32) {
    %c0_i32 = arith.constant 0 : i32
    %c0_i32_0 = arith.constant 0 : i32
    %c0_i32_1 = arith.constant 0 : i32
    return %c0_i32, %c0_i32_0 : i32, i32
  }
  func.func @transform_5(%arg0: i32) -> (i32, i32, i32) {
    %c0_i32 = arith.constant 0 : i32
    %c0_i32_0 = arith.constant 0 : i32
    %c0_i32_1 = arith.constant 0 : i32
    return %arg0, %c0_i32, %c0_i32_0 : i32, i32, i32
  }
}

</mosaic_0001>

<bundles_post_ra>
// kernel: tpu_custom_call.1
= control target key start
LH: loop header
LB: loop body
LE: loop exit
PB: predicated region body
PF: predicated region fallthrough
CT: control target
= control target key end

     0   :  { %10 = vsyncpa [#allocation3], 0  ;;  %s13736_s0 = inlined_call_operand.vmem [shape: bf16[2,32,256], index: 0, kind: input, shape index: {}]   ;;  %s13737_s1 = inlined_call_operand.vmem [shape: bf16[96,32], index: 1, kind: input, shape index: {}]   ;;  %s13738_s2 = inlined_call_operand.vmem [shape: f32[96,1], index: 2, kind: input, shape index: {}]   ;;  %s13739_s3 = inlined_call_operand.vmem [shape: bf16[32,32], index: 3, kind: input, shape index: {}]   ;;  %s13740_s4 = inlined_call_operand.vmem [shape: f32[32,1], index: 4, kind: input, shape index: {}]   ;;  %s13741_s5 = inlined_call_operand.hbm [shape: f32[2,32,256], index: 5, kind: output, shape index: {}]  }
   0x1   :  { %12 = vsyncpa [#allocation3 + $0x1], 0  ;;  %s7732_s18 = smov 0   ;;  %s7734_s19 = smov 0  }
   0x2   :  { %s7736_s20 = smov 0   ;;  %s7738_s21 = smov 0  }
   0x3 LB: > { %s7753_s22 = sadd.s32 4294967295, %s7696_s21   ;;  %s6350_s23 = sadd.s32 4294967294, %s7696_s21   ;;  %s7696_s21 = sphi %s7738_s21, %s15204_s21   ;;  %s7692_s20 = sphi %s7736_s20, %s15203_s20   ;;  %s7688_s19 = sphi %s7734_s19, %s15202_s19   ;;  %s7684_s18 = sphi %s7732_s18, %s15201_s18  }
   0x4   : > { %s7757_s24 = sadd.s32 1, %s7696_s21   ;;  %s135_s25 = sadd.s32 1, %s7692_s20 }
   0x5   : > { %s132_s26 = ssub.s32 %s7696_s21, %s7757_s24  ;;  %p145_p0 = scmp.ne.s32.totalorder %s7692_s20, %s7688_s19 }
   0x6   : > { %p133_p1 = scmp.eq.s32.totalorder %s132_s26, 0  ;;  %p146_p2 = scmp.eq.s32.totalorder %s7753_s22, 1 }
   0x7   : > { %p151_p3 = scmp.ne.s32.totalorder %s7688_s19, %s7684_s18  ;;  %p152_p4 = scmp.eq.s32.totalorder %s6350_s23, 1 }
   0x8   : > { %s7768_s27 = scalar_select %p133_p1, %s7692_s20, %s135_s25  }
   0x9   : > { %p7770_p5 = por %p146_p2, %p145_p0  ;;  %p7774_p6 = por %p152_p4, %p151_p3 }
   0xa   : > { %p6353_p7 = scmp.ge.s32.totalorder %s7696_s21, 1  ;;  %p190_p8 = scmp.lt.s32.totalorder %s7696_s21, 3 }
   0xc   : > { %p191_p9 = pnand %p6353_p7, %p190_p8 }
   0xe   : > { %194 = sbr.rel (%p191_p9) target bundleno = 4660 (0x1234), region = 40 }
  0x15   : > { %p218_p10 = scmp.lt.s32.totalorder %s7753_s22, 1  ;;  %v13742_v0 = vmov 0   ;;  %v244_v1 = vld [vmem:[%s13738_s2 + $0x20] sm:$0xff]  ;;  %vm362_vm0 = vcmask 261120   ;;  %v6571_v9 = vld [vmem:[%s13737_s1 + $0x8] sm:$0xff]   ;;  %v6572_v10 = vld [vmem:[%s13737_s1 + $0x10] sm:$0xff]  }
  0x16   : > { %413 = vmatprep.mubr.bf16.mxu0 %v13742_v0  ;;  %6562 = vset.pattern.permute.xlu0 %v13742_v0  ;;  %v240_v2 = vld [vmem:[%s13738_s2] sm:$0xff]  ;;  %v6573_v11 = vld [vmem:[%s13737_s1 + $0x18] sm:$0xff]   ;;  %v6575_v13 = vld [vmem:[%s13737_s1 + $0x28] sm:$0xff]   ;;  %vm561_vm1 = vcmask 1041408   ;;  %vm512_vm2 = vcmask 31744   ;;  %vm6156_vm3 = vcmask 1043456  }
  0x17   : > { %s219_s30 = scalar_select %p218_p10, %s7753_s22, 1  ;;  %600 = vmatprep.mubr.bf16.mxu1 %v13742_v0  ;;  %274 = vperm.xlu0 %6562, %v244_v1   ;;  %v248_v7 = vld [vmem:[%s13738_s2 + $0x40] sm:$0xff]  ;;  %v245_v47 = vld [vmem:[%s13738_s2 + $0x28] sm:$0xff] }
  0x18   : > { %v6570_v8 = vld [vmem:[%s13737_s1] sm:$0xff]   ;;  %v241_v49 = vld [vmem:[%s13738_s2 + $0x8] sm:$0xff]  ;;  %s215_s10 = sand.u32 1, %s7688_s19   ;;  %s6519_s13 = sshll.u32 %s7753_s22, 10 }
  0x19   : > { %s6518_s6 = sshll.u32 %s219_s30, 5  ;;  %v6574_v12 = vld [vmem:[%s13737_s1 + $0x20] sm:$0xff]   ;;  %s6354_s11 = sshll.u32 %s215_s10, 6 }
  0x1a   : > { %s222_s9 = scalar_lea.vmem %s13736_s0, %s6518_s6  ;;  %s217_s12 = scalar_lea.vmem [#allocation2], %s6354_s11 }
  0x1b   : > { %v6564_v3 = vld [vmem:[%s222_s9 + $0x4] ss:$8 sps:$4 sm:$0xff]   ;;  %v6566_v4 = vld [vmem:[%s222_s9] ss:$8 sps:$4 sm:$0xff]   ;;  %v6567_v5 = vld [vmem:[%s222_s9 + $0x14] ss:$8 sps:$4 sm:$0xff]   ;;  %254 = vperm.xlu0 %6562, %v240_v2   ;;  %s13689_s17 = scalar_lea.hbm %s13741_s5, %s6519_s13 }
  0x1c   : > { %381 = vmatprep.subr.bf16.mxu0 %v6564_v3  ;;  %v6569_v6 = vld [vmem:[%s222_s9 + $0x10] ss:$8 sps:$4 sm:$0xff]   ;;  %s6288_s14 = sshll.u32 %s217_s12, 4  ;;  %s13695_s22 = scalar_lea.sflag [#allocation3], %s215_s10  ;;  %s13691_s14 = int_to_ptr.vmem [resolvable:$true] %s6288_s14 }
  0x1d   : > { %382 = vmatpush1.bf16.msra.mxu0 %v6566_v4  ;;  %s7634_s23 = scalar_lea.vmem %s13691_s14, 1024  ;;  %s7699_s25 = smov [#allocation2]  }
  0x1e   : > { %383 = vmatprep.subr.bf16.mxu0 %v6567_v5  ;;  %p7635_p11 = scmp.ne.s32.totalorder %s13691_s14, %s7634_s23  ;;  %s7638_s26 = sshll.u32 %s7699_s25, 4  ;;  %s7639_s26 = int_to_ptr.vmem [resolvable:$false] %s7638_s26 }
  0x1f   : > { %294 = vperm.xlu0 %6562, %v248_v7   ;;  %s7640_s30 = scalar_lea.vmem %s7639_s26, 2048  ;;  %p7641_p0 = scmp.lt.s32.totalorder %s13691_s14, %s7639_s26 }
  0x20   : > { %p7636_p12 = pnand %p7635_p11, %p7770_p5  ;;  %p7642_p1 = scmp.lt.s32.totalorder %s7640_s30, %s7634_s23 }
  0x21   : > { %384 = vmatpush1.bf16.msra.mxu0 %v6569_v6 }
  0x22   : > { %p7637_p13 = pneg %p7636_p12  ;;  %p7643_p2 = por %p7642_p1, %p7641_p0 }
  0x24   : > { %6367 = vmatmul.mubr.msk.bf16.vlgmr.msra.gmra.mrb[0].mxu0 %vm362_vm0, %v6570_v8  ;;  %p7644_p3 = pnand %p7643_p2, %p7637_p13 }
  0x25   : > { %423 = vmatprep.mubr.bf16.mxu0 %v13742_v0 }
  0x2c   : > { %6368 = vmatmul.mubr.msk.bf16.gmra.mrb[4].mxu0 %vm362_vm0, %v6571_v9 }
  0x2d   : > { %433 = vmatprep.mubr.bf16.mxu0 %v13742_v0 }
  0x34   : > { %6369 = vmatmul.mubr.msk.bf16.gmra.mrb[8].mxu0 %vm362_vm0, %v6572_v10 }
  0x35   : > { %443 = vmatprep.mubr.bf16.mxu0 %v13742_v0 }
  0x3c   : > { %6370 = vmatmul.mubr.msk.bf16.gmra.mrb[12].mxu0 %vm362_vm0, %v6573_v11 }
  0x3d   : > { %453 = vmatprep.mubr.bf16.mxu0 %v13742_v0 }
  0x44   : > { %6371 = vmatmul.mubr.msk.bf16.gmra.mrb[16].mxu0 %vm362_vm0, %v6574_v12 }
  0x45   : > { %463 = vmatprep.mubr.bf16.mxu0 %v13742_v0 }
  0x4c   : > { %6372 = vmatmul.mubr.msk.bf16.gmra.mrb[20].mxu0 %vm362_vm0, %v6575_v13 }
  0x96   : > { %v275_v14 = vpop.permute.xlu0 %274 }
  0x9a   : > { %v255_v15 = vpop.permute.xlu0 %254 }
  0x9e   : > { %v7860_v41 = vpop.permute.xlu0 %294 }
  0x9f   : > { %14122 = vst [vmem:[#allocation12_spill] sm:$0xff] %v7860_v41 }
  0xf7   : > { %v415_v16 = vpop.f32.mrb[0].mxu0 }
  0xf8   : > { %v417_v17 = vpop.f32.mrb[1].mxu0  ;;  %v416_v18 = vadd.f32 %v415_v16, %v255_v15 }
  0xf9   : > { %v7826_v19 = vpop.f32.mrb[2].mxu0  ;;  %v418_v20 = vadd.f32 %v417_v17, %v255_v15 }
  0xfa   : > { %v7828_v21 = vpop.f32.mrb[3].mxu0  ;;  %v7830_v22 = vpack.c.bf16 %v416_v18, %v416_v18 }
  0xfb   : > { %v7832_v23 = vpack.c.bf16 %v418_v20, %v418_v20 }
  0xfc   : > { %14115 = vst [vmem:[#allocation5_spill] sm:$0xff] %v7830_v22  ;;  %v563_v24 = vsel %vm561_vm1, %v7830_v22, 0 }
  0xfd   : > { %14116 = vst [vmem:[#allocation6_spill] sm:$0xff] %v7832_v23  ;;  %6373 = vmatprep.subr.msk.bf16.mxu1 %vm561_vm1, %v7832_v23 }
  0xfe   : > { %569 = vmatpush1.bf16.msra.mxu1 %v563_v24 }
  0xff   : > { %v7838_v25 = vpop.f32.mrb[4].mxu0 }
 0x100   : > { %v7840_v26 = vpop.f32.mrb[5].mxu0 }
 0x101   : > { %v7842_v27 = vpop.f32.mrb[6].mxu0 }
 0x102   : > { %14117 = vst [vmem:[#allocation7_spill] sm:$0xff] %v7842_v27  ;;  %v7844_v28 = vpop.f32.mrb[7].mxu0 }
 0x103   : > { %14118 = vst [vmem:[#allocation8_spill] sm:$0xff] %v7844_v28 }
 0x107   : > { %v435_v29 = vpop.f32.mrb[8].mxu0 }
 0x108   : > { %v437_v30 = vpop.f32.mrb[9].mxu0  ;;  %v436_v31 = vadd.f32 %v435_v29, %v275_v14 }
 0x109   : > { %v7846_v32 = vpop.f32.mrb[10].mxu0  ;;  %v438_v45 = vadd.f32 %v437_v30, %v275_v14 }
 0x10a   : > { %v7848_v33 = vpop.f32.mrb[11].mxu0  ;;  %v476_v34 = vpack.c.bf16 %v436_v31, %v436_v31  ;;  %v249_v31 = vld [vmem:[%s13738_s2 + $0x48] sm:$0xff] }
 0x10b   : > { %v477_v46 = vpack.c.bf16 %v438_v45, %v438_v45 }
 0x10c   : > { %480 = vxpose.xlu1.c.b16.start.end [1/1] (short) %v476_v34, 128  ;;  %v1180_v35 = vrot.slane %v476_v34, 2 }
 0x10d   : > { %v1181_v48 = vrot.slane %v477_v46, 2 }
 0x10e   : > { %1184 = vxpose.xlu0.c.b16.start.end [1/1] (short) %v1180_v35, 128 }
 0x10f   : > { %v7850_v36 = vpop.f32.mrb[12].mxu0 }
 0x110   : > { %v7852_v37 = vpop.f32.mrb[13].mxu0 }
 0x111   : > { %v7854_v38 = vpop.f32.mrb[14].mxu0 }
 0x112   : > { %14119 = vst [vmem:[#allocation9_spill] sm:$0xff] %v7854_v38  ;;  %v7856_v39 = vpop.f32.mrb[15].mxu0 }
 0x113   : > { %14120 = vst [vmem:[#allocation10_spill] sm:$0xff] %v7856_v39 }
 0x117   : > { %v7858_v40 = vpop.f32.mrb[16].mxu0 }
 0x118   : > { %14121 = vst [vmem:[#allocation11_spill] sm:$0xff] %v7858_v40  ;;  %v457_v42 = vpop.f32.mrb[17].mxu0 }
 0x119   : > { %v458_v43 = vadd.f32 %v457_v42, %v7860_v41 }
 0x11b   : > { %v7863_v44 = vpack.c.bf16 %v458_v43, %v458_v43 }
 0x11d   : > { %1165 = vmatprep.mubr.bf16.mxu0 %v7863_v44 }
 0x129   : > { %496 = vxpose.xlu1.c.b16.start.end [1/1] (short) %v477_v46, 128  ;;  %v1842_v46 = vrot.slane %v7863_v44, 2 }
 0x133   : > { %279 = vperm.xlu0 %6562, %v245_v47   ;;  %v246_v47 = vld [vmem:[%s13738_s2 + $0x30] sm:$0xff] }
 0x146   : > { %1200 = vxpose.xlu1.c.b16.start.end [1/1] (short) %v1181_v48, 128 }
 0x14a   : > { %6563 = vset.pattern.permute.xlu1 %v13742_v0 }
 0x166   : > { %259 = vperm.xlu1 %6563, %v241_v49  }
 0x172   : > { %v488_v50 = vpop.trf.xlu1 }
 0x173   : > { %6374 = vmatmul.mubr.msk.bf16.vlgmr.msra.gmra.mrb[0].mxu1 %vm512_vm2, %v488_v50 }
 0x174   : > { %610 = vmatprep.mubr.bf16.mxu1 %v13742_v0  ;;  %v7877_v55 = vpop.trf.xlu0 }
 0x175   : > { %14123 = vst [vmem:[#allocation13_spill] sm:$0xff] %v7877_v55 }
 0x176   : > { %v489_v51 = vpop.trf.xlu1 }
 0x178   : > { %v7881_v57 = vpop.trf.xlu0 }
 0x179   : > { %14124 = vst [vmem:[#allocation14_spill] sm:$0xff] %v7881_v57 }
 0x17a   : > { %v490_v52 = vpop.trf.xlu1 }
 0x17b   : > { %6375 = vmatmul.mubr.msk.bf16.gmra.mrb[4].mxu1 %vm512_vm2, %v489_v51 }
 0x17c   : > { %620 = vmatprep.mubr.bf16.mxu1 %v13742_v0  ;;  %v7885_v59 = vpop.trf.xlu0 }
 0x17d   : > { %14125 = vst [vmem:[#allocation15_spill] sm:$0xff] %v7885_v59 }
 0x17e   : > { %v491_v53 = vpop.trf.xlu1 }
 0x180   : > { %v7889_v62 = vpop.trf.xlu0 }
 0x181   : > { %14126 = vst [vmem:[#allocation16_spill] sm:$0xff] %v7889_v62 }
 0x182   : > { %v492_v54 = vpop.trf.xlu1 }
 0x183   : > { %6376 = vmatmul.mubr.msk.bf16.gmra.mrb[8].mxu1 %vm512_vm2, %v490_v52 }
 0x184   : > { %630 = vmatprep.mubr.bf16.mxu1 %v13742_v0  ;;  %v7891_v1 = vpop.trf.xlu0 }
 0x185   : > { %14127 = vst [vmem:[#allocation17_spill] sm:$0xff] %v7891_v1 }
 0x186   : > { %v493_v56 = vpop.trf.xlu1 }
 0x188   : > { %v7895_v4 = vpop.trf.xlu0 }
 0x189   : > { %14128 = vst [vmem:[#allocation18_spill] sm:$0xff] %v7895_v4 }
 0x18a   : > { %v494_v58 = vpop.trf.xlu1 }
 0x18b   : > { %6377 = vmatmul.mubr.msk.bf16.gmra.mrb[12].mxu1 %vm512_vm2, %v491_v53 }
 0x18c   : > { %640 = vmatprep.mubr.bf16.mxu1 %v13742_v0  ;;  %v7899_v6 = vpop.trf.xlu0 }
 0x18d   : > { %14129 = vst [vmem:[#allocation19_spill] sm:$0xff] %v7899_v6 }
 0x18e   : > { %v495_v60 = vpop.trf.xlu1 }
 0x190   : > { %v7902_v9 = vpop.trf.xlu0 }
 0x191   : > { %14130 = vst [vmem:[#allocation20_spill] sm:$0xff] %v7902_v9 }
 0x192   : > { %v504_v61 = vpop.trf.xlu1 }
 0x193   : > { %6378 = vmatmul.mubr.msk.bf16.gmra.mrb[16].mxu1 %vm512_vm2, %v492_v54 }
 0x194   : > { %650 = vmatprep.mubr.bf16.mxu1 %v13742_v0 }
 0x196   : > { %v505_v63 = vpop.trf.xlu1 }
 0x19a   : > { %v506_v2 = vpop.trf.xlu1 }
 0x19b   : > { %6379 = vmatmul.mubr.msk.bf16.gmra.mrb[20].mxu1 %vm512_vm2, %v493_v56 }
 0x19c   : > { %660 = vmatprep.mubr.bf16.mxu1 %v13742_v0 }
 0x19e   : > { %v507_v3 = vpop.trf.xlu1 }
 0x1a2   : > { %v508_v5 = vpop.trf.xlu1 }
 0x1a3   : > { %6380 = vmatmul.mubr.msk.bf16.gmra.mrb[24].mxu1 %vm512_vm2, %v494_v58 }
 0x1a4   : > { %670 = vmatprep.mubr.bf16.mxu1 %v13742_v0 }
 0x1a6   : > { %v509_v7 = vpop.trf.xlu1 }
 0x1aa   : > { %v510_v8 = vpop.trf.xlu1 }
 0x1ab   : > { %6381 = vmatmul.mubr.msk.bf16.gmra.mrb[28].mxu1 %vm512_vm2, %v495_v60 }
 0x1ac   : > { %680 = vmatprep.mubr.bf16.mxu1 %v13742_v0 }
 0x1ae   : > { %v511_v10 = vpop.trf.xlu1 }
 0x1b2   : > { %v280_v11 = vpop.permute.xlu0 %279  ;;  %v7909_v16 = vpop.trf.xlu1 }
 0x1b3   : > { %v440_v12 = vadd.f32 %v7846_v32, %v280_v11  ;;  %v442_v13 = vadd.f32 %v7848_v33, %v280_v11  ;;  %6382 = vmatmul.mubr.msk.bf16.gmra.mrb[32].mxu1 %vm512_vm2, %v504_v61  ;;  %14131 = vst [vmem:[#allocation21_spill] sm:$0xff] %v7909_v16  ;;  %v459_v33 = vpop.f32.mrb[18].mxu0 }
 0x1b4   : > { %690 = vmatprep.mubr.bf16.mxu1 %v13742_v0  ;;  %v461_v34 = vpop.f32.mrb[19].mxu0 }
 0x1b5   : > { %v1892_v14 = vpack.c.bf16 %v440_v12, %v440_v12  ;;  %v1893_v15 = vpack.c.bf16 %v442_v13, %v442_v13 }
 0x1b6   : > { %v7912_v17 = vpop.trf.xlu1 }
 0x1b7   : > { %1912 = vxpose.xlu1.c.b16.start.end [1/1] (short) %v1893_v15, 128  ;;  %1896 = vxpose.xlu0.c.b16.start.end [1/1] (short) %v1892_v14, 128  ;;  %14132 = vst [vmem:[#allocation22_spill] sm:$0xff] %v7912_v17  ;;  %v2594_v29 = vrot.slane %v1892_v14, 2  ;;  %v2595_v48 = vrot.slane %v1893_v15, 2 }
 0x1ba   : > { %v7915_v18 = vpop.trf.xlu1 }
 0x1bb   : > { %6383 = vmatmul.mubr.msk.bf16.gmra.mrb[36].mxu1 %vm512_vm2, %v505_v63  ;;  %14133 = vst [vmem:[#allocation23_spill] sm:$0xff] %v7915_v18 }
 0x1bc   : > { %700 = vmatprep.mubr.bf16.mxu1 %v13742_v0 }
 0x1be   : > { %v7919_v20 = vpop.trf.xlu1 }
 0x1bf   : > { %14134 = vst [vmem:[#allocation24_spill] sm:$0xff] %v7919_v20 }
 0x1c2   : > { %v7923_v24 = vpop.trf.xlu1 }
 0x1c3   : > { %6384 = vmatmul.mubr.msk.bf16.gmra.mrb[40].mxu1 %vm512_vm2, %v506_v2  ;;  %14135 = vst [vmem:[#allocation25_spill] sm:$0xff] %v7923_v24 }
 0x1c4   : > { %710 = vmatprep.mubr.bf16.mxu1 %v13742_v0 }
 0x1c6   : > { %v7926_v30 = vpop.trf.xlu1 }
 0x1c7   : > { %14136 = vst [vmem:[#allocation26_spill] sm:$0xff] %v7926_v30 }
 0x1ca   : > { %v7932_v32 = vpop.trf.xlu1 }
 0x1cb   : > { %6385 = vmatmul.mubr.msk.bf16.gmra.mrb[44].mxu1 %vm512_vm2, %v507_v3  ;;  %14137 = vst [vmem:[#allocation27_spill] sm:$0xff] %v7932_v32 }
 0x1cc   : > { %720 = vmatprep.mubr.bf16.mxu1 %v13742_v0 }
 0x1ce   : > { %v7936_v35 = vpop.trf.xlu1 }
 0x1cf   : > { %14138 = vst [vmem:[#allocation28_spill] sm:$0xff] %v7936_v35 }
 0x1d3   : > { %6386 = vmatmul.mubr.msk.bf16.gmra.mrb[48].mxu1 %vm512_vm2, %v508_v5 }
 0x1d4   : > { %2598 = vxpose.xlu1.c.b16.start.end [1/1] (short) %v2594_v29, 128  ;;  %730 = vmatprep.mubr.bf16.mxu1 %v13742_v0 }
 0x1db   : > { %6387 = vmatmul.mubr.msk.bf16.gmra.mrb[52].mxu1 %vm512_vm2, %v509_v7 }
 0x1dc   : > { %299 = vperm.xlu0 %6562, %v249_v31   ;;  %740 = vmatprep.mubr.bf16.mxu1 %v13742_v0 }
 0x1e3   : > { %6388 = vmatmul.mubr.msk.bf16.gmra.mrb[56].mxu1 %vm512_vm2, %v510_v8 }
 0x1e4   : > { %750 = vmatprep.mubr.bf16.mxu1 %v13742_v0 }
 0x1e5   : > { %v260_v42 = vpop.permute.xlu1 %259 }
 0x1e6   : > { %v7941_v43 = vadd.f32 %v7826_v19, %v260_v42  ;;  %v7944_v45 = vadd.f32 %v7828_v21, %v260_v42  ;;  %v242_v19 = vld [vmem:[%s13738_s2 + $0x10] sm:$0xff] }
 0x1e8   : > { %14139 = vst [vmem:[#allocation29_spill] sm:$0xff] %v7941_v43  ;;  %14140 = vst [vmem:[#allocation30_spill] sm:$0xff] %v7944_v45 }
 0x1eb   : > { %6389 = vmatmul.mubr.msk.bf16.gmra.mrb[60].mxu1 %vm512_vm2, %v511_v10 }
 0x1ec   : > { %1877 = vmatprep.mubr.bf16.mxu1 %v1842_v46 }
 0x1f4   : > { %284 = vperm.xlu1 %6563, %v246_v47  }
 0x1fa   : > { %2614 = vxpose.xlu0.c.b16.start.end [1/1] (short) %v2595_v48, 128 }
 0x21d   : > { %v7954_v49 = vpop.trf.xlu1  ;;  %v7962_v51 = vpop.trf.xlu0 }
 0x21e   : > { %14141 = vst [vmem:[#allocation31_spill] sm:$0xff] %v7954_v49  ;;  %14145 = vst [vmem:[#allocation35_spill] sm:$0xff] %v7962_v51 }
 0x21f   : > { %264 = vperm.xlu0 %6562, %v242_v19  }
 0x221   : > { %v7956_v21 = vpop.trf.xlu1  ;;  %v7966_v53 = vpop.trf.xlu0 }
 0x222   : > { %14142 = vst [vmem:[#allocation32_spill] sm:$0xff] %v7956_v21  ;;  %14147 = vst [vmem:[#allocation37_spill] sm:$0xff] %v7966_v53 }
 0x225   : > { %v7958_v44 = vpop.trf.xlu1  ;;  %v7970_v56 = vpop.trf.xlu0 }
 0x226   : > { %14143 = vst [vmem:[#allocation33_spill] sm:$0xff] %v7958_v44  ;;  %14149 = vst [vmem:[#allocation39_spill] sm:$0xff] %v7970_v56 }
 0x229   : > { %v7960_v50 = vpop.trf.xlu1  ;;  %v7974_v60 = vpop.trf.xlu0 }
 0x22a   : > { %14144 = vst [vmem:[#allocation34_spill] sm:$0xff] %v7960_v50  ;;  %14151 = vst [vmem:[#allocation41_spill] sm:$0xff] %v7974_v60 }
 0x22d   : > { %v7964_v52 = vpop.trf.xlu1  ;;  %v7978_v63 = vpop.trf.xlu0 }
 0x22e   : > { %14146 = vst [vmem:[#allocation36_spill] sm:$0xff] %v7964_v52  ;;  %14153 = vst [vmem:[#allocation43_spill] sm:$0xff] %v7978_v63 }
 0x231   : > { %v7968_v54 = vpop.trf.xlu1  ;;  %v7988_v8 = vpop.trf.xlu0 }
 0x232   : > { %14148 = vst [vmem:[#allocation38_spill] sm:$0xff] %v7968_v54  ;;  %14155 = vst [vmem:[#allocation45_spill] sm:$0xff] %v7988_v8 }
 0x235   : > { %v7972_v58 = vpop.trf.xlu1  ;;  %v7996_v13 = vpop.trf.xlu0 }
 0x236   : > { %14150 = vst [vmem:[#allocation40_spill] sm:$0xff] %v7972_v58  ;;  %14157 = vst [vmem:[#allocation47_spill] sm:$0xff] %v7996_v13 }
 0x239   : > { %v7976_v61 = vpop.trf.xlu1  ;;  %v8014_v19 = vpop.trf.xlu0 }
 0x23a   : > { %14152 = vst [vmem:[#allocation42_spill] sm:$0xff] %v7976_v61  ;;  %14159 = vst [vmem:[#allocation49_spill] sm:$0xff] %v8014_v19 }
 0x23d   : > { %v7980_v2 = vpop.trf.xlu1 }
 0x23e   : > { %14154 = vst [vmem:[#allocation44_spill] sm:$0xff] %v7980_v2 }
 0x241   : > { %v7992_v11 = vpop.trf.xlu1 }
 0x242   : > { %14156 = vst [vmem:[#allocation46_spill] sm:$0xff] %v7992_v11 }
 0x245   : > { %v8002_v29 = vpop.trf.xlu1 }
 0x246   : > { %v7982_v3 = vpop.f32.mrb[0].mxu1  ;;  %14158 = vst [vmem:[#allocation48_spill] sm:$0xff] %v8002_v29 }
 0x247   : > { %v7984_v5 = vpop.f32.mrb[1].mxu1 }
 0x248   : > { %v7986_v7 = vpop.f32.mrb[2].mxu1 }
 0x249   : > { %v7990_v10 = vpop.f32.mrb[3].mxu1  ;;  %v8016_v0 = vpop.trf.xlu1 }
 0x24a   : > { %14160 = vst [vmem:[#allocation50_spill] sm:$0xff] %v8016_v0 }
 0x24d   : > { %v8030_v50 = vpop.trf.xlu1 }
 0x24e   : > { %v7994_v12 = vpop.f32.mrb[4].mxu1  ;;  %14161 = vst [vmem:[#allocation51_spill] sm:$0xff] %v8030_v50 }
 0x24f   : > { %v761_v14 = vmax.f32 %v7982_v3, %v7994_v12  ;;  %v8000_v15 = vpop.f32.mrb[5].mxu1 }
 0x250   : > { %v798_v31 = vmax.f32 %v7984_v5, %v8000_v15  ;;  %v8006_v42 = vpop.f32.mrb[6].mxu1 }
 0x251   : > { %v762_v46 = vmax.f32 %v7986_v7, %v8006_v42  ;;  %v8010_v47 = vpop.f32.mrb[7].mxu1  ;;  %v8047_v13 = vpop.trf.xlu1 }
 0x252   : > { %v799_v48 = vmax.f32 %v7990_v10, %v8010_v47  ;;  %14164 = vst [vmem:[#allocation54_spill] sm:$0xff] %v8047_v13 }
 0x255   : > { %v8054_v50 = vpop.trf.xlu1 }
 0x256   : > { %v8018_v28 = vpop.f32.mrb[8].mxu1  ;;  %14165 = vst [vmem:[#allocation55_spill] sm:$0xff] %v8054_v50 }
 0x257   : > { %v763_v27 = vmax.f32 %v761_v14, %v8018_v28  ;;  %v8021_v29 = vpop.f32.mrb[9].mxu1 }
 0x258   : > { %v800_v11 = vmax.f32 %v798_v31, %v8021_v29  ;;  %v8024_v2 = vpop.f32.mrb[10].mxu1 }
 0x259   : > { %v764_v61 = vmax.f32 %v762_v46, %v8024_v2  ;;  %v8027_v58 = vpop.f32.mrb[11].mxu1  ;;  %v8064_v63 = vpop.trf.xlu1 }
 0x25a   : > { %v801_v54 = vmax.f32 %v799_v48, %v8027_v58  ;;  %14166 = vst [vmem:[#allocation56_spill] sm:$0xff] %v8064_v63 }
 0x25b   : > { %v300_v52 = vpop.permute.xlu0 %299 }
 0x25c   : > { %v8032_v0 = vadd.f32 %v459_v33, %v300_v52  ;;  %v8034_v44 = vadd.f32 %v461_v34, %v300_v52 }
 0x25e   : > { %14162 = vst [vmem:[#allocation52_spill] sm:$0xff] %v8032_v0  ;;  %14163 = vst [vmem:[#allocation53_spill] sm:$0xff] %v8034_v44  ;;  %v8036_v14 = vpop.f32.mrb[12].mxu1 }
 0x25f   : > { %v765_v21 = vmax.f32 %v763_v27, %v8036_v14  ;;  %v8039_v31 = vpop.f32.mrb[13].mxu1 }
 0x260   : > { %v802_v49 = vmax.f32 %v800_v11, %v8039_v31  ;;  %v8042_v46 = vpop.f32.mrb[14].mxu1  ;;  %v8068_v60 = vpop.trf.xlu0 }
 0x261   : > { %v766_v19 = vmax.f32 %v764_v61, %v8042_v46  ;;  %v8045_v48 = vpop.f32.mrb[15].mxu1  ;;  %14167 = vst [vmem:[#allocation57_spill] sm:$0xff] %v8068_v60 }
 0x262   : > { %v803_v33 = vmax.f32 %v801_v54, %v8045_v48 }
 0x264   : > { %v8082_v60 = vpop.trf.xlu0 }
 0x265   : > { %14169 = vst [vmem:[#allocation59_spill] sm:$0xff] %v8082_v60 }
 0x266   : > { %v8050_v34 = vpop.f32.mrb[16].mxu1 }
 0x267   : > { %v8052_v52 = vpop.f32.mrb[17].mxu1  ;;  %v767_v27 = vmax.f32 %v765_v21, %v8050_v34 }
 0x268   : > { %v8057_v0 = vpop.f32.mrb[18].mxu1  ;;  %v804_v11 = vmax.f32 %v802_v49, %v8052_v52 }
 0x269   : > { %v8060_v8 = vpop.f32.mrb[19].mxu1  ;;  %v768_v61 = vmax.f32 %v766_v19, %v8057_v0 }
 0x26a   : > { %v805_v13 = vmax.f32 %v803_v33, %v8060_v8 }
 0x26e   : > { %v8066_v54 = vpop.f32.mrb[20].mxu1 }
 0x26f   : > { %v8070_v56 = vpop.f32.mrb[21].mxu1  ;;  %v769_v21 = vmax.f32 %v767_v27, %v8066_v54 }
 0x270   : > { %v8073_v50 = vpop.f32.mrb[22].mxu1  ;;  %v806_v49 = vmax.f32 %v804_v11, %v8070_v56 }
 0x271   : > { %v8076_v53 = vpop.f32.mrb[23].mxu1  ;;  %v770_v19 = vmax.f32 %v768_v61, %v8073_v50 }
 0x272   : > { %14168 = vst [vmem:[#allocation58_spill] sm:$0xff] %v8076_v53  ;;  %v807_v33 = vmax.f32 %v805_v13, %v8076_v53 }
 0x273   : > { %v285_v51 = vpop.permute.xlu1 %284 }
 0x274   : > { %v446_v63 = vadd.f32 %v7850_v36, %v285_v51  ;;  %v448_v45 = vadd.f32 %v7852_v37, %v285_v51  ;;  %v8099_v51 = vpop.trf.xlu0 }
 0x275   : > { %14172 = vst [vmem:[#allocation62_spill] sm:$0xff] %v8099_v51 }
 0x276   : > { %v3306_v43 = vpack.c.bf16 %v446_v63, %v446_v63  ;;  %v8084_v35 = vpack.c.bf16 %v448_v45, %v448_v45  ;;  %v8086_v27 = vpop.f32.mrb[24].mxu1 }
 0x277   : > { %v771_v11 = vmax.f32 %v769_v21, %v8086_v27  ;;  %v8089_v44 = vpop.f32.mrb[25].mxu1 }
 0x278   : > { %14170 = vst [vmem:[#allocation60_spill] sm:$0xff] %v8089_v44  ;;  %v808_v61 = vmax.f32 %v806_v49, %v8089_v44  ;;  %3326 = vxpose.xlu0.c.b16.start.end [1/1] (short) %v8084_v35, 128  ;;  %3310 = vxpose.xlu1.c.b16.start.end [1/1] (short) %v3306_v43, 128  ;;  %v8093_v13 = vpop.f32.mrb[26].mxu1  ;;  %v8109_v30 = vpop.trf.xlu0 }
 0x279   : > { %v772_v36 = vmax.f32 %v770_v19, %v8093_v13  ;;  %v8096_v37 = vpop.f32.mrb[27].mxu1  ;;  %14174 = vst [vmem:[#allocation64_spill] sm:$0xff] %v8109_v30 }
 0x27a   : > { %14171 = vst [vmem:[#allocation61_spill] sm:$0xff] %v8096_v37  ;;  %v809_v45 = vmax.f32 %v807_v33, %v8096_v37 }
 0x27c   : > { %v8117_v51 = vpop.trf.xlu0 }
 0x27d   : > { %14176 = vst [vmem:[#allocation66_spill] sm:$0xff] %v8117_v51 }
 0x27e   : > { %v8101_v63 = vpop.f32.mrb[28].mxu1 }
 0x27f   : > { %v773_v21 = vmax.f32 %v771_v11, %v8101_v63  ;;  %v8104_v60 = vpop.f32.mrb[29].mxu1 }
 0x280   : > { %14173 = vst [vmem:[#allocation63_spill] sm:$0xff] %v8104_v60  ;;  %v810_v49 = vmax.f32 %v808_v61, %v8104_v60  ;;  %v8107_v32 = vpop.f32.mrb[30].mxu1  ;;  %v8129_v9 = vpop.trf.xlu0 }
 0x281   : > { %v774_v19 = vmax.f32 %v772_v36, %v8107_v32  ;;  %v8112_v24 = vpop.f32.mrb[31].mxu1  ;;  %14179 = vst [vmem:[#allocation69_spill] sm:$0xff] %v8129_v9 }
 0x282   : > { %14175 = vst [vmem:[#allocation65_spill] sm:$0xff] %v8112_v24  ;;  %v811_v33 = vmax.f32 %v809_v45, %v8112_v24 }
 0x286   : > { %v8115_v20 = vpop.f32.mrb[32].mxu1 }
 0x287   : > { %v775_v11 = vmax.f32 %v773_v21, %v8115_v20  ;;  %v8120_v18 = vpop.f32.mrb[33].mxu1 }
 0x288   : > { %14177 = vst [vmem:[#allocation67_spill] sm:$0xff] %v8120_v18  ;;  %v812_v61 = vmax.f32 %v810_v49, %v8120_v18  ;;  %v8123_v17 = vpop.f32.mrb[34].mxu1 }
 0x289   : > { %v776_v30 = vmax.f32 %v774_v19, %v8123_v17  ;;  %v8126_v16 = vpop.f32.mrb[35].mxu1  ;;  %v4008_v19 = vrot.slane %v3306_v43, 2 }
 0x28a   : > { %14178 = vst [vmem:[#allocation68_spill] sm:$0xff] %v8126_v16  ;;  %v813_v36 = vmax.f32 %v811_v33, %v8126_v16  ;;  %v8143_v33 = vpop.trf.xlu0 }
 0x28b   : > { %14182 = vst [vmem:[#allocation72_spill] sm:$0xff] %v8143_v33 }
 0x28e   : > { %v8131_v45 = vpop.f32.mrb[36].mxu1  ;;  %v8156_v43 = vpop.trf.xlu0 }
 0x28f   : > { %v777_v51 = vmax.f32 %v775_v11, %v8131_v45  ;;  %v8134_v6 = vpop.f32.mrb[37].mxu1  ;;  %v250_v11 = vld [vmem:[%s13738_s2 + $0x50] sm:$0xff]  ;;  %14184 = vst [vmem:[#allocation74_spill] sm:$0xff] %v8156_v43 }
 0x290   : > { %14180 = vst [vmem:[#allocation70_spill] sm:$0xff] %v8134_v6  ;;  %v814_v21 = vmax.f32 %v812_v61, %v8134_v6  ;;  %v8137_v4 = vpop.f32.mrb[38].mxu1 }
 0x291   : > { %v778_v49 = vmax.f32 %v776_v30, %v8137_v4  ;;  %v8140_v1 = vpop.f32.mrb[39].mxu1 }
 0x292   : > { %14181 = vst [vmem:[#allocation71_spill] sm:$0xff] %v8140_v1  ;;  %v815_v62 = vmax.f32 %v813_v36, %v8140_v1 }
 0x295   : > { %4012 = vxpose.xlu0.c.b16.start.end [1/1] (short) %v4008_v19, 128 }
 0x296   : > { %v8148_v9 = vpop.f32.mrb[40].mxu1 }
 0x297   : > { %v779_v61 = vmax.f32 %v777_v51, %v8148_v9  ;;  %v8151_v59 = vpop.f32.mrb[41].mxu1 }
 0x298   : > { %14183 = vst [vmem:[#allocation73_spill] sm:$0xff] %v8151_v59  ;;  %v816_v30 = vmax.f32 %v814_v21, %v8151_v59  ;;  %304 = vperm.xlu1 %6563, %v250_v11   ;;  %v8154_v57 = vpop.f32.mrb[42].mxu1 }
 0x299   : > { %v780_v36 = vmax.f32 %v778_v49, %v8154_v57  ;;  %v8159_v19 = vpop.f32.mrb[43].mxu1 }
 0x29a   : > { %14185 = vst [vmem:[#allocation75_spill] sm:$0xff] %v8159_v19  ;;  %v817_v33 = vmax.f32 %v815_v62, %v8159_v19 }
 0x29e   : > { %v265_v55 = vpop.permute.xlu0 %264  ;;  %v8162_v22 = vpop.f32.mrb[44].mxu1 }
 0x29f   : > { %v8165_v51 = vadd.f32 %v7838_v25, %v265_v55  ;;  %v8168_v23 = vadd.f32 %v7840_v26, %v265_v55  ;;  %v781_v21 = vmax.f32 %v779_v61, %v8162_v22  ;;  %v8171_v11 = vpop.f32.mrb[45].mxu1 }
 0x2a0   : > { %14188 = vst [vmem:[#allocation78_spill] sm:$0xff] %v8171_v11  ;;  %v818_v43 = vmax.f32 %v816_v30, %v8171_v11  ;;  %v8174_v49 = vpop.f32.mrb[46].mxu1 }
 0x2a1   : > { %14186 = vst [vmem:[#allocation76_spill] sm:$0xff] %v8165_v51  ;;  %14187 = vst [vmem:[#allocation77_spill] sm:$0xff] %v8168_v23  ;;  %v782_v40 = vmax.f32 %v780_v36, %v8174_v49  ;;  %v8177_v62 = vpop.f32.mrb[47].mxu1 }
 0x2a2   : > { %14189 = vst [vmem:[#allocation79_spill] sm:$0xff] %v8177_v62  ;;  %v819_v41 = vmax.f32 %v817_v33, %v8177_v62 }
 0x2a6   : > { %v8180_v39 = vpop.f32.mrb[48].mxu1 }
 0x2a7   : > { %v783_v25 = vmax.f32 %v781_v21, %v8180_v39  ;;  %v8183_v26 = vpop.f32.mrb[49].mxu1 }
 0x2a8   : > { %14190 = vst [vmem:[#allocation80_spill] sm:$0xff] %v8183_v26  ;;  %v820_v55 = vmax.f32 %v818_v43, %v8183_v26  ;;  %v8186_v61 = vpop.f32.mrb[50].mxu1 }
 0x2a9   : > { %v784_v30 = vmax.f32 %v782_v40, %v8186_v61  ;;  %v8189_v23 = vpop.f32.mrb[51].mxu1 }
 0x2aa   : > { %14191 = vst [vmem:[#allocation81_spill] sm:$0xff] %v8189_v23  ;;  %v821_v36 = vmax.f32 %v819_v41, %v8189_v23  ;;  %v4009_v41 = vrot.slane %v8084_v35, 2 }
 0x2ae   : > { %v8192_v51 = vpop.f32.mrb[52].mxu1 }
 0x2af   : > { %v785_v33 = vmax.f32 %v783_v25, %v8192_v51  ;;  %v8195_v38 = vpop.f32.mrb[53].mxu1  ;;  %v247_v25 = vld [vmem:[%s13738_s2 + $0x38] sm:$0xff] }
 0x2b0   : > { %14192 = vst [vmem:[#allocation82_spill] sm:$0xff] %v8195_v38  ;;  %v822_v21 = vmax.f32 %v820_v55, %v8195_v38  ;;  %v8198_v62 = vpop.f32.mrb[54].mxu1 }
 0x2b1   : > { %v786_v43 = vmax.f32 %v784_v30, %v8198_v62  ;;  %v8201_v26 = vpop.f32.mrb[55].mxu1 }
 0x2b2   : > { %14193 = vst [vmem:[#allocation83_spill] sm:$0xff] %v8201_v26  ;;  %v823_v40 = vmax.f32 %v821_v36, %v8201_v26 }
 0x2b6   : > { %v8204_v11 = vpop.f32.mrb[56].mxu1 }
 0x2b7   : > { %v787_v23 = vmax.f32 %v785_v33, %v8204_v11  ;;  %v8208_v19 = vpop.f32.mrb[57].mxu1 }
 0x2b8   : > { %14194 = vst [vmem:[#allocation84_spill] sm:$0xff] %v8208_v19  ;;  %v824_v55 = vmax.f32 %v822_v21, %v8208_v19  ;;  %v8214_v38 = vpop.f32.mrb[58].mxu1 }
 0x2b9   : > { %v788_v30 = vmax.f32 %v786_v43, %v8214_v38  ;;  %v8217_v59 = vpop.f32.mrb[59].mxu1 }
 0x2ba   : > { %14195 = vst [vmem:[#allocation85_spill] sm:$0xff] %v8217_v59  ;;  %v825_v36 = vmax.f32 %v823_v40, %v8217_v59  ;;  %289 = vperm.xlu0 %6562, %v247_v25  }
 0x2bb   : > { %4028 = vxpose.xlu1.c.b16.start.end [1/1] (short) %v4009_v41, 128 }
 0x2be   : > { %v8220_v35 = vpop.f32.mrb[60].mxu1 }
 0x2bf   : > { %v789_v33 = vmax.f32 %v787_v23, %v8220_v35  ;;  %v8223_v26 = vpop.f32.mrb[61].mxu1 }
 0x2c0   : > { %14196 = vst [vmem:[#allocation86_spill] sm:$0xff] %v8223_v26  ;;  %v826_v1 = vmax.f32 %v824_v55, %v8223_v26  ;;  %v8226_v6 = vpop.f32.mrb[62].mxu1 }
 0x2c1   : > { %v790_v21 = vmax.f32 %v788_v30, %v8226_v6  ;;  %v8229_v19 = vpop.f32.mrb[63].mxu1 }
 0x2c2   : > { %14197 = vst [vmem:[#allocation87_spill] sm:$0xff] %v8229_v19  ;;  %v827_v43 = vmax.f32 %v825_v36, %v8229_v19 }
 0x2c3   : > { %v791_v16 = vmax.f32 %v789_v33, %v790_v21 }
 0x2c4   : > { %v828_v40 = vmax.f32 %v826_v1, %v827_v43 }
 0x2c5   : > { %v792_v25 = vrot.slane %v791_v16, 4 }
 0x2c6   : > { %v829_v41 = vrot.slane %v828_v40, 4 }
 0x2c7   : > { %v793_v59 = vmax.f32 %v791_v16, %v792_v25 }
 0x2c8   : > { %v830_v18 = vmax.f32 %v828_v40, %v829_v41 }
 0x2c9   : > { %v794_v24 = vrot.slane %v793_v59, 2 }
 0x2ca   : > { %v831_v23 = vrot.slane %v830_v18, 2 }
 0x2cb   : > { %v795_v60 = vmax.f32 %v793_v59, %v794_v24 }
 0x2cc   : > { %v832_v37 = vmax.f32 %v830_v18, %v831_v23 }
 0x2cd   : > { %v796_v44 = vrot.slane %v795_v60, 1 }
 0x2ce   : > { %v833_v55 = vrot.slane %v832_v37, 1 }
 0x2cf   : > { %v8232_v26 = vmax.f32 %v795_v60, %v796_v44 }
 0x2d0   : > { %v8234_v53 = vmax.f32 %v832_v37, %v833_v55 }
 0x2d1   : > { %v835_v30 = vsub.f32 %v7982_v3, %v8232_v26  ;;  %v837_v1 = vsub.f32 %v7986_v7, %v8232_v26  ;;  %v839_v16 = vsub.f32 %v7994_v12, %v8232_v26  ;;  %v841_v36 = vsub.f32 %v8006_v42, %v8232_v26 }
 0x2d2   : > { %v843_v59 = vsub.f32 %v8018_v28, %v8232_v26  ;;  %v845_v18 = vsub.f32 %v8024_v2, %v8232_v26  ;;  %v847_v24 = vsub.f32 %v8036_v14, %v8232_v26  ;;  %v849_v44 = vsub.f32 %v8042_v46, %v8232_v26 }
 0x2d3   : > { %v851_v60 = vsub.f32 %v8050_v34, %v8232_v26  ;;  %v853_v3 = vsub.f32 %v8057_v0, %v8232_v26  ;;  %v855_v7 = vsub.f32 %v8066_v54, %v8232_v26  ;;  %v857_v28 = vsub.f32 %v8073_v50, %v8232_v26 }
 0x2d4   : > { %v859_v2 = vsub.f32 %v8086_v27, %v8232_v26  ;;  %v861_v12 = vsub.f32 %v8093_v13, %v8232_v26  ;;  %v863_v42 = vsub.f32 %v8101_v63, %v8232_v26  ;;  %v865_v14 = vsub.f32 %v8107_v32, %v8232_v26 }
 0x2d5   : > { %v867_v0 = vsub.f32 %v8115_v20, %v8232_v26  ;;  %v869_v46 = vsub.f32 %v8123_v17, %v8232_v26  ;;  %v871_v50 = vsub.f32 %v8131_v45, %v8232_v26  ;;  %v873_v34 = vsub.f32 %v8137_v4, %v8232_v26  ;;  %v243_v45 = vld [vmem:[%s13738_s2 + $0x18] sm:$0xff]  ;;  %v14220_v4 = vld [vmem:[#allocation85_spill] sm:$0xff] }
 0x2d6   : > { %v875_v54 = vsub.f32 %v8148_v9, %v8232_v26  ;;  %v877_v27 = vsub.f32 %v8154_v57, %v8232_v26  ;;  %v879_v32 = vsub.f32 %v8162_v22, %v8232_v26  ;;  %v881_v20 = vsub.f32 %v8174_v49, %v8232_v26  ;;  %v14213_v57 = vld [vmem:[#allocation79_spill] sm:$0xff] }
 0x2d7   : > { %v899_v49 = vmul.f32 1.442695, %v835_v30  ;;  %v903_v33 = vmul.f32 1.442695, %v837_v1  ;;  %v907_v21 = vmul.f32 1.442695, %v839_v16 }
 0x2d8   : > { %v911_v40 = vmul.f32 1.442695, %v841_v36  ;;  %v915_v41 = vmul.f32 1.442695, %v843_v59  ;;  %v919_v23 = vmul.f32 1.442695, %v845_v18 }
 0x2d9   : > { %6578 = vpow2.f32 %v899_v49  ;;  %v923_v55 = vmul.f32 1.442695, %v847_v24  ;;  %v927_v63 = vmul.f32 1.442695, %v849_v44  ;;  %v931_v37 = vmul.f32 1.442695, %v851_v60 }
 0x2da   : > { %6580 = vpow2.f32 %v903_v33  ;;  %v935_v30 = vmul.f32 1.442695, %v853_v3  ;;  %v939_v16 = vmul.f32 1.442695, %v855_v7  ;;  %v943_v43 = vmul.f32 1.442695, %v857_v28 }
 0x2db   : > { %269 = vperm.xlu1 %6563, %v243_v45   ;;  %6582 = vpow2.f32 %v907_v21  ;;  %v947_v36 = vmul.f32 1.442695, %v859_v2  ;;  %v951_v22 = vmul.f32 1.442695, %v861_v12  ;;  %v955_v25 = vmul.f32 1.442695, %v863_v42 }
 0x2dc   : > { %6584 = vpow2.f32 %v911_v40  ;;  %v959_v49 = vmul.f32 1.442695, %v865_v14  ;;  %v963_v59 = vmul.f32 1.442695, %v867_v0  ;;  %v967_v45 = vmul.f32 1.442695, %v869_v46 }
 0x2dd   : > { %6586 = vpow2.f32 %v915_v41  ;;  %v971_v18 = vmul.f32 1.442695, %v871_v50  ;;  %v975_v24 = vmul.f32 1.442695, %v873_v34  ;;  %v8309_v33 = vmul.f32 1.442695, %v875_v54 }
 0x2de   : > { %v8307_v1 = vpop.trf.xlu0  ;;  %6588 = vpow2.f32 %v919_v23  ;;  %v8311_v44 = vmul.f32 1.442695, %v877_v27  ;;  %v8315_v3 = vmul.f32 1.442695, %v879_v32  ;;  %v8317_v7 = vmul.f32 1.442695, %v881_v20 }
 0x2df   : > { %14198 = vst [vmem:[#allocation88_spill] sm:$0xff] %v8307_v1  ;;  %6590 = vpow2.f32 %v923_v55  ;;  %v14200_v32 = vld [vmem:[#allocation58_spill] sm:$0xff]  ;;  %v14202_v40 = vld [vmem:[#allocation60_spill] sm:$0xff]  ;;  %v14203_v41 = vld [vmem:[#allocation61_spill] sm:$0xff] }
 0x2e0   : > { %6592 = vpow2.f32 %v927_v63  ;;  %v14205_v20 = vld [vmem:[#allocation65_spill] sm:$0xff]  ;;  %v14207_v46 = vld [vmem:[#allocation68_spill] sm:$0xff]  ;;  %v14208_v0 = vld [vmem:[#allocation70_spill] sm:$0xff] }
 0x2e1   : > { %6594 = vpow2.f32 %v931_v37  ;;  %v14210_v12 = vld [vmem:[#allocation73_spill] sm:$0xff]  ;;  %v14211_v2 = vld [vmem:[#allocation75_spill] sm:$0xff]  ;;  %v14212_v23 = vld [vmem:[#allocation78_spill] sm:$0xff] }
 0x2e2   : > { %v8313_v60 = vpop.trf.xlu0  ;;  %6596 = vpow2.f32 %v935_v30  ;;  %v14204_v30 = vld [vmem:[#allocation63_spill] sm:$0xff]  ;;  %v14215_v54 = vld [vmem:[#allocation80_spill] sm:$0xff] }
 0x2e3   : > { %14199 = vst [vmem:[#allocation89_spill] sm:$0xff] %v8313_v60  ;;  %v8327_v14 = vpop.eup %6578  ;;  %6598 = vpow2.f32 %v939_v16  ;;  %v14209_v16 = vld [vmem:[#allocation71_spill] sm:$0xff] }
 0x2e4   : > { %v8335_v34 = vpop.eup %6580  ;;  %6600 = vpow2.f32 %v943_v43 }
 0x2e5   : > { %v8345_v63 = vpop.eup %6582  ;;  %6602 = vpow2.f32 %v947_v36  ;;  %v1027_v21 = vadd.f32 %v8335_v34, %v8327_v14  ;;  %v14206_v36 = vld [vmem:[#allocation67_spill] sm:$0xff] }
 0x2e6   : > { %v8343_v37 = vpop.trf.xlu0  ;;  %v8353_v55 = vpop.eup %6584  ;;  %6604 = vpow2.f32 %v951_v22 }
 0x2e7   : > { %14201 = vst [vmem:[#allocation58_spill] sm:$0xff] %v8343_v37  ;;  %v8361_v50 = vpop.eup %6586  ;;  %6606 = vpow2.f32 %v955_v25  ;;  %v1028_v43 = vadd.f32 %v8345_v63, %v1027_v21  ;;  %v14216_v25 = vld [vmem:[#allocation81_spill] sm:$0xff]  ;;  %v14219_v37 = vld [vmem:[#allocation84_spill] sm:$0xff] }
 0x2e8   : > { %v8368_v42 = vpop.eup %6588  ;;  %6608 = vpow2.f32 %v959_v49  ;;  %v14218_v49 = vld [vmem:[#allocation83_spill] sm:$0xff] }
 0x2e9   : > { %v8376_v28 = vpop.eup %6590  ;;  %6610 = vpow2.f32 %v963_v59  ;;  %v1029_v21 = vadd.f32 %v8353_v55, %v1028_v43  ;;  %v14223_v43 = vsub.f32 %v8186_v61, %v8232_v26  ;;  %v14226_v61 = vsub.f32 %v8198_v62, %v8232_v26 }
 0x2ea   : > { %v8383_v9 = vpop.trf.xlu0  ;;  %v8385_v27 = vpop.eup %6592  ;;  %6612 = vpow2.f32 %v967_v45  ;;  %v14230_v62 = vsub.f32 %v8220_v35, %v8232_v26 }
 0x2eb   : > { %14214 = vst [vmem:[#allocation60_spill] sm:$0xff] %v8383_v9  ;;  %v8393_v17 = vpop.eup %6594  ;;  %6614 = vpow2.f32 %v971_v18  ;;  %v1030_v22 = vadd.f32 %v8361_v50, %v1029_v21  ;;  %v14222_v21 = vsub.f32 %v8180_v39, %v8232_v26  ;;  %v999_v13 = vmul.f32 1.442695, %v14223_v43 }
 0x2ec   : > { %v8400_v60 = vpop.eup %6596  ;;  %6616 = vpow2.f32 %v975_v24 }
 0x2ed   : > { %v8408_v59 = vpop.eup %6598  ;;  %6618 = vpow2.f32 %v8309_v33  ;;  %v995_v45 = vmul.f32 1.442695, %v14222_v21  ;;  %v1031_v9 = vadd.f32 %v8368_v42, %v1030_v22  ;;  %v14224_v33 = vsub.f32 %v8192_v51, %v8232_v26 }
 0x2ee   : > { %v8415_v24 = vpop.eup %6600  ;;  %6620 = vpow2.f32 %v8311_v44  ;;  %v8428_v21 = vpop.trf.xlu0  ;;  %v1007_v44 = vmul.f32 1.442695, %v14226_v61 }
 0x2ef   : > { %v8421_v1 = vpop.eup %6602  ;;  %6622 = vpow2.f32 %v8315_v3  ;;  %v1003_v18 = vmul.f32 1.442695, %v14224_v33  ;;  %v1032_v39 = vadd.f32 %v8376_v28, %v1031_v9  ;;  %14225 = vst [vmem:[#allocation61_spill] sm:$0xff] %v8428_v21  ;;  %v14227_v3 = vsub.f32 %v8204_v11, %v8232_v26 }
 0x2f0   : > { %v8430_v22 = vpop.eup %6604  ;;  %6624 = vpow2.f32 %v8317_v7  ;;  %v14228_v21 = vsub.f32 %v8214_v38, %v8232_v26 }
 0x2f1   : > { %v8436_v43 = vpop.eup %6606  ;;  %6626 = vpow2.f32 %v995_v45  ;;  %v1011_v51 = vmul.f32 1.442695, %v14227_v3  ;;  %v1033_v33 = vadd.f32 %v8385_v27, %v1032_v39  ;;  %v1019_v45 = vmul.f32 1.442695, %v14230_v62 }
 0x2f2   : > { %v8442_v9 = vpop.eup %6608  ;;  %6628 = vpow2.f32 %v999_v13  ;;  %v1015_v7 = vmul.f32 1.442695, %v14228_v21  ;;  %v14231_v39 = vsub.f32 %v8226_v6, %v8232_v26  ;;  %v8464_v35 = vpop.trf.xlu0  ;;  %v14235_v6 = vsub.f32 %v8000_v15, %v8234_v53 }
 0x2f3   : > { %v8447_v19 = vpop.eup %6610  ;;  %6630 = vpow2.f32 %v1003_v18  ;;  %v1034_v61 = vadd.f32 %v8393_v17, %v1033_v33  ;;  %v14232_v18 = vsub.f32 %v7984_v5, %v8234_v53  ;;  %14233 = vst [vmem:[#allocation65_spill] sm:$0xff] %v8464_v35  ;;  %v14236_v5 = vsub.f32 %v8010_v47, %v8234_v53 }
 0x2f4   : > { %14229 = vst [vmem:[#allocation63_spill] sm:$0xff] %v8447_v19  ;;  %v8453_v11 = vpop.eup %6612  ;;  %6632 = vpow2.f32 %v1007_v44  ;;  %v1023_v13 = vmul.f32 1.442695, %v14231_v39  ;;  %v14234_v44 = vsub.f32 %v7990_v10, %v8234_v53  ;;  %v909_v26 = vmul.f32 1.442695, %v14235_v6 }
 0x2f5   : > { %v8458_v3 = vpop.eup %6614  ;;  %6634 = vpow2.f32 %v1011_v51  ;;  %v1035_v38 = vadd.f32 %v8400_v60, %v1034_v61  ;;  %v901_v21 = vmul.f32 1.442695, %v14232_v18  ;;  %v913_v39 = vmul.f32 1.442695, %v14236_v5 }
 0x2f6   : > { %v8466_v62 = vpop.eup %6616  ;;  %6636 = vpow2.f32 %v1015_v7  ;;  %v905_v33 = vmul.f32 1.442695, %v14234_v44  ;;  %v14237_v7 = vsub.f32 %v8021_v29, %v8234_v53  ;;  %v14238_v10 = vsub.f32 %v8027_v58, %v8234_v53 }
 0x2f7   : > { %v8474_v51 = vpop.eup %6618  ;;  %6638 = vpow2.f32 %v1019_v45  ;;  %v1036_v61 = vadd.f32 %v8408_v59, %v1035_v38  ;;  %v14239_v45 = vsub.f32 %v8039_v31, %v8234_v53  ;;  %v14240_v38 = vsub.f32 %v8045_v48, %v8234_v53 }
 0x2f8   : > { %v917_v18 = vmul.f32 1.442695, %v14237_v7  ;;  %v8483_v35 = vpop.eup %6620  ;;  %6640 = vpow2.f32 %v1023_v13  ;;  %v921_v15 = vmul.f32 1.442695, %v14238_v10  ;;  %v14241_v13 = vsub.f32 %v8052_v52, %v8234_v53 }
 0x2f9   : > { %v925_v44 = vmul.f32 1.442695, %v14239_v45  ;;  %v929_v47 = vmul.f32 1.442695, %v14240_v38  ;;  %v8494_v6 = vpop.eup %6622  ;;  %v1037_v29 = vadd.f32 %v8415_v24, %v1036_v61  ;;  %6642 = vpow2.f32 %v901_v21  ;;  %v8518_v45 = vpop.trf.xlu0 }
 0x2fa   : > { %v933_v5 = vmul.f32 1.442695, %v14241_v13  ;;  %v14242_v58 = vsub.f32 %v8060_v8, %v8234_v53  ;;  %v8503_v10 = vpop.eup %6624  ;;  %6644 = vpow2.f32 %v905_v33  ;;  %14243 = vst [vmem:[#allocation67_spill] sm:$0xff] %v8518_v45 }
 0x2fb   : > { %v8511_v61 = vpop.eup %6626  ;;  %v1038_v52 = vadd.f32 %v8421_v1, %v1037_v29  ;;  %6646 = vpow2.f32 %v909_v26  ;;  %v14245_v26 = vsub.f32 %v14200_v32, %v8234_v53  ;;  %v14248_v32 = vsub.f32 %v14203_v41, %v8234_v53 }
 0x2fc   : > { %v937_v7 = vmul.f32 1.442695, %v14242_v58  ;;  %v8520_v38 = vpop.eup %6628  ;;  %6648 = vpow2.f32 %v913_v39  ;;  %v14244_v39 = vsub.f32 %v8070_v56, %v8234_v53  ;;  %v14251_v41 = vsub.f32 %v14206_v36, %v8234_v53 }
 0x2fd   : > { %v8528_v29 = vpop.eup %6630  ;;  %v1039_v8 = vadd.f32 %v8430_v22, %v1038_v52  ;;  %6650 = vpow2.f32 %v917_v18  ;;  %v945_v58 = vmul.f32 1.442695, %v14245_v26 }
 0x2fe   : > { %v8535_v21 = vpop.eup %6632  ;;  %6652 = vpow2.f32 %v921_v15  ;;  %v941_v33 = vmul.f32 1.442695, %v14244_v39 }
 0x2ff   : > { %v8543_v52 = vpop.eup %6634  ;;  %v1040_v18 = vadd.f32 %v8436_v43, %v1039_v8  ;;  %6654 = vpow2.f32 %v925_v44  ;;  %v14246_v44 = vsub.f32 %v14202_v40, %v8234_v53  ;;  %v8562_v8 = vpop.trf.xlu0  ;;  %v14249_v40 = vsub.f32 %v14204_v30, %v8234_v53 }
 0x300   : > { %v8551_v48 = vpop.eup %6636  ;;  %6656 = vpow2.f32 %v929_v47  ;;  %14247 = vst [vmem:[#allocation68_spill] sm:$0xff] %v8562_v8  ;;  %v953_v47 = vmul.f32 1.442695, %v14248_v32  ;;  %v965_v32 = vmul.f32 1.442695, %v14251_v41 }
 0x301   : > { %v8556_v13 = vpop.eup %6638  ;;  %v1041_v31 = vadd.f32 %v8442_v9, %v1040_v18  ;;  %6658 = vpow2.f32 %v933_v5  ;;  %v949_v56 = vmul.f32 1.442695, %v14246_v44  ;;  %v957_v5 = vmul.f32 1.442695, %v14249_v40 }
 0x302   : > { %v8566_v15 = vpop.eup %6640  ;;  %6660 = vpow2.f32 %v937_v7  ;;  %v14250_v7 = vsub.f32 %v14205_v20, %v8234_v53  ;;  %v14252_v44 = vsub.f32 %v14207_v46, %v8234_v53  ;;  %v14253_v20 = vsub.f32 %v14208_v0, %v8234_v53 }
 0x303   : > { %v6643_v26 = vpop.eup %6642  ;;  %v1042_v18 = vadd.f32 %v8447_v19, %v1041_v31  ;;  %6662 = vpow2.f32 %v941_v33 }
 0x304   : > { %v6645_v8 = vpop.eup %6644  ;;  %6664 = vpow2.f32 %v945_v58  ;;  %v961_v39 = vmul.f32 1.442695, %v14250_v7  ;;  %v969_v58 = vmul.f32 1.442695, %v14252_v44  ;;  %v973_v7 = vmul.f32 1.442695, %v14253_v20 }
 0x305   : > { %v6647_v45 = vpop.eup %6646  ;;  %v1043_v31 = vadd.f32 %v8453_v11, %v1042_v18  ;;  %6666 = vpow2.f32 %v949_v56  ;;  %v1064_v33 = vadd.f32 %v6645_v8, %v6643_v26  ;;  %v1102_v30 = vpack.c.bf16 %v6645_v8, %v6643_v26  ;;  %v8591_v56 = vpop.trf.xlu0 }
 0x306   : > { %v6649_v40 = vpop.eup %6648  ;;  %6668 = vpow2.f32 %v953_v47  ;;  %14254 = vst [vmem:[#allocation70_spill] sm:$0xff] %v8591_v56  ;;  %v14255_v47 = vsub.f32 %v14209_v16, %v8234_v53  ;;  %v14256_v26 = vsub.f32 %v14210_v12, %v8234_v53  ;;  %v14257_v44 = vpack.c.bf16 %v8335_v34, %v8327_v14 }
 0x307   : > { %v6651_v19 = vpop.eup %6650  ;;  %v1044_v36 = vadd.f32 %v8458_v3, %v1043_v31  ;;  %6670 = vpow2.f32 %v957_v5  ;;  %v1065_v41 = vadd.f32 %v6647_v45, %v1064_v33  ;;  %1133 = vmatprep.subr.bf16.mxu0 %v1102_v30  ;;  %v1104_v18 = vpack.c.bf16 %v6649_v40, %v6647_v45 }
 0x308   : > { %v6653_v8 = vpop.eup %6652  ;;  %6672 = vpow2.f32 %v961_v39  ;;  %v977_v46 = vmul.f32 1.442695, %v14255_v47  ;;  %v981_v0 = vmul.f32 1.442695, %v14256_v26  ;;  %1134 = vmatpush1.bf16.msra.mxu0 %v14257_v44  ;;  %v14258_v16 = vsub.f32 %v14211_v2, %v8234_v53 }
 0x309   : > { %v6655_v5 = vpop.eup %6654  ;;  %v1045_v31 = vadd.f32 %v8466_v62, %v1044_v36  ;;  %6674 = vpow2.f32 %v965_v32  ;;  %v1066_v45 = vadd.f32 %v6649_v40, %v1065_v41  ;;  %1135 = vmatprep.subr.bf16.mxu0 %v1104_v18  ;;  %v1106_v33 = vpack.c.bf16 %v6653_v8, %v6651_v19 }
 0x30a   : > { %v6657_v39 = vpop.eup %6656  ;;  %6676 = vpow2.f32 %v969_v58  ;;  %v985_v30 = vmul.f32 1.442695, %v14258_v16  ;;  %v14259_v12 = vsub.f32 %v14212_v23, %v8234_v53  ;;  %v14260_v40 = vsub.f32 %v14213_v57, %v8234_v53 }
 0x30b   : > { %v6659_v47 = vpop.eup %6658  ;;  %v1046_v14 = vadd.f32 %v8474_v51, %v1045_v31  ;;  %6678 = vpow2.f32 %v973_v7  ;;  %v1067_v34 = vadd.f32 %v6651_v19, %v1066_v45  ;;  %v1108_v36 = vpack.c.bf16 %v6657_v39, %v6655_v5  ;;  %v14265_v31 = vld [vmem:[#allocation82_spill] sm:$0xff] }
 0x30c   : > { %v989_v20 = vmul.f32 1.442695, %v14259_v12  ;;  %v6661_v32 = vpop.eup %6660  ;;  %6680 = vpow2.f32 %v977_v46  ;;  %v993_v58 = vmul.f32 1.442695, %v14260_v40  ;;  %v14261_v2 = vsub.f32 %v14215_v54, %v8234_v53  ;;  %v8620_v46 = vpop.trf.xlu0 }
 0x30d   : > { %v14262_v23 = vpack.c.bf16 %v8353_v55, %v8345_v63  ;;  %v6663_v18 = vpop.eup %6662  ;;  %v1047_v26 = vadd.f32 %v8483_v35, %v1046_v14  ;;  %6682 = vpow2.f32 %v981_v0  ;;  %v1068_v19 = vadd.f32 %v6653_v8, %v1067_v34  ;;  %14263 = vst [vmem:[#allocation71_spill] sm:$0xff] %v8620_v46 }
 0x30e   : > { %v997_v41 = vmul.f32 1.442695, %v14261_v2  ;;  %v1110_v7 = vpack.c.bf16 %v6661_v32, %v6659_v47  ;;  %v6665_v44 = vpop.eup %6664  ;;  %6684 = vpow2.f32 %v985_v30  ;;  %v14264_v57 = vsub.f32 %v14216_v25, %v8234_v53 }
 0x30f   : > { %1136 = vmatpush1.bf16.msra.mxu0 %v14262_v23  ;;  %v14266_v45 = vsub.f32 %v14265_v31, %v8234_v53  ;;  %v8628_v55 = vpop.eup %6666  ;;  %v1048_v16 = vadd.f32 %v8494_v6, %v1047_v26  ;;  %6686 = vpow2.f32 %v989_v20  ;;  %v1069_v8 = vadd.f32 %v6655_v5, %v1068_v19  ;;  %v14271_v23 = vld [vmem:[#allocation86_spill] sm:$0xff] }
 0x310   : > { %1137 = vmatprep.subr.bf16.mxu0 %v1106_v33  ;;  %v1001_v54 = vmul.f32 1.442695, %v14264_v57  ;;  %v1112_v0 = vpack.c.bf16 %v6665_v44, %v6663_v18  ;;  %v6669_v33 = vpop.eup %6668  ;;  %6688 = vpow2.f32 %v993_v58  ;;  %v14267_v30 = vsub.f32 %v14218_v49, %v8234_v53 }
 0x311   : > { %v1005_v63 = vmul.f32 1.442695, %v14266_v45  ;;  %v14268_v25 = vsub.f32 %v14219_v37, %v8234_v53  ;;  %v14269_v34 = vpack.c.bf16 %v8368_v42, %v8361_v50  ;;  %v8640_v40 = vpop.eup %6670  ;;  %v1049_v20 = vadd.f32 %v8503_v10, %v1048_v16 }
 0x312   : > { %v1009_v12 = vmul.f32 1.442695, %v14267_v30  ;;  %6690 = vpow2.f32 %v997_v41  ;;  %v1070_v5 = vadd.f32 %v6657_v39, %v1069_v8  ;;  %v1114_v58 = vpack.c.bf16 %v6669_v33, %v8628_v55  ;;  %v6673_v2 = vpop.eup %6672 }
 0x313   : > { %v1013_v14 = vmul.f32 1.442695, %v14268_v25  ;;  %1138 = vmatpush1.bf16.msra.mxu0 %v14269_v34  ;;  %6692 = vpow2.f32 %v1001_v54  ;;  %v14270_v49 = vsub.f32 %v14220_v4, %v8234_v53  ;;  %v14272_v26 = vsub.f32 %v14271_v23, %v8234_v53  ;;  %v8650_v50 = vpop.eup %6674  ;;  %v14274_v54 = vld [vmem:[#allocation87_spill] sm:$0xff] }
 0x314   : > { %1139 = vmatprep.subr.bf16.mxu0 %v1108_v36  ;;  %v1050_v19 = vadd.f32 %v8511_v61, %v1049_v20  ;;  %6694 = vpow2.f32 %v1005_v63  ;;  %v1071_v41 = vadd.f32 %v6659_v47, %v1070_v5  ;;  %v1116_v39 = vpack.c.bf16 %v6673_v2, %v8640_v40  ;;  %v8654_v36 = vpop.trf.xlu0  ;;  %v6677_v57 = vpop.eup %6676 }
 0x315   : > { %v1017_v37 = vmul.f32 1.442695, %v14270_v49  ;;  %v1021_v42 = vmul.f32 1.442695, %v14272_v26  ;;  %14273 = vst [vmem:[#allocation73_spill] sm:$0xff] %v8654_v36  ;;  %6696 = vpow2.f32 %v1009_v12  ;;  %v14275_v4 = vsub.f32 %v14274_v54, %v8234_v53  ;;  %v6679_v16 = vpop.eup %6678 }
 0x316   : > { %v14276_v45 = vpack.c.bf16 %v8385_v27, %v8376_v28  ;;  %v1051_v8 = vadd.f32 %v8520_v38, %v1050_v19  ;;  %6698 = vpow2.f32 %v1013_v14  ;;  %v1072_v63 = vadd.f32 %v6661_v32, %v1071_v41  ;;  %v6681_v30 = vpop.eup %6680  ;;  %v8668_v27 = vpop.trf.xlu1 }
 0x317   : > { %v1025_v31 = vmul.f32 1.442695, %v14275_v4  ;;  %v1118_v47 = vpack.c.bf16 %v6677_v57, %v8650_v50  ;;  %6700 = vpow2.f32 %v1017_v37  ;;  %v6683_v25 = vpop.eup %6682  ;;  %v1120_v34 = vpack.c.bf16 %v6681_v30, %v6679_v16  ;;  %14278 = vst [vmem:[#allocation75_spill] sm:$0xff] %v8668_v27 }
 0x318   : > { %1140 = vmatpush1.bf16.msra.mxu0 %v14276_v45  ;;  %v1052_v12 = vadd.f32 %v8528_v29, %v1051_v8  ;;  %6702 = vpow2.f32 %v1021_v42  ;;  %v1073_v53 = vadd.f32 %v6663_v18, %v1072_v63  ;;  %v6685_v20 = vpop.eup %6684  ;;  %v14277_v28 = vpack.c.bf16 %v8400_v60, %v8393_v17  ;;  %v8671_v49 = vpop.trf.xlu0 }
 0x319   : > { %1141 = vmatprep.subr.bf16.mxu0 %v1110_v7  ;;  %6704 = vpow2.f32 %v1025_v31  ;;  %v6687_v32 = vpop.eup %6686  ;;  %v1122_v5 = vpack.c.bf16 %v6685_v20, %v6683_v25  ;;  %14279 = vst [vmem:[#allocation78_spill] sm:$0xff] %v8671_v49  ;;  %v14280_v17 = vpack.c.bf16 %v8415_v24, %v8408_v59  ;;  %v14283_v59 = vpack.c.bf16 %v8430_v22, %v8421_v1 }
 0x31a   : > { %v1053_v7 = vadd.f32 %v8535_v21, %v1052_v12  ;;  %v1074_v14 = vadd.f32 %v6665_v44, %v1073_v53  ;;  %v6689_v37 = vpop.eup %6688  ;;  %v8679_v4 = vpop.trf.xlu1 }
 0x31b   : > { %v1124_v42 = vpack.c.bf16 %v6689_v37, %v6687_v32  ;;  %14281 = vst [vmem:[#allocation79_spill] sm:$0xff] %v8679_v4 }
 0x31c   : > { %1142 = vmatpush1.bf16.msra.mxu0 %v14277_v28  ;;  %v6691_v23 = vpop.eup %6690  ;;  %v1054_v18 = vadd.f32 %v8543_v52, %v1053_v7  ;;  %v1075_v26 = vadd.f32 %v8628_v55, %v1074_v14  ;;  %v8683_v63 = vpop.trf.xlu0 }
 0x31d   : > { %1143 = vmatprep.subr.bf16.mxu0 %v1112_v0  ;;  %v6693_v19 = vpop.eup %6692  ;;  %14282 = vst [vmem:[#allocation80_spill] sm:$0xff] %v8683_v63 }
 0x31e   : > { %v6695_v60 = vpop.eup %6694  ;;  %v1055_v41 = vadd.f32 %v8551_v48, %v1054_v18  ;;  %v1076_v44 = vadd.f32 %v6669_v33, %v1075_v26  ;;  %v1126_v0 = vpack.c.bf16 %v6693_v19, %v6691_v23  ;;  %v8695_v18 = vpop.trf.xlu1 }
 0x31f   : > { %v6697_v54 = vpop.eup %6696  ;;  %14285 = vst [vmem:[#allocation81_spill] sm:$0xff] %v8695_v18 }
 0x320   : > { %1144 = vmatpush1.bf16.msra.mxu0 %v14280_v17  ;;  %v6699_v31 = vpop.eup %6698  ;;  %v1056_v45 = vadd.f32 %v8556_v13, %v1055_v41  ;;  %v1077_v55 = vadd.f32 %v8640_v40, %v1076_v44  ;;  %v1128_v8 = vpack.c.bf16 %v6697_v54, %v6695_v60  ;;  %v14284_v40 = vpack.c.bf16 %v8442_v9, %v8436_v43  ;;  %v8697_v1 = vpop.trf.xlu0  ;;  %v14287_v17 = vld [vmem:[#allocation63_spill] sm:$0xff] }
 0x321   : > { %1145 = vmatprep.subr.bf16.mxu0 %v1114_v58  ;;  %v6701_v12 = vpop.eup %6700  ;;  %14286 = vst [vmem:[#allocation83_spill] sm:$0xff] %v8697_v1  ;;  %v14291_v43 = vpack.c.bf16 %v8466_v62, %v8458_v3 }
 0x322   : > { %v6703_v24 = vpop.eup %6702  ;;  %v8689_v33 = vadd.f32 %v8566_v15, %v1056_v45  ;;  %v1078_v58 = vadd.f32 %v6673_v2, %v1077_v55  ;;  %v1130_v53 = vpack.c.bf16 %v6701_v12, %v6699_v31  ;;  %v14288_v2 = vpack.c.bf16 %v8453_v11, %v14287_v17  ;;  %v8702_v41 = vpop.trf.xlu1 }
 0x323   : > { %v6705_v28 = vpop.eup %6704  ;;  %14289 = vst [vmem:[#allocation84_spill] sm:$0xff] %v8702_v41 }
 0x324   : > { %1146 = vmatpush1.bf16.msra.mxu0 %v14283_v59  ;;  %v1079_v7 = vadd.f32 %v8650_v50, %v1078_v58  ;;  %v1132_v14 = vpack.c.bf16 %v6705_v28, %v6703_v24  ;;  %v8704_v44 = vpop.trf.xlu0  ;;  %v14307_v58 = vld [vmem:[#allocation5_spill] sm:$0xff] }
 0x325   : > { %1147 = vmatprep.subr.bf16.mxu0 %v1116_v39  ;;  %14290 = vst [vmem:[#allocation85_spill] sm:$0xff] %v8704_v44 }
 0x326   : > { %v1080_v26 = vadd.f32 %v6677_v57, %v1079_v7  ;;  %v8712_v11 = vpop.trf.xlu1  ;;  %v1218_v7 = vrot.slane %v14307_v58, 2 }
 0x327   : > { %14293 = vst [vmem:[#allocation82_spill] sm:$0xff] %v8712_v11 }
 0x328   : > { %1148 = vmatpush1.bf16.msra.mxu0 %v14284_v40  ;;  %v1081_v22 = vadd.f32 %v6679_v16, %v1080_v26  ;;  %v14292_v16 = vpack.c.bf16 %v8483_v35, %v8474_v51  ;;  %v14297_v35 = vpack.c.bf16 %v8520_v38, %v8511_v61  ;;  %v14298_v51 = vld [vmem:[#allocation9_spill] sm:$0xff]  ;;  %v14302_v38 = vpack.c.bf16 %v8551_v48, %v8543_v52 }
 0x329   : > { %1149 = vmatprep.subr.bf16.mxu0 %v1118_v47  ;;  %v1269_v48 = vsel %vm561_vm1, %v1218_v7, 0  ;;  %v14310_v52 = vmov 0   ;;  %v14315_v26 = vld [vmem:[#allocation13_spill] sm:$0xff]  ;;  %v6175_v7 = vld [vmem:[%s13740_s4 + $0x10] sm:$0xff] }
 0x32a   : > { %v1082_v39 = vadd.f32 %v6681_v30, %v1081_v22  ;;  %v8714_v30 = vpop.trf.xlu0  ;;  %v8719_v62 = vpop.trf.xlu1  ;;  %v14316_v22 = vld [vmem:[#allocation14_spill] sm:$0xff] }
 0x32b   : > { %14294 = vst [vmem:[#allocation86_spill] sm:$0xff] %v8714_v30  ;;  %14296 = vst [vmem:[#allocation87_spill] sm:$0xff] %v8719_v62 }
 0x32c   : > { %1150 = vmatpush1.bf16.msra.mxu0 %v14288_v2  ;;  %v1083_v50 = vadd.f32 %v6683_v25, %v1082_v39  ;;  %v14317_v2 = vld [vmem:[#allocation15_spill] sm:$0xff]  ;;  %v251_v39 = vld [vmem:[%s13738_s2 + $0x58] sm:$0xff] }
 0x32d   : > { %1151 = vmatprep.subr.bf16.mxu0 %v1120_v34  ;;  %v14295_v34 = vpack.c.bf16 %v8503_v10, %v8494_v6  ;;  %v14300_v10 = vpack.c.bf16 %v8535_v21, %v8528_v29  ;;  %v14306_v21 = vld [vmem:[#allocation6_spill] sm:$0xff] }
 0x32e   : > { %v1084_v9 = vadd.f32 %v6685_v20, %v1083_v50  ;;  %v1219_v29 = vrot.slane %v14306_v21, 2  ;;  %v14318_v50 = vld [vmem:[#allocation16_spill] sm:$0xff]  ;;  %v6173_v21 = vld [vmem:[%s13740_s4] sm:$0xff] }
 0x330   : > { %1152 = vmatpush1.bf16.msra.mxu0 %v14291_v43  ;;  %v1085_v57 = vadd.f32 %v6687_v32, %v1084_v9  ;;  %v14319_v43 = vld [vmem:[#allocation17_spill] sm:$0xff]  ;;  %v14320_v9 = vld [vmem:[#allocation18_spill] sm:$0xff] }
 0x331   : > { %1153 = vmatprep.subr.bf16.mxu0 %v1122_v5 }
 0x332   : > { %v1086_v47 = vadd.f32 %v6689_v37, %v1085_v57  ;;  %v14299_v37 = vld [vmem:[#allocation10_spill] sm:$0xff] }
 0x334   : > { %1154 = vmatpush1.bf16.msra.mxu0 %v14292_v16  ;;  %v1087_v25 = vadd.f32 %v6691_v23, %v1086_v47  ;;  %v14321_v16 = vld [vmem:[#allocation19_spill] sm:$0xff]  ;;  %v14322_v47 = vld [vmem:[#allocation20_spill] sm:$0xff] }
 0x335   : > { %1155 = vmatprep.subr.bf16.mxu0 %v1124_v42 }
 0x336   : > { %v1088_v3 = vadd.f32 %v6693_v19, %v1087_v25  ;;  %v8729_v19 = vpop.trf.xlu1  ;;  %v14323_v25 = vld [vmem:[#allocation21_spill] sm:$0xff] }
 0x337   : > { %14301 = vst [vmem:[#allocation63_spill] sm:$0xff] %v8729_v19 }
 0x338   : > { %1156 = vmatpush1.bf16.msra.mxu0 %v14295_v34  ;;  %v1089_v20 = vadd.f32 %v6695_v60, %v1088_v3  ;;  %v14324_v34 = vld [vmem:[#allocation22_spill] sm:$0xff]  ;;  %v14325_v3 = vld [vmem:[#allocation23_spill] sm:$0xff] }
 0x339   : > { %1157 = vmatprep.subr.bf16.mxu0 %v1126_v0  ;;  %v290_v32 = vpop.permute.xlu0 %289  ;;  %v14303_v0 = vld [vmem:[#allocation12_spill] sm:$0xff] }
 0x33a   : > { %v450_v5 = vadd.f32 %v14298_v51, %v290_v32  ;;  %v452_v42 = vadd.f32 %v14299_v37, %v290_v32  ;;  %v1090_v45 = vadd.f32 %v6697_v54, %v1089_v20  ;;  %v14304_v54 = vld [vmem:[#allocation11_spill] sm:$0xff]  ;;  %v6174_v20 = vld [vmem:[%s13740_s4 + $0x8] sm:$0xff]  ;;  %v14326_v32 = vld [vmem:[#allocation24_spill] sm:$0xff] }
 0x33c   : > { %1158 = vmatpush1.bf16.msra.mxu0 %v14297_v35  ;;  %v4720_v23 = vpack.c.bf16 %v450_v5, %v450_v5  ;;  %v4721_v55 = vpack.c.bf16 %v452_v42, %v452_v42  ;;  %v1091_v6 = vadd.f32 %v6699_v31, %v1090_v45  ;;  %v8738_v31 = vpop.trf.xlu1  ;;  %v14327_v35 = vld [vmem:[#allocation25_spill] sm:$0xff]  ;;  %v14329_v5 = vld [vmem:[#allocation26_spill] sm:$0xff]  ;;  %v14332_v45 = vld [vmem:[#allocation27_spill] sm:$0xff] }
 0x33d   : > { %1159 = vmatprep.subr.bf16.mxu0 %v1128_v8  ;;  %v456_v8 = vadd.f32 %v14304_v54, %v14303_v0  ;;  %14305 = vst [vmem:[#allocation9_spill] sm:$0xff] %v8738_v31 }
 0x33e   : > { %4740 = vxpose.xlu1.c.b16.start.end [1/1] (short) %v4721_v55, 128  ;;  %v1092_v60 = vadd.f32 %v6701_v12, %v1091_v6  ;;  %4724 = vxpose.xlu0.c.b16.start.end [1/1] (short) %v4720_v23, 128  ;;  %v14308_v12 = vpack.c.bf16 %v8566_v15, %v8556_v13  ;;  %v5422_v17 = vrot.slane %v4720_v23, 2  ;;  %v5423_v57 = vrot.slane %v4721_v55, 2  ;;  %v14334_v55 = vld [vmem:[#allocation53_spill] sm:$0xff] }
 0x33f   : > { %v8821_v6 = vpack.c.bf16 %v14334_v55, %v14334_v55 }
 0x340   : > { %1160 = vmatpush1.bf16.msra.mxu0 %v14300_v10  ;;  %v1093_v61 = vadd.f32 %v6703_v24, %v1092_v60  ;;  %v8745_v24 = vpack.c.bf16 %v456_v8, %v456_v8  ;;  %v14336_v10 = vld [vmem:[#allocation28_spill] sm:$0xff] }
 0x341   : > { %1161 = vmatprep.subr.bf16.mxu0 %v1130_v53  ;;  %v8751_v53 = vpop.permute.xlu1 %304  ;;  %14335 = vst [vmem:[#allocation17_spill] sm:$0xff] %v8821_v6 }
 0x342   : > { %v8736_v59 = vadd.f32 %v6705_v28, %v1093_v61  ;;  %14309 = vst [vmem:[#allocation10_spill] sm:$0xff] %v8745_v24  ;;  %14311 = vst [vmem:[#allocation12_spill] sm:$0xff] %v8751_v53  ;;  %v465_v28 = vpop.f32.mrb[20].mxu0 }
 0x343   : > { %v8756_v40 = vpop.f32.mrb[21].mxu0 }
 0x344   : > { %1162 = vmatpush1.bf16.msra.mxu0 %v14302_v38  ;;  %14313 = vst [vmem:[#allocation6_spill] sm:$0xff] %v8756_v40  ;;  %v469_v13 = vpop.f32.mrb[22].mxu0  ;;  %v1095_v58 = vrot.slane %v8736_v59, 4 }
 0x345   : > { %1163 = vmatprep.subr.bf16.mxu0 %v1132_v14  ;;  %v8754_v14 = vadd.f32 %v465_v28, %v8751_v53  ;;  %v8758_v15 = vpop.f32.mrb[23].mxu0  ;;  %v6176_v28 = vld [vmem:[%s13740_s4 + $0x18] sm:$0xff] }
 0x346   : > { %14314 = vst [vmem:[#allocation5_spill] sm:$0xff] %v8758_v15 }
 0x347   : > { %14312 = vst [vmem:[#allocation11_spill] sm:$0xff] %v8754_v14 }
 0x348   : > { %1164 = vmatpush1.bf16.msra.mxu0 %v14308_v12 }
 0x349   : > { %6390 = vmatprep.subr.msk.bf16.mxu0 %vm561_vm1, %v1219_v29  ;;  %v1058_v29 = vrot.slane %v8689_v33, 4 }
 0x34b   : > { %1166 = vmatmul.mubr.bf16.vlgmr.msra.gmra.mrb[24].mxu0 %v8745_v24  ;;  %v1059_v12 = vadd.f32 %v1058_v29, %v8689_v33 }
 0x34c   : > { %1275 = vmatpush1.bf16.msra.mxu0 %v1269_v48  ;;  %1306 = vmatprep.mubr.bf16.mxu0 %v14310_v52  ;;  %v1096_v48 = vadd.f32 %v1095_v58, %v8736_v59 }
 0x353   : > { %6391 = vmatmul.mubr.msk.bf16.vlgmr.msra.gmra.mrb[28].mxu0 %vm512_vm2, %v14315_v26  ;;  %v1097_v26 = vrot.slane %v1096_v48, 2 }
 0x354   : > { %1316 = vmatprep.mubr.bf16.mxu0 %v14310_v52 }
 0x35b   : > { %6392 = vmatmul.mubr.msk.bf16.gmra.mrb[32].mxu0 %vm512_vm2, %v14316_v22  ;;  %5426 = vxpose.xlu1.c.b16.start.end [1/1] (short) %v5422_v17, 128  ;;  %v1098_v17 = vadd.f32 %v1097_v26, %v1096_v48 }
 0x35c   : > { %1326 = vmatprep.mubr.bf16.mxu0 %v14310_v52 }
 0x363   : > { %6393 = vmatmul.mubr.msk.bf16.gmra.mrb[36].mxu0 %vm512_vm2, %v14317_v2  ;;  %309 = vperm.xlu0 %6562, %v251_v39   ;;  %v1099_v39 = vrot.slane %v1098_v17, 1 }
 0x364   : > { %1336 = vmatprep.mubr.bf16.mxu0 %v14310_v52 }
 0x36b   : > { %6394 = vmatmul.mubr.msk.bf16.gmra.mrb[40].mxu0 %vm512_vm2, %v14318_v50 }
 0x36c   : > { %1346 = vmatprep.mubr.bf16.mxu0 %v14310_v52 }
 0x373   : > { %6395 = vmatmul.mubr.msk.bf16.gmra.mrb[44].mxu0 %vm512_vm2, %v14319_v43  ;;  %v1100_v43 = vadd.f32 %v1099_v39, %v1098_v17 }
 0x374   : > { %1356 = vmatprep.mubr.bf16.mxu0 %v14310_v52 }
 0x37b   : > { %6396 = vmatmul.mubr.msk.bf16.gmra.mrb[48].mxu0 %vm512_vm2, %v14320_v9  ;;  %6179 = vperm.xlu1 %6563, %v6173_v21  }
 0x37c   : > { %1366 = vmatprep.mubr.bf16.mxu0 %v14310_v52 }
 0x37f   : > { %6189 = vperm.xlu1 %6563, %v6175_v7  }
 0x381   : > { %5442 = vxpose.xlu0.c.b16.start.end [1/1] (short) %v5423_v57, 128 }
 0x383   : > { %6397 = vmatmul.mubr.msk.bf16.gmra.mrb[52].mxu0 %vm512_vm2, %v14321_v16  ;;  %6194 = vperm.xlu1 %6563, %v6176_v28  }
 0x384   : > { %1376 = vmatprep.mubr.bf16.mxu0 %v14310_v52 }
 0x38b   : > { %6398 = vmatmul.mubr.msk.bf16.gmra.mrb[56].mxu0 %vm512_vm2, %v14322_v47 }
 0x38c   : > { %1386 = vmatprep.mubr.bf16.mxu0 %v14310_v52 }
 0x393   : > { %6399 = vmatmul.mubr.msk.bf16.gmra.mrb[60].mxu0 %vm512_vm2, %v14323_v25 }
 0x394   : > { %1396 = vmatprep.mubr.bf16.mxu0 %v14310_v52 }
 0x39b   : > { %6400 = vmatmul.mubr.msk.bf16.gmra.mrb[64].mxu0 %vm512_vm2, %v14324_v34 }
 0x39c   : > { %1406 = vmatprep.mubr.bf16.mxu0 %v14310_v52 }
 0x3a3   : > { %6401 = vmatmul.mubr.msk.bf16.gmra.mrb[68].mxu0 %vm512_vm2, %v14325_v3 }
 0x3a4   : > { %1416 = vmatprep.mubr.bf16.mxu0 %v14310_v52  ;;  %v8805_v51 = vpop.trf.xlu0 }
 0x3a5   : > { %14328 = vst [vmem:[#allocation13_spill] sm:$0xff] %v8805_v51 }
 0x3a6   : > { %6184 = vperm.xlu0 %6562, %v6174_v20  }
 0x3a8   : > { %v8809_v37 = vpop.trf.xlu0 }
 0x3a9   : > { %14330 = vst [vmem:[#allocation14_spill] sm:$0xff] %v8809_v37 }
 0x3ab   : > { %6402 = vmatmul.mubr.msk.bf16.gmra.mrb[72].mxu0 %vm512_vm2, %v14326_v32 }
 0x3ac   : > { %1426 = vmatprep.mubr.bf16.mxu0 %v14310_v52  ;;  %v8812_v42 = vpop.trf.xlu0 }
 0x3ad   : > { %14331 = vst [vmem:[#allocation15_spill] sm:$0xff] %v8812_v42 }
 0x3b0   : > { %v8817_v23 = vpop.trf.xlu0 }
 0x3b1   : > { %14333 = vst [vmem:[#allocation16_spill] sm:$0xff] %v8817_v23 }
 0x3b3   : > { %6403 = vmatmul.mubr.msk.bf16.gmra.mrb[76].mxu0 %vm512_vm2, %v14327_v35 }
 0x3b4   : > { %1436 = vmatprep.mubr.bf16.mxu0 %v14310_v52  ;;  %v8826_v60 = vpop.trf.xlu0 }
 0x3b5   : > { %14337 = vst [vmem:[#allocation18_spill] sm:$0xff] %v8826_v60 }
 0x3b8   : > { %v8828_v61 = vpop.trf.xlu0 }
 0x3b9   : > { %14338 = vst [vmem:[#allocation19_spill] sm:$0xff] %v8828_v61 }
 0x3bb   : > { %6404 = vmatmul.mubr.msk.bf16.gmra.mrb[80].mxu0 %vm512_vm2, %v14329_v5 }
 0x3bc   : > { %1446 = vmatprep.mubr.bf16.mxu0 %v14310_v52  ;;  %v8830_v38 = vpop.trf.xlu0 }
 0x3bd   : > { %14339 = vst [vmem:[#allocation20_spill] sm:$0xff] %v8830_v38 }
 0x3c0   : > { %v8832_v0 = vpop.trf.xlu0 }
 0x3c1   : > { %14340 = vst [vmem:[#allocation21_spill] sm:$0xff] %v8832_v0 }
 0x3c3   : > { %6405 = vmatmul.mubr.msk.bf16.gmra.mrb[84].mxu0 %vm512_vm2, %v14332_v45 }
 0x3c4   : > { %1456 = vmatprep.mubr.bf16.mxu0 %v14310_v52 }
 0x3cb   : > { %6406 = vmatmul.mubr.msk.bf16.gmra.mrb[88].mxu0 %vm512_vm2, %v14336_v10 }
 0x3cc   : > { %2579 = vmatprep.mubr.bf16.mxu0 %v8821_v6 }
 0x3e2   : > { %v8834_v54 = vpop.permute.xlu0 %309 }
 0x3e3   : > { %14341 = vst [vmem:[#allocation22_spill] sm:$0xff] %v8834_v54  ;;  %v8837_v8 = vadd.f32 %v469_v13, %v8834_v54  ;;  %v1060_v13 = vrot.slane %v1059_v12, 2 }
 0x3e5   : > { %14342 = vst [vmem:[#allocation23_spill] sm:$0xff] %v8837_v8  ;;  %v1061_v22 = vadd.f32 %v1060_v13, %v1059_v12 }
 0x3e7   : > { %v1062_v2 = vrot.slane %v1061_v22, 1 }
 0x3e9   : > { %v1063_v50 = vadd.f32 %v1062_v2, %v1061_v22 }
 0x3eb   : > { %6706 = vrcp.f32 %v1063_v50 }
 0x3ec   : > { %6708 = vrcp.f32 %v1100_v43 }
 0x3f5   : > { %v6707_v9 = vpop.eup %6706 }
 0x3f6   : > { %v6709_v57 = vpop.eup %6708 }
 0x41e   : > { %v1167_v33 = vpop.f32.mrb[24].mxu0 }
 0x41f   : > { %v8852_v16 = vmul.f32 %v6707_v9, %v1167_v33  ;;  %v1169_v59 = vpop.f32.mrb[25].mxu0 }
 0x420   : > { %v8854_v47 = vmul.f32 %v6709_v57, %v1169_v59  ;;  %v1171_v25 = vpop.f32.mrb[26].mxu0 }
 0x421   : > { %14343 = vst [vmem:[#allocation24_spill] sm:$0xff] %v8852_v16  ;;  %v1172_v34 = vpop.f32.mrb[27].mxu0 }
 0x422   : > { %14344 = vst [vmem:[#allocation25_spill] sm:$0xff] %v8854_v47 }
 0x426   : > { %v8856_v3 = vpop.f32.mrb[28].mxu0 }
 0x427   : > { %v8858_v20 = vpop.f32.mrb[29].mxu0 }
 0x428   : > { %v8860_v32 = vpop.f32.mrb[30].mxu0 }
 0x429   : > { %v8862_v35 = vpop.f32.mrb[31].mxu0 }
 0x42e   : > { %v8864_v5 = vpop.f32.mrb[32].mxu0 }
 0x42f   : > { %v8866_v45 = vpop.f32.mrb[33].mxu0  ;;  %v1467_v55 = vmax.f32 %v8856_v3, %v8864_v5 }
 0x430   : > { %v8870_v10 = vpop.f32.mrb[34].mxu0  ;;  %v1504_v21 = vmax.f32 %v8858_v20, %v8866_v45 }
 0x431   : > { %v8874_v29 = vpop.f32.mrb[35].mxu0  ;;  %v1468_v58 = vmax.f32 %v8860_v32, %v8870_v10 }
 0x432   : > { %v1505_v7 = vmax.f32 %v8862_v35, %v8874_v29 }
 0x436   : > { %v8880_v12 = vpop.f32.mrb[36].mxu0 }
 0x437   : > { %v8882_v48 = vpop.f32.mrb[37].mxu0  ;;  %v1469_v28 = vmax.f32 %v1467_v55, %v8880_v12 }
 0x438   : > { %v8885_v13 = vpop.f32.mrb[38].mxu0  ;;  %v1506_v26 = vmax.f32 %v1504_v21, %v8882_v48 }
 0x439   : > { %v8888_v22 = vpop.f32.mrb[39].mxu0  ;;  %v1470_v17 = vmax.f32 %v1468_v58, %v8885_v13 }
 0x43a   : > { %v1507_v2 = vmax.f32 %v1505_v7, %v8888_v22 }
 0x43e   : > { %v8892_v39 = vpop.f32.mrb[40].mxu0 }
 0x43f   : > { %v1471_v50 = vmax.f32 %v1469_v28, %v8892_v39  ;;  %v8895_v43 = vpop.f32.mrb[41].mxu0 }
 0x440   : > { %v1508_v9 = vmax.f32 %v1506_v26, %v8895_v43  ;;  %v8898_v33 = vpop.f32.mrb[42].mxu0 }
 0x441   : > { %v1472_v57 = vmax.f32 %v1470_v17, %v8898_v33  ;;  %v8901_v59 = vpop.f32.mrb[43].mxu0 }
 0x442   : > { %v1509_v25 = vmax.f32 %v1507_v2, %v8901_v59 }
 0x446   : > { %v8904_v34 = vpop.f32.mrb[44].mxu0 }
 0x447   : > { %v1473_v55 = vmax.f32 %v1471_v50, %v8904_v34  ;;  %v8907_v21 = vpop.f32.mrb[45].mxu0 }
 0x448   : > { %v1510_v58 = vmax.f32 %v1508_v9, %v8907_v21  ;;  %v8910_v7 = vpop.f32.mrb[46].mxu0 }
 0x449   : > { %v1474_v28 = vmax.f32 %v1472_v57, %v8910_v7  ;;  %v8913_v26 = vpop.f32.mrb[47].mxu0 }
 0x44a   : > { %v1511_v17 = vmax.f32 %v1509_v25, %v8913_v26 }
 0x44e   : > { %v8916_v8 = vpop.f32.mrb[48].mxu0 }
 0x44f   : > { %v1475_v2 = vmax.f32 %v1473_v55, %v8916_v8  ;;  %v8919_v0 = vpop.f32.mrb[49].mxu0 }
 0x450   : > { %v1512_v50 = vmax.f32 %v1510_v58, %v8919_v0  ;;  %v8922_v38 = vpop.f32.mrb[50].mxu0 }
 0x451   : > { %v1476_v9 = vmax.f32 %v1474_v28, %v8922_v38  ;;  %v8925_v61 = vpop.f32.mrb[51].mxu0 }
 0x452   : > { %14345 = vst [vmem:[#allocation26_spill] sm:$0xff] %v8925_v61  ;;  %v1513_v57 = vmax.f32 %v1511_v17, %v8925_v61 }
 0x456   : > { %v8928_v60 = vpop.f32.mrb[52].mxu0 }
 0x457   : > { %v1477_v25 = vmax.f32 %v1475_v2, %v8928_v60  ;;  %v8931_v23 = vpop.f32.mrb[53].mxu0 }
 0x458   : > { %14346 = vst [vmem:[#allocation27_spill] sm:$0xff] %v8931_v23  ;;  %v1514_v55 = vmax.f32 %v1512_v50, %v8931_v23  ;;  %v8934_v42 = vpop.f32.mrb[54].mxu0 }
 0x459   : > { %v1478_v58 = vmax.f32 %v1476_v9, %v8934_v42  ;;  %v8937_v37 = vpop.f32.mrb[55].mxu0 }
 0x45a   : > { %14347 = vst [vmem:[#allocation53_spill] sm:$0xff] %v8937_v37  ;;  %v1515_v28 = vmax.f32 %v1513_v57, %v8937_v37 }
 0x45e   : > { %v8940_v51 = vpop.f32.mrb[56].mxu0 }
 0x45f   : > { %v1479_v17 = vmax.f32 %v1477_v25, %v8940_v51  ;;  %v8943_v15 = vpop.f32.mrb[57].mxu0 }
 0x460   : > { %14348 = vst [vmem:[#allocation28_spill] sm:$0xff] %v8943_v15  ;;  %v1516_v2 = vmax.f32 %v1514_v55, %v8943_v15  ;;  %v8946_v54 = vpop.f32.mrb[58].mxu0 }
 0x461   : > { %v1480_v50 = vmax.f32 %v1478_v58, %v8946_v54  ;;  %v8949_v30 = vpop.f32.mrb[59].mxu0 }
 0x462   : > { %14349 = vst [vmem:[#allocation90_spill] sm:$0xff] %v8949_v30  ;;  %v1517_v9 = vmax.f32 %v1515_v28, %v8949_v30 }
 0x466   : > { %v8952_v44 = vpop.f32.mrb[60].mxu0 }
 0x467   : > { %v1481_v57 = vmax.f32 %v1479_v17, %v8952_v44  ;;  %v8955_v1 = vpop.f32.mrb[61].mxu0 }
 0x468   : > { %14350 = vst [vmem:[#allocation91_spill] sm:$0xff] %v8955_v1  ;;  %v1518_v25 = vmax.f32 %v1516_v2, %v8955_v1  ;;  %v8958_v63 = vpop.f32.mrb[62].mxu0 }
 0x469   : > { %v1482_v55 = vmax.f32 %v1480_v50, %v8958_v63  ;;  %v8961_v49 = vpop.f32.mrb[63].mxu0 }
 0x46a   : > { %14351 = vst [vmem:[#allocation92_spill] sm:$0xff] %v8961_v49  ;;  %v1519_v58 = vmax.f32 %v1517_v9, %v8961_v49 }
 0x46e   : > { %v8964_v36 = vpop.f32.mrb[64].mxu0 }
 0x46f   : > { %v1483_v28 = vmax.f32 %v1481_v57, %v8964_v36  ;;  %v8967_v46 = vpop.f32.mrb[65].mxu0 }
 0x470   : > { %14352 = vst [vmem:[#allocation93_spill] sm:$0xff] %v8967_v46  ;;  %v1520_v17 = vmax.f32 %v1518_v25, %v8967_v46  ;;  %v8970_v56 = vpop.f32.mrb[66].mxu0 }
 0x471   : > { %v1484_v2 = vmax.f32 %v1482_v55, %v8970_v56  ;;  %v8973_v14 = vpop.f32.mrb[67].mxu0 }
 0x472   : > { %14353 = vst [vmem:[#allocation94_spill] sm:$0xff] %v8973_v14  ;;  %v1521_v50 = vmax.f32 %v1519_v58, %v8973_v14 }
 0x476   : > { %v8976_v31 = vpop.f32.mrb[68].mxu0 }
 0x477   : > { %v1485_v9 = vmax.f32 %v1483_v28, %v8976_v31  ;;  %v8979_v19 = vpop.f32.mrb[69].mxu0 }
 0x478   : > { %14354 = vst [vmem:[#allocation95_spill] sm:$0xff] %v8979_v19  ;;  %v1522_v57 = vmax.f32 %v1520_v17, %v8979_v19  ;;  %v8982_v62 = vpop.f32.mrb[70].mxu0 }
 0x479   : > { %v1486_v25 = vmax.f32 %v1484_v2, %v8982_v62  ;;  %v8985_v11 = vpop.f32.mrb[71].mxu0 }
 0x47a   : > { %14355 = vst [vmem:[#allocation96_spill] sm:$0xff] %v8985_v11  ;;  %v1523_v55 = vmax.f32 %v1521_v50, %v8985_v11 }
 0x47e   : > { %v8988_v41 = vpop.f32.mrb[72].mxu0 }
 0x47f   : > { %v1487_v58 = vmax.f32 %v1485_v9, %v8988_v41  ;;  %v8991_v18 = vpop.f32.mrb[73].mxu0 }
 0x480   : > { %14356 = vst [vmem:[#allocation97_spill] sm:$0xff] %v8991_v18  ;;  %v1524_v28 = vmax.f32 %v1522_v57, %v8991_v18  ;;  %v8994_v4 = vpop.f32.mrb[74].mxu0 }
 0x481   : > { %v1488_v17 = vmax.f32 %v1486_v25, %v8994_v4  ;;  %v8997_v27 = vpop.f32.mrb[75].mxu0 }
 0x482   : > { %14357 = vst [vmem:[#allocation98_spill] sm:$0xff] %v8997_v27  ;;  %v1525_v2 = vmax.f32 %v1523_v55, %v8997_v27 }
 0x486   : > { %v9000_v40 = vpop.f32.mrb[76].mxu0 }
 0x487   : > { %v1489_v50 = vmax.f32 %v1487_v58, %v9000_v40  ;;  %v9003_v53 = vpop.f32.mrb[77].mxu0 }
 0x488   : > { %14358 = vst [vmem:[#allocation99_spill] sm:$0xff] %v9003_v53  ;;  %v1526_v9 = vmax.f32 %v1524_v28, %v9003_v53  ;;  %v9006_v47 = vpop.f32.mrb[78].mxu0 }
 0x489   : > { %v1490_v57 = vmax.f32 %v1488_v17, %v9006_v47  ;;  %v9009_v16 = vpop.f32.mrb[79].mxu0 }
 0x48a   : > { %14359 = vst [vmem:[#allocation100_spill] sm:$0xff] %v9009_v16  ;;  %v1527_v25 = vmax.f32 %v1525_v2, %v9009_v16 }
 0x48e   : > { %v9012_v6 = vpop.f32.mrb[80].mxu0 }
 0x48f   : > { %v1491_v55 = vmax.f32 %v1489_v50, %v9012_v6  ;;  %v9015_v52 = vpop.f32.mrb[81].mxu0 }
 0x490   : > { %14360 = vst [vmem:[#allocation101_spill] sm:$0xff] %v9015_v52  ;;  %v1528_v58 = vmax.f32 %v1526_v9, %v9015_v52  ;;  %v9018_v24 = vpop.f32.mrb[82].mxu0 }
 0x491   : > { %v1492_v28 = vmax.f32 %v1490_v57, %v9018_v24  ;;  %v9021_v53 = vpop.f32.mrb[83].mxu0 }
 0x492   : > { %14361 = vst [vmem:[#allocation102_spill] sm:$0xff] %v9021_v53  ;;  %v1529_v17 = vmax.f32 %v1527_v25, %v9021_v53 }
 0x496   : > { %v9024_v27 = vpop.f32.mrb[84].mxu0 }
 0x497   : > { %v1493_v2 = vmax.f32 %v1491_v55, %v9024_v27  ;;  %v9027_v16 = vpop.f32.mrb[85].mxu0 }
 0x498   : > { %14362 = vst [vmem:[#allocation103_spill] sm:$0xff] %v9027_v16  ;;  %v1530_v50 = vmax.f32 %v1528_v58, %v9027_v16  ;;  %v9030_v18 = vpop.f32.mrb[86].mxu0 }
 0x499   : > { %v1494_v9 = vmax.f32 %v1492_v28, %v9030_v18  ;;  %v9033_v52 = vpop.f32.mrb[87].mxu0 }
 0x49a   : > { %14363 = vst [vmem:[#allocation104_spill] sm:$0xff] %v9033_v52  ;;  %v1531_v57 = vmax.f32 %v1529_v17, %v9033_v52 }
 0x49e   : > { %v9036_v11 = vpop.f32.mrb[88].mxu0 }
 0x49f   : > { %v1495_v25 = vmax.f32 %v1493_v2, %v9036_v11  ;;  %v9039_v53 = vpop.f32.mrb[89].mxu0 }
 0x4a0   : > { %14364 = vst [vmem:[#allocation105_spill] sm:$0xff] %v9039_v53  ;;  %v1532_v55 = vmax.f32 %v1530_v50, %v9039_v53  ;;  %v9042_v19 = vpop.f32.mrb[90].mxu0 }
 0x4a1   : > { %v1496_v58 = vmax.f32 %v1494_v9, %v9042_v19  ;;  %v9045_v16 = vpop.f32.mrb[91].mxu0 }
 0x4a2   : > { %14365 = vst [vmem:[#allocation106_spill] sm:$0xff] %v9045_v16  ;;  %v1533_v28 = vmax.f32 %v1531_v57, %v9045_v16 }
 0x4a3   : > { %v1497_v14 = vmax.f32 %v1495_v25, %v1496_v58 }
 0x4a4   : > { %v1534_v46 = vmax.f32 %v1532_v55, %v1533_v28 }
 0x4a5   : > { %v1498_v49 = vrot.slane %v1497_v14, 4 }
 0x4a6   : > { %v1535_v17 = vrot.slane %v1534_v46, 4 }
 0x4a7   : > { %v1499_v52 = vmax.f32 %v1497_v14, %v1498_v49 }
 0x4a8   : > { %v1536_v1 = vmax.f32 %v1534_v46, %v1535_v17 }
 0x4a9   : > { %v1500_v30 = vrot.slane %v1499_v52, 2 }
 0x4aa   : > { %v1537_v2 = vrot.slane %v1536_v1, 2 }
 0x4ab   : > { %v1501_v15 = vmax.f32 %v1499_v52, %v1500_v30 }
 0x4ac   : > { %v1538_v37 = vmax.f32 %v1536_v1, %v1537_v2 }
 0x4ad   : > { %v1502_v23 = vrot.slane %v1501_v15, 1 }
 0x4ae   : > { %v1539_v50 = vrot.slane %v1538_v37, 1 }
 0x4af   : > { %v9048_v53 = vmax.f32 %v1501_v15, %v1502_v23 }
 0x4b0   : > { %v9050_v61 = vmax.f32 %v1538_v37, %v1539_v50 }
 0x4b1   : > { %v1541_v9 = vsub.f32 %v8856_v3, %v9048_v53  ;;  %v1543_v57 = vsub.f32 %v8860_v32, %v9048_v53  ;;  %v1545_v49 = vsub.f32 %v8864_v5, %v9048_v53  ;;  %v1547_v46 = vsub.f32 %v8870_v10, %v9048_v53 }
 0x4b2   : > { %v1549_v1 = vsub.f32 %v8880_v12, %v9048_v53  ;;  %v1551_v30 = vsub.f32 %v8885_v13, %v9048_v53  ;;  %v1553_v52 = vsub.f32 %v8892_v39, %v9048_v53  ;;  %v1555_v14 = vsub.f32 %v8898_v33, %v9048_v53 }
 0x4b3   : > { %v1557_v15 = vsub.f32 %v8904_v34, %v9048_v53  ;;  %v1559_v37 = vsub.f32 %v8910_v7, %v9048_v53  ;;  %v1561_v23 = vsub.f32 %v8916_v8, %v9048_v53  ;;  %v1563_v3 = vsub.f32 %v8922_v38, %v9048_v53 }
 0x4b4   : > { %v1565_v32 = vsub.f32 %v8928_v60, %v9048_v53  ;;  %v1567_v5 = vsub.f32 %v8934_v42, %v9048_v53  ;;  %v1569_v10 = vsub.f32 %v8940_v51, %v9048_v53  ;;  %v1571_v12 = vsub.f32 %v8946_v54, %v9048_v53 }
 0x4b5   : > { %v1573_v13 = vsub.f32 %v8952_v44, %v9048_v53  ;;  %v1575_v8 = vsub.f32 %v8958_v63, %v9048_v53  ;;  %v1577_v38 = vsub.f32 %v8964_v36, %v9048_v53  ;;  %v1579_v60 = vsub.f32 %v8970_v56, %v9048_v53  ;;  %v14385_v63 = vld [vmem:[#allocation105_spill] sm:$0xff] }
 0x4b6   : > { %v1581_v42 = vsub.f32 %v8976_v31, %v9048_v53  ;;  %v1583_v51 = vsub.f32 %v8982_v62, %v9048_v53  ;;  %v1585_v54 = vsub.f32 %v8988_v41, %v9048_v53  ;;  %v1587_v44 = vsub.f32 %v8994_v4, %v9048_v53 }
 0x4b7   : > { %v1605_v33 = vmul.f32 1.442695, %v1541_v9  ;;  %v1609_v34 = vmul.f32 1.442695, %v1543_v57  ;;  %v1613_v7 = vmul.f32 1.442695, %v1545_v49 }
 0x4b8   : > { %v1617_v55 = vmul.f32 1.442695, %v1547_v46  ;;  %v1621_v28 = vmul.f32 1.442695, %v1549_v1  ;;  %v1625_v17 = vmul.f32 1.442695, %v1551_v30 }
 0x4b9   : > { %6710 = vpow2.f32 %v1605_v33  ;;  %v1629_v2 = vmul.f32 1.442695, %v1553_v52  ;;  %v1633_v50 = vmul.f32 1.442695, %v1555_v14  ;;  %v1637_v4 = vmul.f32 1.442695, %v1557_v15 }
 0x4ba   : > { %6712 = vpow2.f32 %v1609_v34  ;;  %v1641_v39 = vmul.f32 1.442695, %v1559_v37  ;;  %v1645_v9 = vmul.f32 1.442695, %v1561_v23  ;;  %v1649_v57 = vmul.f32 1.442695, %v1563_v3 }
 0x4bb   : > { %6714 = vpow2.f32 %v1613_v7  ;;  %v1653_v49 = vmul.f32 1.442695, %v1565_v32  ;;  %v1657_v25 = vmul.f32 1.442695, %v1567_v5  ;;  %v1661_v46 = vmul.f32 1.442695, %v1569_v10 }
 0x4bc   : > { %6716 = vpow2.f32 %v1617_v55  ;;  %v1665_v41 = vmul.f32 1.442695, %v1571_v12  ;;  %v1669_v58 = vmul.f32 1.442695, %v1573_v13  ;;  %v1673_v33 = vmul.f32 1.442695, %v1575_v8 }
 0x4bd   : > { %6718 = vpow2.f32 %v1621_v28  ;;  %v1677_v1 = vmul.f32 1.442695, %v1577_v38  ;;  %v1681_v30 = vmul.f32 1.442695, %v1579_v60  ;;  %v1685_v34 = vmul.f32 1.442695, %v1581_v42 }
 0x4be   : > { %6720 = vpow2.f32 %v1625_v17  ;;  %v9120_v52 = vmul.f32 1.442695, %v1583_v51  ;;  %v9122_v14 = vmul.f32 1.442695, %v1585_v54  ;;  %v9124_v15 = vmul.f32 1.442695, %v1587_v44 }
 0x4bf   : > { %6722 = vpow2.f32 %v1629_v2  ;;  %v14366_v42 = vld [vmem:[#allocation26_spill] sm:$0xff]  ;;  %v14368_v7 = vld [vmem:[#allocation53_spill] sm:$0xff]  ;;  %v14369_v17 = vld [vmem:[#allocation28_spill] sm:$0xff] }
 0x4c0   : > { %6724 = vpow2.f32 %v1633_v50  ;;  %v14370_v50 = vld [vmem:[#allocation90_spill] sm:$0xff]  ;;  %v14372_v60 = vld [vmem:[#allocation92_spill] sm:$0xff]  ;;  %v14373_v38 = vld [vmem:[#allocation93_spill] sm:$0xff] }
 0x4c1   : > { %6726 = vpow2.f32 %v1637_v4  ;;  %v14367_v4 = vld [vmem:[#allocation27_spill] sm:$0xff]  ;;  %v14374_v2 = vld [vmem:[#allocation94_spill] sm:$0xff]  ;;  %v14376_v10 = vld [vmem:[#allocation96_spill] sm:$0xff] }
 0x4c2   : > { %6728 = vpow2.f32 %v1641_v39  ;;  %v14375_v12 = vld [vmem:[#allocation95_spill] sm:$0xff]  ;;  %v14377_v55 = vld [vmem:[#allocation97_spill] sm:$0xff]  ;;  %v14378_v3 = vld [vmem:[#allocation98_spill] sm:$0xff] }
 0x4c3   : > { %v9134_v5 = vpop.eup %6710  ;;  %6730 = vpow2.f32 %v1645_v9  ;;  %v14379_v9 = vld [vmem:[#allocation99_spill] sm:$0xff]  ;;  %v14380_v37 = vld [vmem:[#allocation100_spill] sm:$0xff] }
 0x4c4   : > { %v9142_v8 = vpop.eup %6712  ;;  %6732 = vpow2.f32 %v1649_v57  ;;  %v14371_v57 = vld [vmem:[#allocation91_spill] sm:$0xff] }
 0x4c5   : > { %v9150_v54 = vpop.eup %6714  ;;  %6734 = vpow2.f32 %v1653_v49  ;;  %v1733_v44 = vadd.f32 %v9142_v8, %v9134_v5  ;;  %v14384_v49 = vld [vmem:[#allocation104_spill] sm:$0xff] }
 0x4c6   : > { %v9158_v28 = vpop.eup %6716  ;;  %6736 = vpow2.f32 %v1657_v25  ;;  %v14382_v25 = vld [vmem:[#allocation102_spill] sm:$0xff] }
 0x4c7   : > { %v9166_v51 = vpop.eup %6718  ;;  %6738 = vpow2.f32 %v1661_v46  ;;  %v1734_v39 = vadd.f32 %v9150_v54, %v1733_v44 }
 0x4c8   : > { %v9173_v13 = vpop.eup %6720  ;;  %6740 = vpow2.f32 %v1665_v41 }
 0x4c9   : > { %v9181_v32 = vpop.eup %6722  ;;  %6742 = vpow2.f32 %v1669_v58  ;;  %v1735_v44 = vadd.f32 %v9158_v28, %v1734_v39 }
 0x4ca   : > { %v9188_v23 = vpop.eup %6724  ;;  %6744 = vpow2.f32 %v1673_v33 }
 0x4cb   : > { %v9196_v31 = vpop.eup %6726  ;;  %6746 = vpow2.f32 %v1677_v1  ;;  %v1736_v39 = vadd.f32 %v9166_v51, %v1735_v44  ;;  %v14386_v44 = vsub.f32 %v9000_v40, %v9048_v53 }
 0x4cc   : > { %v9203_v36 = vpop.eup %6728  ;;  %6748 = vpow2.f32 %v1681_v30  ;;  %v14387_v30 = vsub.f32 %v9006_v47, %v9048_v53 }
 0x4cd   : > { %v9211_v62 = vpop.eup %6730  ;;  %6750 = vpow2.f32 %v1685_v34  ;;  %v1701_v41 = vmul.f32 1.442695, %v14386_v44  ;;  %v1737_v33 = vadd.f32 %v9173_v13, %v1736_v39  ;;  %v14388_v34 = vsub.f32 %v9012_v6, %v9048_v53 }
 0x4ce   : > { %v9217_v56 = vpop.eup %6732  ;;  %6752 = vpow2.f32 %v9120_v52  ;;  %v1705_v58 = vmul.f32 1.442695, %v14387_v30  ;;  %v14389_v52 = vsub.f32 %v9018_v24, %v9048_v53  ;;  %v14393_v24 = vsub.f32 %v9036_v11, %v9048_v53 }
 0x4cf   : > { %v9223_v46 = vpop.eup %6734  ;;  %6754 = vpow2.f32 %v9122_v14  ;;  %v1709_v1 = vmul.f32 1.442695, %v14388_v34  ;;  %v1738_v40 = vadd.f32 %v9181_v32, %v1737_v33  ;;  %v14390_v14 = vsub.f32 %v9024_v27, %v9048_v53 }
 0x4d0   : > { %v9230_v44 = vpop.eup %6736  ;;  %6756 = vpow2.f32 %v9124_v15  ;;  %v1713_v39 = vmul.f32 1.442695, %v14389_v52  ;;  %v14391_v33 = vsub.f32 %v9030_v18, %v9048_v53 }
 0x4d1   : > { %v9236_v47 = vpop.eup %6738  ;;  %6758 = vpow2.f32 %v1701_v41  ;;  %v1717_v30 = vmul.f32 1.442695, %v14390_v14  ;;  %v1739_v6 = vadd.f32 %v9188_v23, %v1738_v40  ;;  %v1725_v41 = vmul.f32 1.442695, %v14393_v24 }
 0x4d2   : > { %v9242_v34 = vpop.eup %6740  ;;  %6760 = vpow2.f32 %v1705_v58  ;;  %v1721_v15 = vmul.f32 1.442695, %v14391_v33  ;;  %v14394_v40 = vsub.f32 %v9042_v19, %v9048_v53  ;;  %v14397_v19 = vsub.f32 %v8866_v45, %v9050_v61 }
 0x4d3   : > { %v9247_v16 = vpop.eup %6742  ;;  %6762 = vpow2.f32 %v1709_v1  ;;  %v1740_v52 = vadd.f32 %v9196_v31, %v1739_v6  ;;  %v14395_v1 = vsub.f32 %v8858_v20, %v9050_v61  ;;  %v14396_v6 = vsub.f32 %v8862_v35, %v9050_v61 }
 0x4d4   : > { %14392 = vst [vmem:[#allocation26_spill] sm:$0xff] %v9247_v16  ;;  %v9253_v27 = vpop.eup %6744  ;;  %6764 = vpow2.f32 %v1713_v39  ;;  %v1729_v58 = vmul.f32 1.442695, %v14394_v40  ;;  %v1615_v53 = vmul.f32 1.442695, %v14397_v19  ;;  %v14398_v20 = vsub.f32 %v8874_v29, %v9050_v61 }
 0x4d5   : > { %v9258_v14 = vpop.eup %6746  ;;  %6766 = vpow2.f32 %v1717_v30  ;;  %v1741_v18 = vadd.f32 %v9203_v36, %v1740_v52  ;;  %v1607_v33 = vmul.f32 1.442695, %v14395_v1  ;;  %v1611_v39 = vmul.f32 1.442695, %v14396_v6 }
 0x4d6   : > { %v9264_v11 = vpop.eup %6748  ;;  %6768 = vpow2.f32 %v1721_v15  ;;  %v1619_v52 = vmul.f32 1.442695, %v14398_v20  ;;  %v14399_v15 = vsub.f32 %v8882_v48, %v9050_v61  ;;  %v14400_v35 = vsub.f32 %v8888_v22, %v9050_v61 }
 0x4d7   : > { %v9272_v24 = vpop.eup %6750  ;;  %6770 = vpow2.f32 %v1725_v41  ;;  %v1742_v30 = vadd.f32 %v9211_v62, %v1741_v18  ;;  %v14401_v41 = vsub.f32 %v8895_v43, %v9050_v61  ;;  %v14402_v18 = vsub.f32 %v8901_v59, %v9050_v61 }
 0x4d8   : > { %v1623_v40 = vmul.f32 1.442695, %v14399_v15  ;;  %v9281_v1 = vpop.eup %6752  ;;  %6772 = vpow2.f32 %v1729_v58  ;;  %v1627_v45 = vmul.f32 1.442695, %v14400_v35  ;;  %v14403_v58 = vsub.f32 %v8907_v21, %v9050_v61 }
 0x4d9   : > { %v1631_v6 = vmul.f32 1.442695, %v14401_v41  ;;  %v1635_v29 = vmul.f32 1.442695, %v14402_v18  ;;  %v9292_v19 = vpop.eup %6754  ;;  %v1743_v48 = vadd.f32 %v9217_v56, %v1742_v30  ;;  %6774 = vpow2.f32 %v1607_v33 }
 0x4da   : > { %v1639_v20 = vmul.f32 1.442695, %v14403_v58  ;;  %v14404_v22 = vsub.f32 %v8913_v26, %v9050_v61  ;;  %v9301_v35 = vpop.eup %6756  ;;  %6776 = vpow2.f32 %v1611_v39 }
 0x4db   : > { %v9309_v30 = vpop.eup %6758  ;;  %v1744_v21 = vadd.f32 %v9223_v46, %v1743_v48  ;;  %6778 = vpow2.f32 %v1615_v53 }
 0x4dc   : > { %v1643_v15 = vmul.f32 1.442695, %v14404_v22  ;;  %v9316_v41 = vpop.eup %6760  ;;  %6780 = vpow2.f32 %v1619_v52  ;;  %v14405_v52 = vsub.f32 %v8919_v0, %v9050_v61  ;;  %v14406_v22 = vsub.f32 %v14366_v42, %v9050_v61 }
 0x4dd   : > { %v9324_v48 = vpop.eup %6762  ;;  %v1745_v53 = vadd.f32 %v9230_v44, %v1744_v21  ;;  %6782 = vpow2.f32 %v1623_v40 }
 0x4de   : > { %v9331_v26 = vpop.eup %6764  ;;  %6784 = vpow2.f32 %v1627_v45  ;;  %v1647_v39 = vmul.f32 1.442695, %v14405_v52  ;;  %v1651_v58 = vmul.f32 1.442695, %v14406_v22 }
 0x4df   : > { %v9339_v21 = vpop.eup %6766  ;;  %v1746_v40 = vadd.f32 %v9236_v47, %v1745_v53  ;;  %6786 = vpow2.f32 %v1631_v6  ;;  %v14407_v6 = vsub.f32 %v14367_v4, %v9050_v61  ;;  %v14412_v4 = vsub.f32 %v14372_v60, %v9050_v61 }
 0x4e0   : > { %v9347_v33 = vpop.eup %6768  ;;  %6788 = vpow2.f32 %v1635_v29  ;;  %v14408_v29 = vsub.f32 %v14368_v7, %v9050_v61  ;;  %v14411_v7 = vsub.f32 %v14371_v57, %v9050_v61  ;;  %v14415_v60 = vsub.f32 %v14375_v12, %v9050_v61 }
 0x4e1   : > { %v9352_v18 = vpop.eup %6770  ;;  %v1747_v59 = vadd.f32 %v9242_v34, %v1746_v40  ;;  %6790 = vpow2.f32 %v1639_v20  ;;  %v1655_v0 = vmul.f32 1.442695, %v14407_v6  ;;  %v14409_v20 = vsub.f32 %v14369_v17, %v9050_v61 }
 0x4e2   : > { %v9360_v52 = vpop.eup %6772  ;;  %6792 = vpow2.f32 %v1643_v15  ;;  %v1659_v42 = vmul.f32 1.442695, %v14408_v29  ;;  %v14410_v15 = vsub.f32 %v14370_v50, %v9050_v61  ;;  %v1671_v29 = vmul.f32 1.442695, %v14411_v7 }
 0x4e3   : > { %v6775_v22 = vpop.eup %6774  ;;  %v1748_v45 = vadd.f32 %v9247_v16, %v1747_v59  ;;  %6794 = vpow2.f32 %v1647_v39  ;;  %v1663_v40 = vmul.f32 1.442695, %v14409_v20  ;;  %v14413_v50 = vsub.f32 %v14373_v38, %v9050_v61 }
 0x4e4   : > { %v6777_v6 = vpop.eup %6776  ;;  %6796 = vpow2.f32 %v1651_v58  ;;  %v1667_v53 = vmul.f32 1.442695, %v14410_v15  ;;  %v1675_v58 = vmul.f32 1.442695, %v14412_v4  ;;  %v1687_v4 = vmul.f32 1.442695, %v14415_v60 }
 0x4e5   : > { %v6779_v43 = vpop.eup %6778  ;;  %v1749_v59 = vadd.f32 %v9253_v27, %v1748_v45  ;;  %6798 = vpow2.f32 %v1655_v0  ;;  %v1770_v39 = vadd.f32 %v6777_v6, %v6775_v22  ;;  %v1808_v17 = vpack.c.bf16 %v6777_v6, %v6775_v22 }
 0x4e6   : > { %v6781_v20 = vpop.eup %6780  ;;  %6800 = vpow2.f32 %v1659_v42  ;;  %v1679_v15 = vmul.f32 1.442695, %v14413_v50  ;;  %v14414_v42 = vsub.f32 %v14374_v2, %v9050_v61  ;;  %v14416_v38 = vpack.c.bf16 %v9142_v8, %v9134_v5 }
 0x4e7   : > { %v6783_v16 = vpop.eup %6782  ;;  %v1750_v57 = vadd.f32 %v9258_v14, %v1749_v59  ;;  %6802 = vpow2.f32 %v1663_v40  ;;  %v1771_v7 = vadd.f32 %v6779_v43, %v1770_v39  ;;  %1845 = vmatprep.subr.bf16.mxu1 %v1808_v17  ;;  %v1810_v45 = vpack.c.bf16 %v6781_v20, %v6779_v43 }
 0x4e8   : > { %v6785_v0 = vpop.eup %6784  ;;  %6804 = vpow2.f32 %v1667_v53  ;;  %v1683_v22 = vmul.f32 1.442695, %v14414_v42  ;;  %1846 = vmatpush1.bf16.msra.mxu1 %v14416_v38  ;;  %v14417_v2 = vsub.f32 %v14376_v10, %v9050_v61  ;;  %v14418_v12 = vsub.f32 %v14377_v55, %v9050_v61  ;;  %v14423_v38 = vld [vmem:[#allocation101_spill] sm:$0xff] }
 0x4e9   : > { %v6787_v6 = vpop.eup %6786  ;;  %v1751_v40 = vadd.f32 %v9264_v11, %v1750_v57  ;;  %6806 = vpow2.f32 %v1671_v29  ;;  %v1772_v59 = vadd.f32 %v6781_v20, %v1771_v7  ;;  %1847 = vmatprep.subr.bf16.mxu1 %v1810_v45  ;;  %v1812_v43 = vpack.c.bf16 %v6785_v0, %v6783_v16 }
 0x4ea   : > { %v6789_v53 = vpop.eup %6788  ;;  %6808 = vpow2.f32 %v1675_v58  ;;  %v1691_v39 = vmul.f32 1.442695, %v14417_v2  ;;  %v1695_v17 = vmul.f32 1.442695, %v14418_v12  ;;  %v14419_v20 = vsub.f32 %v14378_v3, %v9050_v61 }
 0x4eb   : > { %v6791_v50 = vpop.eup %6790  ;;  %v1752_v5 = vadd.f32 %v9272_v24, %v1751_v40  ;;  %6810 = vpow2.f32 %v1679_v15  ;;  %v1773_v8 = vadd.f32 %v6783_v16, %v1772_v59  ;;  %v1814_v57 = vpack.c.bf16 %v6789_v53, %v6787_v6 }
 0x4ec   : > { %v6793_v29 = vpop.eup %6792  ;;  %6812 = vpow2.f32 %v1683_v22  ;;  %v1699_v58 = vmul.f32 1.442695, %v14419_v20  ;;  %v14420_v10 = vsub.f32 %v14379_v9, %v9050_v61  ;;  %v14421_v55 = vpack.c.bf16 %v9158_v28, %v9150_v54 }
 0x4ed   : > { %v6795_v45 = vpop.eup %6794  ;;  %v1753_v42 = vadd.f32 %v9281_v1, %v1752_v5  ;;  %6814 = vpow2.f32 %v1687_v4  ;;  %v1774_v16 = vadd.f32 %v6785_v0, %v1773_v8  ;;  %v1816_v15 = vpack.c.bf16 %v6793_v29, %v6791_v50 }
 0x4ee   : > { %v1703_v7 = vmul.f32 1.442695, %v14420_v10  ;;  %1848 = vmatpush1.bf16.msra.mxu1 %v14421_v55  ;;  %v6797_v22 = vpop.eup %6796  ;;  %6816 = vpow2.f32 %v1691_v39  ;;  %v14422_v3 = vsub.f32 %v14380_v37, %v9050_v61  ;;  %v14424_v9 = vsub.f32 %v14423_v38, %v9050_v61  ;;  %v14426_v39 = vld [vmem:[#allocation103_spill] sm:$0xff] }
 0x4ef   : > { %1849 = vmatprep.subr.bf16.mxu1 %v1812_v43  ;;  %v6799_v59 = vpop.eup %6798  ;;  %v1754_v54 = vadd.f32 %v9292_v19, %v1753_v42  ;;  %6818 = vpow2.f32 %v1695_v17  ;;  %v1775_v28 = vadd.f32 %v6787_v6, %v1774_v16  ;;  %v1818_v2 = vpack.c.bf16 %v6797_v22, %v6795_v45 }
 0x4f0   : > { %v1707_v60 = vmul.f32 1.442695, %v14422_v3  ;;  %v1711_v40 = vmul.f32 1.442695, %v14424_v9  ;;  %v6801_v4 = vpop.eup %6800  ;;  %6820 = vpow2.f32 %v1699_v58  ;;  %v14425_v0 = vsub.f32 %v14382_v25, %v9050_v61 }
 0x4f1   : > { %v14427_v37 = vsub.f32 %v14426_v39, %v9050_v61  ;;  %v14428_v5 = vpack.c.bf16 %v9173_v13, %v9166_v51  ;;  %v6803_v8 = vpop.eup %6802  ;;  %v1755_v20 = vadd.f32 %v9301_v35, %v1754_v54  ;;  %6822 = vpow2.f32 %v1703_v7 }
 0x4f2   : > { %v1715_v43 = vmul.f32 1.442695, %v14425_v0  ;;  %v1776_v6 = vadd.f32 %v6789_v53, %v1775_v28  ;;  %v1820_v17 = vpack.c.bf16 %v6801_v4, %v6799_v59  ;;  %v6805_v58 = vpop.eup %6804  ;;  %6824 = vpow2.f32 %v1707_v60  ;;  %v14431_v53 = vld [vmem:[#allocation106_spill] sm:$0xff] }
 0x4f3   : > { %v1719_v12 = vmul.f32 1.442695, %v14427_v37  ;;  %1850 = vmatpush1.bf16.msra.mxu1 %v14428_v5  ;;  %v14429_v25 = vsub.f32 %v14384_v49, %v9050_v61  ;;  %v14430_v55 = vsub.f32 %v14385_v63, %v9050_v61  ;;  %v6807_v16 = vpop.eup %6806  ;;  %v1756_v13 = vadd.f32 %v9309_v30, %v1755_v20 }
 0x4f4   : > { %1851 = vmatprep.subr.bf16.mxu1 %v1814_v57  ;;  %6826 = vpow2.f32 %v1711_v40  ;;  %v1777_v51 = vadd.f32 %v6791_v50, %v1776_v6  ;;  %v1822_v3 = vpack.c.bf16 %v6805_v58, %v6803_v8  ;;  %v6809_v7 = vpop.eup %6808  ;;  %v14432_v57 = vsub.f32 %v14431_v53, %v9050_v61 }
 0x4f5   : > { %v1723_v10 = vmul.f32 1.442695, %v14429_v25  ;;  %v1727_v42 = vmul.f32 1.442695, %v14430_v55  ;;  %6828 = vpow2.f32 %v1715_v43  ;;  %v14433_v49 = vpack.c.bf16 %v9188_v23, %v9181_v32  ;;  %v6811_v38 = vpop.eup %6810 }
 0x4f6   : > { %v1731_v60 = vmul.f32 1.442695, %v14432_v57  ;;  %v1757_v63 = vadd.f32 %v9316_v41, %v1756_v13  ;;  %6830 = vpow2.f32 %v1719_v12  ;;  %v1778_v9 = vadd.f32 %v6793_v29, %v1777_v51  ;;  %v6813_v40 = vpop.eup %6812 }
 0x4f7   : > { %1852 = vmatpush1.bf16.msra.mxu1 %v14433_v49  ;;  %v1824_v54 = vpack.c.bf16 %v6809_v7, %v6807_v16  ;;  %6832 = vpow2.f32 %v1723_v10  ;;  %v6815_v50 = vpop.eup %6814  ;;  %v1826_v61 = vpack.c.bf16 %v6813_v40, %v6811_v38  ;;  %v14434_v23 = vpack.c.bf16 %v9203_v36, %v9196_v31 }
 0x4f8   : > { %1853 = vmatprep.subr.bf16.mxu1 %v1816_v15  ;;  %v1758_v28 = vadd.f32 %v9324_v48, %v1757_v63  ;;  %6834 = vpow2.f32 %v1727_v42  ;;  %v1779_v0 = vadd.f32 %v6795_v45, %v1778_v9  ;;  %v6817_v43 = vpop.eup %6816  ;;  %v14435_v25 = vpack.c.bf16 %v9217_v56, %v9211_v62 }
 0x4f9   : > { %6836 = vpow2.f32 %v1731_v60  ;;  %v6819_v32 = vpop.eup %6818  ;;  %v1828_v15 = vpack.c.bf16 %v6817_v43, %v6815_v50  ;;  %v14437_v63 = vpack.c.bf16 %v9242_v34, %v9236_v47  ;;  %v14441_v47 = vpack.c.bf16 %v9281_v1, %v9272_v24 }
 0x4fa   : > { %v1759_v39 = vadd.f32 %v9331_v26, %v1758_v28  ;;  %v1780_v29 = vadd.f32 %v6797_v22, %v1779_v0  ;;  %v6821_v37 = vpop.eup %6820  ;;  %v14444_v24 = vpack.c.bf16 %v9331_v26, %v9324_v48  ;;  %v14450_v26 = vpack.c.bf16 %v9360_v52, %v9352_v18  ;;  %v14451_v48 = vld [vmem:[#allocation10_spill] sm:$0xff] }
 0x4fb   : > { %1854 = vmatpush1.bf16.msra.mxu1 %v14434_v23  ;;  %v6823_v12 = vpop.eup %6822  ;;  %v1830_v6 = vpack.c.bf16 %v6821_v37, %v6819_v32  ;;  %v1841_v23 = vrot.slane %v14451_v48, 2 }
 0x4fc   : > { %1855 = vmatprep.subr.bf16.mxu1 %v1818_v2  ;;  %v1760_v5 = vadd.f32 %v9339_v21, %v1759_v39  ;;  %v1781_v20 = vadd.f32 %v6799_v59, %v1780_v29  ;;  %v6825_v45 = vpop.eup %6824  ;;  %v14436_v59 = vpack.c.bf16 %v9230_v44, %v9223_v46  ;;  %v14438_v46 = vld [vmem:[#allocation26_spill] sm:$0xff]  ;;  %v14454_v39 = vld [vmem:[#allocation37_spill] sm:$0xff]  ;;  %v14457_v29 = vld [vmem:[#allocation43_spill] sm:$0xff] }
 0x4fd   : > { %v1832_v55 = vpack.c.bf16 %v6825_v45, %v6823_v12  ;;  %v14439_v44 = vpack.c.bf16 %v9253_v27, %v14438_v46  ;;  %v14442_v27 = vpack.c.bf16 %v9301_v35, %v9292_v19  ;;  %v14445_v19 = vpack.c.bf16 %v9347_v33, %v9339_v21 }
 0x4fe   : > { %v6827_v10 = vpop.eup %6826  ;;  %v1761_v36 = vadd.f32 %v9347_v33, %v1760_v5  ;;  %v1782_v31 = vadd.f32 %v6801_v4, %v1781_v20  ;;  %v14452_v21 = vmov 0   ;;  %v14461_v5 = vld [vmem:[#allocation31_spill] sm:$0xff]  ;;  %v14462_v20 = vld [vmem:[#allocation32_spill] sm:$0xff] }
 0x4ff   : > { %1856 = vmatpush1.bf16.msra.mxu1 %v14435_v25  ;;  %v6829_v22 = vpop.eup %6828  ;;  %v14465_v25 = vld [vmem:[#allocation36_spill] sm:$0xff] }
 0x500   : > { %1857 = vmatprep.subr.bf16.mxu1 %v1820_v17  ;;  %v6831_v2 = vpop.eup %6830  ;;  %v1762_v42 = vadd.f32 %v9352_v18, %v1761_v36  ;;  %v1783_v13 = vadd.f32 %v6803_v8, %v1782_v31  ;;  %v1834_v51 = vpack.c.bf16 %v6829_v22, %v6827_v10  ;;  %v14455_v18 = vld [vmem:[#allocation39_spill] sm:$0xff]  ;;  %v14467_v36 = vld [vmem:[#allocation40_spill] sm:$0xff]  ;;  %v14468_v31 = vld [vmem:[#allocation17_spill] sm:$0xff] }
 0x501   : > { %v6833_v53 = vpop.eup %6832 }
 0x502   : > { %v6835_v57 = vpop.eup %6834  ;;  %v9458_v56 = vadd.f32 %v9360_v52, %v1762_v42  ;;  %v1784_v62 = vadd.f32 %v6805_v58, %v1783_v13  ;;  %v1836_v4 = vpack.c.bf16 %v6833_v53, %v6831_v2  ;;  %v14440_v58 = vpack.c.bf16 %v9264_v11, %v9258_v14  ;;  %v14456_v52 = vld [vmem:[#allocation41_spill] sm:$0xff] }
 0x503   : > { %1858 = vmatpush1.bf16.msra.mxu1 %v14436_v59  ;;  %v6837_v17 = vpop.eup %6836  ;;  %v14443_v14 = vpack.c.bf16 %v9316_v41, %v9309_v30  ;;  %v14448_v41 = vld [vmem:[#allocation30_spill] sm:$0xff] }
 0x504   : > { %1859 = vmatprep.subr.bf16.mxu1 %v1822_v3  ;;  %v1785_v60 = vadd.f32 %v6807_v16, %v1784_v62  ;;  %v1838_v49 = vpack.c.bf16 %v6837_v17, %v6835_v57 }
 0x506   : > { %v1786_v8 = vadd.f32 %v6809_v7, %v1785_v60 }
 0x507   : > { %1860 = vmatpush1.bf16.msra.mxu1 %v14437_v63 }
 0x508   : > { %1861 = vmatprep.subr.bf16.mxu1 %v1824_v54  ;;  %v1787_v9 = vadd.f32 %v6811_v38, %v1786_v8 }
 0x50a   : > { %v1788_v28 = vadd.f32 %v6813_v40, %v1787_v9 }
 0x50b   : > { %1862 = vmatpush1.bf16.msra.mxu1 %v14439_v44 }
 0x50c   : > { %1863 = vmatprep.subr.bf16.mxu1 %v1826_v61  ;;  %v1789_v0 = vadd.f32 %v6815_v50, %v1788_v28  ;;  %v14446_v61 = vld [vmem:[#allocation29_spill] sm:$0xff] }
 0x50d   : > { %v9486_v30 = vpack.c.bf16 %v14446_v61, %v14446_v61 }
 0x50e   : > { %v1790_v16 = vadd.f32 %v6817_v43, %v1789_v0  ;;  %v9490_v43 = vpack.c.bf16 %v14448_v41, %v14448_v41 }
 0x50f   : > { %1864 = vmatpush1.bf16.msra.mxu1 %v14440_v58  ;;  %14447 = vst [vmem:[#allocation27_spill] sm:$0xff] %v9486_v30  ;;  %v1977_v33 = vsel %vm561_vm1, %v9486_v30, 0 }
 0x510   : > { %1865 = vmatprep.subr.bf16.mxu1 %v1828_v15  ;;  %v1791_v3 = vadd.f32 %v6819_v32, %v1790_v16  ;;  %14449 = vst [vmem:[#allocation53_spill] sm:$0xff] %v9490_v43  ;;  %v14453_v32 = vld [vmem:[#allocation35_spill] sm:$0xff]  ;;  %v14458_v15 = vld [vmem:[#allocation45_spill] sm:$0xff]  ;;  %v14470_v16 = vld [vmem:[#allocation24_spill] sm:$0xff] }
 0x512   : > { %v1792_v34 = vadd.f32 %v6821_v37, %v1791_v3  ;;  %v14459_v37 = vld [vmem:[#allocation47_spill] sm:$0xff] }
 0x513   : > { %1866 = vmatpush1.bf16.msra.mxu1 %v14441_v47 }
 0x514   : > { %1867 = vmatprep.subr.bf16.mxu1 %v1830_v6  ;;  %v1793_v7 = vadd.f32 %v6823_v12, %v1792_v34  ;;  %v14460_v12 = vld [vmem:[#allocation49_spill] sm:$0xff] }
 0x515   : > { %v14463_v6 = vld [vmem:[#allocation33_spill] sm:$0xff] }
 0x516   : > { %v1794_v38 = vadd.f32 %v6825_v45, %v1793_v7  ;;  %v14464_v45 = vld [vmem:[#allocation34_spill] sm:$0xff] }
 0x517   : > { %1868 = vmatpush1.bf16.msra.mxu1 %v14442_v27 }
 0x518   : > { %1869 = vmatprep.subr.bf16.mxu1 %v1832_v55  ;;  %v1795_v54 = vadd.f32 %v6827_v10, %v1794_v38  ;;  %v14466_v10 = vld [vmem:[#allocation38_spill] sm:$0xff]  ;;  %v3256_v55 = vrot.slane %v14468_v31, 2 }
 0x51a   : > { %v1796_v11 = vadd.f32 %v6829_v22, %v1795_v54  ;;  %v14469_v22 = vld [vmem:[#allocation42_spill] sm:$0xff] }
 0x51b   : > { %1870 = vmatpush1.bf16.msra.mxu1 %v14443_v14 }
 0x51c   : > { %1871 = vmatprep.subr.bf16.mxu1 %v1834_v51  ;;  %v1797_v40 = vadd.f32 %v6831_v2, %v1796_v11  ;;  %v1764_v2 = vrot.slane %v9458_v56, 4 }
 0x51e   : > { %v1798_v1 = vadd.f32 %v6833_v53, %v1797_v40  ;;  %v1765_v13 = vadd.f32 %v1764_v2, %v9458_v56 }
 0x51f   : > { %1872 = vmatpush1.bf16.msra.mxu1 %v14444_v24 }
 0x520   : > { %1873 = vmatprep.subr.bf16.mxu1 %v1836_v4  ;;  %v1799_v50 = vadd.f32 %v6835_v57, %v1798_v1  ;;  %v1766_v53 = vrot.slane %v1765_v13, 2 }
 0x522   : > { %v1800_v35 = vadd.f32 %v6837_v17, %v1799_v50  ;;  %v1767_v57 = vadd.f32 %v1766_v53, %v1765_v13 }
 0x523   : > { %1874 = vmatpush1.bf16.msra.mxu1 %v14445_v19 }
 0x524   : > { %1875 = vmatprep.subr.bf16.mxu1 %v1838_v49  ;;  %v1801_v42 = vrot.slane %v1800_v35, 4  ;;  %v1768_v4 = vrot.slane %v1767_v57, 1 }
 0x526   : > { %v1802_v51 = vadd.f32 %v1801_v42, %v1800_v35  ;;  %v1769_v60 = vadd.f32 %v1768_v4, %v1767_v57 }
 0x527   : > { %1876 = vmatpush1.bf16.msra.mxu1 %v14450_v26 }
 0x528   : > { %6407 = vmatprep.subr.msk.bf16.mxu1 %vm561_vm1, %v9490_v43  ;;  %v1803_v59 = vrot.slane %v1802_v51, 2  ;;  %6838 = vrcp.f32 %v1769_v60 }
 0x52a   : > { %1878 = vmatmul.mubr.bf16.vlgmr.msra.gmra.mrb[64].mxu1 %v1841_v23  ;;  %v1804_v62 = vadd.f32 %v1803_v59, %v1802_v51 }
 0x52b   : > { %1983 = vmatpush1.bf16.msra.mxu1 %v1977_v33  ;;  %2014 = vmatprep.mubr.bf16.mxu1 %v14452_v21 }
 0x52c   : > { %v1805_v17 = vrot.slane %v1804_v62, 1 }
 0x52e   : > { %v1806_v49 = vadd.f32 %v1805_v17, %v1804_v62 }
 0x530   : > { %6840 = vrcp.f32 %v1806_v49 }
 0x532   : > { %6408 = vmatmul.mubr.msk.bf16.vlgmr.msra.gmra.mrb[68].mxu1 %vm512_vm2, %v14453_v32  ;;  %v6839_v63 = vpop.eup %6838 }
 0x533   : > { %2024 = vmatprep.mubr.bf16.mxu1 %v14452_v21 }
 0x53a   : > { %6409 = vmatmul.mubr.msk.bf16.gmra.mrb[72].mxu1 %vm512_vm2, %v14454_v39  ;;  %v6841_v9 = vpop.eup %6840 }
 0x53b   : > { %2034 = vmatprep.mubr.bf16.mxu1 %v14452_v21 }
 0x542   : > { %6410 = vmatmul.mubr.msk.bf16.gmra.mrb[76].mxu1 %vm512_vm2, %v14455_v18 }
 0x543   : > { %2044 = vmatprep.mubr.bf16.mxu1 %v14452_v21 }
 0x54a   : > { %6411 = vmatmul.mubr.msk.bf16.gmra.mrb[80].mxu1 %vm512_vm2, %v14456_v52 }
 0x54b   : > { %2054 = vmatprep.mubr.bf16.mxu1 %v14452_v21 }
 0x552   : > { %6412 = vmatmul.mubr.msk.bf16.gmra.mrb[84].mxu1 %vm512_vm2, %v14457_v29 }
 0x553   : > { %2064 = vmatprep.mubr.bf16.mxu1 %v14452_v21 }
 0x55a   : > { %6413 = vmatmul.mubr.msk.bf16.gmra.mrb[88].mxu1 %vm512_vm2, %v14458_v15 }
 0x55b   : > { %2074 = vmatprep.mubr.bf16.mxu1 %v14452_v21 }
 0x562   : > { %6414 = vmatmul.mubr.msk.bf16.gmra.mrb[92].mxu1 %vm512_vm2, %v14459_v37 }
 0x563   : > { %2084 = vmatprep.mubr.bf16.mxu1 %v14452_v21 }
 0x56a   : > { %6415 = vmatmul.mubr.msk.bf16.gmra.mrb[96].mxu1 %vm512_vm2, %v14460_v12 }
 0x56b   : > { %2094 = vmatprep.mubr.bf16.mxu1 %v14452_v21 }
 0x572   : > { %6416 = vmatmul.mubr.msk.bf16.gmra.mrb[100].mxu1 %vm512_vm2, %v14461_v5 }
 0x573   : > { %2104 = vmatprep.mubr.bf16.mxu1 %v14452_v21 }
 0x57a   : > { %6417 = vmatmul.mubr.msk.bf16.gmra.mrb[104].mxu1 %vm512_vm2, %v14462_v20 }
 0x57b   : > { %2114 = vmatprep.mubr.bf16.mxu1 %v14452_v21 }
 0x582   : > { %6418 = vmatmul.mubr.msk.bf16.gmra.mrb[108].mxu1 %vm512_vm2, %v14463_v6 }
 0x583   : > { %2124 = vmatprep.mubr.bf16.mxu1 %v14452_v21 }
 0x58a   : > { %6419 = vmatmul.mubr.msk.bf16.gmra.mrb[112].mxu1 %vm512_vm2, %v14464_v45 }
 0x58b   : > { %2134 = vmatprep.mubr.bf16.mxu1 %v14452_v21 }
 0x592   : > { %6420 = vmatmul.mubr.msk.bf16.gmra.mrb[116].mxu1 %vm512_vm2, %v14465_v25 }
 0x593   : > { %2144 = vmatprep.mubr.bf16.mxu1 %v14452_v21 }
 0x59a   : > { %6421 = vmatmul.mubr.msk.bf16.gmra.mrb[120].mxu1 %vm512_vm2, %v14466_v10 }
 0x59b   : > { %2154 = vmatprep.mubr.bf16.mxu1 %v14452_v21 }
 0x5a2   : > { %6422 = vmatmul.mubr.msk.bf16.gmra.mrb[124].mxu1 %vm512_vm2, %v14467_v36 }
 0x5a3   : > { %2164 = vmatprep.mubr.bf16.mxu1 %v14452_v21 }
 0x5aa   : > { %6423 = vmatmul.mubr.msk.bf16.gmra.mrb[128].mxu1 %vm512_vm2, %v14469_v22 }
 0x5ab   : > { %3291 = vmatprep.mubr.bf16.mxu1 %v3256_v55 }
 0x5fd   : > { %v1879_v8 = vpop.f32.mrb[64].mxu1 }
 0x5fe   : > { %v1888_v46 = vmul.f32 %v6839_v63, %v1879_v8  ;;  %v1881_v44 = vpop.f32.mrb[65].mxu1 }
 0x5ff   : > { %v9551_v28 = vmul.f32 %v6841_v9, %v1881_v44  ;;  %v1883_v56 = vpop.f32.mrb[66].mxu1 }
 0x600   : > { %v6134_v0 = vrot.slane %v1888_v46, 4  ;;  %v1884_v58 = vpop.f32.mrb[67].mxu1 }
 0x602   : > { %v9555_v3 = vsel %vm6156_vm3, %v14470_v16, %v6134_v0 }
 0x603   : > { %14471 = vst [vmem:[#allocation28_spill] sm:$0xff] %v9555_v3 }
 0x605   : > { %v9557_v47 = vpop.f32.mrb[68].mxu1 }
 0x606   : > { %v9559_v34 = vpop.f32.mrb[69].mxu1 }
 0x607   : > { %v9561_v7 = vpop.f32.mrb[70].mxu1 }
 0x608   : > { %v9563_v27 = vpop.f32.mrb[71].mxu1 }
 0x60d   : > { %v9565_v38 = vpop.f32.mrb[72].mxu1 }
 0x60e   : > { %v2175_v54 = vmax.f32 %v9557_v47, %v9565_v38  ;;  %v9569_v14 = vpop.f32.mrb[73].mxu1 }
 0x60f   : > { %v2212_v11 = vmax.f32 %v9559_v34, %v9569_v14  ;;  %v9573_v40 = vpop.f32.mrb[74].mxu1 }
 0x610   : > { %v2176_v24 = vmax.f32 %v9561_v7, %v9573_v40  ;;  %v9577_v1 = vpop.f32.mrb[75].mxu1 }
 0x611   : > { %v2213_v50 = vmax.f32 %v9563_v27, %v9577_v1 }
 0x615   : > { %v9581_v19 = vpop.f32.mrb[76].mxu1 }
 0x616   : > { %v2177_v35 = vmax.f32 %v2175_v54, %v9581_v19  ;;  %v9584_v61 = vpop.f32.mrb[77].mxu1 }
 0x617   : > { %v2214_v41 = vmax.f32 %v2212_v11, %v9584_v61  ;;  %v9587_v26 = vpop.f32.mrb[78].mxu1 }
 0x618   : > { %v2178_v48 = vmax.f32 %v2176_v24, %v9587_v26  ;;  %v9590_v23 = vpop.f32.mrb[79].mxu1 }
 0x619   : > { %v2215_v33 = vmax.f32 %v2213_v50, %v9590_v23 }
 0x61d   : > { %v9593_v32 = vpop.f32.mrb[80].mxu1 }
 0x61e   : > { %v2179_v39 = vmax.f32 %v2177_v35, %v9593_v32  ;;  %v9596_v18 = vpop.f32.mrb[81].mxu1 }
 0x61f   : > { %v2216_v52 = vmax.f32 %v2214_v41, %v9596_v18  ;;  %v9599_v29 = vpop.f32.mrb[82].mxu1 }
 0x620   : > { %v2180_v15 = vmax.f32 %v2178_v48, %v9599_v29  ;;  %v9602_v37 = vpop.f32.mrb[83].mxu1 }
 0x621   : > { %v2217_v12 = vmax.f32 %v2215_v33, %v9602_v37 }
 0x625   : > { %v9605_v5 = vpop.f32.mrb[84].mxu1 }
 0x626   : > { %v2181_v20 = vmax.f32 %v2179_v39, %v9605_v5  ;;  %v9608_v6 = vpop.f32.mrb[85].mxu1 }
 0x627   : > { %v2218_v45 = vmax.f32 %v2216_v52, %v9608_v6  ;;  %v9611_v25 = vpop.f32.mrb[86].mxu1 }
 0x628   : > { %v2182_v10 = vmax.f32 %v2180_v15, %v9611_v25  ;;  %v9614_v36 = vpop.f32.mrb[87].mxu1 }
 0x629   : > { %14472 = vst [vmem:[#allocation90_spill] sm:$0xff] %v9614_v36  ;;  %v2219_v31 = vmax.f32 %v2217_v12, %v9614_v36 }
 0x62d   : > { %v9617_v55 = vpop.f32.mrb[88].mxu1 }
 0x62e   : > { %v2183_v22 = vmax.f32 %v2181_v20, %v9617_v55  ;;  %v9620_v2 = vpop.f32.mrb[89].mxu1 }
 0x62f   : > { %14473 = vst [vmem:[#allocation91_spill] sm:$0xff] %v9620_v2  ;;  %v2220_v42 = vmax.f32 %v2218_v45, %v9620_v2  ;;  %v9623_v13 = vpop.f32.mrb[90].mxu1 }
 0x630   : > { %v2184_v51 = vmax.f32 %v2182_v10, %v9623_v13  ;;  %v9626_v53 = vpop.f32.mrb[91].mxu1 }
 0x631   : > { %14474 = vst [vmem:[#allocation92_spill] sm:$0xff] %v9626_v53  ;;  %v2221_v59 = vmax.f32 %v2219_v31, %v9626_v53 }
 0x635   : > { %v9629_v57 = vpop.f32.mrb[92].mxu1 }
 0x636   : > { %v2185_v62 = vmax.f32 %v2183_v22, %v9629_v57  ;;  %v9632_v4 = vpop.f32.mrb[93].mxu1 }
 0x637   : > { %14475 = vst [vmem:[#allocation93_spill] sm:$0xff] %v9632_v4  ;;  %v2222_v17 = vmax.f32 %v2220_v42, %v9632_v4  ;;  %v9635_v60 = vpop.f32.mrb[94].mxu1 }
 0x638   : > { %v2186_v49 = vmax.f32 %v2184_v51, %v9635_v60  ;;  %v9638_v63 = vpop.f32.mrb[95].mxu1 }
 0x639   : > { %14476 = vst [vmem:[#allocation94_spill] sm:$0xff] %v9638_v63  ;;  %v2223_v8 = vmax.f32 %v2221_v59, %v9638_v63 }
 0x63d   : > { %v9641_v9 = vpop.f32.mrb[96].mxu1 }
 0x63e   : > { %v2187_v46 = vmax.f32 %v2185_v62, %v9641_v9  ;;  %v9644_v44 = vpop.f32.mrb[97].mxu1 }
 0x63f   : > { %14477 = vst [vmem:[#allocation95_spill] sm:$0xff] %v9644_v44  ;;  %v2224_v56 = vmax.f32 %v2222_v17, %v9644_v44  ;;  %v9647_v0 = vpop.f32.mrb[98].mxu1 }
 0x640   : > { %v2188_v58 = vmax.f32 %v2186_v49, %v9647_v0  ;;  %v9650_v16 = vpop.f32.mrb[99].mxu1 }
 0x641   : > { %14478 = vst [vmem:[#allocation96_spill] sm:$0xff] %v9650_v16  ;;  %v2225_v54 = vmax.f32 %v2223_v8, %v9650_v16  ;;  %v14495_v16 = vld [vmem:[#allocation25_spill] sm:$0xff] }
 0x645   : > { %v9653_v11 = vpop.f32.mrb[100].mxu1 }
 0x646   : > { %v2189_v24 = vmax.f32 %v2187_v46, %v9653_v11  ;;  %v9656_v50 = vpop.f32.mrb[101].mxu1 }
 0x647   : > { %14479 = vst [vmem:[#allocation97_spill] sm:$0xff] %v9656_v50  ;;  %v2226_v35 = vmax.f32 %v2224_v56, %v9656_v50  ;;  %v9659_v41 = vpop.f32.mrb[102].mxu1 }
 0x648   : > { %v2190_v48 = vmax.f32 %v2188_v58, %v9659_v41  ;;  %v9662_v33 = vpop.f32.mrb[103].mxu1 }
 0x649   : > { %14480 = vst [vmem:[#allocation98_spill] sm:$0xff] %v9662_v33  ;;  %v2227_v39 = vmax.f32 %v2225_v54, %v9662_v33 }
 0x64d   : > { %v9665_v52 = vpop.f32.mrb[104].mxu1 }
 0x64e   : > { %v2191_v15 = vmax.f32 %v2189_v24, %v9665_v52  ;;  %v9668_v12 = vpop.f32.mrb[105].mxu1 }
 0x64f   : > { %14481 = vst [vmem:[#allocation99_spill] sm:$0xff] %v9668_v12  ;;  %v2228_v20 = vmax.f32 %v2226_v35, %v9668_v12  ;;  %v9671_v45 = vpop.f32.mrb[106].mxu1 }
 0x650   : > { %v2192_v10 = vmax.f32 %v2190_v48, %v9671_v45  ;;  %v9674_v31 = vpop.f32.mrb[107].mxu1 }
 0x651   : > { %14482 = vst [vmem:[#allocation100_spill] sm:$0xff] %v9674_v31  ;;  %v2229_v22 = vmax.f32 %v2227_v39, %v9674_v31 }
 0x655   : > { %v9677_v42 = vpop.f32.mrb[108].mxu1 }
 0x656   : > { %v2193_v51 = vmax.f32 %v2191_v15, %v9677_v42  ;;  %v9680_v59 = vpop.f32.mrb[109].mxu1 }
 0x657   : > { %14483 = vst [vmem:[#allocation102_spill] sm:$0xff] %v9680_v59  ;;  %v2230_v62 = vmax.f32 %v2228_v20, %v9680_v59  ;;  %v9683_v17 = vpop.f32.mrb[110].mxu1 }
 0x658   : > { %v2194_v49 = vmax.f32 %v2192_v10, %v9683_v17  ;;  %v9686_v8 = vpop.f32.mrb[111].mxu1 }
 0x659   : > { %14484 = vst [vmem:[#allocation104_spill] sm:$0xff] %v9686_v8  ;;  %v2231_v46 = vmax.f32 %v2229_v22, %v9686_v8 }
 0x65d   : > { %v9689_v56 = vpop.f32.mrb[112].mxu1 }
 0x65e   : > { %v2195_v58 = vmax.f32 %v2193_v51, %v9689_v56  ;;  %v9692_v54 = vpop.f32.mrb[113].mxu1 }
 0x65f   : > { %14485 = vst [vmem:[#allocation105_spill] sm:$0xff] %v9692_v54  ;;  %v2232_v24 = vmax.f32 %v2230_v62, %v9692_v54  ;;  %v9695_v35 = vpop.f32.mrb[114].mxu1 }
 0x660   : > { %v2196_v48 = vmax.f32 %v2194_v49, %v9695_v35  ;;  %v9698_v39 = vpop.f32.mrb[115].mxu1 }
 0x661   : > { %14486 = vst [vmem:[#allocation101_spill] sm:$0xff] %v9698_v39  ;;  %v2233_v15 = vmax.f32 %v2231_v46, %v9698_v39 }
 0x665   : > { %v9701_v20 = vpop.f32.mrb[116].mxu1 }
 0x666   : > { %v2197_v10 = vmax.f32 %v2195_v58, %v9701_v20  ;;  %v9704_v22 = vpop.f32.mrb[117].mxu1 }
 0x667   : > { %14487 = vst [vmem:[#allocation103_spill] sm:$0xff] %v9704_v22  ;;  %v2234_v51 = vmax.f32 %v2232_v24, %v9704_v22  ;;  %v9707_v3 = vpop.f32.mrb[118].mxu1 }
 0x668   : > { %v2198_v62 = vmax.f32 %v2196_v48, %v9707_v3  ;;  %v9710_v21 = vpop.f32.mrb[119].mxu1 }
 0x669   : > { %14488 = vst [vmem:[#allocation106_spill] sm:$0xff] %v9710_v21  ;;  %v2235_v49 = vmax.f32 %v2233_v15, %v9710_v21 }
 0x66d   : > { %v9713_v43 = vpop.f32.mrb[120].mxu1 }
 0x66e   : > { %v2199_v46 = vmax.f32 %v2197_v10, %v9713_v43  ;;  %v9716_v30 = vpop.f32.mrb[121].mxu1 }
 0x66f   : > { %14489 = vst [vmem:[#allocation26_spill] sm:$0xff] %v9716_v30  ;;  %v2236_v58 = vmax.f32 %v2234_v51, %v9716_v30  ;;  %v9719_v39 = vpop.f32.mrb[122].mxu1 }
 0x670   : > { %v2200_v24 = vmax.f32 %v2198_v62, %v9719_v39  ;;  %v9722_v22 = vpop.f32.mrb[123].mxu1 }
 0x671   : > { %14490 = vst [vmem:[#allocation29_spill] sm:$0xff] %v9722_v22  ;;  %v2237_v48 = vmax.f32 %v2235_v49, %v9722_v22 }
 0x675   : > { %v9725_v54 = vpop.f32.mrb[124].mxu1 }
 0x676   : > { %v2201_v15 = vmax.f32 %v2199_v46, %v9725_v54  ;;  %v9728_v21 = vpop.f32.mrb[125].mxu1 }
 0x677   : > { %14491 = vst [vmem:[#allocation30_spill] sm:$0xff] %v9728_v21  ;;  %v2238_v10 = vmax.f32 %v2236_v58, %v9728_v21  ;;  %v9731_v8 = vpop.f32.mrb[126].mxu1 }
 0x678   : > { %v2202_v51 = vmax.f32 %v2200_v24, %v9731_v8  ;;  %v9734_v30 = vpop.f32.mrb[127].mxu1  ;;  %v6135_v24 = vrot.slane %v9551_v28, 4 }
 0x679   : > { %14492 = vst [vmem:[#allocation10_spill] sm:$0xff] %v9734_v30  ;;  %v2239_v62 = vmax.f32 %v2237_v48, %v9734_v30 }
 0x67d   : > { %v9737_v59 = vpop.f32.mrb[128].mxu1 }
 0x67e   : > { %v2203_v49 = vmax.f32 %v2201_v15, %v9737_v59  ;;  %v9740_v22 = vpop.f32.mrb[129].mxu1  ;;  %v9752_v15 = vsel %vm6156_vm3, %v14495_v16, %v6135_v24 }
 0x67f   : > { %14493 = vst [vmem:[#allocation35_spill] sm:$0xff] %v9740_v22  ;;  %v2240_v46 = vmax.f32 %v2238_v10, %v9740_v22  ;;  %v9743_v31 = vpop.f32.mrb[130].mxu1  ;;  %14496 = vst [vmem:[#allocation39_spill] sm:$0xff] %v9752_v15 }
 0x680   : > { %v2204_v58 = vmax.f32 %v2202_v51, %v9743_v31  ;;  %v9746_v21 = vpop.f32.mrb[131].mxu1 }
 0x681   : > { %14494 = vst [vmem:[#allocation37_spill] sm:$0xff] %v9746_v21  ;;  %v2241_v12 = vmax.f32 %v2239_v62, %v9746_v21 }
 0x682   : > { %v2205_v33 = vmax.f32 %v2203_v49, %v2204_v58 }
 0x683   : > { %v2242_v48 = vmax.f32 %v2240_v46, %v2241_v12 }
 0x684   : > { %v2206_v30 = vrot.slane %v2205_v33, 4 }
 0x685   : > { %v2243_v50 = vrot.slane %v2242_v48, 4 }
 0x686   : > { %v2207_v44 = vmax.f32 %v2205_v33, %v2206_v30  ;;  %v14513_v33 = vld [vmem:[#allocation106_spill] sm:$0xff]  ;;  %v14518_v15 = vld [vmem:[#allocation35_spill] sm:$0xff] }
 0x687   : > { %v2244_v10 = vmax.f32 %v2242_v48, %v2243_v50 }
 0x688   : > { %v2208_v22 = vrot.slane %v2207_v44, 2 }
 0x689   : > { %v2245_v63 = vrot.slane %v2244_v10, 2 }
 0x68a   : > { %v2209_v4 = vmax.f32 %v2207_v44, %v2208_v22 }
 0x68b   : > { %v2246_v51 = vmax.f32 %v2244_v10, %v2245_v63 }
 0x68c   : > { %v2210_v53 = vrot.slane %v2209_v4, 1 }
 0x68d   : > { %v2247_v2 = vrot.slane %v2246_v51, 1 }
 0x68e   : > { %v9754_v36 = vmax.f32 %v2209_v4, %v2210_v53 }
 0x68f   : > { %v9756_v28 = vmax.f32 %v2246_v51, %v2247_v2 }
 0x690   : > { %v2249_v12 = vsub.f32 %v9557_v47, %v9754_v36  ;;  %v2251_v62 = vsub.f32 %v9561_v7, %v9754_v36  ;;  %v2253_v30 = vsub.f32 %v9565_v38, %v9754_v36  ;;  %v2255_v16 = vsub.f32 %v9573_v40, %v9754_v36 }
 0x691   : > { %v2257_v63 = vsub.f32 %v9581_v19, %v9754_v36  ;;  %v2259_v53 = vsub.f32 %v9587_v26, %v9754_v36  ;;  %v2261_v2 = vsub.f32 %v9593_v32, %v9754_v36  ;;  %v2263_v47 = vsub.f32 %v9599_v29, %v9754_v36 }
 0x692   : > { %v2265_v7 = vsub.f32 %v9605_v5, %v9754_v36  ;;  %v2267_v38 = vsub.f32 %v9611_v25, %v9754_v36  ;;  %v2269_v40 = vsub.f32 %v9617_v55, %v9754_v36  ;;  %v2271_v19 = vsub.f32 %v9623_v13, %v9754_v36 }
 0x693   : > { %v2273_v26 = vsub.f32 %v9629_v57, %v9754_v36  ;;  %v2275_v32 = vsub.f32 %v9635_v60, %v9754_v36  ;;  %v2277_v29 = vsub.f32 %v9641_v9, %v9754_v36  ;;  %v2279_v5 = vsub.f32 %v9647_v0, %v9754_v36 }
 0x694   : > { %v2281_v25 = vsub.f32 %v9653_v11, %v9754_v36  ;;  %v2283_v55 = vsub.f32 %v9659_v41, %v9754_v36  ;;  %v2285_v13 = vsub.f32 %v9665_v52, %v9754_v36  ;;  %v2287_v57 = vsub.f32 %v9671_v45, %v9754_v36 }
 0x695   : > { %v2289_v4 = vsub.f32 %v9677_v42, %v9754_v36  ;;  %v2291_v60 = vsub.f32 %v9683_v17, %v9754_v36  ;;  %v2293_v9 = vsub.f32 %v9689_v56, %v9754_v36  ;;  %v2295_v44 = vsub.f32 %v9695_v35, %v9754_v36 }
 0x696   : > { %v2313_v17 = vmul.f32 1.442695, %v2249_v12  ;;  %v2317_v56 = vmul.f32 1.442695, %v2251_v62  ;;  %v2321_v35 = vmul.f32 1.442695, %v2253_v30 }
 0x697   : > { %v2325_v49 = vmul.f32 1.442695, %v2255_v16  ;;  %v2329_v58 = vmul.f32 1.442695, %v2257_v63  ;;  %v2333_v24 = vmul.f32 1.442695, %v2259_v53 }
 0x698   : > { %6842 = vpow2.f32 %v2313_v17  ;;  %v2337_v48 = vmul.f32 1.442695, %v2261_v2  ;;  %v2341_v10 = vmul.f32 1.442695, %v2263_v47  ;;  %v2345_v51 = vmul.f32 1.442695, %v2265_v7 }
 0x699   : > { %6844 = vpow2.f32 %v2317_v56  ;;  %v2349_v42 = vmul.f32 1.442695, %v2267_v38  ;;  %v2353_v12 = vmul.f32 1.442695, %v2269_v40  ;;  %v2357_v62 = vmul.f32 1.442695, %v2271_v19 }
 0x69a   : > { %6846 = vpow2.f32 %v2321_v35  ;;  %v2361_v30 = vmul.f32 1.442695, %v2273_v26  ;;  %v2365_v22 = vmul.f32 1.442695, %v2275_v32  ;;  %v2369_v16 = vmul.f32 1.442695, %v2277_v29 }
 0x69b   : > { %6848 = vpow2.f32 %v2325_v49  ;;  %v2373_v45 = vmul.f32 1.442695, %v2279_v5  ;;  %v2377_v46 = vmul.f32 1.442695, %v2281_v25  ;;  %v2381_v17 = vmul.f32 1.442695, %v2283_v55 }
 0x69c   : > { %6850 = vpow2.f32 %v2329_v58  ;;  %v2385_v63 = vmul.f32 1.442695, %v2285_v13  ;;  %v2389_v53 = vmul.f32 1.442695, %v2287_v57  ;;  %v2393_v56 = vmul.f32 1.442695, %v2289_v4 }
 0x69d   : > { %6852 = vpow2.f32 %v2333_v24  ;;  %v9826_v2 = vmul.f32 1.442695, %v2291_v60  ;;  %v9828_v47 = vmul.f32 1.442695, %v2293_v9  ;;  %v9830_v7 = vmul.f32 1.442695, %v2295_v44 }
 0x69e   : > { %6854 = vpow2.f32 %v2337_v48  ;;  %v14497_v13 = vld [vmem:[#allocation90_spill] sm:$0xff]  ;;  %v14498_v4 = vld [vmem:[#allocation91_spill] sm:$0xff]  ;;  %v14499_v9 = vld [vmem:[#allocation92_spill] sm:$0xff] }
 0x69f   : > { %6856 = vpow2.f32 %v2341_v10  ;;  %v14500_v49 = vld [vmem:[#allocation93_spill] sm:$0xff]  ;;  %v14501_v24 = vld [vmem:[#allocation94_spill] sm:$0xff]  ;;  %v14506_v5 = vld [vmem:[#allocation99_spill] sm:$0xff] }
 0x6a0   : > { %6858 = vpow2.f32 %v2345_v51  ;;  %v14502_v51 = vld [vmem:[#allocation95_spill] sm:$0xff]  ;;  %v14505_v25 = vld [vmem:[#allocation98_spill] sm:$0xff]  ;;  %v14509_v19 = vld [vmem:[#allocation104_spill] sm:$0xff] }
 0x6a1   : > { %6860 = vpow2.f32 %v2349_v42  ;;  %v14508_v26 = vld [vmem:[#allocation102_spill] sm:$0xff]  ;;  %v14510_v48 = vld [vmem:[#allocation105_spill] sm:$0xff]  ;;  %v14512_v44 = vld [vmem:[#allocation103_spill] sm:$0xff] }
 0x6a2   : > { %v9840_v32 = vpop.eup %6842  ;;  %6862 = vpow2.f32 %v2353_v12  ;;  %v14507_v12 = vld [vmem:[#allocation100_spill] sm:$0xff]  ;;  %v14511_v38 = vld [vmem:[#allocation101_spill] sm:$0xff]  ;;  %v14517_v60 = vld [vmem:[#allocation10_spill] sm:$0xff] }
 0x6a3   : > { %v9848_v55 = vpop.eup %6844  ;;  %6864 = vpow2.f32 %v2357_v62  ;;  %v14503_v62 = vld [vmem:[#allocation96_spill] sm:$0xff] }
 0x6a4   : > { %v9856_v42 = vpop.eup %6846  ;;  %6866 = vpow2.f32 %v2361_v30  ;;  %v2441_v35 = vadd.f32 %v9848_v55, %v9840_v32  ;;  %v14504_v30 = vld [vmem:[#allocation97_spill] sm:$0xff] }
 0x6a5   : > { %v9864_v10 = vpop.eup %6848  ;;  %6868 = vpow2.f32 %v2365_v22  ;;  %v14515_v22 = vld [vmem:[#allocation29_spill] sm:$0xff] }
 0x6a6   : > { %v9872_v57 = vpop.eup %6850  ;;  %6870 = vpow2.f32 %v2369_v16  ;;  %v2442_v58 = vadd.f32 %v9856_v42, %v2441_v35 }
 0x6a7   : > { %v9879_v29 = vpop.eup %6852  ;;  %6872 = vpow2.f32 %v2373_v45 }
 0x6a8   : > { %v9887_v40 = vpop.eup %6854  ;;  %6874 = vpow2.f32 %v2377_v46  ;;  %v2443_v35 = vadd.f32 %v9864_v10, %v2442_v58 }
 0x6a9   : > { %v9894_v52 = vpop.eup %6856  ;;  %6876 = vpow2.f32 %v2381_v17 }
 0x6aa   : > { %v9902_v50 = vpop.eup %6858  ;;  %6878 = vpow2.f32 %v2385_v63  ;;  %v2444_v58 = vadd.f32 %v9872_v57, %v2443_v35  ;;  %v14519_v35 = vsub.f32 %v9701_v20, %v9754_v36 }
 0x6ab   : > { %v9909_v0 = vpop.eup %6860  ;;  %6880 = vpow2.f32 %v2389_v53  ;;  %v14520_v53 = vsub.f32 %v9707_v3, %v9754_v36 }
 0x6ac   : > { %v9917_v41 = vpop.eup %6862  ;;  %6882 = vpow2.f32 %v2393_v56  ;;  %v2409_v45 = vmul.f32 1.442695, %v14519_v35  ;;  %v2445_v17 = vadd.f32 %v9879_v29, %v2444_v58  ;;  %v14521_v56 = vsub.f32 %v9713_v43, %v9754_v36 }
 0x6ad   : > { %v9923_v11 = vpop.eup %6864  ;;  %6884 = vpow2.f32 %v9826_v2  ;;  %v2413_v46 = vmul.f32 1.442695, %v14520_v53  ;;  %v14522_v2 = vsub.f32 %v9719_v39, %v9754_v36  ;;  %v14526_v39 = vsub.f32 %v9737_v59, %v9754_v36 }
 0x6ae   : > { %v9929_v16 = vpop.eup %6866  ;;  %6886 = vpow2.f32 %v9828_v47  ;;  %v2417_v63 = vmul.f32 1.442695, %v14521_v56  ;;  %v2446_v20 = vadd.f32 %v9887_v40, %v2445_v17  ;;  %v14523_v47 = vsub.f32 %v9725_v54, %v9754_v36 }
 0x6af   : > { %v9936_v35 = vpop.eup %6868  ;;  %6888 = vpow2.f32 %v9830_v7  ;;  %v2421_v58 = vmul.f32 1.442695, %v14522_v2  ;;  %v14524_v17 = vsub.f32 %v9731_v8, %v9754_v36 }
 0x6b0   : > { %v9942_v3 = vpop.eup %6870  ;;  %6890 = vpow2.f32 %v2409_v45  ;;  %v2425_v53 = vmul.f32 1.442695, %v14523_v47  ;;  %v2447_v43 = vadd.f32 %v9894_v52, %v2446_v20  ;;  %v2433_v45 = vmul.f32 1.442695, %v14526_v39 }
 0x6b1   : > { %v9948_v56 = vpop.eup %6872  ;;  %6892 = vpow2.f32 %v2413_v46  ;;  %v2429_v7 = vmul.f32 1.442695, %v14524_v17  ;;  %v14527_v20 = vsub.f32 %v9743_v31, %v9754_v36  ;;  %v14530_v36 = vsub.f32 %v9569_v14, %v9756_v28 }
 0x6b2   : > { %v9953_v21 = vpop.eup %6874  ;;  %6894 = vpow2.f32 %v2417_v63  ;;  %v2448_v2 = vadd.f32 %v9902_v50, %v2447_v43  ;;  %v14528_v63 = vsub.f32 %v9559_v34, %v9756_v28  ;;  %v14529_v43 = vsub.f32 %v9563_v27, %v9756_v28 }
 0x6b3   : > { %14525 = vst [vmem:[#allocation41_spill] sm:$0xff] %v9953_v21  ;;  %v9959_v54 = vpop.eup %6876  ;;  %6896 = vpow2.f32 %v2421_v58  ;;  %v2437_v46 = vmul.f32 1.442695, %v14527_v20  ;;  %v2323_v31 = vmul.f32 1.442695, %v14530_v36  ;;  %v14531_v34 = vsub.f32 %v9577_v1, %v9756_v28 }
 0x6b4   : > { %v9964_v47 = vpop.eup %6878  ;;  %6898 = vpow2.f32 %v2425_v53  ;;  %v2449_v8 = vadd.f32 %v9909_v0, %v2448_v2  ;;  %v2315_v17 = vmul.f32 1.442695, %v14528_v63  ;;  %v2319_v58 = vmul.f32 1.442695, %v14529_v43 }
 0x6b5   : > { %v9970_v59 = vpop.eup %6880  ;;  %6900 = vpow2.f32 %v2429_v7  ;;  %v2327_v2 = vmul.f32 1.442695, %v14531_v34  ;;  %v14532_v7 = vsub.f32 %v9584_v61, %v9756_v28  ;;  %v14533_v27 = vsub.f32 %v9590_v23, %v9756_v28 }
 0x6b6   : > { %v9978_v39 = vpop.eup %6882  ;;  %6902 = vpow2.f32 %v2433_v45  ;;  %v2450_v53 = vadd.f32 %v9917_v41, %v2449_v8  ;;  %v14534_v45 = vsub.f32 %v9596_v18, %v9756_v28  ;;  %v14535_v8 = vsub.f32 %v9602_v37, %v9756_v28 }
 0x6b7   : > { %v2331_v20 = vmul.f32 1.442695, %v14532_v7  ;;  %v9987_v63 = vpop.eup %6884  ;;  %6904 = vpow2.f32 %v2437_v46  ;;  %v2335_v14 = vmul.f32 1.442695, %v14533_v27  ;;  %v14536_v46 = vsub.f32 %v9608_v6, %v9756_v28 }
 0x6b8   : > { %v2339_v43 = vmul.f32 1.442695, %v14534_v45  ;;  %v2343_v1 = vmul.f32 1.442695, %v14535_v8  ;;  %v9998_v36 = vpop.eup %6886  ;;  %v2451_v61 = vadd.f32 %v9923_v11, %v2450_v53  ;;  %6906 = vpow2.f32 %v2315_v17 }
 0x6b9   : > { %v2347_v34 = vmul.f32 1.442695, %v14536_v46  ;;  %v14537_v23 = vsub.f32 %v14497_v13, %v9756_v28  ;;  %v10007_v27 = vpop.eup %6888  ;;  %6908 = vpow2.f32 %v2319_v58 }
 0x6ba   : > { %v10015_v53 = vpop.eup %6890  ;;  %v2452_v6 = vadd.f32 %v9929_v16, %v2451_v61  ;;  %6910 = vpow2.f32 %v2323_v31 }
 0x6bb   : > { %v2351_v7 = vmul.f32 1.442695, %v14537_v23  ;;  %v10022_v45 = vpop.eup %6892  ;;  %6912 = vpow2.f32 %v2327_v2  ;;  %v14538_v2 = vsub.f32 %v14498_v4, %v9756_v28  ;;  %v14539_v23 = vsub.f32 %v14499_v9, %v9756_v28 }
 0x6bc   : > { %v10030_v61 = vpop.eup %6894  ;;  %v2453_v31 = vadd.f32 %v9936_v35, %v2452_v6  ;;  %6914 = vpow2.f32 %v2331_v20 }
 0x6bd   : > { %v10037_v13 = vpop.eup %6896  ;;  %6916 = vpow2.f32 %v2335_v14  ;;  %v2355_v58 = vmul.f32 1.442695, %v14538_v2  ;;  %v2359_v46 = vmul.f32 1.442695, %v14539_v23 }
 0x6be   : > { %v10045_v6 = vpop.eup %6898  ;;  %v2454_v20 = vadd.f32 %v9942_v3, %v2453_v31  ;;  %6918 = vpow2.f32 %v2339_v43  ;;  %v14540_v43 = vsub.f32 %v14500_v49, %v9756_v28  ;;  %v14545_v49 = vsub.f32 %v14505_v25, %v9756_v28 }
 0x6bf   : > { %v10053_v17 = vpop.eup %6900  ;;  %6920 = vpow2.f32 %v2343_v1  ;;  %v14541_v1 = vsub.f32 %v14501_v24, %v9756_v28  ;;  %v14544_v24 = vsub.f32 %v14504_v30, %v9756_v28  ;;  %v14548_v25 = vsub.f32 %v14508_v26, %v9756_v28 }
 0x6c0   : > { %v10058_v8 = vpop.eup %6902  ;;  %v2455_v37 = vadd.f32 %v9948_v56, %v2454_v20  ;;  %6922 = vpow2.f32 %v2347_v34  ;;  %v2363_v4 = vmul.f32 1.442695, %v14540_v43  ;;  %v14542_v34 = vsub.f32 %v14502_v51, %v9756_v28 }
 0x6c1   : > { %v10066_v2 = vpop.eup %6904  ;;  %6924 = vpow2.f32 %v2351_v7  ;;  %v2367_v9 = vmul.f32 1.442695, %v14541_v1  ;;  %v14543_v7 = vsub.f32 %v14503_v62, %v9756_v28  ;;  %v2379_v1 = vmul.f32 1.442695, %v14544_v24 }
 0x6c2   : > { %v6907_v23 = vpop.eup %6906  ;;  %v2456_v14 = vadd.f32 %v9953_v21, %v2455_v37  ;;  %6926 = vpow2.f32 %v2355_v58  ;;  %v2371_v20 = vmul.f32 1.442695, %v14542_v34  ;;  %v14546_v62 = vsub.f32 %v14506_v5, %v9756_v28 }
 0x6c3   : > { %v6909_v43 = vpop.eup %6908  ;;  %6928 = vpow2.f32 %v2359_v46  ;;  %v2375_v31 = vmul.f32 1.442695, %v14543_v7  ;;  %v2383_v46 = vmul.f32 1.442695, %v14545_v49  ;;  %v2395_v49 = vmul.f32 1.442695, %v14548_v25 }
 0x6c4   : > { %v6911_v18 = vpop.eup %6910  ;;  %v2457_v37 = vadd.f32 %v9959_v54, %v2456_v14  ;;  %6930 = vpow2.f32 %v2363_v4  ;;  %v2478_v58 = vadd.f32 %v6909_v43, %v6907_v23  ;;  %v2516_v51 = vpack.c.bf16 %v6909_v43, %v6907_v23 }
 0x6c5   : > { %v6913_v34 = vpop.eup %6912  ;;  %6932 = vpow2.f32 %v2367_v9  ;;  %v2387_v7 = vmul.f32 1.442695, %v14546_v62  ;;  %v14547_v9 = vsub.f32 %v14507_v12, %v9756_v28  ;;  %v14549_v5 = vpack.c.bf16 %v9848_v55, %v9840_v32 }
 0x6c6   : > { %v6915_v21 = vpop.eup %6914  ;;  %v2458_v30 = vadd.f32 %v9964_v47, %v2457_v37  ;;  %6934 = vpow2.f32 %v2371_v20  ;;  %v2479_v24 = vadd.f32 %v6911_v18, %v2478_v58  ;;  %2547 = vmatprep.subr.bf16.mxu0 %v2516_v51  ;;  %v2518_v14 = vpack.c.bf16 %v6913_v34, %v6911_v18 }
 0x6c7   : > { %v6917_v4 = vpop.eup %6916  ;;  %6936 = vpow2.f32 %v2375_v31  ;;  %v2391_v23 = vmul.f32 1.442695, %v14547_v9  ;;  %2548 = vmatpush1.bf16.msra.mxu0 %v14549_v5  ;;  %v14550_v12 = vsub.f32 %v14509_v19, %v9756_v28  ;;  %v14551_v26 = vsub.f32 %v14510_v48, %v9756_v28  ;;  %v14556_v5 = vld [vmem:[#allocation26_spill] sm:$0xff] }
 0x6c8   : > { %v6919_v43 = vpop.eup %6918  ;;  %v2459_v20 = vadd.f32 %v9970_v59, %v2458_v30  ;;  %6938 = vpow2.f32 %v2379_v1  ;;  %v2480_v37 = vadd.f32 %v6913_v34, %v2479_v24  ;;  %2549 = vmatprep.subr.bf16.mxu0 %v2518_v14  ;;  %v2520_v18 = vpack.c.bf16 %v6917_v4, %v6915_v21 }
 0x6c9   : > { %v6921_v31 = vpop.eup %6920  ;;  %6940 = vpow2.f32 %v2383_v46  ;;  %v2399_v58 = vmul.f32 1.442695, %v14550_v12  ;;  %v2403_v51 = vmul.f32 1.442695, %v14551_v26  ;;  %v14552_v34 = vsub.f32 %v14511_v38, %v9756_v28 }
 0x6ca   : > { %v6923_v62 = vpop.eup %6922  ;;  %v2460_v32 = vadd.f32 %v9978_v39, %v2459_v20  ;;  %6942 = vpow2.f32 %v2387_v7  ;;  %v2481_v55 = vadd.f32 %v6915_v21, %v2480_v37  ;;  %v2522_v30 = vpack.c.bf16 %v6921_v31, %v6919_v43 }
 0x6cb   : > { %v6925_v1 = vpop.eup %6924  ;;  %6944 = vpow2.f32 %v2391_v23  ;;  %v2407_v46 = vmul.f32 1.442695, %v14552_v34  ;;  %v14553_v19 = vsub.f32 %v14512_v44, %v9756_v28  ;;  %v14554_v48 = vpack.c.bf16 %v9864_v10, %v9856_v42 }
 0x6cc   : > { %v6927_v14 = vpop.eup %6926  ;;  %v2461_v9 = vadd.f32 %v9987_v63, %v2460_v32  ;;  %6946 = vpow2.f32 %v2395_v49  ;;  %v2482_v21 = vadd.f32 %v6917_v4, %v2481_v55  ;;  %v2524_v7 = vpack.c.bf16 %v6925_v1, %v6923_v62 }
 0x6cd   : > { %v2411_v24 = vmul.f32 1.442695, %v14553_v19  ;;  %2550 = vmatpush1.bf16.msra.mxu0 %v14554_v48  ;;  %v6929_v23 = vpop.eup %6928  ;;  %6948 = vpow2.f32 %v2399_v58  ;;  %v14555_v38 = vsub.f32 %v14513_v33, %v9756_v28  ;;  %v14557_v44 = vsub.f32 %v14556_v5, %v9756_v28  ;;  %v14559_v58 = vld [vmem:[#allocation30_spill] sm:$0xff] }
 0x6ce   : > { %2551 = vmatprep.subr.bf16.mxu0 %v2520_v18  ;;  %v6931_v37 = vpop.eup %6930  ;;  %v2462_v42 = vadd.f32 %v9998_v36, %v2461_v9  ;;  %6950 = vpow2.f32 %v2403_v51  ;;  %v2483_v10 = vadd.f32 %v6919_v43, %v2482_v21  ;;  %v2526_v12 = vpack.c.bf16 %v6929_v23, %v6927_v14 }
 0x6cf   : > { %v2415_v25 = vmul.f32 1.442695, %v14555_v38  ;;  %v2419_v20 = vmul.f32 1.442695, %v14557_v44  ;;  %v6933_v49 = vpop.eup %6932  ;;  %6952 = vpow2.f32 %v2407_v46  ;;  %v14558_v4 = vsub.f32 %v14515_v22, %v9756_v28 }
 0x6d0   : > { %v14560_v33 = vsub.f32 %v14559_v58, %v9756_v28  ;;  %v14561_v32 = vpack.c.bf16 %v9879_v29, %v9872_v57  ;;  %v6935_v55 = vpop.eup %6934  ;;  %v2463_v34 = vadd.f32 %v10007_v27, %v2462_v42  ;;  %6954 = vpow2.f32 %v2411_v24 }
 0x6d1   : > { %v2423_v18 = vmul.f32 1.442695, %v14558_v4  ;;  %v2484_v43 = vadd.f32 %v6921_v31, %v2483_v10  ;;  %v2528_v51 = vpack.c.bf16 %v6933_v49, %v6931_v37  ;;  %v6937_v46 = vpop.eup %6936  ;;  %6956 = vpow2.f32 %v2415_v25  ;;  %v14564_v31 = vld [vmem:[#allocation37_spill] sm:$0xff] }
 0x6d2   : > { %v2427_v26 = vmul.f32 1.442695, %v14560_v33  ;;  %2552 = vmatpush1.bf16.msra.mxu0 %v14561_v32  ;;  %v14562_v22 = vsub.f32 %v14517_v60, %v9756_v28  ;;  %v14563_v48 = vsub.f32 %v14518_v15, %v9756_v28  ;;  %v6939_v21 = vpop.eup %6938  ;;  %v2464_v29 = vadd.f32 %v10015_v53, %v2463_v34 }
 0x6d3   : > { %2553 = vmatprep.subr.bf16.mxu0 %v2522_v30  ;;  %6958 = vpow2.f32 %v2419_v20  ;;  %v2485_v57 = vadd.f32 %v6923_v62, %v2484_v43  ;;  %v2530_v38 = vpack.c.bf16 %v6937_v46, %v6935_v55  ;;  %v6941_v24 = vpop.eup %6940  ;;  %v14565_v30 = vsub.f32 %v14564_v31, %v9756_v28 }
 0x6d4   : > { %v2431_v19 = vmul.f32 1.442695, %v14562_v22  ;;  %v2435_v9 = vmul.f32 1.442695, %v14563_v48  ;;  %6960 = vpow2.f32 %v2423_v18  ;;  %v14566_v60 = vpack.c.bf16 %v9894_v52, %v9887_v40  ;;  %v6943_v5 = vpop.eup %6942 }
 0x6d5   : > { %v2439_v25 = vmul.f32 1.442695, %v14565_v30  ;;  %v2465_v15 = vadd.f32 %v10022_v45, %v2464_v29  ;;  %6962 = vpow2.f32 %v2427_v26  ;;  %v2486_v44 = vadd.f32 %v6925_v1, %v2485_v57  ;;  %v6945_v20 = vpop.eup %6944 }
 0x6d6   : > { %2554 = vmatpush1.bf16.msra.mxu0 %v14566_v60  ;;  %v2532_v42 = vpack.c.bf16 %v6941_v24, %v6939_v21  ;;  %6964 = vpow2.f32 %v2431_v19  ;;  %v6947_v62 = vpop.eup %6946  ;;  %v2534_v28 = vpack.c.bf16 %v6945_v20, %v6943_v5  ;;  %v14567_v52 = vpack.c.bf16 %v9909_v0, %v9902_v50 }
 0x6d7   : > { %2555 = vmatprep.subr.bf16.mxu0 %v2524_v7  ;;  %v2466_v10 = vadd.f32 %v10030_v61, %v2465_v15  ;;  %6966 = vpow2.f32 %v2435_v9  ;;  %v2487_v4 = vadd.f32 %v6927_v14, %v2486_v44  ;;  %v6949_v18 = vpop.eup %6948  ;;  %v14568_v22 = vpack.c.bf16 %v9923_v11, %v9917_v41 }
 0x6d8   : > { %6968 = vpow2.f32 %v2439_v25  ;;  %v6951_v40 = vpop.eup %6950  ;;  %v2536_v7 = vpack.c.bf16 %v6949_v18, %v6947_v62  ;;  %v14570_v15 = vpack.c.bf16 %v9948_v56, %v9942_v3  ;;  %v14574_v3 = vpack.c.bf16 %v9987_v63, %v9978_v39 }
 0x6d9   : > { %v2467_v58 = vadd.f32 %v10037_v13, %v2466_v10  ;;  %v2488_v1 = vadd.f32 %v6929_v23, %v2487_v4  ;;  %v6953_v33 = vpop.eup %6952  ;;  %v14577_v39 = vpack.c.bf16 %v10037_v13, %v10030_v61  ;;  %v14584_v61 = vmov 0  }
 0x6da   : > { %2556 = vmatpush1.bf16.msra.mxu0 %v14567_v52  ;;  %v6955_v26 = vpop.eup %6954  ;;  %v2538_v43 = vpack.c.bf16 %v6953_v33, %v6951_v40  ;;  %v14581_v52 = vpack.c.bf16 %v10066_v2, %v10058_v8 }
 0x6db   : > { %2557 = vmatprep.subr.bf16.mxu0 %v2526_v12  ;;  %v2468_v32 = vadd.f32 %v10045_v6, %v2467_v58  ;;  %v2489_v34 = vadd.f32 %v6931_v37, %v2488_v1  ;;  %v6957_v14 = vpop.eup %6956  ;;  %v14569_v37 = vpack.c.bf16 %v9936_v35, %v9929_v16  ;;  %v14571_v16 = vld [vmem:[#allocation41_spill] sm:$0xff]  ;;  %v14588_v58 = vld [vmem:[#allocation50_spill] sm:$0xff]  ;;  %v14589_v1 = vld [vmem:[#allocation51_spill] sm:$0xff] }
 0x6dc   : > { %v2540_v48 = vpack.c.bf16 %v6957_v14, %v6955_v26  ;;  %v14572_v35 = vpack.c.bf16 %v9959_v54, %v14571_v16  ;;  %v14575_v54 = vpack.c.bf16 %v10007_v27, %v9998_v36  ;;  %v14578_v36 = vpack.c.bf16 %v10053_v17, %v10045_v6  ;;  %v14585_v6 = vld [vmem:[#allocation44_spill] sm:$0xff] }
 0x6dd   : > { %v6959_v19 = vpop.eup %6958  ;;  %v2469_v0 = vadd.f32 %v10053_v17, %v2468_v32  ;;  %v2490_v50 = vadd.f32 %v6933_v49, %v2489_v34  ;;  %v14593_v32 = vld [vmem:[#allocation57_spill] sm:$0xff]  ;;  %v14594_v34 = vld [vmem:[#allocation59_spill] sm:$0xff] }
 0x6de   : > { %2558 = vmatpush1.bf16.msra.mxu0 %v14568_v22  ;;  %v6961_v23 = vpop.eup %6960  ;;  %v14597_v22 = vld [vmem:[#allocation66_spill] sm:$0xff] }
 0x6df   : > { %2559 = vmatprep.subr.bf16.mxu0 %v2528_v51  ;;  %v6963_v12 = vpop.eup %6962  ;;  %v2470_v9 = vadd.f32 %v10058_v8, %v2469_v0  ;;  %v2491_v29 = vadd.f32 %v6935_v55, %v2490_v50  ;;  %v2542_v57 = vpack.c.bf16 %v6961_v23, %v6959_v19  ;;  %v14586_v8 = vld [vmem:[#allocation46_spill] sm:$0xff]  ;;  %v14599_v0 = vld [vmem:[#allocation72_spill] sm:$0xff] }
 0x6e0   : > { %v6965_v31 = vpop.eup %6964  ;;  %v14600_v50 = vld [vmem:[#allocation12_spill] sm:$0xff] }
 0x6e1   : > { %v6967_v30 = vpop.eup %6966  ;;  %v10164_v11 = vadd.f32 %v10066_v2, %v2470_v9  ;;  %v2492_v41 = vadd.f32 %v6937_v46, %v2491_v29  ;;  %v2544_v49 = vpack.c.bf16 %v6965_v31, %v6963_v12  ;;  %v14573_v46 = vpack.c.bf16 %v9970_v59, %v9964_v47  ;;  %v14587_v2 = vld [vmem:[#allocation48_spill] sm:$0xff]  ;;  %v14603_v9 = vld [vmem:[#allocation74_spill] sm:$0xff] }
 0x6e2   : > { %2560 = vmatpush1.bf16.msra.mxu0 %v14569_v37  ;;  %v6969_v51 = vpop.eup %6968  ;;  %v14576_v47 = vpack.c.bf16 %v10022_v45, %v10015_v53  ;;  %v14580_v53 = vld [vmem:[#allocation53_spill] sm:$0xff] }
 0x6e3   : > { %2561 = vmatprep.subr.bf16.mxu0 %v2530_v38  ;;  %v2493_v25 = vadd.f32 %v6939_v21, %v2492_v41  ;;  %v2546_v60 = vpack.c.bf16 %v6969_v51, %v6967_v30  ;;  %v2633_v45 = vrot.slane %v14580_v53, 2  ;;  %v2472_v29 = vrot.slane %v10164_v11, 4 }
 0x6e5   : > { %v2494_v55 = vadd.f32 %v6941_v24, %v2493_v25 }
 0x6e6   : > { %2562 = vmatpush1.bf16.msra.mxu0 %v14570_v15 }
 0x6e7   : > { %2563 = vmatprep.subr.bf16.mxu0 %v2532_v42  ;;  %v2495_v44 = vadd.f32 %v6943_v5, %v2494_v55 }
 0x6e9   : > { %v2496_v10 = vadd.f32 %v6945_v20, %v2495_v44 }
 0x6ea   : > { %2564 = vmatpush1.bf16.msra.mxu0 %v14572_v35 }
 0x6eb   : > { %2565 = vmatprep.subr.bf16.mxu0 %v2534_v28  ;;  %v2497_v4 = vadd.f32 %v6947_v62, %v2496_v10  ;;  %v14579_v28 = vld [vmem:[#allocation27_spill] sm:$0xff] }
 0x6ed   : > { %v2498_v21 = vadd.f32 %v6949_v18, %v2497_v4  ;;  %v2632_v18 = vrot.slane %v14579_v28, 2 }
 0x6ee   : > { %2566 = vmatpush1.bf16.msra.mxu0 %v14573_v46 }
 0x6ef   : > { %2567 = vmatprep.subr.bf16.mxu0 %v2536_v7  ;;  %v2499_v38 = vadd.f32 %v6951_v40, %v2498_v21  ;;  %v14582_v40 = vld [vmem:[#allocation52_spill] sm:$0xff]  ;;  %v2683_v17 = vsel %vm561_vm1, %v2632_v18, 0  ;;  %v14590_v7 = vld [vmem:[#allocation54_spill] sm:$0xff] }
 0x6f0   : > { %v10197_v13 = vpack.c.bf16 %v14582_v40, %v14582_v40 }
 0x6f1   : > { %v2500_v56 = vadd.f32 %v6953_v33, %v2499_v38  ;;  %v14591_v33 = vld [vmem:[#allocation55_spill] sm:$0xff] }
 0x6f2   : > { %2568 = vmatpush1.bf16.msra.mxu0 %v14574_v3  ;;  %14583 = vst [vmem:[#allocation43_spill] sm:$0xff] %v10197_v13 }
 0x6f3   : > { %2569 = vmatprep.subr.bf16.mxu0 %v2538_v43  ;;  %v2501_v24 = vadd.f32 %v6955_v26, %v2500_v56  ;;  %v14592_v26 = vld [vmem:[#allocation56_spill] sm:$0xff]  ;;  %v14595_v43 = vld [vmem:[#allocation62_spill] sm:$0xff] }
 0x6f5   : > { %v2502_v5 = vadd.f32 %v6957_v14, %v2501_v24  ;;  %v14596_v14 = vld [vmem:[#allocation64_spill] sm:$0xff] }
 0x6f6   : > { %2570 = vmatpush1.bf16.msra.mxu0 %v14575_v54 }
 0x6f7   : > { %2571 = vmatprep.subr.bf16.mxu0 %v2540_v48  ;;  %v2503_v42 = vadd.f32 %v6959_v19, %v2502_v5  ;;  %v14598_v19 = vld [vmem:[#allocation69_spill] sm:$0xff]  ;;  %v14601_v48 = vld [vmem:[#allocation6_spill] sm:$0xff] }
 0x6f9   : > { %v2504_v59 = vadd.f32 %v6961_v23, %v2503_v42  ;;  %v468_v23 = vadd.f32 %v14601_v48, %v14600_v50 }
 0x6fa   : > { %2572 = vmatpush1.bf16.msra.mxu0 %v14576_v47 }
 0x6fb   : > { %2573 = vmatprep.subr.bf16.mxu0 %v2542_v57  ;;  %v2505_v20 = vadd.f32 %v6963_v12, %v2504_v59  ;;  %v10250_v12 = vpack.c.bf16 %v468_v23, %v468_v23 }
 0x6fd   : > { %v2506_v63 = vadd.f32 %v6965_v31, %v2505_v20  ;;  %14602 = vst [vmem:[#allocation45_spill] sm:$0xff] %v10250_v12  ;;  %v2473_v31 = vadd.f32 %v2472_v29, %v10164_v11 }
 0x6fe   : > { %2574 = vmatpush1.bf16.msra.mxu0 %v14577_v39 }
 0x6ff   : > { %2575 = vmatprep.subr.bf16.mxu0 %v2544_v49  ;;  %v2507_v62 = vadd.f32 %v6967_v30, %v2506_v63  ;;  %v2474_v30 = vrot.slane %v2473_v31, 2 }
 0x701   : > { %v2508_v27 = vadd.f32 %v6969_v51, %v2507_v62  ;;  %v2475_v49 = vadd.f32 %v2474_v30, %v2473_v31 }
 0x702   : > { %2576 = vmatpush1.bf16.msra.mxu0 %v14578_v36 }
 0x703   : > { %2577 = vmatprep.subr.bf16.mxu0 %v2546_v60  ;;  %v2509_v57 = vrot.slane %v2508_v27, 4  ;;  %v2476_v25 = vrot.slane %v2475_v49, 1 }
 0x705   : > { %v2510_v37 = vadd.f32 %v2509_v57, %v2508_v27  ;;  %v2477_v15 = vadd.f32 %v2476_v25, %v2475_v49 }
 0x706   : > { %2578 = vmatpush1.bf16.msra.mxu0 %v14581_v52 }
 0x707   : > { %6424 = vmatprep.subr.msk.bf16.mxu0 %vm561_vm1, %v2633_v45  ;;  %v2511_v41 = vrot.slane %v2510_v37, 2  ;;  %6970 = vrcp.f32 %v2477_v15 }
 0x709   : > { %2580 = vmatmul.mubr.bf16.vlgmr.msra.gmra.mrb[92].mxu0 %v10197_v13  ;;  %v2512_v51 = vadd.f32 %v2511_v41, %v2510_v37 }
 0x70a   : > { %2689 = vmatpush1.bf16.msra.mxu0 %v2683_v17  ;;  %2720 = vmatprep.mubr.bf16.mxu0 %v14584_v61 }
 0x70b   : > { %v2513_v60 = vrot.slane %v2512_v51, 1 }
 0x70d   : > { %v2514_v55 = vadd.f32 %v2513_v60, %v2512_v51 }
 0x70f   : > { %6972 = vrcp.f32 %v2514_v55 }
 0x711   : > { %6425 = vmatmul.mubr.msk.bf16.vlgmr.msra.gmra.mrb[96].mxu0 %vm512_vm2, %v14585_v6  ;;  %v6971_v44 = vpop.eup %6970 }
 0x712   : > { %2730 = vmatprep.mubr.bf16.mxu0 %v14584_v61 }
 0x719   : > { %6426 = vmatmul.mubr.msk.bf16.gmra.mrb[100].mxu0 %vm512_vm2, %v14586_v8  ;;  %v6973_v35 = vpop.eup %6972 }
 0x71a   : > { %2740 = vmatprep.mubr.bf16.mxu0 %v14584_v61 }
 0x721   : > { %6427 = vmatmul.mubr.msk.bf16.gmra.mrb[104].mxu0 %vm512_vm2, %v14587_v2 }
 0x722   : > { %2750 = vmatprep.mubr.bf16.mxu0 %v14584_v61 }
 0x729   : > { %6428 = vmatmul.mubr.msk.bf16.gmra.mrb[108].mxu0 %vm512_vm2, %v14588_v58 }
 0x72a   : > { %2760 = vmatprep.mubr.bf16.mxu0 %v14584_v61 }
 0x731   : > { %6429 = vmatmul.mubr.msk.bf16.gmra.mrb[112].mxu0 %vm512_vm2, %v14589_v1 }
 0x732   : > { %2770 = vmatprep.mubr.bf16.mxu0 %v14584_v61 }
 0x739   : > { %6430 = vmatmul.mubr.msk.bf16.gmra.mrb[116].mxu0 %vm512_vm2, %v14590_v7 }
 0x73a   : > { %2780 = vmatprep.mubr.bf16.mxu0 %v14584_v61 }
 0x741   : > { %6431 = vmatmul.mubr.msk.bf16.gmra.mrb[120].mxu0 %vm512_vm2, %v14591_v33 }
 0x742   : > { %2790 = vmatprep.mubr.bf16.mxu0 %v14584_v61 }
 0x749   : > { %6432 = vmatmul.mubr.msk.bf16.gmra.mrb[124].mxu0 %vm512_vm2, %v14592_v26 }
 0x74a   : > { %2800 = vmatprep.mubr.bf16.mxu0 %v14584_v61 }
 0x751   : > { %6433 = vmatmul.mubr.msk.bf16.gmra.mrb[128].mxu0 %vm512_vm2, %v14593_v32 }
 0x752   : > { %2810 = vmatprep.mubr.bf16.mxu0 %v14584_v61 }
 0x759   : > { %6434 = vmatmul.mubr.msk.bf16.gmra.mrb[132].mxu0 %vm512_vm2, %v14594_v34 }
 0x75a   : > { %2820 = vmatprep.mubr.bf16.mxu0 %v14584_v61 }
 0x761   : > { %6435 = vmatmul.mubr.msk.bf16.gmra.mrb[136].mxu0 %vm512_vm2, %v14595_v43 }
 0x762   : > { %2830 = vmatprep.mubr.bf16.mxu0 %v14584_v61 }
 0x769   : > { %6436 = vmatmul.mubr.msk.bf16.gmra.mrb[140].mxu0 %vm512_vm2, %v14596_v14 }
 0x76a   : > { %2840 = vmatprep.mubr.bf16.mxu0 %v14584_v61 }
 0x771   : > { %6437 = vmatmul.mubr.msk.bf16.gmra.mrb[144].mxu0 %vm512_vm2, %v14597_v22 }
 0x772   : > { %2850 = vmatprep.mubr.bf16.mxu0 %v14584_v61 }
 0x779   : > { %6438 = vmatmul.mubr.msk.bf16.gmra.mrb[148].mxu0 %vm512_vm2, %v14598_v19 }
 0x77a   : > { %2860 = vmatprep.mubr.bf16.mxu0 %v14584_v61 }
 0x781   : > { %6439 = vmatmul.mubr.msk.bf16.gmra.mrb[152].mxu0 %vm512_vm2, %v14599_v0 }
 0x782   : > { %2870 = vmatprep.mubr.bf16.mxu0 %v14584_v61 }
 0x789   : > { %6440 = vmatmul.mubr.msk.bf16.gmra.mrb[156].mxu0 %vm512_vm2, %v14603_v9 }
 0x78a   : > { %3993 = vmatprep.mubr.bf16.mxu0 %v10250_v12 }
 0x7dc   : > { %v2581_v16 = vpop.f32.mrb[92].mxu0 }
 0x7dd   : > { %v10257_v10 = vmul.f32 %v6971_v44, %v2581_v16  ;;  %v2583_v4 = vpop.f32.mrb[93].mxu0 }
 0x7de   : > { %v10259_v46 = vmul.f32 %v6973_v35, %v2583_v4  ;;  %v2585_v11 = vpop.f32.mrb[94].mxu0 }
 0x7df   : > { %14604 = vst [vmem:[#allocation47_spill] sm:$0xff] %v10257_v10  ;;  %v2586_v21 = vpop.f32.mrb[95].mxu0 }
 0x7e0   : > { %14605 = vst [vmem:[#allocation49_spill] sm:$0xff] %v10259_v46 }
 0x7e4   : > { %v10261_v38 = vpop.f32.mrb[96].mxu0 }
 0x7e5   : > { %v10263_v3 = vpop.f32.mrb[97].mxu0 }
 0x7e6   : > { %v10265_v56 = vpop.f32.mrb[98].mxu0 }
 0x7e7   : > { %v10267_v24 = vpop.f32.mrb[99].mxu0 }
 0x7ec   : > { %v10269_v54 = vpop.f32.mrb[100].mxu0 }
 0x7ed   : > { %v2881_v5 = vmax.f32 %v10261_v38, %v10269_v54  ;;  %v10273_v42 = vpop.f32.mrb[101].mxu0 }
 0x7ee   : > { %v2918_v47 = vmax.f32 %v10263_v3, %v10273_v42  ;;  %v10277_v59 = vpop.f32.mrb[102].mxu0 }
 0x7ef   : > { %v2882_v20 = vmax.f32 %v10265_v56, %v10277_v59  ;;  %v10281_v39 = vpop.f32.mrb[103].mxu0 }
 0x7f0   : > { %v2919_v63 = vmax.f32 %v10267_v24, %v10281_v39 }
 0x7f4   : > { %v10285_v62 = vpop.f32.mrb[104].mxu0 }
 0x7f5   : > { %v2883_v36 = vmax.f32 %v2881_v5, %v10285_v62  ;;  %v10288_v27 = vpop.f32.mrb[105].mxu0 }
 0x7f6   : > { %v2920_v28 = vmax.f32 %v2918_v47, %v10288_v27  ;;  %v10291_v18 = vpop.f32.mrb[106].mxu0 }
 0x7f7   : > { %v2884_v53 = vmax.f32 %v2882_v20, %v10291_v18  ;;  %v10294_v45 = vpop.f32.mrb[107].mxu0 }
 0x7f8   : > { %v2921_v52 = vmax.f32 %v2919_v63, %v10294_v45 }
 0x7fc   : > { %v10297_v40 = vpop.f32.mrb[108].mxu0 }
 0x7fd   : > { %v2885_v17 = vmax.f32 %v2883_v36, %v10297_v40  ;;  %v10300_v6 = vpop.f32.mrb[109].mxu0 }
 0x7fe   : > { %v2922_v8 = vmax.f32 %v2920_v28, %v10300_v6  ;;  %v10303_v2 = vpop.f32.mrb[110].mxu0 }
 0x7ff   : > { %v2886_v58 = vmax.f32 %v2884_v53, %v10303_v2  ;;  %v10306_v1 = vpop.f32.mrb[111].mxu0 }
 0x800   : > { %v2923_v7 = vmax.f32 %v2921_v52, %v10306_v1 }
 0x804   : > { %v10309_v33 = vpop.f32.mrb[112].mxu0 }
 0x805   : > { %v2887_v26 = vmax.f32 %v2885_v17, %v10309_v33  ;;  %v10312_v32 = vpop.f32.mrb[113].mxu0 }
 0x806   : > { %v2924_v34 = vmax.f32 %v2922_v8, %v10312_v32  ;;  %v10315_v43 = vpop.f32.mrb[114].mxu0 }
 0x807   : > { %v2888_v14 = vmax.f32 %v2886_v58, %v10315_v43  ;;  %v10318_v22 = vpop.f32.mrb[115].mxu0 }
 0x808   : > { %v2925_v19 = vmax.f32 %v2923_v7, %v10318_v22 }
 0x80c   : > { %v10321_v0 = vpop.f32.mrb[116].mxu0 }
 0x80d   : > { %v2889_v50 = vmax.f32 %v2887_v26, %v10321_v0  ;;  %v10324_v48 = vpop.f32.mrb[117].mxu0 }
 0x80e   : > { %v2926_v23 = vmax.f32 %v2924_v34, %v10324_v48  ;;  %v10327_v9 = vpop.f32.mrb[118].mxu0 }
 0x80f   : > { %v2890_v29 = vmax.f32 %v2888_v14, %v10327_v9  ;;  %v10330_v57 = vpop.f32.mrb[119].mxu0 }
 0x810   : > { %14606 = vst [vmem:[#allocation31_spill] sm:$0xff] %v10330_v57  ;;  %v2927_v31 = vmax.f32 %v2925_v19, %v10330_v57 }
 0x814   : > { %v10333_v37 = vpop.f32.mrb[120].mxu0 }
 0x815   : > { %v2891_v30 = vmax.f32 %v2889_v50, %v10333_v37  ;;  %v10336_v41 = vpop.f32.mrb[121].mxu0 }
 0x816   : > { %14607 = vst [vmem:[#allocation32_spill] sm:$0xff] %v10336_v41  ;;  %v2928_v49 = vmax.f32 %v2926_v23, %v10336_v41  ;;  %v10339_v51 = vpop.f32.mrb[122].mxu0 }
 0x817   : > { %v2892_v25 = vmax.f32 %v2890_v29, %v10339_v51  ;;  %v10342_v60 = vpop.f32.mrb[123].mxu0 }
 0x818   : > { %14608 = vst [vmem:[#allocation33_spill] sm:$0xff] %v10342_v60  ;;  %v2929_v15 = vmax.f32 %v2927_v31, %v10342_v60 }
 0x81c   : > { %v10345_v55 = vpop.f32.mrb[124].mxu0 }
 0x81d   : > { %v2893_v44 = vmax.f32 %v2891_v30, %v10345_v55  ;;  %v10348_v16 = vpop.f32.mrb[125].mxu0 }
 0x81e   : > { %14609 = vst [vmem:[#allocation34_spill] sm:$0xff] %v10348_v16  ;;  %v2930_v35 = vmax.f32 %v2928_v49, %v10348_v16  ;;  %v10351_v4 = vpop.f32.mrb[126].mxu0 }
 0x81f   : > { %v2894_v11 = vmax.f32 %v2892_v25, %v10351_v4  ;;  %v10354_v21 = vpop.f32.mrb[127].mxu0 }
 0x820   : > { %14610 = vst [vmem:[#allocation36_spill] sm:$0xff] %v10354_v21  ;;  %v2931_v5 = vmax.f32 %v2929_v15, %v10354_v21 }
 0x824   : > { %v10357_v47 = vpop.f32.mrb[128].mxu0 }
 0x825   : > { %v2895_v20 = vmax.f32 %v2893_v44, %v10357_v47  ;;  %v10360_v63 = vpop.f32.mrb[129].mxu0 }
 0x826   : > { %14611 = vst [vmem:[#allocation38_spill] sm:$0xff] %v10360_v63  ;;  %v2932_v36 = vmax.f32 %v2930_v35, %v10360_v63  ;;  %v10363_v28 = vpop.f32.mrb[130].mxu0 }
 0x827   : > { %v2896_v53 = vmax.f32 %v2894_v11, %v10363_v28  ;;  %v10366_v52 = vpop.f32.mrb[131].mxu0 }
 0x828   : > { %14612 = vst [vmem:[#allocation40_spill] sm:$0xff] %v10366_v52  ;;  %v2933_v17 = vmax.f32 %v2931_v5, %v10366_v52 }
 0x82c   : > { %v10369_v8 = vpop.f32.mrb[132].mxu0 }
 0x82d   : > { %v2897_v58 = vmax.f32 %v2895_v20, %v10369_v8  ;;  %v10372_v7 = vpop.f32.mrb[133].mxu0 }
 0x82e   : > { %14613 = vst [vmem:[#allocation17_spill] sm:$0xff] %v10372_v7  ;;  %v2934_v26 = vmax.f32 %v2932_v36, %v10372_v7  ;;  %v10375_v34 = vpop.f32.mrb[134].mxu0 }
 0x82f   : > { %v2898_v14 = vmax.f32 %v2896_v53, %v10375_v34  ;;  %v10378_v19 = vpop.f32.mrb[135].mxu0 }
 0x830   : > { %14614 = vst [vmem:[#allocation42_spill] sm:$0xff] %v10378_v19  ;;  %v2935_v50 = vmax.f32 %v2933_v17, %v10378_v19 }
 0x834   : > { %v10381_v23 = vpop.f32.mrb[136].mxu0 }
 0x835   : > { %v2899_v29 = vmax.f32 %v2897_v58, %v10381_v23  ;;  %v10384_v31 = vpop.f32.mrb[137].mxu0 }
 0x836   : > { %14615 = vst [vmem:[#allocation24_spill] sm:$0xff] %v10384_v31  ;;  %v2936_v30 = vmax.f32 %v2934_v26, %v10384_v31  ;;  %v10387_v49 = vpop.f32.mrb[138].mxu0 }
 0x837   : > { %v2900_v25 = vmax.f32 %v2898_v14, %v10387_v49  ;;  %v10390_v15 = vpop.f32.mrb[139].mxu0 }
 0x838   : > { %14616 = vst [vmem:[#allocation25_spill] sm:$0xff] %v10390_v15  ;;  %v2937_v44 = vmax.f32 %v2935_v50, %v10390_v15 }
 0x83c   : > { %v10393_v35 = vpop.f32.mrb[140].mxu0 }
 0x83d   : > { %v2901_v11 = vmax.f32 %v2899_v29, %v10393_v35  ;;  %v10396_v5 = vpop.f32.mrb[141].mxu0 }
 0x83e   : > { %14617 = vst [vmem:[#allocation90_spill] sm:$0xff] %v10396_v5  ;;  %v2938_v20 = vmax.f32 %v2936_v30, %v10396_v5  ;;  %v10399_v36 = vpop.f32.mrb[142].mxu0 }
 0x83f   : > { %v2902_v53 = vmax.f32 %v2900_v25, %v10399_v36  ;;  %v10402_v17 = vpop.f32.mrb[143].mxu0 }
 0x840   : > { %14618 = vst [vmem:[#allocation91_spill] sm:$0xff] %v10402_v17  ;;  %v2939_v58 = vmax.f32 %v2937_v44, %v10402_v17 }
 0x844   : > { %v10405_v26 = vpop.f32.mrb[144].mxu0 }
 0x845   : > { %v2903_v14 = vmax.f32 %v2901_v11, %v10405_v26  ;;  %v10408_v50 = vpop.f32.mrb[145].mxu0 }
 0x846   : > { %14619 = vst [vmem:[#allocation92_spill] sm:$0xff] %v10408_v50  ;;  %v2940_v29 = vmax.f32 %v2938_v20, %v10408_v50  ;;  %v10411_v46 = vpop.f32.mrb[146].mxu0 }
 0x847   : > { %v2904_v30 = vmax.f32 %v2902_v53, %v10411_v46  ;;  %v10414_v10 = vpop.f32.mrb[147].mxu0 }
 0x848   : > { %14620 = vst [vmem:[#allocation93_spill] sm:$0xff] %v10414_v10  ;;  %v2941_v25 = vmax.f32 %v2939_v58, %v10414_v10 }
 0x84c   : > { %v10417_v12 = vpop.f32.mrb[148].mxu0 }
 0x84d   : > { %v2905_v44 = vmax.f32 %v2903_v14, %v10417_v12  ;;  %v10420_v61 = vpop.f32.mrb[149].mxu0 }
 0x84e   : > { %14621 = vst [vmem:[#allocation94_spill] sm:$0xff] %v10420_v61  ;;  %v2942_v11 = vmax.f32 %v2940_v29, %v10420_v61  ;;  %v10423_v13 = vpop.f32.mrb[150].mxu0 }
 0x84f   : > { %v2906_v20 = vmax.f32 %v2904_v30, %v10423_v13  ;;  %v10426_v50 = vpop.f32.mrb[151].mxu0 }
 0x850   : > { %14622 = vst [vmem:[#allocation95_spill] sm:$0xff] %v10426_v50  ;;  %v2943_v53 = vmax.f32 %v2941_v25, %v10426_v50 }
 0x854   : > { %v10429_v17 = vpop.f32.mrb[152].mxu0 }
 0x855   : > { %v2907_v58 = vmax.f32 %v2905_v44, %v10429_v17  ;;  %v10432_v10 = vpop.f32.mrb[153].mxu0 }
 0x856   : > { %14623 = vst [vmem:[#allocation96_spill] sm:$0xff] %v10432_v10  ;;  %v2944_v14 = vmax.f32 %v2942_v11, %v10432_v10  ;;  %v10435_v5 = vpop.f32.mrb[154].mxu0 }
 0x857   : > { %v2908_v29 = vmax.f32 %v2906_v20, %v10435_v5  ;;  %v10438_v61 = vpop.f32.mrb[155].mxu0 }
 0x858   : > { %14624 = vst [vmem:[#allocation97_spill] sm:$0xff] %v10438_v61  ;;  %v2945_v30 = vmax.f32 %v2943_v53, %v10438_v61 }
 0x85c   : > { %v10441_v15 = vpop.f32.mrb[156].mxu0 }
 0x85d   : > { %v2909_v25 = vmax.f32 %v2907_v58, %v10441_v15  ;;  %v10444_v50 = vpop.f32.mrb[157].mxu0 }
 0x85e   : > { %14625 = vst [vmem:[#allocation98_spill] sm:$0xff] %v10444_v50  ;;  %v2946_v44 = vmax.f32 %v2944_v14, %v10444_v50  ;;  %v10447_v31 = vpop.f32.mrb[158].mxu0 }
 0x85f   : > { %v2910_v11 = vmax.f32 %v2908_v29, %v10447_v31  ;;  %v10450_v10 = vpop.f32.mrb[159].mxu0 }
 0x860   : > { %14626 = vst [vmem:[#allocation99_spill] sm:$0xff] %v10450_v10  ;;  %v2947_v20 = vmax.f32 %v2945_v30, %v10450_v10 }
 0x861   : > { %v2911_v19 = vmax.f32 %v2909_v25, %v2910_v11 }
 0x862   : > { %v2948_v7 = vmax.f32 %v2946_v44, %v2947_v20 }
 0x863   : > { %v2912_v52 = vrot.slane %v2911_v19, 4 }
 0x864   : > { %v2949_v53 = vrot.slane %v2948_v7, 4 }
 0x865   : > { %v2913_v61 = vmax.f32 %v2911_v19, %v2912_v52 }
 0x866   : > { %v2950_v63 = vmax.f32 %v2948_v7, %v2949_v53 }
 0x867   : > { %v2914_v21 = vrot.slane %v2913_v61, 2 }
 0x868   : > { %v2951_v58 = vrot.slane %v2950_v63, 2 }
 0x869   : > { %v2915_v16 = vmax.f32 %v2913_v61, %v2914_v21  ;;  %v14646_v21 = vld [vmem:[#allocation98_spill] sm:$0xff] }
 0x86a   : > { %v2952_v60 = vmax.f32 %v2950_v63, %v2951_v58 }
 0x86b   : > { %v2916_v41 = vrot.slane %v2915_v16, 1 }
 0x86c   : > { %v2953_v14 = vrot.slane %v2952_v60, 1 }
 0x86d   : > { %v10453_v50 = vmax.f32 %v2915_v16, %v2916_v41 }
 0x86e   : > { %v10455_v57 = vmax.f32 %v2952_v60, %v2953_v14 }
 0x86f   : > { %v2955_v29 = vsub.f32 %v10261_v38, %v10453_v50  ;;  %v2957_v30 = vsub.f32 %v10265_v56, %v10453_v50  ;;  %v2959_v52 = vsub.f32 %v10269_v54, %v10453_v50  ;;  %v2961_v7 = vsub.f32 %v10277_v59, %v10453_v50 }
 0x870   : > { %v2963_v61 = vsub.f32 %v10285_v62, %v10453_v50  ;;  %v2965_v41 = vsub.f32 %v10291_v18, %v10453_v50  ;;  %v2967_v60 = vsub.f32 %v10297_v40, %v10453_v50  ;;  %v2969_v38 = vsub.f32 %v10303_v2, %v10453_v50 }
 0x871   : > { %v2971_v56 = vsub.f32 %v10309_v33, %v10453_v50  ;;  %v2973_v54 = vsub.f32 %v10315_v43, %v10453_v50  ;;  %v2975_v59 = vsub.f32 %v10321_v0, %v10453_v50  ;;  %v2977_v62 = vsub.f32 %v10327_v9, %v10453_v50 }
 0x872   : > { %v2979_v18 = vsub.f32 %v10333_v37, %v10453_v50  ;;  %v2981_v40 = vsub.f32 %v10339_v51, %v10453_v50  ;;  %v2983_v2 = vsub.f32 %v10345_v55, %v10453_v50  ;;  %v2985_v33 = vsub.f32 %v10351_v4, %v10453_v50 }
 0x873   : > { %v2987_v43 = vsub.f32 %v10357_v47, %v10453_v50  ;;  %v2989_v0 = vsub.f32 %v10363_v28, %v10453_v50  ;;  %v2991_v9 = vsub.f32 %v10369_v8, %v10453_v50  ;;  %v2993_v37 = vsub.f32 %v10375_v34, %v10453_v50 }
 0x874   : > { %v2995_v51 = vsub.f32 %v10381_v23, %v10453_v50  ;;  %v2997_v55 = vsub.f32 %v10387_v49, %v10453_v50  ;;  %v2999_v16 = vsub.f32 %v10393_v35, %v10453_v50  ;;  %v3001_v4 = vsub.f32 %v10399_v36, %v10453_v50 }
 0x875   : > { %v3019_v49 = vmul.f32 1.442695, %v2955_v29  ;;  %v3023_v35 = vmul.f32 1.442695, %v2957_v30  ;;  %v3027_v36 = vmul.f32 1.442695, %v2959_v52 }
 0x876   : > { %v3031_v44 = vmul.f32 1.442695, %v2961_v7  ;;  %v3035_v20 = vmul.f32 1.442695, %v2963_v61  ;;  %v3039_v53 = vmul.f32 1.442695, %v2965_v41 }
 0x877   : > { %6974 = vpow2.f32 %v3019_v49  ;;  %v3043_v58 = vmul.f32 1.442695, %v2967_v60  ;;  %v3047_v14 = vmul.f32 1.442695, %v2969_v38  ;;  %v3051_v19 = vmul.f32 1.442695, %v2971_v56 }
 0x878   : > { %6976 = vpow2.f32 %v3023_v35  ;;  %v3055_v23 = vmul.f32 1.442695, %v2973_v54  ;;  %v3059_v29 = vmul.f32 1.442695, %v2975_v59  ;;  %v3063_v30 = vmul.f32 1.442695, %v2977_v62 }
 0x879   : > { %6978 = vpow2.f32 %v3027_v36  ;;  %v3067_v52 = vmul.f32 1.442695, %v2979_v18  ;;  %v3071_v25 = vmul.f32 1.442695, %v2981_v40  ;;  %v3075_v7 = vmul.f32 1.442695, %v2983_v2 }
 0x87a   : > { %6980 = vpow2.f32 %v3031_v44  ;;  %v3079_v34 = vmul.f32 1.442695, %v2985_v33  ;;  %v3083_v11 = vmul.f32 1.442695, %v2987_v43  ;;  %v3087_v49 = vmul.f32 1.442695, %v2989_v0 }
 0x87b   : > { %6982 = vpow2.f32 %v3035_v20  ;;  %v3091_v61 = vmul.f32 1.442695, %v2991_v9  ;;  %v3095_v41 = vmul.f32 1.442695, %v2993_v37  ;;  %v3099_v35 = vmul.f32 1.442695, %v2995_v51 }
 0x87c   : > { %6984 = vpow2.f32 %v3039_v53  ;;  %v10525_v60 = vmul.f32 1.442695, %v2997_v55  ;;  %v10527_v38 = vmul.f32 1.442695, %v2999_v16  ;;  %v10529_v56 = vmul.f32 1.442695, %v3001_v4 }
 0x87d   : > { %6986 = vpow2.f32 %v3043_v58  ;;  %v14627_v51 = vld [vmem:[#allocation31_spill] sm:$0xff]  ;;  %v14629_v36 = vld [vmem:[#allocation33_spill] sm:$0xff]  ;;  %v14630_v53 = vld [vmem:[#allocation34_spill] sm:$0xff] }
 0x87e   : > { %6988 = vpow2.f32 %v3047_v14  ;;  %v14631_v14 = vld [vmem:[#allocation36_spill] sm:$0xff]  ;;  %v14634_v9 = vld [vmem:[#allocation17_spill] sm:$0xff]  ;;  %v14635_v58 = vld [vmem:[#allocation42_spill] sm:$0xff] }
 0x87f   : > { %6990 = vpow2.f32 %v3051_v19  ;;  %v14628_v19 = vld [vmem:[#allocation32_spill] sm:$0xff]  ;;  %v14637_v2 = vld [vmem:[#allocation25_spill] sm:$0xff]  ;;  %v14638_v44 = vld [vmem:[#allocation90_spill] sm:$0xff] }
 0x880   : > { %6992 = vpow2.f32 %v3055_v23  ;;  %v14633_v37 = vld [vmem:[#allocation40_spill] sm:$0xff]  ;;  %v14639_v62 = vld [vmem:[#allocation91_spill] sm:$0xff]  ;;  %v14641_v54 = vld [vmem:[#allocation93_spill] sm:$0xff] }
 0x881   : > { %v10539_v40 = vpop.eup %6974  ;;  %6994 = vpow2.f32 %v3059_v29  ;;  %v14636_v33 = vld [vmem:[#allocation24_spill] sm:$0xff] }
 0x882   : > { %v10547_v0 = vpop.eup %6976  ;;  %6996 = vpow2.f32 %v3063_v30  ;;  %v14632_v30 = vld [vmem:[#allocation38_spill] sm:$0xff]  ;;  %v14640_v29 = vld [vmem:[#allocation92_spill] sm:$0xff] }
 0x883   : > { %v10555_v16 = vpop.eup %6978  ;;  %6998 = vpow2.f32 %v3067_v52  ;;  %v3147_v4 = vadd.f32 %v10547_v0, %v10539_v40  ;;  %v14645_v52 = vld [vmem:[#allocation97_spill] sm:$0xff] }
 0x884   : > { %v10563_v20 = vpop.eup %6980  ;;  %7000 = vpow2.f32 %v3071_v25  ;;  %v14643_v25 = vld [vmem:[#allocation95_spill] sm:$0xff] }
 0x885   : > { %v10571_v55 = vpop.eup %6982  ;;  %7002 = vpow2.f32 %v3075_v7  ;;  %v3148_v23 = vadd.f32 %v10555_v16, %v3147_v4 }
 0x886   : > { %v10578_v43 = vpop.eup %6984  ;;  %7004 = vpow2.f32 %v3079_v34 }
 0x887   : > { %v10586_v18 = vpop.eup %6986  ;;  %7006 = vpow2.f32 %v3083_v11  ;;  %v3149_v4 = vadd.f32 %v10563_v20, %v3148_v23 }
 0x888   : > { %v10593_v59 = vpop.eup %6988  ;;  %7008 = vpow2.f32 %v3087_v49 }
 0x889   : > { %v10601_v28 = vpop.eup %6990  ;;  %7010 = vpow2.f32 %v3091_v61  ;;  %v3150_v23 = vadd.f32 %v10571_v55, %v3149_v4  ;;  %v14647_v4 = vsub.f32 %v10405_v26, %v10453_v50 }
 0x88a   : > { %v10608_v47 = vpop.eup %6992  ;;  %7012 = vpow2.f32 %v3095_v41  ;;  %v14648_v41 = vsub.f32 %v10411_v46, %v10453_v50 }
 0x88b   : > { %v10616_v8 = vpop.eup %6994  ;;  %7014 = vpow2.f32 %v3099_v35  ;;  %v3115_v34 = vmul.f32 1.442695, %v14647_v4  ;;  %v3151_v49 = vadd.f32 %v10578_v43, %v3150_v23  ;;  %v14649_v35 = vsub.f32 %v10417_v12, %v10453_v50 }
 0x88c   : > { %v10622_v63 = vpop.eup %6996  ;;  %7016 = vpow2.f32 %v10525_v60  ;;  %v3119_v11 = vmul.f32 1.442695, %v14648_v41  ;;  %v14650_v60 = vsub.f32 %v10423_v13, %v10453_v50  ;;  %v14654_v13 = vsub.f32 %v10441_v15, %v10453_v50 }
 0x88d   : > { %v10628_v7 = vpop.eup %6998  ;;  %7018 = vpow2.f32 %v10527_v38  ;;  %v3123_v61 = vmul.f32 1.442695, %v14649_v35  ;;  %v3152_v26 = vadd.f32 %v10586_v18, %v3151_v49  ;;  %v14651_v38 = vsub.f32 %v10429_v17, %v10453_v50 }
 0x88e   : > { %v10635_v4 = vpop.eup %7000  ;;  %7020 = vpow2.f32 %v10529_v56  ;;  %v3127_v23 = vmul.f32 1.442695, %v14650_v60  ;;  %v14652_v49 = vsub.f32 %v10435_v5, %v10453_v50 }
 0x88f   : > { %v10641_v46 = vpop.eup %7002  ;;  %7022 = vpow2.f32 %v3115_v34  ;;  %v3131_v41 = vmul.f32 1.442695, %v14651_v38  ;;  %v3153_v12 = vadd.f32 %v10593_v59, %v3152_v26  ;;  %v3139_v34 = vmul.f32 1.442695, %v14654_v13 }
 0x890   : > { %v10647_v35 = vpop.eup %7004  ;;  %7024 = vpow2.f32 %v3119_v11  ;;  %v3135_v56 = vmul.f32 1.442695, %v14652_v49  ;;  %v14655_v26 = vsub.f32 %v10447_v31, %v10453_v50  ;;  %v14658_v31 = vsub.f32 %v10273_v42, %v10455_v57 }
 0x891   : > { %v10652_v10 = vpop.eup %7006  ;;  %7026 = vpow2.f32 %v3123_v61  ;;  %v3154_v60 = vadd.f32 %v10601_v28, %v3153_v12  ;;  %v14656_v61 = vsub.f32 %v10263_v3, %v10455_v57  ;;  %v14657_v12 = vsub.f32 %v10267_v24, %v10455_v57 }
 0x892   : > { %14653 = vst [vmem:[#allocation100_spill] sm:$0xff] %v10652_v10  ;;  %v10658_v17 = vpop.eup %7008  ;;  %7028 = vpow2.f32 %v3127_v23  ;;  %v3143_v11 = vmul.f32 1.442695, %v14655_v26  ;;  %v3029_v50 = vmul.f32 1.442695, %v14658_v31  ;;  %v14659_v3 = vsub.f32 %v10281_v39, %v10455_v57 }
 0x893   : > { %v10663_v38 = vpop.eup %7010  ;;  %7030 = vpow2.f32 %v3131_v41  ;;  %v3155_v5 = vadd.f32 %v10608_v47, %v3154_v60  ;;  %v3021_v49 = vmul.f32 1.442695, %v14656_v61  ;;  %v3025_v23 = vmul.f32 1.442695, %v14657_v12 }
 0x894   : > { %v10669_v15 = vpop.eup %7012  ;;  %7032 = vpow2.f32 %v3135_v56  ;;  %v3033_v60 = vmul.f32 1.442695, %v14659_v3  ;;  %v14660_v56 = vsub.f32 %v10288_v27, %v10455_v57  ;;  %v14661_v24 = vsub.f32 %v10294_v45, %v10455_v57 }
 0x895   : > { %v10677_v13 = vpop.eup %7014  ;;  %7034 = vpow2.f32 %v3139_v34  ;;  %v3156_v41 = vadd.f32 %v10616_v8, %v3155_v5  ;;  %v14662_v34 = vsub.f32 %v10300_v6, %v10455_v57  ;;  %v14663_v5 = vsub.f32 %v10306_v1, %v10455_v57 }
 0x896   : > { %v3037_v26 = vmul.f32 1.442695, %v14660_v56  ;;  %v10686_v61 = vpop.eup %7016  ;;  %7036 = vpow2.f32 %v3143_v11  ;;  %v3041_v42 = vmul.f32 1.442695, %v14661_v24  ;;  %v14664_v11 = vsub.f32 %v10312_v32, %v10455_v57 }
 0x897   : > { %v3045_v12 = vmul.f32 1.442695, %v14662_v34  ;;  %v3049_v39 = vmul.f32 1.442695, %v14663_v5  ;;  %v10697_v31 = vpop.eup %7018  ;;  %v3157_v27 = vadd.f32 %v10622_v63, %v3156_v41  ;;  %7038 = vpow2.f32 %v3021_v49 }
 0x898   : > { %v3053_v3 = vmul.f32 1.442695, %v14664_v11  ;;  %v14665_v45 = vsub.f32 %v10318_v22, %v10455_v57  ;;  %v10706_v24 = vpop.eup %7020  ;;  %7040 = vpow2.f32 %v3025_v23 }
 0x899   : > { %v10714_v41 = vpop.eup %7022  ;;  %v3158_v32 = vadd.f32 %v10628_v7, %v3157_v27  ;;  %7042 = vpow2.f32 %v3029_v50 }
 0x89a   : > { %v3057_v56 = vmul.f32 1.442695, %v14665_v45  ;;  %v10721_v34 = vpop.eup %7024  ;;  %7044 = vpow2.f32 %v3033_v60  ;;  %v14666_v60 = vsub.f32 %v10324_v48, %v10455_v57  ;;  %v14667_v45 = vsub.f32 %v14627_v51, %v10455_v57 }
 0x89b   : > { %v10729_v27 = vpop.eup %7026  ;;  %v3159_v50 = vadd.f32 %v10635_v4, %v3158_v32  ;;  %7046 = vpow2.f32 %v3037_v26 }
 0x89c   : > { %v10736_v22 = vpop.eup %7028  ;;  %7048 = vpow2.f32 %v3041_v42  ;;  %v3061_v23 = vmul.f32 1.442695, %v14666_v60  ;;  %v3065_v11 = vmul.f32 1.442695, %v14667_v45 }
 0x89d   : > { %v10744_v32 = vpop.eup %7030  ;;  %v3160_v26 = vadd.f32 %v10641_v46, %v3159_v50  ;;  %7050 = vpow2.f32 %v3045_v12  ;;  %v14668_v12 = vsub.f32 %v14628_v19, %v10455_v57  ;;  %v14673_v19 = vsub.f32 %v14633_v37, %v10455_v57 }
 0x89e   : > { %v10752_v49 = vpop.eup %7032  ;;  %7052 = vpow2.f32 %v3049_v39  ;;  %v14669_v39 = vsub.f32 %v14629_v36, %v10455_v57  ;;  %v14672_v36 = vsub.f32 %v14632_v30, %v10455_v57  ;;  %v14676_v37 = vsub.f32 %v14636_v33, %v10455_v57 }
 0x89f   : > { %v10757_v5 = vpop.eup %7034  ;;  %v3161_v1 = vadd.f32 %v10647_v35, %v3160_v26  ;;  %7054 = vpow2.f32 %v3053_v3  ;;  %v3069_v48 = vmul.f32 1.442695, %v14668_v12  ;;  %v14670_v3 = vsub.f32 %v14630_v53, %v10455_v57 }
 0x8a0   : > { %v10765_v60 = vpop.eup %7036  ;;  %7056 = vpow2.f32 %v3057_v56  ;;  %v3073_v51 = vmul.f32 1.442695, %v14669_v39  ;;  %v14671_v56 = vsub.f32 %v14631_v14, %v10455_v57  ;;  %v3085_v39 = vmul.f32 1.442695, %v14672_v36 }
 0x8a1   : > { %v7039_v45 = vpop.eup %7038  ;;  %v3162_v42 = vadd.f32 %v10652_v10, %v3161_v1  ;;  %7058 = vpow2.f32 %v3061_v23  ;;  %v3077_v26 = vmul.f32 1.442695, %v14670_v3  ;;  %v14674_v14 = vsub.f32 %v14634_v9, %v10455_v57 }
 0x8a2   : > { %v7041_v12 = vpop.eup %7040  ;;  %7060 = vpow2.f32 %v3065_v11  ;;  %v3081_v50 = vmul.f32 1.442695, %v14671_v56  ;;  %v3089_v11 = vmul.f32 1.442695, %v14673_v19  ;;  %v3101_v19 = vmul.f32 1.442695, %v14676_v37 }
 0x8a3   : > { %v7043_v6 = vpop.eup %7042  ;;  %v3163_v1 = vadd.f32 %v10658_v17, %v3162_v42  ;;  %7062 = vpow2.f32 %v3069_v48  ;;  %v3184_v23 = vadd.f32 %v7041_v12, %v7039_v45  ;;  %v3222_v53 = vpack.c.bf16 %v7041_v12, %v7039_v45 }
 0x8a4   : > { %v7045_v3 = vpop.eup %7044  ;;  %7064 = vpow2.f32 %v3073_v51  ;;  %v3093_v56 = vmul.f32 1.442695, %v14674_v14  ;;  %v14675_v51 = vsub.f32 %v14635_v58, %v10455_v57  ;;  %v14677_v9 = vpack.c.bf16 %v10547_v0, %v10539_v40 }
 0x8a5   : > { %v7047_v10 = vpop.eup %7046  ;;  %v3164_v30 = vadd.f32 %v10663_v38, %v3163_v1  ;;  %7066 = vpow2.f32 %v3077_v26  ;;  %v3185_v36 = vadd.f32 %v7043_v6, %v3184_v23  ;;  %3259 = vmatprep.subr.bf16.mxu1 %v3222_v53  ;;  %v3224_v42 = vpack.c.bf16 %v7045_v3, %v7043_v6 }
 0x8a6   : > { %v7049_v48 = vpop.eup %7048  ;;  %7068 = vpow2.f32 %v3081_v50  ;;  %v3097_v45 = vmul.f32 1.442695, %v14675_v51  ;;  %3260 = vmatpush1.bf16.msra.mxu1 %v14677_v9  ;;  %v14678_v58 = vsub.f32 %v14637_v2, %v10455_v57  ;;  %v14679_v33 = vsub.f32 %v14638_v44, %v10455_v57  ;;  %v14684_v9 = vld [vmem:[#allocation94_spill] sm:$0xff] }
 0x8a7   : > { %v7051_v12 = vpop.eup %7050  ;;  %v3165_v26 = vadd.f32 %v10669_v15, %v3164_v30  ;;  %7070 = vpow2.f32 %v3085_v39  ;;  %v3186_v1 = vadd.f32 %v7045_v3, %v3185_v36  ;;  %3261 = vmatprep.subr.bf16.mxu1 %v3224_v42  ;;  %v3226_v6 = vpack.c.bf16 %v7049_v48, %v7047_v10 }
 0x8a8   : > { %v7053_v50 = vpop.eup %7052  ;;  %7072 = vpow2.f32 %v3089_v11  ;;  %v3105_v23 = vmul.f32 1.442695, %v14678_v58  ;;  %v3109_v53 = vmul.f32 1.442695, %v14679_v33  ;;  %v14680_v3 = vsub.f32 %v14639_v62, %v10455_v57 }
 0x8a9   : > { %v7055_v14 = vpop.eup %7054  ;;  %v3166_v40 = vadd.f32 %v10677_v13, %v3165_v26  ;;  %7074 = vpow2.f32 %v3093_v56  ;;  %v3187_v0 = vadd.f32 %v7047_v10, %v3186_v1  ;;  %v3228_v30 = vpack.c.bf16 %v7053_v50, %v7051_v12 }
 0x8aa   : > { %v7057_v39 = vpop.eup %7056  ;;  %7076 = vpow2.f32 %v3097_v45  ;;  %v3113_v11 = vmul.f32 1.442695, %v14680_v3  ;;  %v14681_v2 = vsub.f32 %v14640_v29, %v10455_v57  ;;  %v14682_v44 = vpack.c.bf16 %v10563_v20, %v10555_v16 }
 0x8ab   : > { %v7059_v42 = vpop.eup %7058  ;;  %v3167_v51 = vadd.f32 %v10686_v61, %v3166_v40  ;;  %7078 = vpow2.f32 %v3101_v19  ;;  %v3188_v10 = vadd.f32 %v7049_v48, %v3187_v0  ;;  %v3230_v56 = vpack.c.bf16 %v7057_v39, %v7055_v14 }
 0x8ac   : > { %v3117_v36 = vmul.f32 1.442695, %v14681_v2  ;;  %3262 = vmatpush1.bf16.msra.mxu1 %v14682_v44  ;;  %v7061_v45 = vpop.eup %7060  ;;  %7080 = vpow2.f32 %v3105_v23  ;;  %v14683_v62 = vsub.f32 %v14641_v54, %v10455_v57  ;;  %v14685_v29 = vsub.f32 %v14684_v9, %v10455_v57  ;;  %v14687_v23 = vld [vmem:[#allocation96_spill] sm:$0xff] }
 0x8ad   : > { %3263 = vmatprep.subr.bf16.mxu1 %v3226_v6  ;;  %v7063_v1 = vpop.eup %7062  ;;  %v3168_v16 = vadd.f32 %v10697_v31, %v3167_v51  ;;  %7082 = vpow2.f32 %v3109_v53  ;;  %v3189_v20 = vadd.f32 %v7051_v12, %v3188_v10  ;;  %v3232_v58 = vpack.c.bf16 %v7061_v45, %v7059_v42 }
 0x8ae   : > { %v3121_v37 = vmul.f32 1.442695, %v14683_v62  ;;  %v3125_v26 = vmul.f32 1.442695, %v14685_v29  ;;  %v7065_v19 = vpop.eup %7064  ;;  %7084 = vpow2.f32 %v3113_v11  ;;  %v14686_v48 = vsub.f32 %v14643_v25, %v10455_v57 }
 0x8af   : > { %v14688_v54 = vsub.f32 %v14687_v23, %v10455_v57  ;;  %v14689_v40 = vpack.c.bf16 %v10578_v43, %v10571_v55  ;;  %v7067_v0 = vpop.eup %7066  ;;  %v3169_v3 = vadd.f32 %v10706_v24, %v3168_v16  ;;  %7086 = vpow2.f32 %v3117_v36 }
 0x8b0   : > { %v3129_v6 = vmul.f32 1.442695, %v14686_v48  ;;  %v3190_v12 = vadd.f32 %v7053_v50, %v3189_v20  ;;  %v3234_v53 = vpack.c.bf16 %v7065_v19, %v7063_v1  ;;  %v7069_v11 = vpop.eup %7068  ;;  %7088 = vpow2.f32 %v3121_v37  ;;  %v14692_v50 = vld [vmem:[#allocation99_spill] sm:$0xff] }
 0x8b1   : > { %v3133_v33 = vmul.f32 1.442695, %v14688_v54  ;;  %3264 = vmatpush1.bf16.msra.mxu1 %v14689_v40  ;;  %v14690_v25 = vsub.f32 %v14645_v52, %v10455_v57  ;;  %v14691_v44 = vsub.f32 %v14646_v21, %v10455_v57  ;;  %v7071_v10 = vpop.eup %7070  ;;  %v3170_v43 = vadd.f32 %v10714_v41, %v3169_v3 }
 0x8b2   : > { %3265 = vmatprep.subr.bf16.mxu1 %v3228_v30  ;;  %7090 = vpow2.f32 %v3125_v26  ;;  %v3191_v55 = vadd.f32 %v7055_v14, %v3190_v12  ;;  %v3236_v62 = vpack.c.bf16 %v7069_v11, %v7067_v0  ;;  %v7073_v36 = vpop.eup %7072  ;;  %v14693_v30 = vsub.f32 %v14692_v50, %v10455_v57 }
 0x8b3   : > { %v3137_v2 = vmul.f32 1.442695, %v14690_v25  ;;  %v3141_v51 = vmul.f32 1.442695, %v14691_v44  ;;  %7092 = vpow2.f32 %v3129_v6  ;;  %v14694_v52 = vpack.c.bf16 %v10593_v59, %v10586_v18  ;;  %v7075_v9 = vpop.eup %7074 }
 0x8b4   : > { %v3145_v37 = vmul.f32 1.442695, %v14693_v30  ;;  %v3171_v21 = vadd.f32 %v10721_v34, %v3170_v43  ;;  %7094 = vpow2.f32 %v3133_v33  ;;  %v3192_v29 = vadd.f32 %v7057_v39, %v3191_v55  ;;  %v7077_v26 = vpop.eup %7076 }
 0x8b5   : > { %3266 = vmatpush1.bf16.msra.mxu1 %v14694_v52  ;;  %v3238_v16 = vpack.c.bf16 %v7073_v36, %v7071_v10  ;;  %7096 = vpow2.f32 %v3137_v2  ;;  %v7079_v14 = vpop.eup %7078  ;;  %v3240_v57 = vpack.c.bf16 %v7077_v26, %v7075_v9  ;;  %v14695_v59 = vpack.c.bf16 %v10608_v47, %v10601_v28 }
 0x8b6   : > { %3267 = vmatprep.subr.bf16.mxu1 %v3230_v56  ;;  %v3172_v20 = vadd.f32 %v10729_v27, %v3171_v21  ;;  %7098 = vpow2.f32 %v3141_v51  ;;  %v3193_v48 = vadd.f32 %v7059_v42, %v3192_v29  ;;  %v7081_v6 = vpop.eup %7080  ;;  %v14696_v25 = vpack.c.bf16 %v10622_v63, %v10616_v8 }
 0x8b7   : > { %7100 = vpow2.f32 %v3145_v37  ;;  %v7083_v18 = vpop.eup %7082  ;;  %v3242_v56 = vpack.c.bf16 %v7081_v6, %v7079_v14  ;;  %v14698_v21 = vpack.c.bf16 %v10647_v35, %v10641_v46  ;;  %v14702_v46 = vpack.c.bf16 %v10686_v61, %v10677_v13 }
 0x8b8   : > { %v3173_v23 = vadd.f32 %v10736_v22, %v3172_v20  ;;  %v3194_v39 = vadd.f32 %v7061_v45, %v3193_v48  ;;  %v7085_v54 = vpop.eup %7084  ;;  %v14705_v13 = vpack.c.bf16 %v10736_v22, %v10729_v27  ;;  %v14711_v22 = vpack.c.bf16 %v10765_v60, %v10757_v5  ;;  %v14712_v27 = vld [vmem:[#allocation43_spill] sm:$0xff] }
 0x8b9   : > { %3268 = vmatpush1.bf16.msra.mxu1 %v14695_v59  ;;  %v7087_v33 = vpop.eup %7086  ;;  %v3244_v12 = vpack.c.bf16 %v7085_v54, %v7083_v18  ;;  %v3255_v59 = vrot.slane %v14712_v27, 2 }
 0x8ba   : > { %3269 = vmatprep.subr.bf16.mxu1 %v3232_v58  ;;  %v3174_v40 = vadd.f32 %v10744_v32, %v3173_v23  ;;  %v3195_v3 = vadd.f32 %v7063_v1, %v3194_v39  ;;  %v7089_v42 = vpop.eup %7088  ;;  %v14697_v1 = vpack.c.bf16 %v10635_v4, %v10628_v7  ;;  %v14699_v7 = vld [vmem:[#allocation100_spill] sm:$0xff]  ;;  %v14715_v23 = vld [vmem:[#allocation79_spill] sm:$0xff]  ;;  %v14718_v39 = vld [vmem:[#allocation82_spill] sm:$0xff] }
 0x8bb   : > { %v3246_v44 = vpack.c.bf16 %v7089_v42, %v7087_v33  ;;  %v14700_v4 = vpack.c.bf16 %v10658_v17, %v14699_v7  ;;  %v14703_v17 = vpack.c.bf16 %v10706_v24, %v10697_v31  ;;  %v14706_v31 = vpack.c.bf16 %v10752_v49, %v10744_v32 }
 0x8bc   : > { %v7091_v2 = vpop.eup %7090  ;;  %v3175_v47 = vadd.f32 %v10752_v49, %v3174_v40  ;;  %v3196_v28 = vadd.f32 %v7065_v19, %v3195_v3  ;;  %v14713_v32 = vmov 0   ;;  %v14722_v40 = vld [vmem:[#allocation88_spill] sm:$0xff]  ;;  %v14723_v3 = vld [vmem:[#allocation89_spill] sm:$0xff] }
 0x8bd   : > { %3270 = vmatpush1.bf16.msra.mxu1 %v14696_v25  ;;  %v7093_v45 = vpop.eup %7092  ;;  %v14726_v25 = vld [vmem:[#allocation61_spill] sm:$0xff] }
 0x8be   : > { %3271 = vmatprep.subr.bf16.mxu1 %v3234_v53  ;;  %v7095_v58 = vpop.eup %7094  ;;  %v3176_v51 = vadd.f32 %v10757_v5, %v3175_v47  ;;  %v3197_v43 = vadd.f32 %v7067_v0, %v3196_v28  ;;  %v3248_v55 = vpack.c.bf16 %v7093_v45, %v7091_v2  ;;  %v14716_v5 = vld [vmem:[#allocation81_spill] sm:$0xff]  ;;  %v14728_v47 = vld [vmem:[#allocation67_spill] sm:$0xff] }
 0x8bf   : > { %v7097_v50 = vpop.eup %7096  ;;  %v14729_v28 = vld [vmem:[#allocation45_spill] sm:$0xff] }
 0x8c0   : > { %v7099_v30 = vpop.eup %7098  ;;  %v10863_v63 = vadd.f32 %v10765_v60, %v3176_v51  ;;  %v3198_v8 = vadd.f32 %v7069_v11, %v3197_v43  ;;  %v3250_v19 = vpack.c.bf16 %v7097_v50, %v7095_v58  ;;  %v14701_v11 = vpack.c.bf16 %v10669_v15, %v10663_v38  ;;  %v14717_v60 = vld [vmem:[#allocation84_spill] sm:$0xff] }
 0x8c1   : > { %3272 = vmatpush1.bf16.msra.mxu1 %v14697_v1  ;;  %v7101_v53 = vpop.eup %7100  ;;  %v14704_v38 = vpack.c.bf16 %v10721_v34, %v10714_v41  ;;  %v14709_v34 = vld [vmem:[#allocation77_spill] sm:$0xff] }
 0x8c2   : > { %3273 = vmatprep.subr.bf16.mxu1 %v3236_v62  ;;  %v3199_v37 = vadd.f32 %v7071_v10, %v3198_v8  ;;  %v3252_v52 = vpack.c.bf16 %v7101_v53, %v7099_v30 }
 0x8c4   : > { %v3200_v0 = vadd.f32 %v7073_v36, %v3199_v37 }
 0x8c5   : > { %3274 = vmatpush1.bf16.msra.mxu1 %v14698_v21 }
 0x8c6   : > { %3275 = vmatprep.subr.bf16.mxu1 %v3238_v16  ;;  %v3201_v29 = vadd.f32 %v7075_v9, %v3200_v0 }
 0x8c8   : > { %v3202_v20 = vadd.f32 %v7077_v26, %v3201_v29 }
 0x8c9   : > { %3276 = vmatpush1.bf16.msra.mxu1 %v14700_v4 }
 0x8ca   : > { %3277 = vmatprep.subr.bf16.mxu1 %v3240_v57  ;;  %v3203_v48 = vadd.f32 %v7079_v14, %v3202_v20  ;;  %v14707_v57 = vld [vmem:[#allocation76_spill] sm:$0xff] }
 0x8cb   : > { %v10891_v41 = vpack.c.bf16 %v14707_v57, %v14707_v57 }
 0x8cc   : > { %v3204_v10 = vadd.f32 %v7081_v6, %v3203_v48  ;;  %v10895_v6 = vpack.c.bf16 %v14709_v34, %v14709_v34 }
 0x8cd   : > { %3278 = vmatpush1.bf16.msra.mxu1 %v14701_v11  ;;  %14708 = vst [vmem:[#allocation102_spill] sm:$0xff] %v10891_v41  ;;  %v3391_v49 = vsel %vm561_vm1, %v10891_v41, 0 }
 0x8ce   : > { %3279 = vmatprep.subr.bf16.mxu1 %v3242_v56  ;;  %v3205_v62 = vadd.f32 %v7083_v18, %v3204_v10  ;;  %14710 = vst [vmem:[#allocation104_spill] sm:$0xff] %v10895_v6  ;;  %v14714_v18 = vld [vmem:[#allocation75_spill] sm:$0xff] }
 0x8cf   : > { %v14719_v56 = vld [vmem:[#allocation87_spill] sm:$0xff] }
 0x8d0   : > { %v3206_v35 = vadd.f32 %v7085_v54, %v3205_v62  ;;  %v14720_v54 = vld [vmem:[#allocation63_spill] sm:$0xff] }
 0x8d1   : > { %3280 = vmatpush1.bf16.msra.mxu1 %v14702_v46  ;;  %v14731_v10 = vld [vmem:[#allocation47_spill] sm:$0xff] }
 0x8d2   : > { %3281 = vmatprep.subr.bf16.mxu1 %v3244_v12  ;;  %v3207_v36 = vadd.f32 %v7087_v33, %v3206_v35  ;;  %v14721_v33 = vld [vmem:[#allocation9_spill] sm:$0xff]  ;;  %v14724_v12 = vld [vmem:[#allocation58_spill] sm:$0xff] }
 0x8d4   : > { %v3208_v9 = vadd.f32 %v7089_v42, %v3207_v36  ;;  %v14725_v42 = vld [vmem:[#allocation60_spill] sm:$0xff] }
 0x8d5   : > { %3282 = vmatpush1.bf16.msra.mxu1 %v14703_v17 }
 0x8d6   : > { %3283 = vmatprep.subr.bf16.mxu1 %v3246_v44  ;;  %v3209_v16 = vadd.f32 %v7091_v2, %v3208_v9  ;;  %v14727_v2 = vld [vmem:[#allocation65_spill] sm:$0xff]  ;;  %v4670_v44 = vrot.slane %v14729_v28, 2 }
 0x8d8   : > { %v3210_v15 = vadd.f32 %v7093_v45, %v3209_v16  ;;  %v14730_v45 = vld [vmem:[#allocation68_spill] sm:$0xff] }
 0x8d9   : > { %3284 = vmatpush1.bf16.msra.mxu1 %v14704_v38 }
 0x8da   : > { %3285 = vmatprep.subr.bf16.mxu1 %v3248_v55  ;;  %v3211_v26 = vadd.f32 %v7095_v58, %v3210_v15  ;;  %v3178_v58 = vrot.slane %v10863_v63, 4 }
 0x8dc   : > { %v3212_v61 = vadd.f32 %v7097_v50, %v3211_v26  ;;  %v3179_v43 = vadd.f32 %v3178_v58, %v10863_v63 }
 0x8dd   : > { %3286 = vmatpush1.bf16.msra.mxu1 %v14705_v13 }
 0x8de   : > { %3287 = vmatprep.subr.bf16.mxu1 %v3250_v19  ;;  %v3213_v14 = vadd.f32 %v7099_v30, %v3212_v61  ;;  %v3180_v50 = vrot.slane %v3179_v43, 2 }
 0x8e0   : > { %v3214_v24 = vadd.f32 %v7101_v53, %v3213_v14  ;;  %v3181_v30 = vadd.f32 %v3180_v50, %v3179_v43 }
 0x8e1   : > { %3288 = vmatpush1.bf16.msra.mxu1 %v14706_v31 }
 0x8e2   : > { %3289 = vmatprep.subr.bf16.mxu1 %v3252_v52  ;;  %v3215_v51 = vrot.slane %v3214_v24, 4  ;;  %v3182_v19 = vrot.slane %v3181_v30, 1 }
 0x8e4   : > { %v3216_v55 = vadd.f32 %v3215_v51, %v3214_v24  ;;  %v3183_v37 = vadd.f32 %v3182_v19, %v3181_v30 }
 0x8e5   : > { %3290 = vmatpush1.bf16.msra.mxu1 %v14711_v22 }
 0x8e6   : > { %6441 = vmatprep.subr.msk.bf16.mxu1 %vm561_vm1, %v10895_v6  ;;  %v3217_v1 = vrot.slane %v3216_v55, 2  ;;  %7102 = vrcp.f32 %v3183_v37 }
 0x8e8   : > { %3292 = vmatmul.mubr.bf16.vlgmr.msra.gmra.mrb[132].mxu1 %v3255_v59  ;;  %v3218_v8 = vadd.f32 %v3217_v1, %v3216_v55 }
 0x8e9   : > { %3397 = vmatpush1.bf16.msra.mxu1 %v3391_v49  ;;  %3428 = vmatprep.mubr.bf16.mxu1 %v14713_v32 }
 0x8ea   : > { %v3219_v53 = vrot.slane %v3218_v8, 1 }
 0x8ec   : > { %v3220_v52 = vadd.f32 %v3219_v53, %v3218_v8 }
 0x8ee   : > { %7104 = vrcp.f32 %v3220_v52 }
 0x8f0   : > { %6442 = vmatmul.mubr.msk.bf16.vlgmr.msra.gmra.mrb[136].mxu1 %vm512_vm2, %v14714_v18  ;;  %v7103_v21 = vpop.eup %7102 }
 0x8f1   : > { %3438 = vmatprep.mubr.bf16.mxu1 %v14713_v32 }
 0x8f8   : > { %6443 = vmatmul.mubr.msk.bf16.gmra.mrb[140].mxu1 %vm512_vm2, %v14715_v23  ;;  %v7105_v29 = vpop.eup %7104 }
 0x8f9   : > { %3448 = vmatprep.mubr.bf16.mxu1 %v14713_v32 }
 0x900   : > { %6444 = vmatmul.mubr.msk.bf16.gmra.mrb[144].mxu1 %vm512_vm2, %v14716_v5 }
 0x901   : > { %3458 = vmatprep.mubr.bf16.mxu1 %v14713_v32 }
 0x908   : > { %6445 = vmatmul.mubr.msk.bf16.gmra.mrb[148].mxu1 %vm512_vm2, %v14717_v60 }
 0x909   : > { %3468 = vmatprep.mubr.bf16.mxu1 %v14713_v32 }
 0x910   : > { %6446 = vmatmul.mubr.msk.bf16.gmra.mrb[152].mxu1 %vm512_vm2, %v14718_v39 }
 0x911   : > { %3478 = vmatprep.mubr.bf16.mxu1 %v14713_v32 }
 0x918   : > { %6447 = vmatmul.mubr.msk.bf16.gmra.mrb[156].mxu1 %vm512_vm2, %v14719_v56 }
 0x919   : > { %3488 = vmatprep.mubr.bf16.mxu1 %v14713_v32 }
 0x920   : > { %6448 = vmatmul.mubr.msk.bf16.gmra.mrb[160].mxu1 %vm512_vm2, %v14720_v54 }
 0x921   : > { %3498 = vmatprep.mubr.bf16.mxu1 %v14713_v32 }
 0x928   : > { %6449 = vmatmul.mubr.msk.bf16.gmra.mrb[164].mxu1 %vm512_vm2, %v14721_v33 }
 0x929   : > { %3508 = vmatprep.mubr.bf16.mxu1 %v14713_v32 }
 0x930   : > { %6450 = vmatmul.mubr.msk.bf16.gmra.mrb[168].mxu1 %vm512_vm2, %v14722_v40 }
 0x931   : > { %3518 = vmatprep.mubr.bf16.mxu1 %v14713_v32 }
 0x938   : > { %6451 = vmatmul.mubr.msk.bf16.gmra.mrb[172].mxu1 %vm512_vm2, %v14723_v3 }
 0x939   : > { %3528 = vmatprep.mubr.bf16.mxu1 %v14713_v32 }
 0x940   : > { %6452 = vmatmul.mubr.msk.bf16.gmra.mrb[176].mxu1 %vm512_vm2, %v14724_v12 }
 0x941   : > { %3538 = vmatprep.mubr.bf16.mxu1 %v14713_v32 }
 0x948   : > { %6453 = vmatmul.mubr.msk.bf16.gmra.mrb[180].mxu1 %vm512_vm2, %v14725_v42 }
 0x949   : > { %3548 = vmatprep.mubr.bf16.mxu1 %v14713_v32 }
 0x950   : > { %6454 = vmatmul.mubr.msk.bf16.gmra.mrb[184].mxu1 %vm512_vm2, %v14726_v25 }
 0x951   : > { %3558 = vmatprep.mubr.bf16.mxu1 %v14713_v32 }
 0x958   : > { %6455 = vmatmul.mubr.msk.bf16.gmra.mrb[188].mxu1 %vm512_vm2, %v14727_v2 }
 0x959   : > { %3568 = vmatprep.mubr.bf16.mxu1 %v14713_v32 }
 0x960   : > { %6456 = vmatmul.mubr.msk.bf16.gmra.mrb[192].mxu1 %vm512_vm2, %v14728_v47 }
 0x961   : > { %3578 = vmatprep.mubr.bf16.mxu1 %v14713_v32 }
 0x968   : > { %6457 = vmatmul.mubr.msk.bf16.gmra.mrb[196].mxu1 %vm512_vm2, %v14730_v45 }
 0x969   : > { %4705 = vmatprep.mubr.bf16.mxu1 %v4670_v44 }
 0x9bb   : > { %v3293_v0 = vpop.f32.mrb[132].mxu1 }
 0x9bc   : > { %v3302_v7 = vmul.f32 %v7103_v21, %v3293_v0  ;;  %v3295_v4 = vpop.f32.mrb[133].mxu1 }
 0x9bd   : > { %v3303_v20 = vmul.f32 %v7105_v29, %v3295_v4  ;;  %v3297_v48 = vpop.f32.mrb[134].mxu1 }
 0x9be   : > { %v6140_v11 = vrot.slane %v3302_v7, 4  ;;  %v3298_v63 = vpop.f32.mrb[135].mxu1  ;;  %v14737_v48 = vld [vmem:[#allocation49_spill] sm:$0xff] }
 0x9bf   : > { %v6141_v19 = vrot.slane %v3303_v20, 4 }
 0x9c0   : > { %v10958_v62 = vsel %vm6156_vm3, %v14731_v10, %v6140_v11 }
 0x9c1   : > { %14732 = vst [vmem:[#allocation105_spill] sm:$0xff] %v10958_v62  ;;  %v11048_v11 = vsel %vm6156_vm3, %v14737_v48, %v6141_v19 }
 0x9c2   : > { %14738 = vst [vmem:[#allocation29_spill] sm:$0xff] %v11048_v11 }
 0x9c3   : > { %v10962_v36 = vpop.f32.mrb[136].mxu1 }
 0x9c4   : > { %v10964_v17 = vpop.f32.mrb[137].mxu1 }
 0x9c5   : > { %v10966_v9 = vpop.f32.mrb[138].mxu1 }
 0x9c6   : > { %v10968_v16 = vpop.f32.mrb[139].mxu1 }
 0x9cb   : > { %v10970_v38 = vpop.f32.mrb[140].mxu1 }
 0x9cc   : > { %v3589_v15 = vmax.f32 %v10962_v36, %v10970_v38  ;;  %v10974_v26 = vpop.f32.mrb[141].mxu1 }
 0x9cd   : > { %v3626_v13 = vmax.f32 %v10964_v17, %v10974_v26  ;;  %v10978_v61 = vpop.f32.mrb[142].mxu1 }
 0x9ce   : > { %v3590_v14 = vmax.f32 %v10966_v9, %v10978_v61  ;;  %v10982_v31 = vpop.f32.mrb[143].mxu1 }
 0x9cf   : > { %v3627_v24 = vmax.f32 %v10968_v16, %v10982_v31 }
 0x9d3   : > { %v10986_v57 = vpop.f32.mrb[144].mxu1 }
 0x9d4   : > { %v3591_v34 = vmax.f32 %v3589_v15, %v10986_v57  ;;  %v10989_v22 = vpop.f32.mrb[145].mxu1 }
 0x9d5   : > { %v3628_v27 = vmax.f32 %v3626_v13, %v10989_v22  ;;  %v10992_v59 = vpop.f32.mrb[146].mxu1 }
 0x9d6   : > { %v3592_v49 = vmax.f32 %v3590_v14, %v10992_v59  ;;  %v10995_v18 = vpop.f32.mrb[147].mxu1 }
 0x9d7   : > { %v3629_v23 = vmax.f32 %v3627_v24, %v10995_v18 }
 0x9db   : > { %v10998_v5 = vpop.f32.mrb[148].mxu1 }
 0x9dc   : > { %v3593_v60 = vmax.f32 %v3591_v34, %v10998_v5  ;;  %v11001_v39 = vpop.f32.mrb[149].mxu1 }
 0x9dd   : > { %v3630_v56 = vmax.f32 %v3628_v27, %v11001_v39  ;;  %v11004_v54 = vpop.f32.mrb[150].mxu1 }
 0x9de   : > { %v3594_v33 = vmax.f32 %v3592_v49, %v11004_v54  ;;  %v11007_v40 = vpop.f32.mrb[151].mxu1 }
 0x9df   : > { %v3631_v3 = vmax.f32 %v3629_v23, %v11007_v40 }
 0x9e3   : > { %v11010_v12 = vpop.f32.mrb[152].mxu1 }
 0x9e4   : > { %v3595_v42 = vmax.f32 %v3593_v60, %v11010_v12  ;;  %v11013_v25 = vpop.f32.mrb[153].mxu1 }
 0x9e5   : > { %v3632_v2 = vmax.f32 %v3630_v56, %v11013_v25  ;;  %v11016_v47 = vpop.f32.mrb[154].mxu1 }
 0x9e6   : > { %v3596_v28 = vmax.f32 %v3594_v33, %v11016_v47  ;;  %v11019_v44 = vpop.f32.mrb[155].mxu1 }
 0x9e7   : > { %v3633_v45 = vmax.f32 %v3631_v3, %v11019_v44 }
 0x9eb   : > { %v11022_v58 = vpop.f32.mrb[156].mxu1 }
 0x9ec   : > { %v3597_v51 = vmax.f32 %v3595_v42, %v11022_v58  ;;  %v11025_v43 = vpop.f32.mrb[157].mxu1 }
 0x9ed   : > { %v3634_v55 = vmax.f32 %v3632_v2, %v11025_v43  ;;  %v11028_v50 = vpop.f32.mrb[158].mxu1 }
 0x9ee   : > { %v3598_v1 = vmax.f32 %v3596_v28, %v11028_v50  ;;  %v11031_v30 = vpop.f32.mrb[159].mxu1 }
 0x9ef   : > { %14734 = vst [vmem:[#allocation101_spill] sm:$0xff] %v11031_v30  ;;  %v3635_v8 = vmax.f32 %v3633_v45, %v11031_v30 }
 0x9f3   : > { %v11034_v53 = vpop.f32.mrb[160].mxu1 }
 0x9f4   : > { %v3599_v37 = vmax.f32 %v3597_v51, %v11034_v53  ;;  %v11037_v52 = vpop.f32.mrb[161].mxu1 }
 0x9f5   : > { %14735 = vst [vmem:[#allocation103_spill] sm:$0xff] %v11037_v52  ;;  %v3636_v21 = vmax.f32 %v3634_v55, %v11037_v52  ;;  %v11040_v0 = vpop.f32.mrb[162].mxu1 }
 0x9f6   : > { %v3600_v29 = vmax.f32 %v3598_v1, %v11040_v0  ;;  %v11043_v7 = vpop.f32.mrb[163].mxu1 }
 0x9f7   : > { %14736 = vst [vmem:[#allocation106_spill] sm:$0xff] %v11043_v7  ;;  %v3637_v4 = vmax.f32 %v3635_v8, %v11043_v7 }
 0x9fb   : > { %v11052_v10 = vpop.f32.mrb[164].mxu1 }
 0x9fc   : > { %v3601_v15 = vmax.f32 %v3599_v37, %v11052_v10  ;;  %v11055_v13 = vpop.f32.mrb[165].mxu1 }
 0x9fd   : > { %14740 = vst [vmem:[#allocation10_spill] sm:$0xff] %v11055_v13  ;;  %v3638_v14 = vmax.f32 %v3636_v21, %v11055_v13  ;;  %v11058_v24 = vpop.f32.mrb[166].mxu1 }
 0x9fe   : > { %v3602_v34 = vmax.f32 %v3600_v29, %v11058_v24  ;;  %v11061_v27 = vpop.f32.mrb[167].mxu1 }
 0x9ff   : > { %14741 = vst [vmem:[#allocation35_spill] sm:$0xff] %v11061_v27  ;;  %v3639_v49 = vmax.f32 %v3637_v4, %v11061_v27 }
 0xa03   : > { %v11064_v23 = vpop.f32.mrb[168].mxu1 }
 0xa04   : > { %v3603_v60 = vmax.f32 %v3601_v15, %v11064_v23  ;;  %v11067_v56 = vpop.f32.mrb[169].mxu1 }
 0xa05   : > { %14742 = vst [vmem:[#allocation26_spill] sm:$0xff] %v11067_v56  ;;  %v3640_v33 = vmax.f32 %v3638_v14, %v11067_v56  ;;  %v11070_v3 = vpop.f32.mrb[170].mxu1 }
 0xa06   : > { %v3604_v42 = vmax.f32 %v3602_v34, %v11070_v3  ;;  %v11073_v2 = vpop.f32.mrb[171].mxu1 }
 0xa07   : > { %14743 = vst [vmem:[#allocation30_spill] sm:$0xff] %v11073_v2  ;;  %v3641_v28 = vmax.f32 %v3639_v49, %v11073_v2 }
 0xa0b   : > { %v11076_v45 = vpop.f32.mrb[172].mxu1 }
 0xa0c   : > { %v3605_v51 = vmax.f32 %v3603_v60, %v11076_v45  ;;  %v11079_v55 = vpop.f32.mrb[173].mxu1 }
 0xa0d   : > { %14744 = vst [vmem:[#allocation37_spill] sm:$0xff] %v11079_v55  ;;  %v3642_v1 = vmax.f32 %v3640_v33, %v11079_v55  ;;  %v11082_v8 = vpop.f32.mrb[174].mxu1 }
 0xa0e   : > { %v3606_v19 = vmax.f32 %v3604_v42, %v11082_v8  ;;  %v11085_v37 = vpop.f32.mrb[175].mxu1 }
 0xa0f   : > { %14745 = vst [vmem:[#allocation41_spill] sm:$0xff] %v11085_v37  ;;  %v3643_v21 = vmax.f32 %v3641_v28, %v11085_v37 }
 0xa13   : > { %v11088_v29 = vpop.f32.mrb[176].mxu1 }
 0xa14   : > { %v3607_v4 = vmax.f32 %v3605_v51, %v11088_v29  ;;  %v11091_v48 = vpop.f32.mrb[177].mxu1 }
 0xa15   : > { %14746 = vst [vmem:[#allocation27_spill] sm:$0xff] %v11091_v48  ;;  %v3644_v15 = vmax.f32 %v3642_v1, %v11091_v48  ;;  %v11094_v14 = vpop.f32.mrb[178].mxu1 }
 0xa16   : > { %v3608_v34 = vmax.f32 %v3606_v19, %v11094_v14  ;;  %v11097_v49 = vpop.f32.mrb[179].mxu1 }
 0xa17   : > { %14747 = vst [vmem:[#allocation53_spill] sm:$0xff] %v11097_v49  ;;  %v3645_v60 = vmax.f32 %v3643_v21, %v11097_v49 }
 0xa1b   : > { %v11100_v33 = vpop.f32.mrb[180].mxu1 }
 0xa1c   : > { %v3609_v42 = vmax.f32 %v3607_v4, %v11100_v33  ;;  %v11103_v28 = vpop.f32.mrb[181].mxu1 }
 0xa1d   : > { %14748 = vst [vmem:[#allocation52_spill] sm:$0xff] %v11103_v28  ;;  %v3646_v51 = vmax.f32 %v3644_v15, %v11103_v28  ;;  %v11106_v35 = vpop.f32.mrb[182].mxu1 }
 0xa1e   : > { %v3610_v1 = vmax.f32 %v3608_v34, %v11106_v35  ;;  %v11109_v63 = vpop.f32.mrb[183].mxu1 }
 0xa1f   : > { %14749 = vst [vmem:[#allocation44_spill] sm:$0xff] %v11109_v63  ;;  %v3647_v19 = vmax.f32 %v3645_v60, %v11109_v63 }
 0xa23   : > { %v11112_v46 = vpop.f32.mrb[184].mxu1 }
 0xa24   : > { %v3611_v21 = vmax.f32 %v3609_v42, %v11112_v46  ;;  %v11115_v62 = vpop.f32.mrb[185].mxu1 }
 0xa25   : > { %14750 = vst [vmem:[#allocation46_spill] sm:$0xff] %v11115_v62  ;;  %v3648_v4 = vmax.f32 %v3646_v51, %v11115_v62  ;;  %v11118_v20 = vpop.f32.mrb[186].mxu1 }
 0xa26   : > { %v3612_v15 = vmax.f32 %v3610_v1, %v11118_v20  ;;  %v11121_v11 = vpop.f32.mrb[187].mxu1 }
 0xa27   : > { %14751 = vst [vmem:[#allocation48_spill] sm:$0xff] %v11121_v11  ;;  %v3649_v34 = vmax.f32 %v3647_v19, %v11121_v11 }
 0xa2b   : > { %v11124_v32 = vpop.f32.mrb[188].mxu1 }
 0xa2c   : > { %v3613_v60 = vmax.f32 %v3611_v21, %v11124_v32  ;;  %v11127_v6 = vpop.f32.mrb[189].mxu1 }
 0xa2d   : > { %14752 = vst [vmem:[#allocation50_spill] sm:$0xff] %v11127_v6  ;;  %v3650_v42 = vmax.f32 %v3648_v4, %v11127_v6  ;;  %v11130_v41 = vpop.f32.mrb[190].mxu1 }
 0xa2e   : > { %v3614_v51 = vmax.f32 %v3612_v15, %v11130_v41  ;;  %v11133_v62 = vpop.f32.mrb[191].mxu1 }
 0xa2f   : > { %14753 = vst [vmem:[#allocation51_spill] sm:$0xff] %v11133_v62  ;;  %v3651_v1 = vmax.f32 %v3649_v34, %v11133_v62 }
 0xa33   : > { %v11136_v63 = vpop.f32.mrb[192].mxu1 }
 0xa34   : > { %v3615_v19 = vmax.f32 %v3613_v60, %v11136_v63  ;;  %v11139_v11 = vpop.f32.mrb[193].mxu1 }
 0xa35   : > { %14754 = vst [vmem:[#allocation54_spill] sm:$0xff] %v11139_v11  ;;  %v3652_v21 = vmax.f32 %v3650_v42, %v11139_v11  ;;  %v11142_v28 = vpop.f32.mrb[194].mxu1 }
 0xa36   : > { %v3616_v4 = vmax.f32 %v3614_v51, %v11142_v28  ;;  %v11145_v6 = vpop.f32.mrb[195].mxu1 }
 0xa37   : > { %14755 = vst [vmem:[#allocation55_spill] sm:$0xff] %v11145_v6  ;;  %v3653_v15 = vmax.f32 %v3651_v1, %v11145_v6 }
 0xa3b   : > { %v11148_v49 = vpop.f32.mrb[196].mxu1 }
 0xa3c   : > { %v3617_v34 = vmax.f32 %v3615_v19, %v11148_v49  ;;  %v11151_v62 = vpop.f32.mrb[197].mxu1 }
 0xa3d   : > { %14756 = vst [vmem:[#allocation56_spill] sm:$0xff] %v11151_v62  ;;  %v3654_v60 = vmax.f32 %v3652_v21, %v11151_v62  ;;  %v11154_v48 = vpop.f32.mrb[198].mxu1 }
 0xa3e   : > { %v3618_v42 = vmax.f32 %v3616_v4, %v11154_v48  ;;  %v11157_v11 = vpop.f32.mrb[199].mxu1 }
 0xa3f   : > { %14757 = vst [vmem:[#allocation57_spill] sm:$0xff] %v11157_v11  ;;  %v3655_v51 = vmax.f32 %v3653_v15, %v11157_v11 }
 0xa40   : > { %v3619_v37 = vmax.f32 %v3617_v34, %v3618_v42 }
 0xa41   : > { %v3656_v55 = vmax.f32 %v3654_v60, %v3655_v51 }
 0xa42   : > { %v3620_v2 = vrot.slane %v3619_v37, 4 }
 0xa43   : > { %v3657_v1 = vrot.slane %v3656_v55, 4 }
 0xa44   : > { %v3621_v6 = vmax.f32 %v3619_v37, %v3620_v2 }
 0xa45   : > { %v3658_v56 = vmax.f32 %v3656_v55, %v3657_v1 }
 0xa46   : > { %v3622_v27 = vrot.slane %v3621_v6, 2 }
 0xa47   : > { %v3659_v19 = vrot.slane %v3658_v56, 2 }
 0xa48   : > { %v3623_v13 = vmax.f32 %v3621_v6, %v3622_v27  ;;  %v14777_v27 = vld [vmem:[#allocation56_spill] sm:$0xff] }
 0xa49   : > { %v3660_v7 = vmax.f32 %v3658_v56, %v3659_v19 }
 0xa4a   : > { %v3624_v52 = vrot.slane %v3623_v13, 1 }
 0xa4b   : > { %v3661_v21 = vrot.slane %v3660_v7, 1 }
 0xa4c   : > { %v11160_v62 = vmax.f32 %v3623_v13, %v3624_v52 }
 0xa4d   : > { %v11162_v30 = vmax.f32 %v3660_v7, %v3661_v21 }
 0xa4e   : > { %v3663_v4 = vsub.f32 %v10962_v36, %v11160_v62  ;;  %v3665_v15 = vsub.f32 %v10966_v9, %v11160_v62  ;;  %v3667_v2 = vsub.f32 %v10970_v38, %v11160_v62  ;;  %v3669_v55 = vsub.f32 %v10978_v61, %v11160_v62 }
 0xa4f   : > { %v3671_v6 = vsub.f32 %v10986_v57, %v11160_v62  ;;  %v3673_v52 = vsub.f32 %v10992_v59, %v11160_v62  ;;  %v3675_v7 = vsub.f32 %v10998_v5, %v11160_v62  ;;  %v3677_v36 = vsub.f32 %v11004_v54, %v11160_v62 }
 0xa50   : > { %v3679_v9 = vsub.f32 %v11010_v12, %v11160_v62  ;;  %v3681_v38 = vsub.f32 %v11016_v47, %v11160_v62  ;;  %v3683_v61 = vsub.f32 %v11022_v58, %v11160_v62  ;;  %v3685_v57 = vsub.f32 %v11028_v50, %v11160_v62 }
 0xa51   : > { %v3687_v59 = vsub.f32 %v11034_v53, %v11160_v62  ;;  %v3689_v5 = vsub.f32 %v11040_v0, %v11160_v62  ;;  %v3691_v54 = vsub.f32 %v11052_v10, %v11160_v62  ;;  %v3693_v12 = vsub.f32 %v11058_v24, %v11160_v62 }
 0xa52   : > { %v3695_v47 = vsub.f32 %v11064_v23, %v11160_v62  ;;  %v3697_v58 = vsub.f32 %v11070_v3, %v11160_v62  ;;  %v3699_v50 = vsub.f32 %v11076_v45, %v11160_v62  ;;  %v3701_v53 = vsub.f32 %v11082_v8, %v11160_v62 }
 0xa53   : > { %v3703_v0 = vsub.f32 %v11088_v29, %v11160_v62  ;;  %v3705_v10 = vsub.f32 %v11094_v14, %v11160_v62  ;;  %v3707_v13 = vsub.f32 %v11100_v33, %v11160_v62  ;;  %v3709_v24 = vsub.f32 %v11106_v35, %v11160_v62 }
 0xa54   : > { %v3727_v29 = vmul.f32 1.442695, %v3663_v4  ;;  %v3731_v14 = vmul.f32 1.442695, %v3665_v15  ;;  %v3735_v33 = vmul.f32 1.442695, %v3667_v2 }
 0xa55   : > { %v3739_v60 = vmul.f32 1.442695, %v3669_v55  ;;  %v3743_v51 = vmul.f32 1.442695, %v3671_v6  ;;  %v3747_v1 = vmul.f32 1.442695, %v3673_v52 }
 0xa56   : > { %7106 = vpow2.f32 %v3727_v29  ;;  %v3751_v19 = vmul.f32 1.442695, %v3675_v7  ;;  %v3755_v21 = vmul.f32 1.442695, %v3677_v36  ;;  %v3759_v35 = vmul.f32 1.442695, %v3679_v9 }
 0xa57   : > { %7108 = vpow2.f32 %v3731_v14  ;;  %v3763_v37 = vmul.f32 1.442695, %v3681_v38  ;;  %v3767_v4 = vmul.f32 1.442695, %v3683_v61  ;;  %v3771_v15 = vmul.f32 1.442695, %v3685_v57 }
 0xa58   : > { %7110 = vpow2.f32 %v3735_v33  ;;  %v3775_v2 = vmul.f32 1.442695, %v3687_v59  ;;  %v3779_v34 = vmul.f32 1.442695, %v3689_v5  ;;  %v3783_v55 = vmul.f32 1.442695, %v3691_v54 }
 0xa59   : > { %7112 = vpow2.f32 %v3739_v60  ;;  %v3787_v8 = vmul.f32 1.442695, %v3693_v12  ;;  %v3791_v42 = vmul.f32 1.442695, %v3695_v47  ;;  %v3795_v29 = vmul.f32 1.442695, %v3697_v58 }
 0xa5a   : > { %7114 = vpow2.f32 %v3743_v51  ;;  %v3799_v6 = vmul.f32 1.442695, %v3699_v50  ;;  %v3803_v52 = vmul.f32 1.442695, %v3701_v53  ;;  %v3807_v14 = vmul.f32 1.442695, %v3703_v0 }
 0xa5b   : > { %7116 = vpow2.f32 %v3747_v1  ;;  %v11232_v7 = vmul.f32 1.442695, %v3705_v10  ;;  %v11234_v36 = vmul.f32 1.442695, %v3707_v13  ;;  %v11236_v9 = vmul.f32 1.442695, %v3709_v24 }
 0xa5c   : > { %7118 = vpow2.f32 %v3751_v19  ;;  %v14758_v0 = vld [vmem:[#allocation101_spill] sm:$0xff]  ;;  %v14760_v33 = vld [vmem:[#allocation106_spill] sm:$0xff]  ;;  %v14767_v12 = vld [vmem:[#allocation27_spill] sm:$0xff] }
 0xa5d   : > { %7120 = vpow2.f32 %v3755_v21  ;;  %v14761_v1 = vld [vmem:[#allocation10_spill] sm:$0xff]  ;;  %v14762_v21 = vld [vmem:[#allocation35_spill] sm:$0xff]  ;;  %v14765_v50 = vld [vmem:[#allocation37_spill] sm:$0xff] }
 0xa5e   : > { %7122 = vpow2.f32 %v3759_v35  ;;  %v14759_v35 = vld [vmem:[#allocation103_spill] sm:$0xff]  ;;  %v14764_v53 = vld [vmem:[#allocation30_spill] sm:$0xff]  ;;  %v14766_v19 = vld [vmem:[#allocation41_spill] sm:$0xff] }
 0xa5f   : > { %7124 = vpow2.f32 %v3763_v37  ;;  %v14768_v54 = vld [vmem:[#allocation53_spill] sm:$0xff]  ;;  %v14769_v60 = vld [vmem:[#allocation52_spill] sm:$0xff] }
 0xa60   : > { %v11246_v5 = vpop.eup %7106  ;;  %7126 = vpow2.f32 %v3767_v4  ;;  %v14770_v57 = vld [vmem:[#allocation44_spill] sm:$0xff]  ;;  %v14771_v4 = vld [vmem:[#allocation46_spill] sm:$0xff] }
 0xa61   : > { %v11254_v58 = vpop.eup %7108  ;;  %7128 = vpow2.f32 %v3771_v15  ;;  %v14763_v15 = vld [vmem:[#allocation26_spill] sm:$0xff]  ;;  %v14772_v38 = vld [vmem:[#allocation48_spill] sm:$0xff] }
 0xa62   : > { %v11262_v13 = vpop.eup %7110  ;;  %7130 = vpow2.f32 %v3775_v2  ;;  %v3855_v24 = vadd.f32 %v11254_v58, %v11246_v5  ;;  %v14776_v2 = vld [vmem:[#allocation55_spill] sm:$0xff] }
 0xa63   : > { %v11270_v51 = vpop.eup %7112  ;;  %7132 = vpow2.f32 %v3779_v34  ;;  %v14774_v34 = vld [vmem:[#allocation51_spill] sm:$0xff] }
 0xa64   : > { %v11278_v10 = vpop.eup %7114  ;;  %7134 = vpow2.f32 %v3783_v55  ;;  %v3856_v37 = vadd.f32 %v11262_v13, %v3855_v24 }
 0xa65   : > { %v11285_v47 = vpop.eup %7116  ;;  %7136 = vpow2.f32 %v3787_v8 }
 0xa66   : > { %v11293_v59 = vpop.eup %7118  ;;  %7138 = vpow2.f32 %v3791_v42  ;;  %v3857_v24 = vadd.f32 %v11270_v51, %v3856_v37 }
 0xa67   : > { %v11300_v61 = vpop.eup %7120  ;;  %7140 = vpow2.f32 %v3795_v29 }
 0xa68   : > { %v11308_v3 = vpop.eup %7122  ;;  %7142 = vpow2.f32 %v3799_v6  ;;  %v3858_v37 = vadd.f32 %v11278_v10, %v3857_v24  ;;  %v14778_v24 = vsub.f32 %v11112_v46, %v11160_v62 }
 0xa69   : > { %v11315_v23 = vpop.eup %7124  ;;  %7144 = vpow2.f32 %v3803_v52  ;;  %v14779_v52 = vsub.f32 %v11118_v20, %v11160_v62 }
 0xa6a   : > { %v11323_v45 = vpop.eup %7126  ;;  %7146 = vpow2.f32 %v3807_v14  ;;  %v3823_v8 = vmul.f32 1.442695, %v14778_v24  ;;  %v3859_v29 = vadd.f32 %v11285_v47, %v3858_v37  ;;  %v14780_v14 = vsub.f32 %v11124_v32, %v11160_v62 }
 0xa6b   : > { %v11329_v56 = vpop.eup %7128  ;;  %7148 = vpow2.f32 %v11232_v7  ;;  %v3827_v42 = vmul.f32 1.442695, %v14779_v52  ;;  %v14781_v7 = vsub.f32 %v11130_v41, %v11160_v62  ;;  %v14785_v41 = vsub.f32 %v11148_v49, %v11160_v62 }
 0xa6c   : > { %v11335_v55 = vpop.eup %7130  ;;  %7150 = vpow2.f32 %v11234_v36  ;;  %v3831_v6 = vmul.f32 1.442695, %v14780_v14  ;;  %v3860_v46 = vadd.f32 %v11293_v59, %v3859_v29  ;;  %v14782_v36 = vsub.f32 %v11136_v63, %v11160_v62 }
 0xa6d   : > { %v11342_v24 = vpop.eup %7132  ;;  %7152 = vpow2.f32 %v11236_v9  ;;  %v3835_v37 = vmul.f32 1.442695, %v14781_v7  ;;  %v14783_v29 = vsub.f32 %v11142_v28, %v11160_v62 }
 0xa6e   : > { %v11348_v20 = vpop.eup %7134  ;;  %7154 = vpow2.f32 %v3823_v8  ;;  %v3839_v52 = vmul.f32 1.442695, %v14782_v36  ;;  %v3861_v32 = vadd.f32 %v11300_v61, %v3860_v46  ;;  %v3847_v8 = vmul.f32 1.442695, %v14785_v41 }
 0xa6f   : > { %v11354_v14 = vpop.eup %7136  ;;  %7156 = vpow2.f32 %v3827_v42  ;;  %v3843_v9 = vmul.f32 1.442695, %v14783_v29  ;;  %v14786_v46 = vsub.f32 %v11154_v48, %v11160_v62  ;;  %v14789_v62 = vsub.f32 %v10974_v26, %v11162_v30 }
 0xa70   : > { %v11359_v11 = vpop.eup %7138  ;;  %7158 = vpow2.f32 %v3831_v6  ;;  %v3862_v7 = vadd.f32 %v11308_v3, %v3861_v32  ;;  %v14787_v6 = vsub.f32 %v10964_v17, %v11162_v30  ;;  %v14788_v32 = vsub.f32 %v10968_v16, %v11162_v30 }
 0xa71   : > { %14784 = vst [vmem:[#allocation59_spill] sm:$0xff] %v11359_v11  ;;  %v11365_v63 = vpop.eup %7140  ;;  %7160 = vpow2.f32 %v3835_v37  ;;  %v3851_v42 = vmul.f32 1.442695, %v14786_v46  ;;  %v3737_v48 = vmul.f32 1.442695, %v14789_v62  ;;  %v14790_v17 = vsub.f32 %v10982_v31, %v11162_v30 }
 0xa72   : > { %v11370_v36 = vpop.eup %7142  ;;  %7162 = vpow2.f32 %v3839_v52  ;;  %v3863_v28 = vadd.f32 %v11315_v23, %v3862_v7  ;;  %v3729_v29 = vmul.f32 1.442695, %v14787_v6  ;;  %v3733_v37 = vmul.f32 1.442695, %v14788_v32 }
 0xa73   : > { %v11376_v49 = vpop.eup %7144  ;;  %7164 = vpow2.f32 %v3843_v9  ;;  %v3741_v7 = vmul.f32 1.442695, %v14790_v17  ;;  %v14791_v9 = vsub.f32 %v10989_v22, %v11162_v30  ;;  %v14792_v16 = vsub.f32 %v10995_v18, %v11162_v30 }
 0xa74   : > { %v11384_v41 = vpop.eup %7146  ;;  %7166 = vpow2.f32 %v3847_v8  ;;  %v3864_v52 = vadd.f32 %v11323_v45, %v3863_v28  ;;  %v14793_v8 = vsub.f32 %v11001_v39, %v11162_v30  ;;  %v14794_v28 = vsub.f32 %v11007_v40, %v11162_v30 }
 0xa75   : > { %v3745_v46 = vmul.f32 1.442695, %v14791_v9  ;;  %v11393_v6 = vpop.eup %7148  ;;  %7168 = vpow2.f32 %v3851_v42  ;;  %v3749_v26 = vmul.f32 1.442695, %v14792_v16  ;;  %v14795_v42 = vsub.f32 %v11013_v25, %v11162_v30 }
 0xa76   : > { %v3753_v32 = vmul.f32 1.442695, %v14793_v8  ;;  %v3757_v31 = vmul.f32 1.442695, %v14794_v28  ;;  %v11404_v62 = vpop.eup %7150  ;;  %v3865_v22 = vadd.f32 %v11329_v56, %v3864_v52  ;;  %7170 = vpow2.f32 %v3729_v29 }
 0xa77   : > { %v3761_v17 = vmul.f32 1.442695, %v14795_v42  ;;  %v14796_v18 = vsub.f32 %v11019_v44, %v11162_v30  ;;  %v11413_v16 = vpop.eup %7152  ;;  %7172 = vpow2.f32 %v3733_v37 }
 0xa78   : > { %v11421_v52 = vpop.eup %7154  ;;  %v3866_v25 = vadd.f32 %v11335_v55, %v3865_v22  ;;  %7174 = vpow2.f32 %v3737_v48 }
 0xa79   : > { %v3765_v9 = vmul.f32 1.442695, %v14796_v18  ;;  %v11428_v8 = vpop.eup %7156  ;;  %7176 = vpow2.f32 %v3741_v7  ;;  %v14797_v7 = vsub.f32 %v11025_v43, %v11162_v30  ;;  %v14798_v18 = vsub.f32 %v14758_v0, %v11162_v30 }
 0xa7a   : > { %v11436_v22 = vpop.eup %7158  ;;  %v3867_v48 = vadd.f32 %v11342_v24, %v3866_v25  ;;  %7178 = vpow2.f32 %v3745_v46 }
 0xa7b   : > { %v11443_v44 = vpop.eup %7160  ;;  %7180 = vpow2.f32 %v3749_v26  ;;  %v3769_v37 = vmul.f32 1.442695, %v14797_v7  ;;  %v3773_v42 = vmul.f32 1.442695, %v14798_v18 }
 0xa7c   : > { %v11451_v25 = vpop.eup %7162  ;;  %v3868_v46 = vadd.f32 %v11348_v20, %v3867_v48  ;;  %7182 = vpow2.f32 %v3753_v32  ;;  %v14799_v32 = vsub.f32 %v14759_v35, %v11162_v30  ;;  %v14804_v35 = vsub.f32 %v14764_v53, %v11162_v30 }
 0xa7d   : > { %v11459_v29 = vpop.eup %7164  ;;  %7184 = vpow2.f32 %v3757_v31  ;;  %v14800_v31 = vsub.f32 %v14760_v33, %v11162_v30  ;;  %v14803_v33 = vsub.f32 %v14763_v15, %v11162_v30  ;;  %v14807_v53 = vsub.f32 %v14767_v12, %v11162_v30 }
 0xa7e   : > { %v11464_v28 = vpop.eup %7166  ;;  %v3869_v40 = vadd.f32 %v11354_v14, %v3868_v46  ;;  %7186 = vpow2.f32 %v3761_v17  ;;  %v3777_v43 = vmul.f32 1.442695, %v14799_v32  ;;  %v14801_v17 = vsub.f32 %v14761_v1, %v11162_v30 }
 0xa7f   : > { %v11472_v7 = vpop.eup %7168  ;;  %7188 = vpow2.f32 %v3765_v9  ;;  %v3781_v0 = vmul.f32 1.442695, %v14800_v31  ;;  %v14802_v9 = vsub.f32 %v14762_v21, %v11162_v30  ;;  %v3793_v31 = vmul.f32 1.442695, %v14803_v33 }
 0xa80   : > { %v7171_v18 = vpop.eup %7170  ;;  %v3870_v26 = vadd.f32 %v11359_v11, %v3869_v40  ;;  %7190 = vpow2.f32 %v3769_v37  ;;  %v3785_v46 = vmul.f32 1.442695, %v14801_v17  ;;  %v14805_v21 = vsub.f32 %v14765_v50, %v11162_v30 }
 0xa81   : > { %v7173_v32 = vpop.eup %7172  ;;  %7192 = vpow2.f32 %v3773_v42  ;;  %v3789_v48 = vmul.f32 1.442695, %v14802_v9  ;;  %v3797_v42 = vmul.f32 1.442695, %v14804_v35  ;;  %v3809_v35 = vmul.f32 1.442695, %v14807_v53 }
 0xa82   : > { %v7175_v39 = vpop.eup %7174  ;;  %v3871_v40 = vadd.f32 %v11365_v63, %v3870_v26  ;;  %7194 = vpow2.f32 %v3777_v43  ;;  %v3892_v37 = vadd.f32 %v7173_v32, %v7171_v18  ;;  %v3930_v1 = vpack.c.bf16 %v7173_v32, %v7171_v18 }
 0xa83   : > { %v7177_v17 = vpop.eup %7176  ;;  %7196 = vpow2.f32 %v3781_v0  ;;  %v3801_v9 = vmul.f32 1.442695, %v14805_v21  ;;  %v14806_v0 = vsub.f32 %v14766_v19, %v11162_v30  ;;  %v14808_v50 = vpack.c.bf16 %v11254_v58, %v11246_v5 }
 0xa84   : > { %v7179_v11 = vpop.eup %7178  ;;  %v3872_v15 = vadd.f32 %v11370_v36, %v3871_v40  ;;  %7198 = vpow2.f32 %v3785_v46  ;;  %v3893_v33 = vadd.f32 %v7175_v39, %v3892_v37  ;;  %3961 = vmatprep.subr.bf16.mxu0 %v3930_v1  ;;  %v3932_v26 = vpack.c.bf16 %v7177_v17, %v7175_v39 }
 0xa85   : > { %v7181_v43 = vpop.eup %7180  ;;  %7200 = vpow2.f32 %v3789_v48  ;;  %v3805_v18 = vmul.f32 1.442695, %v14806_v0  ;;  %3962 = vmatpush1.bf16.msra.mxu0 %v14808_v50  ;;  %v14809_v19 = vsub.f32 %v14768_v54, %v11162_v30  ;;  %v14810_v12 = vsub.f32 %v14769_v60, %v11162_v30  ;;  %v14815_v50 = vld [vmem:[#allocation50_spill] sm:$0xff] }
 0xa86   : > { %v7183_v32 = vpop.eup %7182  ;;  %v3873_v46 = vadd.f32 %v11376_v49, %v3872_v15  ;;  %7202 = vpow2.f32 %v3793_v31  ;;  %v3894_v40 = vadd.f32 %v7177_v17, %v3893_v33  ;;  %3963 = vmatprep.subr.bf16.mxu0 %v3932_v26  ;;  %v3934_v39 = vpack.c.bf16 %v7181_v43, %v7179_v11 }
 0xa87   : > { %v7185_v48 = vpop.eup %7184  ;;  %7204 = vpow2.f32 %v3797_v42  ;;  %v3813_v37 = vmul.f32 1.442695, %v14809_v19  ;;  %v3817_v1 = vmul.f32 1.442695, %v14810_v12  ;;  %v14811_v17 = vsub.f32 %v14770_v57, %v11162_v30 }
 0xa88   : > { %v7187_v21 = vpop.eup %7186  ;;  %v3874_v5 = vadd.f32 %v11384_v41, %v3873_v46  ;;  %7206 = vpow2.f32 %v3801_v9  ;;  %v3895_v58 = vadd.f32 %v7179_v11, %v3894_v40  ;;  %v3936_v15 = vpack.c.bf16 %v7185_v48, %v7183_v32 }
 0xa89   : > { %v7189_v31 = vpop.eup %7188  ;;  %7208 = vpow2.f32 %v3805_v18  ;;  %v3821_v42 = vmul.f32 1.442695, %v14811_v17  ;;  %v14812_v54 = vsub.f32 %v14771_v4, %v11162_v30  ;;  %v14813_v60 = vpack.c.bf16 %v11270_v51, %v11262_v13 }
 0xa8a   : > { %v7191_v26 = vpop.eup %7190  ;;  %v3875_v0 = vadd.f32 %v11393_v6, %v3874_v5  ;;  %7210 = vpow2.f32 %v3809_v35  ;;  %v3896_v11 = vadd.f32 %v7181_v43, %v3895_v58  ;;  %v3938_v9 = vpack.c.bf16 %v7189_v31, %v7187_v21 }
 0xa8b   : > { %v3825_v33 = vmul.f32 1.442695, %v14812_v54  ;;  %3964 = vmatpush1.bf16.msra.mxu0 %v14813_v60  ;;  %v7193_v18 = vpop.eup %7192  ;;  %7212 = vpow2.f32 %v3813_v37  ;;  %v14814_v57 = vsub.f32 %v14772_v38, %v11162_v30  ;;  %v14816_v4 = vsub.f32 %v14815_v50, %v11162_v30  ;;  %v14818_v37 = vld [vmem:[#allocation54_spill] sm:$0xff] }
 0xa8c   : > { %3965 = vmatprep.subr.bf16.mxu0 %v3934_v39  ;;  %v7195_v40 = vpop.eup %7194  ;;  %v3876_v13 = vadd.f32 %v11404_v62, %v3875_v0  ;;  %7214 = vpow2.f32 %v3817_v1  ;;  %v3897_v51 = vadd.f32 %v7183_v32, %v3896_v11  ;;  %v3940_v19 = vpack.c.bf16 %v7193_v18, %v7191_v26 }
 0xa8d   : > { %v3829_v53 = vmul.f32 1.442695, %v14814_v57  ;;  %v3833_v46 = vmul.f32 1.442695, %v14816_v4  ;;  %v7197_v35 = vpop.eup %7196  ;;  %7216 = vpow2.f32 %v3821_v42  ;;  %v14817_v43 = vsub.f32 %v14774_v34, %v11162_v30 }
 0xa8e   : > { %v14819_v38 = vsub.f32 %v14818_v37, %v11162_v30  ;;  %v14820_v5 = vpack.c.bf16 %v11285_v47, %v11278_v10  ;;  %v7199_v58 = vpop.eup %7198  ;;  %v3877_v17 = vadd.f32 %v11413_v16, %v3876_v13  ;;  %7218 = vpow2.f32 %v3825_v33 }
 0xa8f   : > { %v3837_v39 = vmul.f32 1.442695, %v14817_v43  ;;  %v3898_v32 = vadd.f32 %v7185_v48, %v3897_v51  ;;  %v3942_v1 = vpack.c.bf16 %v7197_v35, %v7195_v40  ;;  %v7201_v42 = vpop.eup %7200  ;;  %7220 = vpow2.f32 %v3829_v53  ;;  %v14823_v48 = vld [vmem:[#allocation57_spill] sm:$0xff] }
 0xa90   : > { %v3841_v12 = vmul.f32 1.442695, %v14819_v38  ;;  %3966 = vmatpush1.bf16.msra.mxu0 %v14820_v5  ;;  %v14821_v34 = vsub.f32 %v14776_v2, %v11162_v30  ;;  %v14822_v60 = vsub.f32 %v14777_v27, %v11162_v30  ;;  %v7203_v11 = vpop.eup %7202  ;;  %v3878_v47 = vadd.f32 %v11421_v52, %v3877_v17 }
 0xa91   : > { %3967 = vmatprep.subr.bf16.mxu0 %v3936_v15  ;;  %7222 = vpow2.f32 %v3833_v46  ;;  %v3899_v10 = vadd.f32 %v7187_v21, %v3898_v32  ;;  %v3944_v57 = vpack.c.bf16 %v7201_v42, %v7199_v58  ;;  %v7205_v33 = vpop.eup %7204  ;;  %v14824_v15 = vsub.f32 %v14823_v48, %v11162_v30 }
 0xa92   : > { %v3845_v54 = vmul.f32 1.442695, %v14821_v34  ;;  %v3849_v0 = vmul.f32 1.442695, %v14822_v60  ;;  %7224 = vpow2.f32 %v3837_v39  ;;  %v14825_v2 = vpack.c.bf16 %v11300_v61, %v11293_v59  ;;  %v7207_v50 = vpop.eup %7206 }
 0xa93   : > { %v3853_v53 = vmul.f32 1.442695, %v14824_v15  ;;  %v3879_v27 = vadd.f32 %v11428_v8, %v3878_v47  ;;  %7226 = vpow2.f32 %v3841_v12  ;;  %v3900_v4 = vadd.f32 %v7189_v31, %v3899_v10  ;;  %v7209_v46 = vpop.eup %7208 }
 0xa94   : > { %3968 = vmatpush1.bf16.msra.mxu0 %v14825_v2  ;;  %v3946_v13 = vpack.c.bf16 %v7205_v33, %v7203_v11  ;;  %7228 = vpow2.f32 %v3845_v54  ;;  %v7211_v21 = vpop.eup %7210  ;;  %v3948_v30 = vpack.c.bf16 %v7209_v46, %v7207_v50  ;;  %v14826_v61 = vpack.c.bf16 %v11315_v23, %v11308_v3 }
 0xa95   : > { %3969 = vmatprep.subr.bf16.mxu0 %v3938_v9  ;;  %v3880_v51 = vadd.f32 %v11436_v22, %v3879_v27  ;;  %7230 = vpow2.f32 %v3849_v0  ;;  %v3901_v43 = vadd.f32 %v7191_v26, %v3900_v4  ;;  %v7213_v39 = vpop.eup %7212  ;;  %v14827_v34 = vpack.c.bf16 %v11329_v56, %v11323_v45 }
 0xa96   : > { %7232 = vpow2.f32 %v3853_v53  ;;  %v7215_v59 = vpop.eup %7214  ;;  %v3950_v9 = vpack.c.bf16 %v7213_v39, %v7211_v21  ;;  %v14829_v27 = vpack.c.bf16 %v11354_v14, %v11348_v20  ;;  %v14833_v20 = vpack.c.bf16 %v11393_v6, %v11384_v41 }
 0xa97   : > { %v3881_v37 = vadd.f32 %v11443_v44, %v3880_v51  ;;  %v3902_v31 = vadd.f32 %v7193_v18, %v3901_v43  ;;  %v7217_v38 = vpop.eup %7216  ;;  %v14836_v41 = vpack.c.bf16 %v11443_v44, %v11436_v22  ;;  %v14843_v22 = vmov 0  }
 0xa98   : > { %3970 = vmatpush1.bf16.msra.mxu0 %v14826_v61  ;;  %v7219_v12 = vpop.eup %7218  ;;  %v3952_v32 = vpack.c.bf16 %v7217_v38, %v7215_v59  ;;  %v14840_v61 = vpack.c.bf16 %v11472_v7, %v11464_v28 }
 0xa99   : > { %3971 = vmatprep.subr.bf16.mxu0 %v3940_v19  ;;  %v3882_v5 = vadd.f32 %v11451_v25, %v3881_v37  ;;  %v3903_v17 = vadd.f32 %v7195_v40, %v3902_v31  ;;  %v7221_v26 = vpop.eup %7220  ;;  %v14828_v40 = vpack.c.bf16 %v11342_v24, %v11335_v55  ;;  %v14830_v55 = vld [vmem:[#allocation59_spill] sm:$0xff]  ;;  %v14847_v37 = vld [vmem:[#allocation78_spill] sm:$0xff]  ;;  %v14848_v31 = vld [vmem:[#allocation80_spill] sm:$0xff] }
 0xa9a   : > { %v3954_v60 = vpack.c.bf16 %v7221_v26, %v7219_v12  ;;  %v14831_v24 = vpack.c.bf16 %v11365_v63, %v14830_v55  ;;  %v14834_v63 = vpack.c.bf16 %v11413_v16, %v11404_v62  ;;  %v14837_v62 = vpack.c.bf16 %v11459_v29, %v11451_v25  ;;  %v14844_v25 = vld [vmem:[#allocation70_spill] sm:$0xff] }
 0xa9b   : > { %v7223_v54 = vpop.eup %7222  ;;  %v3883_v23 = vadd.f32 %v11459_v29, %v3882_v5  ;;  %v3904_v3 = vadd.f32 %v7197_v35, %v3903_v17  ;;  %v4036_v5 = vpop.trf.xlu1 }
 0xa9c   : > { %3972 = vmatpush1.bf16.msra.mxu0 %v14827_v34  ;;  %v7225_v18 = vpop.eup %7224 }
 0xa9d   : > { %3973 = vmatprep.subr.bf16.mxu0 %v3942_v1  ;;  %v7227_v19 = vpop.eup %7226  ;;  %v3884_v0 = vadd.f32 %v11464_v28, %v3883_v23  ;;  %v3905_v47 = vadd.f32 %v7199_v58, %v3904_v3  ;;  %v3956_v10 = vpack.c.bf16 %v7225_v18, %v7223_v54  ;;  %v14845_v28 = vld [vmem:[#allocation71_spill] sm:$0xff]  ;;  %v14852_v3 = vld [vmem:[#allocation22_spill] sm:$0xff] }
 0xa9e   : > { %v7229_v48 = vpop.eup %7228 }
 0xa9f   : > { %v7231_v15 = vpop.eup %7230  ;;  %v11570_v56 = vadd.f32 %v11472_v7, %v3884_v0  ;;  %v3906_v45 = vadd.f32 %v7201_v42, %v3905_v47  ;;  %v3958_v35 = vpack.c.bf16 %v7229_v48, %v7227_v19  ;;  %v14832_v42 = vpack.c.bf16 %v11376_v49, %v11370_v36  ;;  %v14846_v7 = vld [vmem:[#allocation73_spill] sm:$0xff]  ;;  %v4037_v17 = vpop.trf.xlu1 }
 0xaa0   : > { %3974 = vmatpush1.bf16.msra.mxu0 %v14828_v40  ;;  %v7233_v1 = vpop.eup %7232  ;;  %v14835_v36 = vpack.c.bf16 %v11428_v8, %v11421_v52  ;;  %v14839_v52 = vld [vmem:[#allocation104_spill] sm:$0xff] }
 0xaa1   : > { %3975 = vmatprep.subr.bf16.mxu0 %v3944_v57  ;;  %v3907_v53 = vadd.f32 %v7203_v11, %v3906_v45  ;;  %v3960_v2 = vpack.c.bf16 %v7233_v1, %v7231_v15  ;;  %v4047_v8 = vrot.slane %v14839_v52, 2  ;;  %v3886_v47 = vrot.slane %v11570_v56, 4 }
 0xaa3   : > { %v3908_v58 = vadd.f32 %v7205_v33, %v3907_v53 }
 0xaa4   : > { %3976 = vmatpush1.bf16.msra.mxu0 %v14829_v27 }
 0xaa5   : > { %3977 = vmatprep.subr.bf16.mxu0 %v3946_v13  ;;  %v3909_v4 = vadd.f32 %v7207_v50, %v3908_v58 }
 0xaa7   : > { %v3910_v51 = vadd.f32 %v7209_v46, %v3909_v4 }
 0xaa8   : > { %3978 = vmatpush1.bf16.msra.mxu0 %v14831_v24 }
 0xaa9   : > { %3979 = vmatprep.subr.bf16.mxu0 %v3948_v30  ;;  %v3911_v43 = vadd.f32 %v7211_v21, %v3910_v51  ;;  %v14838_v30 = vld [vmem:[#allocation102_spill] sm:$0xff] }
 0xaab   : > { %v3912_v11 = vadd.f32 %v7213_v39, %v3911_v43  ;;  %v4046_v39 = vrot.slane %v14838_v30, 2 }
 0xaac   : > { %3980 = vmatpush1.bf16.msra.mxu0 %v14832_v42 }
 0xaad   : > { %3981 = vmatprep.subr.bf16.mxu0 %v3950_v9  ;;  %v3913_v57 = vadd.f32 %v7215_v59, %v3912_v11  ;;  %v14841_v59 = vld [vmem:[#allocation11_spill] sm:$0xff]  ;;  %v4097_v29 = vsel %vm561_vm1, %v4046_v39, 0 }
 0xaae   : > { %v11603_v44 = vpack.c.bf16 %v14841_v59, %v14841_v59  ;;  %v14849_v9 = vld [vmem:[#allocation83_spill] sm:$0xff] }
 0xaaf   : > { %v3914_v14 = vadd.f32 %v7217_v38, %v3913_v57  ;;  %v14850_v38 = vld [vmem:[#allocation85_spill] sm:$0xff] }
 0xab0   : > { %3982 = vmatpush1.bf16.msra.mxu0 %v14833_v20  ;;  %14842 = vst [vmem:[#allocation62_spill] sm:$0xff] %v11603_v44 }
 0xab1   : > { %3983 = vmatprep.subr.bf16.mxu0 %v3952_v32  ;;  %v3915_v33 = vadd.f32 %v7219_v12, %v3914_v14  ;;  %v14851_v12 = vld [vmem:[#allocation86_spill] sm:$0xff]  ;;  %v4038_v32 = vpop.trf.xlu1 }
 0xab3   : > { %v3916_v50 = vadd.f32 %v7221_v26, %v3915_v33 }
 0xab4   : > { %3984 = vmatpush1.bf16.msra.mxu0 %v14834_v63 }
 0xab5   : > { %3985 = vmatprep.subr.bf16.mxu0 %v3954_v60  ;;  %v3917_v13 = vadd.f32 %v7223_v54, %v3916_v50  ;;  %v4039_v26 = vpop.trf.xlu1  ;;  %v14853_v60 = vld [vmem:[#allocation5_spill] sm:$0xff] }
 0xab7   : > { %v3918_v49 = vadd.f32 %v7225_v18, %v3917_v13  ;;  %v472_v18 = vadd.f32 %v14853_v60, %v14852_v3 }
 0xab8   : > { %3986 = vmatpush1.bf16.msra.mxu0 %v14835_v36 }
 0xab9   : > { %3987 = vmatprep.subr.bf16.mxu0 %v3956_v10  ;;  %v3919_v46 = vadd.f32 %v7227_v19, %v3918_v49  ;;  %v4040_v34 = vpop.trf.xlu1  ;;  %v11649_v0 = vpack.c.bf16 %v472_v18, %v472_v18 }
 0xabb   : > { %v3920_v6 = vadd.f32 %v7229_v48, %v3919_v46  ;;  %14854 = vst [vmem:[#allocation64_spill] sm:$0xff] %v11649_v0  ;;  %v3887_v48 = vadd.f32 %v3886_v47, %v11570_v56 }
 0xabc   : > { %3988 = vmatpush1.bf16.msra.mxu0 %v14836_v41 }
 0xabd   : > { %3989 = vmatprep.subr.bf16.mxu0 %v3958_v35  ;;  %v3921_v21 = vadd.f32 %v7231_v15, %v3920_v6  ;;  %v4041_v54 = vpop.trf.xlu1  ;;  %v3888_v15 = vrot.slane %v3887_v48, 2 }
 0xabf   : > { %v3922_v16 = vadd.f32 %v7233_v1, %v3921_v21  ;;  %v3889_v35 = vadd.f32 %v3888_v15, %v3887_v48 }
 0xac0   : > { %3990 = vmatpush1.bf16.msra.mxu0 %v14837_v62 }
 0xac1   : > { %3991 = vmatprep.subr.bf16.mxu0 %v3960_v2  ;;  %v4042_v23 = vpop.trf.xlu1  ;;  %v3923_v10 = vrot.slane %v3922_v16, 4  ;;  %v3890_v53 = vrot.slane %v3889_v35, 1 }
 0xac3   : > { %v3924_v40 = vadd.f32 %v3923_v10, %v3922_v16  ;;  %v3891_v27 = vadd.f32 %v3890_v53, %v3889_v35 }
 0xac4   : > { %3992 = vmatpush1.bf16.msra.mxu0 %v14840_v61 }
 0xac5   : > { %6458 = vmatprep.subr.msk.bf16.mxu0 %vm561_vm1, %v4047_v8  ;;  %v4043_v19 = vpop.trf.xlu1  ;;  %v3925_v45 = vrot.slane %v3924_v40, 2  ;;  %7234 = vrcp.f32 %v3891_v27 }
 0xac7   : > { %3994 = vmatmul.mubr.bf16.vlgmr.msra.gmra.mrb[160].mxu0 %v11603_v44  ;;  %v3926_v1 = vadd.f32 %v3925_v45, %v3924_v40 }
 0xac8   : > { %4103 = vmatpush1.bf16.msra.mxu0 %v4097_v29  ;;  %4134 = vmatprep.mubr.bf16.mxu0 %v14843_v22 }
 0xac9   : > { %v3927_v2 = vrot.slane %v3926_v1, 1 }
 0xacb   : > { %v3928_v58 = vadd.f32 %v3927_v2, %v3926_v1 }
 0xacd   : > { %7236 = vrcp.f32 %v3928_v58 }
 0xacf   : > { %6459 = vmatmul.mubr.msk.bf16.vlgmr.msra.gmra.mrb[164].mxu0 %vm512_vm2, %v14844_v25  ;;  %v7235_v4 = vpop.eup %7234 }
 0xad0   : > { %4144 = vmatprep.mubr.bf16.mxu0 %v14843_v22 }
 0xad7   : > { %6460 = vmatmul.mubr.msk.bf16.gmra.mrb[168].mxu0 %vm512_vm2, %v14845_v28  ;;  %v7237_v24 = vpop.eup %7236 }
 0xad8   : > { %4154 = vmatprep.mubr.bf16.mxu0 %v14843_v22 }
 0xadf   : > { %6461 = vmatmul.mubr.msk.bf16.gmra.mrb[172].mxu0 %vm512_vm2, %v14846_v7 }
 0xae0   : > { %4164 = vmatprep.mubr.bf16.mxu0 %v14843_v22 }
 0xae7   : > { %6462 = vmatmul.mubr.msk.bf16.gmra.mrb[176].mxu0 %vm512_vm2, %v14847_v37 }
 0xae8   : > { %4174 = vmatprep.mubr.bf16.mxu0 %v14843_v22 }
 0xaef   : > { %6463 = vmatmul.mubr.msk.bf16.gmra.mrb[180].mxu0 %vm512_vm2, %v14848_v31 }
 0xaf0   : > { %4184 = vmatprep.mubr.bf16.mxu0 %v14843_v22 }
 0xaf7   : > { %6464 = vmatmul.mubr.msk.bf16.gmra.mrb[184].mxu0 %vm512_vm2, %v14849_v9 }
 0xaf8   : > { %4194 = vmatprep.mubr.bf16.mxu0 %v14843_v22 }
 0xaff   : > { %6465 = vmatmul.mubr.msk.bf16.gmra.mrb[188].mxu0 %vm512_vm2, %v14850_v38 }
 0xb00   : > { %4204 = vmatprep.mubr.bf16.mxu0 %v14843_v22 }
 0xb07   : > { %6466 = vmatmul.mubr.msk.bf16.gmra.mrb[192].mxu0 %vm512_vm2, %v14851_v12 }
 0xb08   : > { %4214 = vmatprep.mubr.bf16.mxu0 %v14843_v22 }
 0xb0f   : > { %6467 = vmatmul.mubr.msk.bf16.gmra.mrb[196].mxu0 %vm512_vm2, %v4036_v5 }
 0xb10   : > { %4224 = vmatprep.mubr.bf16.mxu0 %v14843_v22 }
 0xb17   : > { %6468 = vmatmul.mubr.msk.bf16.gmra.mrb[200].mxu0 %vm512_vm2, %v4037_v17 }
 0xb18   : > { %4234 = vmatprep.mubr.bf16.mxu0 %v14843_v22 }
 0xb1f   : > { %6469 = vmatmul.mubr.msk.bf16.gmra.mrb[204].mxu0 %vm512_vm2, %v4038_v32 }
 0xb20   : > { %4244 = vmatprep.mubr.bf16.mxu0 %v14843_v22 }
 0xb27   : > { %6470 = vmatmul.mubr.msk.bf16.gmra.mrb[208].mxu0 %vm512_vm2, %v4039_v26 }
 0xb28   : > { %4254 = vmatprep.mubr.bf16.mxu0 %v14843_v22 }
 0xb2f   : > { %6471 = vmatmul.mubr.msk.bf16.gmra.mrb[212].mxu0 %vm512_vm2, %v4040_v34 }
 0xb30   : > { %4264 = vmatprep.mubr.bf16.mxu0 %v14843_v22 }
 0xb37   : > { %6472 = vmatmul.mubr.msk.bf16.gmra.mrb[216].mxu0 %vm512_vm2, %v4041_v54 }
 0xb38   : > { %4274 = vmatprep.mubr.bf16.mxu0 %v14843_v22 }
 0xb3f   : > { %6473 = vmatmul.mubr.msk.bf16.gmra.mrb[220].mxu0 %vm512_vm2, %v4042_v23 }
 0xb40   : > { %4284 = vmatprep.mubr.bf16.mxu0 %v14843_v22 }
 0xb47   : > { %6474 = vmatmul.mubr.msk.bf16.gmra.mrb[224].mxu0 %vm512_vm2, %v4043_v19 }
 0xb48   : > { %5407 = vmatprep.mubr.bf16.mxu0 %v11649_v0 }
 0xb9a   : > { %v3995_v55 = vpop.f32.mrb[160].mxu0 }
 0xb9b   : > { %v11655_v51 = vmul.f32 %v7235_v4, %v3995_v55  ;;  %v3997_v43 = vpop.f32.mrb[161].mxu0 }
 0xb9c   : > { %v11657_v42 = vmul.f32 %v7237_v24, %v3997_v43  ;;  %v3999_v56 = vpop.f32.mrb[162].mxu0 }
 0xb9d   : > { %14855 = vst [vmem:[#allocation66_spill] sm:$0xff] %v11655_v51  ;;  %v4000_v11 = vpop.f32.mrb[163].mxu0 }
 0xb9e   : > { %14856 = vst [vmem:[#allocation69_spill] sm:$0xff] %v11657_v42 }
 0xba2   : > { %v11659_v57 = vpop.f32.mrb[164].mxu0 }
 0xba3   : > { %v11661_v20 = vpop.f32.mrb[165].mxu0 }
 0xba4   : > { %v11663_v14 = vpop.f32.mrb[166].mxu0 }
 0xba5   : > { %v11665_v33 = vpop.f32.mrb[167].mxu0 }
 0xbaa   : > { %v11667_v63 = vpop.f32.mrb[168].mxu0 }
 0xbab   : > { %v4295_v50 = vmax.f32 %v11659_v57, %v11667_v63  ;;  %v11671_v13 = vpop.f32.mrb[169].mxu0 }
 0xbac   : > { %v4332_v36 = vmax.f32 %v11661_v20, %v11671_v13  ;;  %v11675_v49 = vpop.f32.mrb[170].mxu0 }
 0xbad   : > { %v4296_v46 = vmax.f32 %v11663_v14, %v11675_v49  ;;  %v11679_v41 = vpop.f32.mrb[171].mxu0 }
 0xbae   : > { %v4333_v6 = vmax.f32 %v11665_v33, %v11679_v41 }
 0xbb2   : > { %v11683_v21 = vpop.f32.mrb[172].mxu0 }
 0xbb3   : > { %v4297_v62 = vmax.f32 %v4295_v50, %v11683_v21  ;;  %v11686_v16 = vpop.f32.mrb[173].mxu0 }
 0xbb4   : > { %v4334_v30 = vmax.f32 %v4332_v36, %v11686_v16  ;;  %v11689_v39 = vpop.f32.mrb[174].mxu0 }
 0xbb5   : > { %v4298_v52 = vmax.f32 %v4296_v46, %v11689_v39  ;;  %v11692_v8 = vpop.f32.mrb[175].mxu0 }
 0xbb6   : > { %v4335_v61 = vmax.f32 %v4333_v6, %v11692_v8 }
 0xbba   : > { %v11695_v59 = vpop.f32.mrb[176].mxu0 }
 0xbbb   : > { %v4299_v29 = vmax.f32 %v4297_v62, %v11695_v59  ;;  %v11698_v25 = vpop.f32.mrb[177].mxu0 }
 0xbbc   : > { %v4336_v28 = vmax.f32 %v4334_v30, %v11698_v25  ;;  %v11701_v7 = vpop.f32.mrb[178].mxu0 }
 0xbbd   : > { %v4300_v37 = vmax.f32 %v4298_v52, %v11701_v7  ;;  %v11704_v31 = vpop.f32.mrb[179].mxu0 }
 0xbbe   : > { %v4337_v9 = vmax.f32 %v4335_v61, %v11704_v31 }
 0xbc2   : > { %v11707_v38 = vpop.f32.mrb[180].mxu0 }
 0xbc3   : > { %v4301_v12 = vmax.f32 %v4299_v29, %v11707_v38  ;;  %v11710_v5 = vpop.f32.mrb[181].mxu0 }
 0xbc4   : > { %v4338_v17 = vmax.f32 %v4336_v28, %v11710_v5  ;;  %v11713_v32 = vpop.f32.mrb[182].mxu0 }
 0xbc5   : > { %v4302_v26 = vmax.f32 %v4300_v37, %v11713_v32  ;;  %v11716_v34 = vpop.f32.mrb[183].mxu0 }
 0xbc6   : > { %v4339_v54 = vmax.f32 %v4337_v9, %v11716_v34 }
 0xbca   : > { %v11719_v23 = vpop.f32.mrb[184].mxu0 }
 0xbcb   : > { %v4303_v3 = vmax.f32 %v4301_v12, %v11719_v23  ;;  %v11722_v60 = vpop.f32.mrb[185].mxu0 }
 0xbcc   : > { %v4340_v18 = vmax.f32 %v4338_v17, %v11722_v60  ;;  %v11725_v19 = vpop.f32.mrb[186].mxu0 }
 0xbcd   : > { %v4304_v47 = vmax.f32 %v4302_v26, %v11725_v19  ;;  %v11728_v10 = vpop.f32.mrb[187].mxu0 }
 0xbce   : > { %14857 = vst [vmem:[#allocation72_spill] sm:$0xff] %v11728_v10  ;;  %v4341_v48 = vmax.f32 %v4339_v54, %v11728_v10 }
 0xbd2   : > { %v11731_v40 = vpop.f32.mrb[188].mxu0 }
 0xbd3   : > { %v4305_v15 = vmax.f32 %v4303_v3, %v11731_v40  ;;  %v11734_v45 = vpop.f32.mrb[189].mxu0 }
 0xbd4   : > { %14858 = vst [vmem:[#allocation12_spill] sm:$0xff] %v11734_v45  ;;  %v4342_v35 = vmax.f32 %v4340_v18, %v11734_v45  ;;  %v11737_v1 = vpop.f32.mrb[190].mxu0 }
 0xbd5   : > { %v4306_v53 = vmax.f32 %v4304_v47, %v11737_v1  ;;  %v11740_v2 = vpop.f32.mrb[191].mxu0 }
 0xbd6   : > { %14859 = vst [vmem:[#allocation6_spill] sm:$0xff] %v11740_v2  ;;  %v4343_v27 = vmax.f32 %v4341_v48, %v11740_v2 }
 0xbda   : > { %v11743_v58 = vpop.f32.mrb[192].mxu0 }
 0xbdb   : > { %v4307_v4 = vmax.f32 %v4305_v15, %v11743_v58  ;;  %v11746_v55 = vpop.f32.mrb[193].mxu0 }
 0xbdc   : > { %14860 = vst [vmem:[#allocation74_spill] sm:$0xff] %v11746_v55  ;;  %v4344_v24 = vmax.f32 %v4342_v35, %v11746_v55  ;;  %v11749_v43 = vpop.f32.mrb[194].mxu0 }
 0xbdd   : > { %v4308_v56 = vmax.f32 %v4306_v53, %v11749_v43  ;;  %v11752_v11 = vpop.f32.mrb[195].mxu0 }
 0xbde   : > { %14861 = vst [vmem:[#allocation31_spill] sm:$0xff] %v11752_v11  ;;  %v4345_v50 = vmax.f32 %v4343_v27, %v11752_v11 }
 0xbe2   : > { %v11755_v36 = vpop.f32.mrb[196].mxu0 }
 0xbe3   : > { %v4309_v46 = vmax.f32 %v4307_v4, %v11755_v36  ;;  %v11758_v6 = vpop.f32.mrb[197].mxu0 }
 0xbe4   : > { %14862 = vst [vmem:[#allocation32_spill] sm:$0xff] %v11758_v6  ;;  %v4346_v62 = vmax.f32 %v4344_v24, %v11758_v6  ;;  %v11761_v30 = vpop.f32.mrb[198].mxu0 }
 0xbe5   : > { %v4310_v52 = vmax.f32 %v4308_v56, %v11761_v30  ;;  %v11764_v61 = vpop.f32.mrb[199].mxu0 }
 0xbe6   : > { %14863 = vst [vmem:[#allocation33_spill] sm:$0xff] %v11764_v61  ;;  %v4347_v29 = vmax.f32 %v4345_v50, %v11764_v61 }
 0xbea   : > { %v11767_v28 = vpop.f32.mrb[200].mxu0 }
 0xbeb   : > { %v4311_v37 = vmax.f32 %v4309_v46, %v11767_v28  ;;  %v11770_v9 = vpop.f32.mrb[201].mxu0 }
 0xbec   : > { %14864 = vst [vmem:[#allocation34_spill] sm:$0xff] %v11770_v9  ;;  %v4348_v12 = vmax.f32 %v4346_v62, %v11770_v9  ;;  %v11773_v17 = vpop.f32.mrb[202].mxu0 }
 0xbed   : > { %v4312_v26 = vmax.f32 %v4310_v52, %v11773_v17  ;;  %v11776_v54 = vpop.f32.mrb[203].mxu0 }
 0xbee   : > { %14865 = vst [vmem:[#allocation36_spill] sm:$0xff] %v11776_v54  ;;  %v4349_v3 = vmax.f32 %v4347_v29, %v11776_v54 }
 0xbf2   : > { %v11779_v18 = vpop.f32.mrb[204].mxu0 }
 0xbf3   : > { %v4313_v47 = vmax.f32 %v4311_v37, %v11779_v18  ;;  %v11782_v48 = vpop.f32.mrb[205].mxu0 }
 0xbf4   : > { %14866 = vst [vmem:[#allocation38_spill] sm:$0xff] %v11782_v48  ;;  %v4350_v15 = vmax.f32 %v4348_v12, %v11782_v48  ;;  %v11785_v35 = vpop.f32.mrb[206].mxu0 }
 0xbf5   : > { %v4314_v53 = vmax.f32 %v4312_v26, %v11785_v35  ;;  %v11788_v27 = vpop.f32.mrb[207].mxu0 }
 0xbf6   : > { %14867 = vst [vmem:[#allocation40_spill] sm:$0xff] %v11788_v27  ;;  %v4351_v4 = vmax.f32 %v4349_v3, %v11788_v27 }
 0xbfa   : > { %v11791_v24 = vpop.f32.mrb[208].mxu0 }
 0xbfb   : > { %v4315_v56 = vmax.f32 %v4313_v47, %v11791_v24  ;;  %v11794_v50 = vpop.f32.mrb[209].mxu0 }
 0xbfc   : > { %14868 = vst [vmem:[#allocation17_spill] sm:$0xff] %v11794_v50  ;;  %v4352_v46 = vmax.f32 %v4350_v15, %v11794_v50  ;;  %v11797_v62 = vpop.f32.mrb[210].mxu0 }
 0xbfd   : > { %v4316_v52 = vmax.f32 %v4314_v53, %v11797_v62  ;;  %v11800_v29 = vpop.f32.mrb[211].mxu0 }
 0xbfe   : > { %14869 = vst [vmem:[#allocation42_spill] sm:$0xff] %v11800_v29  ;;  %v4353_v37 = vmax.f32 %v4351_v4, %v11800_v29 }
 0xc02   : > { %v11803_v12 = vpop.f32.mrb[212].mxu0 }
 0xc03   : > { %v4317_v26 = vmax.f32 %v4315_v56, %v11803_v12  ;;  %v11806_v3 = vpop.f32.mrb[213].mxu0 }
 0xc04   : > { %14870 = vst [vmem:[#allocation24_spill] sm:$0xff] %v11806_v3  ;;  %v4354_v47 = vmax.f32 %v4352_v46, %v11806_v3  ;;  %v11809_v42 = vpop.f32.mrb[214].mxu0 }
 0xc05   : > { %v4318_v15 = vmax.f32 %v4316_v52, %v11809_v42  ;;  %v11812_v51 = vpop.f32.mrb[215].mxu0 }
 0xc06   : > { %14871 = vst [vmem:[#allocation25_spill] sm:$0xff] %v11812_v51  ;;  %v4355_v53 = vmax.f32 %v4353_v37, %v11812_v51 }
 0xc0a   : > { %v11815_v0 = vpop.f32.mrb[216].mxu0 }
 0xc0b   : > { %v4319_v4 = vmax.f32 %v4317_v26, %v11815_v0  ;;  %v11818_v22 = vpop.f32.mrb[217].mxu0 }
 0xc0c   : > { %14872 = vst [vmem:[#allocation90_spill] sm:$0xff] %v11818_v22  ;;  %v4356_v56 = vmax.f32 %v4354_v47, %v11818_v22  ;;  %v11821_v44 = vpop.f32.mrb[218].mxu0 }
 0xc0d   : > { %v4320_v46 = vmax.f32 %v4318_v15, %v11821_v44  ;;  %v11824_v3 = vpop.f32.mrb[219].mxu0 }
 0xc0e   : > { %14873 = vst [vmem:[#allocation91_spill] sm:$0xff] %v11824_v3  ;;  %v4357_v52 = vmax.f32 %v4355_v53, %v11824_v3 }
 0xc12   : > { %v11827_v29 = vpop.f32.mrb[220].mxu0 }
 0xc13   : > { %v4321_v37 = vmax.f32 %v4319_v4, %v11827_v29  ;;  %v11830_v51 = vpop.f32.mrb[221].mxu0 }
 0xc14   : > { %14874 = vst [vmem:[#allocation92_spill] sm:$0xff] %v11830_v51  ;;  %v4358_v26 = vmax.f32 %v4356_v56, %v11830_v51  ;;  %v11833_v50 = vpop.f32.mrb[222].mxu0 }
 0xc15   : > { %v4322_v47 = vmax.f32 %v4320_v46, %v11833_v50  ;;  %v11836_v22 = vpop.f32.mrb[223].mxu0 }
 0xc16   : > { %14875 = vst [vmem:[#allocation93_spill] sm:$0xff] %v11836_v22  ;;  %v4359_v15 = vmax.f32 %v4357_v52, %v11836_v22 }
 0xc1a   : > { %v11839_v27 = vpop.f32.mrb[224].mxu0 }
 0xc1b   : > { %v4323_v53 = vmax.f32 %v4321_v37, %v11839_v27  ;;  %v11842_v3 = vpop.f32.mrb[225].mxu0 }
 0xc1c   : > { %14876 = vst [vmem:[#allocation95_spill] sm:$0xff] %v11842_v3  ;;  %v4360_v4 = vmax.f32 %v4358_v26, %v11842_v3  ;;  %v11845_v48 = vpop.f32.mrb[226].mxu0 }
 0xc1d   : > { %v4324_v56 = vmax.f32 %v4322_v47, %v11845_v48  ;;  %v11848_v51 = vpop.f32.mrb[227].mxu0 }
 0xc1e   : > { %14877 = vst [vmem:[#allocation97_spill] sm:$0xff] %v11848_v51  ;;  %v4361_v46 = vmax.f32 %v4359_v15, %v11848_v51 }
 0xc1f   : > { %v4325_v54 = vmax.f32 %v4323_v53, %v4324_v56 }
 0xc20   : > { %v4362_v9 = vmax.f32 %v4360_v4, %v4361_v46 }
 0xc21   : > { %v4326_v61 = vrot.slane %v4325_v54, 4 }
 0xc22   : > { %v4363_v52 = vrot.slane %v4362_v9, 4 }
 0xc23   : > { %v4327_v22 = vmax.f32 %v4325_v54, %v4326_v61 }
 0xc24   : > { %v4364_v6 = vmax.f32 %v4362_v9, %v4363_v52 }
 0xc25   : > { %v4328_v11 = vrot.slane %v4327_v22, 2 }
 0xc26   : > { %v4365_v37 = vrot.slane %v4364_v6, 2 }
 0xc27   : > { %v4329_v55 = vmax.f32 %v4327_v22, %v4328_v11  ;;  %v14897_v11 = vld [vmem:[#allocation95_spill] sm:$0xff] }
 0xc28   : > { %v4366_v2 = vmax.f32 %v4364_v6, %v4365_v37 }
 0xc29   : > { %v4330_v45 = vrot.slane %v4329_v55, 1 }
 0xc2a   : > { %v4367_v26 = vrot.slane %v4366_v2, 1 }
 0xc2b   : > { %v11851_v3 = vmax.f32 %v4329_v55, %v4330_v45 }
 0xc2c   : > { %v11853_v10 = vmax.f32 %v4366_v2, %v4367_v26 }
 0xc2d   : > { %v4369_v47 = vsub.f32 %v11659_v57, %v11851_v3  ;;  %v4371_v15 = vsub.f32 %v11663_v14, %v11851_v3  ;;  %v4373_v61 = vsub.f32 %v11667_v63, %v11851_v3  ;;  %v4375_v9 = vsub.f32 %v11675_v49, %v11851_v3 }
 0xc2e   : > { %v4377_v22 = vsub.f32 %v11683_v21, %v11851_v3  ;;  %v4379_v45 = vsub.f32 %v11689_v39, %v11851_v3  ;;  %v4381_v2 = vsub.f32 %v11695_v59, %v11851_v3  ;;  %v4383_v57 = vsub.f32 %v11701_v7, %v11851_v3 }
 0xc2f   : > { %v4385_v14 = vsub.f32 %v11707_v38, %v11851_v3  ;;  %v4387_v63 = vsub.f32 %v11713_v32, %v11851_v3  ;;  %v4389_v49 = vsub.f32 %v11719_v23, %v11851_v3  ;;  %v4391_v21 = vsub.f32 %v11725_v19, %v11851_v3 }
 0xc30   : > { %v4393_v39 = vsub.f32 %v11731_v40, %v11851_v3  ;;  %v4395_v59 = vsub.f32 %v11737_v1, %v11851_v3  ;;  %v4397_v7 = vsub.f32 %v11743_v58, %v11851_v3  ;;  %v4399_v38 = vsub.f32 %v11749_v43, %v11851_v3 }
 0xc31   : > { %v4401_v32 = vsub.f32 %v11755_v36, %v11851_v3  ;;  %v4403_v23 = vsub.f32 %v11761_v30, %v11851_v3  ;;  %v4405_v19 = vsub.f32 %v11767_v28, %v11851_v3  ;;  %v4407_v40 = vsub.f32 %v11773_v17, %v11851_v3 }
 0xc32   : > { %v4409_v1 = vsub.f32 %v11779_v18, %v11851_v3  ;;  %v4411_v58 = vsub.f32 %v11785_v35, %v11851_v3  ;;  %v4413_v55 = vsub.f32 %v11791_v24, %v11851_v3  ;;  %v4415_v43 = vsub.f32 %v11797_v62, %v11851_v3 }
 0xc33   : > { %v4433_v35 = vmul.f32 1.442695, %v4369_v47  ;;  %v4437_v24 = vmul.f32 1.442695, %v4371_v15  ;;  %v4441_v62 = vmul.f32 1.442695, %v4373_v61 }
 0xc34   : > { %v4445_v4 = vmul.f32 1.442695, %v4375_v9  ;;  %v4449_v46 = vmul.f32 1.442695, %v4377_v22  ;;  %v4453_v52 = vmul.f32 1.442695, %v4379_v45 }
 0xc35   : > { %7238 = vpow2.f32 %v4433_v35  ;;  %v4457_v37 = vmul.f32 1.442695, %v4381_v2  ;;  %v4461_v26 = vmul.f32 1.442695, %v4383_v57  ;;  %v4465_v54 = vmul.f32 1.442695, %v4385_v14 }
 0xc36   : > { %7240 = vpow2.f32 %v4437_v24  ;;  %v4469_v18 = vmul.f32 1.442695, %v4387_v63  ;;  %v4473_v47 = vmul.f32 1.442695, %v4389_v49  ;;  %v4477_v15 = vmul.f32 1.442695, %v4391_v21 }
 0xc37   : > { %7242 = vpow2.f32 %v4441_v62  ;;  %v4481_v61 = vmul.f32 1.442695, %v4393_v39  ;;  %v4485_v53 = vmul.f32 1.442695, %v4395_v59  ;;  %v4489_v9 = vmul.f32 1.442695, %v4397_v7 }
 0xc38   : > { %7244 = vpow2.f32 %v4445_v4  ;;  %v4493_v17 = vmul.f32 1.442695, %v4399_v38  ;;  %v4497_v56 = vmul.f32 1.442695, %v4401_v32  ;;  %v4501_v35 = vmul.f32 1.442695, %v4403_v23 }
 0xc39   : > { %7246 = vpow2.f32 %v4449_v46  ;;  %v4505_v22 = vmul.f32 1.442695, %v4405_v19  ;;  %v4509_v45 = vmul.f32 1.442695, %v4407_v40  ;;  %v4513_v24 = vmul.f32 1.442695, %v4409_v1 }
 0xc3a   : > { %7248 = vpow2.f32 %v4453_v52  ;;  %v11923_v2 = vmul.f32 1.442695, %v4411_v58  ;;  %v11925_v57 = vmul.f32 1.442695, %v4413_v55  ;;  %v11927_v14 = vmul.f32 1.442695, %v4415_v43 }
 0xc3b   : > { %7250 = vpow2.f32 %v4457_v37  ;;  %v14878_v1 = vld [vmem:[#allocation72_spill] sm:$0xff]  ;;  %v14880_v62 = vld [vmem:[#allocation6_spill] sm:$0xff]  ;;  %v14884_v40 = vld [vmem:[#allocation33_spill] sm:$0xff] }
 0xc3c   : > { %7252 = vpow2.f32 %v4461_v26  ;;  %v14881_v52 = vld [vmem:[#allocation74_spill] sm:$0xff]  ;;  %v14882_v26 = vld [vmem:[#allocation31_spill] sm:$0xff]  ;;  %v14886_v37 = vld [vmem:[#allocation36_spill] sm:$0xff] }
 0xc3d   : > { %7254 = vpow2.f32 %v4465_v54  ;;  %v14879_v54 = vld [vmem:[#allocation12_spill] sm:$0xff]  ;;  %v14885_v19 = vld [vmem:[#allocation34_spill] sm:$0xff]  ;;  %v14889_v4 = vld [vmem:[#allocation17_spill] sm:$0xff] }
 0xc3e   : > { %7256 = vpow2.f32 %v4469_v18  ;;  %v14887_v38 = vld [vmem:[#allocation38_spill] sm:$0xff]  ;;  %v14888_v7 = vld [vmem:[#allocation40_spill] sm:$0xff]  ;;  %v14892_v63 = vld [vmem:[#allocation25_spill] sm:$0xff] }
 0xc3f   : > { %v11937_v59 = vpop.eup %7238  ;;  %7258 = vpow2.f32 %v4473_v47  ;;  %v14890_v21 = vld [vmem:[#allocation42_spill] sm:$0xff]  ;;  %v14891_v47 = vld [vmem:[#allocation24_spill] sm:$0xff] }
 0xc40   : > { %v11945_v23 = vpop.eup %7240  ;;  %7260 = vpow2.f32 %v4477_v15  ;;  %v14883_v15 = vld [vmem:[#allocation32_spill] sm:$0xff] }
 0xc41   : > { %v11953_v55 = vpop.eup %7242  ;;  %7262 = vpow2.f32 %v4481_v61  ;;  %v4561_v43 = vadd.f32 %v11945_v23, %v11937_v59  ;;  %v14896_v61 = vld [vmem:[#allocation93_spill] sm:$0xff] }
 0xc42   : > { %v11961_v46 = vpop.eup %7244  ;;  %7264 = vpow2.f32 %v4485_v53  ;;  %v14894_v53 = vld [vmem:[#allocation91_spill] sm:$0xff] }
 0xc43   : > { %v11969_v58 = vpop.eup %7246  ;;  %7266 = vpow2.f32 %v4489_v9  ;;  %v4562_v18 = vadd.f32 %v11953_v55, %v4561_v43 }
 0xc44   : > { %v11976_v32 = vpop.eup %7248  ;;  %7268 = vpow2.f32 %v4493_v17 }
 0xc45   : > { %v11984_v39 = vpop.eup %7250  ;;  %7270 = vpow2.f32 %v4497_v56  ;;  %v4563_v43 = vadd.f32 %v11961_v46, %v4562_v18 }
 0xc46   : > { %v11991_v49 = vpop.eup %7252  ;;  %7272 = vpow2.f32 %v4501_v35 }
 0xc47   : > { %v11999_v30 = vpop.eup %7254  ;;  %7274 = vpow2.f32 %v4505_v22  ;;  %v4564_v18 = vadd.f32 %v11969_v58, %v4563_v43  ;;  %v14898_v43 = vsub.f32 %v11803_v12, %v11851_v3 }
 0xc48   : > { %v12006_v36 = vpop.eup %7256  ;;  %7276 = vpow2.f32 %v4509_v45  ;;  %v14899_v45 = vsub.f32 %v11809_v42, %v11851_v3 }
 0xc49   : > { %v12014_v28 = vpop.eup %7258  ;;  %7278 = vpow2.f32 %v4513_v24  ;;  %v4529_v17 = vmul.f32 1.442695, %v14898_v43  ;;  %v4565_v35 = vadd.f32 %v11976_v32, %v4564_v18  ;;  %v14900_v24 = vsub.f32 %v11815_v0, %v11851_v3 }
 0xc4a   : > { %v12020_v6 = vpop.eup %7260  ;;  %7280 = vpow2.f32 %v11923_v2  ;;  %v4533_v56 = vmul.f32 1.442695, %v14899_v45  ;;  %v14901_v2 = vsub.f32 %v11821_v44, %v11851_v3  ;;  %v14905_v44 = vsub.f32 %v11839_v27, %v11851_v3 }
 0xc4b   : > { %v12026_v9 = vpop.eup %7262  ;;  %7282 = vpow2.f32 %v11925_v57  ;;  %v4537_v22 = vmul.f32 1.442695, %v14900_v24  ;;  %v4566_v12 = vadd.f32 %v11984_v39, %v4565_v35  ;;  %v14902_v57 = vsub.f32 %v11827_v29, %v11851_v3 }
 0xc4c   : > { %v12033_v43 = vpop.eup %7264  ;;  %7284 = vpow2.f32 %v11927_v14  ;;  %v4541_v18 = vmul.f32 1.442695, %v14901_v2  ;;  %v14903_v35 = vsub.f32 %v11833_v50, %v11851_v3 }
 0xc4d   : > { %v12039_v42 = vpop.eup %7266  ;;  %7286 = vpow2.f32 %v4529_v17  ;;  %v4545_v45 = vmul.f32 1.442695, %v14902_v57  ;;  %v4567_v0 = vadd.f32 %v11991_v49, %v4566_v12  ;;  %v4553_v17 = vmul.f32 1.442695, %v14905_v44 }
 0xc4e   : > { %v12045_v24 = vpop.eup %7268  ;;  %7288 = vpow2.f32 %v4533_v56  ;;  %v4549_v14 = vmul.f32 1.442695, %v14903_v35  ;;  %v14906_v12 = vsub.f32 %v11845_v48, %v11851_v3  ;;  %v14909_v48 = vsub.f32 %v11671_v13, %v11853_v10 }
 0xc4f   : > { %v12050_v51 = vpop.eup %7270  ;;  %7290 = vpow2.f32 %v4537_v22  ;;  %v4568_v2 = vadd.f32 %v11999_v30, %v4567_v0  ;;  %v14907_v22 = vsub.f32 %v11661_v20, %v11853_v10  ;;  %v14908_v0 = vsub.f32 %v11665_v33, %v11853_v10 }
 0xc50   : > { %14904 = vst [vmem:[#allocation98_spill] sm:$0xff] %v12050_v51  ;;  %v12056_v29 = vpop.eup %7272  ;;  %7292 = vpow2.f32 %v4541_v18  ;;  %v4557_v56 = vmul.f32 1.442695, %v14906_v12  ;;  %v4443_v3 = vmul.f32 1.442695, %v14909_v48  ;;  %v14910_v20 = vsub.f32 %v11679_v41, %v11853_v10 }
 0xc51   : > { %v12061_v57 = vpop.eup %7274  ;;  %7294 = vpow2.f32 %v4545_v45  ;;  %v4569_v50 = vadd.f32 %v12006_v36, %v4568_v2  ;;  %v4435_v35 = vmul.f32 1.442695, %v14907_v22  ;;  %v4439_v18 = vmul.f32 1.442695, %v14908_v0 }
 0xc52   : > { %v12067_v27 = vpop.eup %7276  ;;  %7296 = vpow2.f32 %v4549_v14  ;;  %v4447_v2 = vmul.f32 1.442695, %v14910_v20  ;;  %v14911_v14 = vsub.f32 %v11686_v16, %v11853_v10  ;;  %v14912_v33 = vsub.f32 %v11692_v8, %v11853_v10 }
 0xc53   : > { %v12075_v44 = vpop.eup %7278  ;;  %7298 = vpow2.f32 %v4553_v17  ;;  %v4570_v45 = vadd.f32 %v12014_v28, %v4569_v50  ;;  %v14913_v17 = vsub.f32 %v11698_v25, %v11853_v10  ;;  %v14914_v50 = vsub.f32 %v11704_v31, %v11853_v10 }
 0xc54   : > { %v4451_v12 = vmul.f32 1.442695, %v14911_v14  ;;  %v12084_v22 = vpop.eup %7280  ;;  %7300 = vpow2.f32 %v4557_v56  ;;  %v4455_v13 = vmul.f32 1.442695, %v14912_v33  ;;  %v14915_v56 = vsub.f32 %v11710_v5, %v11853_v10 }
 0xc55   : > { %v4459_v0 = vmul.f32 1.442695, %v14913_v17  ;;  %v4463_v41 = vmul.f32 1.442695, %v14914_v50  ;;  %v12095_v48 = vpop.eup %7282  ;;  %v4571_v16 = vadd.f32 %v12020_v6, %v4570_v45  ;;  %7302 = vpow2.f32 %v4435_v35 }
 0xc56   : > { %v4467_v20 = vmul.f32 1.442695, %v14915_v56  ;;  %v14916_v8 = vsub.f32 %v11716_v34, %v11853_v10  ;;  %v12104_v33 = vpop.eup %7284  ;;  %7304 = vpow2.f32 %v4439_v18 }
 0xc57   : > { %v12112_v45 = vpop.eup %7286  ;;  %v4572_v5 = vadd.f32 %v12026_v9, %v4571_v16  ;;  %7306 = vpow2.f32 %v4443_v3 }
 0xc58   : > { %v4471_v14 = vmul.f32 1.442695, %v14916_v8  ;;  %v12119_v17 = vpop.eup %7288  ;;  %7308 = vpow2.f32 %v4447_v2  ;;  %v14917_v2 = vsub.f32 %v11722_v60, %v11853_v10  ;;  %v14918_v8 = vsub.f32 %v14878_v1, %v11853_v10 }
 0xc59   : > { %v12127_v16 = vpop.eup %7290  ;;  %v4573_v3 = vadd.f32 %v12033_v43, %v4572_v5  ;;  %7310 = vpow2.f32 %v4451_v12 }
 0xc5a   : > { %v12134_v34 = vpop.eup %7292  ;;  %7312 = vpow2.f32 %v4455_v13  ;;  %v4475_v18 = vmul.f32 1.442695, %v14917_v2  ;;  %v4479_v56 = vmul.f32 1.442695, %v14918_v8 }
 0xc5b   : > { %v12142_v5 = vpop.eup %7294  ;;  %v4574_v12 = vadd.f32 %v12039_v42, %v4573_v3  ;;  %7314 = vpow2.f32 %v4459_v0  ;;  %v14919_v0 = vsub.f32 %v14879_v54, %v11853_v10  ;;  %v14924_v54 = vsub.f32 %v14884_v40, %v11853_v10 }
 0xc5c   : > { %v12150_v35 = vpop.eup %7296  ;;  %7316 = vpow2.f32 %v4463_v41  ;;  %v14920_v41 = vsub.f32 %v14880_v62, %v11853_v10  ;;  %v14923_v62 = vsub.f32 %v14883_v15, %v11853_v10  ;;  %v14927_v40 = vsub.f32 %v14887_v38, %v11853_v10 }
 0xc5d   : > { %v12155_v50 = vpop.eup %7298  ;;  %v4575_v31 = vadd.f32 %v12045_v24, %v4574_v12  ;;  %7318 = vpow2.f32 %v4467_v20  ;;  %v4483_v60 = vmul.f32 1.442695, %v14919_v0  ;;  %v14921_v20 = vsub.f32 %v14881_v52, %v11853_v10 }
 0xc5e   : > { %v12163_v2 = vpop.eup %7300  ;;  %7320 = vpow2.f32 %v4471_v14  ;;  %v4487_v1 = vmul.f32 1.442695, %v14920_v41  ;;  %v14922_v14 = vsub.f32 %v14882_v26, %v11853_v10  ;;  %v4499_v41 = vmul.f32 1.442695, %v14923_v62 }
 0xc5f   : > { %v7303_v8 = vpop.eup %7302  ;;  %v4576_v13 = vadd.f32 %v12050_v51, %v4575_v31  ;;  %7322 = vpow2.f32 %v4475_v18  ;;  %v4491_v12 = vmul.f32 1.442695, %v14921_v20  ;;  %v14925_v26 = vsub.f32 %v14885_v19, %v11853_v10 }
 0xc60   : > { %v7305_v0 = vpop.eup %7304  ;;  %7324 = vpow2.f32 %v4479_v56  ;;  %v4495_v3 = vmul.f32 1.442695, %v14922_v14  ;;  %v4503_v56 = vmul.f32 1.442695, %v14924_v54  ;;  %v4515_v54 = vmul.f32 1.442695, %v14927_v40 }
 0xc61   : > { %v7307_v25 = vpop.eup %7306  ;;  %v4577_v31 = vadd.f32 %v12056_v29, %v4576_v13  ;;  %7326 = vpow2.f32 %v4483_v60  ;;  %v4598_v18 = vadd.f32 %v7305_v0, %v7303_v8  ;;  %v4636_v52 = vpack.c.bf16 %v7305_v0, %v7303_v8 }
 0xc62   : > { %v7309_v20 = vpop.eup %7308  ;;  %7328 = vpow2.f32 %v4487_v1  ;;  %v4507_v14 = vmul.f32 1.442695, %v14925_v26  ;;  %v14926_v1 = vsub.f32 %v14886_v37, %v11853_v10  ;;  %v14928_v19 = vpack.c.bf16 %v11945_v23, %v11937_v59 }
 0xc63   : > { %v7311_v51 = vpop.eup %7310  ;;  %v4578_v15 = vadd.f32 %v12061_v57, %v4577_v31  ;;  %7330 = vpow2.f32 %v4491_v12  ;;  %v4599_v62 = vadd.f32 %v7307_v25, %v4598_v18  ;;  %4673 = vmatprep.subr.bf16.mxu1 %v4636_v52  ;;  %v4638_v13 = vpack.c.bf16 %v7309_v20, %v7307_v25 }
 0xc64   : > { %v7313_v60 = vpop.eup %7312  ;;  %7332 = vpow2.f32 %v4495_v3  ;;  %v4511_v8 = vmul.f32 1.442695, %v14926_v1  ;;  %4674 = vmatpush1.bf16.msra.mxu1 %v14928_v19  ;;  %v14929_v37 = vsub.f32 %v14888_v7, %v11853_v10  ;;  %v14930_v38 = vsub.f32 %v14889_v4, %v11853_v10  ;;  %v14935_v19 = vld [vmem:[#allocation90_spill] sm:$0xff] }
 0xc65   : > { %v7315_v0 = vpop.eup %7314  ;;  %v4579_v12 = vadd.f32 %v12067_v27, %v4578_v15  ;;  %7334 = vpow2.f32 %v4499_v41  ;;  %v4600_v31 = vadd.f32 %v7309_v20, %v4599_v62  ;;  %4675 = vmatprep.subr.bf16.mxu1 %v4638_v13  ;;  %v4640_v25 = vpack.c.bf16 %v7313_v60, %v7311_v51 }
 0xc66   : > { %v7317_v3 = vpop.eup %7316  ;;  %7336 = vpow2.f32 %v4503_v56  ;;  %v4519_v18 = vmul.f32 1.442695, %v14929_v37  ;;  %v4523_v52 = vmul.f32 1.442695, %v14930_v38  ;;  %v14931_v20 = vsub.f32 %v14890_v21, %v11853_v10 }
 0xc67   : > { %v7319_v26 = vpop.eup %7318  ;;  %v4580_v59 = vadd.f32 %v12075_v44, %v4579_v12  ;;  %7338 = vpow2.f32 %v4507_v14  ;;  %v4601_v23 = vadd.f32 %v7311_v51, %v4600_v31  ;;  %v4642_v15 = vpack.c.bf16 %v7317_v3, %v7315_v0 }
 0xc68   : > { %v7321_v41 = vpop.eup %7320  ;;  %7340 = vpow2.f32 %v4511_v8  ;;  %v4527_v56 = vmul.f32 1.442695, %v14931_v20  ;;  %v14932_v7 = vsub.f32 %v14891_v47, %v11853_v10  ;;  %v14933_v4 = vpack.c.bf16 %v11961_v46, %v11953_v55 }
 0xc69   : > { %v7323_v13 = vpop.eup %7322  ;;  %v4581_v1 = vadd.f32 %v12084_v22, %v4580_v59  ;;  %7342 = vpow2.f32 %v4515_v54  ;;  %v4602_v51 = vadd.f32 %v7313_v60, %v4601_v23  ;;  %v4644_v14 = vpack.c.bf16 %v7321_v41, %v7319_v26 }
 0xc6a   : > { %v4531_v62 = vmul.f32 1.442695, %v14932_v7  ;;  %4676 = vmatpush1.bf16.msra.mxu1 %v14933_v4  ;;  %v7325_v8 = vpop.eup %7324  ;;  %7344 = vpow2.f32 %v4519_v18  ;;  %v14934_v21 = vsub.f32 %v14892_v63, %v11853_v10  ;;  %v14936_v47 = vsub.f32 %v14935_v19, %v11853_v10  ;;  %v14938_v18 = vld [vmem:[#allocation92_spill] sm:$0xff] }
 0xc6b   : > { %4677 = vmatprep.subr.bf16.mxu1 %v4640_v25  ;;  %v7327_v31 = vpop.eup %7326  ;;  %v4582_v55 = vadd.f32 %v12095_v48, %v4581_v1  ;;  %7346 = vpow2.f32 %v4523_v52  ;;  %v4603_v46 = vadd.f32 %v7315_v0, %v4602_v51  ;;  %v4646_v37 = vpack.c.bf16 %v7325_v8, %v7323_v13 }
 0xc6c   : > { %v4535_v40 = vmul.f32 1.442695, %v14934_v21  ;;  %v4539_v12 = vmul.f32 1.442695, %v14936_v47  ;;  %v7329_v54 = vpop.eup %7328  ;;  %7348 = vpow2.f32 %v4527_v56  ;;  %v14937_v60 = vsub.f32 %v14894_v53, %v11853_v10 }
 0xc6d   : > { %v14939_v63 = vsub.f32 %v14938_v18, %v11853_v10  ;;  %v14940_v59 = vpack.c.bf16 %v11976_v32, %v11969_v58  ;;  %v7331_v23 = vpop.eup %7330  ;;  %v4583_v20 = vadd.f32 %v12104_v33, %v4582_v55  ;;  %7350 = vpow2.f32 %v4531_v62 }
 0xc6e   : > { %v4543_v25 = vmul.f32 1.442695, %v14937_v60  ;;  %v4604_v0 = vadd.f32 %v7317_v3, %v4603_v46  ;;  %v4648_v52 = vpack.c.bf16 %v7329_v54, %v7327_v31  ;;  %v7333_v56 = vpop.eup %7332  ;;  %7352 = vpow2.f32 %v4535_v40  ;;  %v14943_v3 = vld [vmem:[#allocation97_spill] sm:$0xff] }
 0xc6f   : > { %v4547_v38 = vmul.f32 1.442695, %v14939_v63  ;;  %4678 = vmatpush1.bf16.msra.mxu1 %v14940_v59  ;;  %v14941_v53 = vsub.f32 %v14896_v61, %v11853_v10  ;;  %v14942_v4 = vsub.f32 %v14897_v11, %v11853_v10  ;;  %v7335_v51 = vpop.eup %7334  ;;  %v4584_v32 = vadd.f32 %v12112_v45, %v4583_v20 }
 0xc70   : > { %4679 = vmatprep.subr.bf16.mxu1 %v4642_v15  ;;  %7354 = vpow2.f32 %v4539_v12  ;;  %v4605_v58 = vadd.f32 %v7319_v26, %v4604_v0  ;;  %v4650_v21 = vpack.c.bf16 %v7333_v56, %v7331_v23  ;;  %v7337_v62 = vpop.eup %7336  ;;  %v14944_v15 = vsub.f32 %v14943_v3, %v11853_v10 }
 0xc71   : > { %v4551_v7 = vmul.f32 1.442695, %v14941_v53  ;;  %v4555_v1 = vmul.f32 1.442695, %v14942_v4  ;;  %7356 = vpow2.f32 %v4543_v25  ;;  %v14945_v61 = vpack.c.bf16 %v11991_v49, %v11984_v39  ;;  %v7339_v19 = vpop.eup %7338 }
 0xc72   : > { %v4559_v40 = vmul.f32 1.442695, %v14944_v15  ;;  %v4585_v11 = vadd.f32 %v12119_v17, %v4584_v32  ;;  %7358 = vpow2.f32 %v4547_v38  ;;  %v4606_v47 = vadd.f32 %v7321_v41, %v4605_v58  ;;  %v7341_v12 = vpop.eup %7340 }
 0xc73   : > { %4680 = vmatpush1.bf16.msra.mxu1 %v14945_v61  ;;  %v4652_v55 = vpack.c.bf16 %v7337_v62, %v7335_v51  ;;  %7360 = vpow2.f32 %v4551_v7  ;;  %v7343_v26 = vpop.eup %7342  ;;  %v4654_v10 = vpack.c.bf16 %v7341_v12, %v7339_v19  ;;  %v14946_v49 = vpack.c.bf16 %v12006_v36, %v11999_v30 }
 0xc74   : > { %4681 = vmatprep.subr.bf16.mxu1 %v4644_v14  ;;  %v4586_v46 = vadd.f32 %v12127_v16, %v4585_v11  ;;  %7362 = vpow2.f32 %v4555_v1  ;;  %v4607_v60 = vadd.f32 %v7323_v13, %v4606_v47  ;;  %v7345_v25 = vpop.eup %7344  ;;  %v14947_v53 = vpack.c.bf16 %v12020_v6, %v12014_v28 }
 0xc75   : > { %7364 = vpow2.f32 %v4559_v40  ;;  %v7347_v39 = vpop.eup %7346  ;;  %v4656_v14 = vpack.c.bf16 %v7345_v25, %v7343_v26  ;;  %v14949_v11 = vpack.c.bf16 %v12045_v24, %v12039_v42  ;;  %v14953_v42 = vpack.c.bf16 %v12084_v22, %v12075_v44 }
 0xc76   : > { %v4587_v18 = vadd.f32 %v12134_v34, %v4586_v46  ;;  %v4608_v41 = vadd.f32 %v7325_v8, %v4607_v60  ;;  %v7349_v63 = vpop.eup %7348  ;;  %v14956_v44 = vpack.c.bf16 %v12134_v34, %v12127_v16  ;;  %v14962_v34 = vpack.c.bf16 %v12163_v2, %v12155_v50  ;;  %v14963_v16 = vld [vmem:[#allocation62_spill] sm:$0xff] }
 0xc77   : > { %4682 = vmatpush1.bf16.msra.mxu1 %v14946_v49  ;;  %v7351_v38 = vpop.eup %7350  ;;  %v4658_v0 = vpack.c.bf16 %v7349_v63, %v7347_v39 }
 0xc78   : > { %4683 = vmatprep.subr.bf16.mxu1 %v4646_v37  ;;  %v4588_v59 = vadd.f32 %v12142_v5, %v4587_v18  ;;  %v4609_v20 = vadd.f32 %v7327_v31, %v4608_v41  ;;  %v7353_v13 = vpop.eup %7352  ;;  %v14948_v31 = vpack.c.bf16 %v12033_v43, %v12026_v9  ;;  %v14950_v9 = vld [vmem:[#allocation98_spill] sm:$0xff]  ;;  %v4669_v41 = vrot.slane %v14963_v16, 2 }
 0xc79   : > { %v4660_v4 = vpack.c.bf16 %v7353_v13, %v7351_v38  ;;  %v14951_v43 = vpack.c.bf16 %v12056_v29, %v14950_v9  ;;  %v14954_v29 = vpack.c.bf16 %v12104_v33, %v12095_v48  ;;  %v14958_v33 = vld [vmem:[#allocation8_spill] sm:$0xff] }
 0xc7a   : > { %v7355_v7 = vpop.eup %7354  ;;  %v4589_v36 = vadd.f32 %v12150_v35, %v4588_v59  ;;  %v4610_v30 = vadd.f32 %v7329_v54, %v4609_v20  ;;  %v14970_v59 = vld [vmem:[#allocation19_spill] sm:$0xff]  ;;  %v14971_v20 = vld [vmem:[#allocation20_spill] sm:$0xff] }
 0xc7b   : > { %4684 = vmatpush1.bf16.msra.mxu1 %v14947_v53  ;;  %v7357_v8 = vpop.eup %7356 }
 0xc7c   : > { %4685 = vmatprep.subr.bf16.mxu1 %v4648_v52  ;;  %v7359_v37 = vpop.eup %7358  ;;  %v4590_v1 = vadd.f32 %v12155_v50, %v4589_v36  ;;  %v4611_v32 = vadd.f32 %v7331_v23, %v4610_v30  ;;  %v4662_v58 = vpack.c.bf16 %v7357_v8, %v7355_v7  ;;  %v14967_v50 = vld [vmem:[#allocation15_spill] sm:$0xff] }
 0xc7d   : > { %v7361_v3 = vpop.eup %7360 }
 0xc7e   : > { %v7363_v15 = vpop.eup %7362  ;;  %v12261_v6 = vadd.f32 %v12163_v2, %v4590_v1  ;;  %v4612_v28 = vadd.f32 %v7333_v56, %v4611_v32  ;;  %v4664_v54 = vpack.c.bf16 %v7361_v3, %v7359_v37  ;;  %v14952_v56 = vpack.c.bf16 %v12067_v27, %v12061_v57  ;;  %v14968_v2 = vld [vmem:[#allocation16_spill] sm:$0xff] }
 0xc7f   : > { %4686 = vmatpush1.bf16.msra.mxu1 %v14948_v31  ;;  %v7365_v52 = vpop.eup %7364  ;;  %v14955_v57 = vpack.c.bf16 %v12119_v17, %v12112_v45  ;;  %v14973_v1 = vld [vmem:[#allocation64_spill] sm:$0xff] }
 0xc80   : > { %4687 = vmatprep.subr.bf16.mxu1 %v4650_v21  ;;  %v4613_v40 = vadd.f32 %v7335_v51, %v4612_v28  ;;  %v4666_v61 = vpack.c.bf16 %v7365_v52, %v7363_v15  ;;  %v6084_v32 = vrot.slane %v14973_v1, 2 }
 0xc82   : > { %v4614_v23 = vadd.f32 %v7337_v62, %v4613_v40 }
 0xc83   : > { %4688 = vmatpush1.bf16.msra.mxu1 %v14949_v11 }
 0xc84   : > { %4689 = vmatprep.subr.bf16.mxu1 %v4652_v55  ;;  %v4615_v47 = vadd.f32 %v7339_v19, %v4614_v23 }
 0xc86   : > { %v4616_v46 = vadd.f32 %v7341_v12, %v4615_v47 }
 0xc87   : > { %4690 = vmatpush1.bf16.msra.mxu1 %v14951_v43 }
 0xc88   : > { %4691 = vmatprep.subr.bf16.mxu1 %v4654_v10  ;;  %v4617_v60 = vadd.f32 %v7343_v26, %v4616_v46  ;;  %v270_v26 = vpop.permute.xlu1 %269  ;;  %v14957_v10 = vld [vmem:[#allocation7_spill] sm:$0xff] }
 0xc89   : > { %v430_v48 = vadd.f32 %v14957_v10, %v270_v26 }
 0xc8a   : > { %v4618_v51 = vadd.f32 %v7345_v25, %v4617_v60  ;;  %v432_v25 = vadd.f32 %v14958_v33, %v270_v26 }
 0xc8b   : > { %4692 = vmatpush1.bf16.msra.mxu1 %v14952_v56  ;;  %v12289_v17 = vpack.c.bf16 %v430_v48, %v430_v48 }
 0xc8c   : > { %4693 = vmatprep.subr.bf16.mxu1 %v4656_v14  ;;  %v4619_v21 = vadd.f32 %v7347_v39, %v4618_v51  ;;  %v14959_v39 = vpack.c.bf16 %v12150_v35, %v12142_v5  ;;  %v12291_v18 = vpack.c.bf16 %v432_v25, %v432_v25  ;;  %v14964_v5 = vmov 0   ;;  %v14965_v14 = vld [vmem:[#allocation13_spill] sm:$0xff] }
 0xc8d   : > { %14960 = vst [vmem:[#allocation94_spill] sm:$0xff] %v12289_v17  ;;  %v4805_v35 = vsel %vm561_vm1, %v12289_v17, 0 }
 0xc8e   : > { %v4620_v24 = vadd.f32 %v7349_v63, %v4619_v21  ;;  %14961 = vst [vmem:[#allocation96_spill] sm:$0xff] %v12291_v18  ;;  %v14966_v63 = vld [vmem:[#allocation14_spill] sm:$0xff] }
 0xc8f   : > { %4694 = vmatpush1.bf16.msra.mxu1 %v14953_v42 }
 0xc90   : > { %4695 = vmatprep.subr.bf16.mxu1 %v4658_v0  ;;  %v4621_v62 = vadd.f32 %v7351_v38, %v4620_v24  ;;  %v14969_v38 = vld [vmem:[#allocation18_spill] sm:$0xff]  ;;  %v14972_v0 = vld [vmem:[#allocation21_spill] sm:$0xff] }
 0xc92   : > { %v4622_v19 = vadd.f32 %v7353_v13, %v4621_v62  ;;  %v4748_v13 = vpop.trf.xlu1  ;;  %v14974_v62 = vld [vmem:[#allocation66_spill] sm:$0xff] }
 0xc93   : > { %4696 = vmatpush1.bf16.msra.mxu1 %v14954_v29 }
 0xc94   : > { %4697 = vmatprep.subr.bf16.mxu1 %v4660_v4  ;;  %v4623_v55 = vadd.f32 %v7355_v7, %v4622_v19  ;;  %v14976_v19 = vld [vmem:[#allocation69_spill] sm:$0xff] }
 0xc96   : > { %v4624_v27 = vadd.f32 %v7357_v8, %v4623_v55  ;;  %v4749_v53 = vpop.trf.xlu1 }
 0xc97   : > { %4698 = vmatpush1.bf16.msra.mxu1 %v14955_v57 }
 0xc98   : > { %4699 = vmatprep.subr.bf16.mxu1 %v4662_v58  ;;  %v4625_v12 = vadd.f32 %v7359_v37, %v4624_v27  ;;  %v4592_v58 = vrot.slane %v12261_v6, 4 }
 0xc9a   : > { %v4626_v22 = vadd.f32 %v7361_v3, %v4625_v12  ;;  %v4750_v7 = vpop.trf.xlu1  ;;  %v4593_v31 = vadd.f32 %v4592_v58, %v12261_v6 }
 0xc9b   : > { %4700 = vmatpush1.bf16.msra.mxu1 %v14956_v44 }
 0xc9c   : > { %4701 = vmatprep.subr.bf16.mxu1 %v4664_v54  ;;  %v4627_v49 = vadd.f32 %v7363_v15, %v4626_v22  ;;  %v4594_v28 = vrot.slane %v4593_v31, 2 }
 0xc9e   : > { %v4628_v45 = vadd.f32 %v7365_v52, %v4627_v49  ;;  %v4751_v36 = vpop.trf.xlu1  ;;  %v4595_v52 = vadd.f32 %v4594_v28, %v4593_v31 }
 0xc9f   : > { %4702 = vmatpush1.bf16.msra.mxu1 %v14959_v39 }
 0xca0   : > { %4703 = vmatprep.subr.bf16.mxu1 %v4666_v61  ;;  %v4629_v3 = vrot.slane %v4628_v45, 4  ;;  %v4596_v61 = vrot.slane %v4595_v52, 1 }
 0xca2   : > { %v4752_v30 = vpop.trf.xlu1  ;;  %v4630_v15 = vadd.f32 %v4629_v3, %v4628_v45  ;;  %v4597_v23 = vadd.f32 %v4596_v61, %v4595_v52 }
 0xca3   : > { %4704 = vmatpush1.bf16.msra.mxu1 %v14962_v34 }
 0xca4   : > { %6475 = vmatprep.subr.msk.bf16.mxu1 %vm561_vm1, %v12291_v18  ;;  %v4631_v54 = vrot.slane %v4630_v15, 2  ;;  %7366 = vrcp.f32 %v4597_v23 }
 0xca6   : > { %4706 = vmatmul.mubr.bf16.vlgmr.msra.gmra.mrb[200].mxu1 %v4669_v41  ;;  %v4753_v4 = vpop.trf.xlu1  ;;  %v4632_v40 = vadd.f32 %v4631_v54, %v4630_v15 }
 0xca7   : > { %4811 = vmatpush1.bf16.msra.mxu1 %v4805_v35  ;;  %4842 = vmatprep.mubr.bf16.mxu1 %v14964_v5 }
 0xca8   : > { %v4633_v11 = vrot.slane %v4632_v40, 1 }
 0xcaa   : > { %v4754_v8 = vpop.trf.xlu1  ;;  %v4634_v47 = vadd.f32 %v4633_v11, %v4632_v40 }
 0xcac   : > { %7368 = vrcp.f32 %v4634_v47 }
 0xcae   : > { %6476 = vmatmul.mubr.msk.bf16.vlgmr.msra.gmra.mrb[204].mxu1 %vm512_vm2, %v14965_v14  ;;  %v4755_v37 = vpop.trf.xlu1  ;;  %v7367_v9 = vpop.eup %7366 }
 0xcaf   : > { %4852 = vmatprep.mubr.bf16.mxu1 %v14964_v5 }
 0xcb6   : > { %6477 = vmatmul.mubr.msk.bf16.gmra.mrb[208].mxu1 %vm512_vm2, %v14966_v63  ;;  %v7369_v46 = vpop.eup %7368 }
 0xcb7   : > { %4862 = vmatprep.mubr.bf16.mxu1 %v14964_v5 }
 0xcbe   : > { %6478 = vmatmul.mubr.msk.bf16.gmra.mrb[212].mxu1 %vm512_vm2, %v14967_v50 }
 0xcbf   : > { %4872 = vmatprep.mubr.bf16.mxu1 %v14964_v5 }
 0xcc6   : > { %6479 = vmatmul.mubr.msk.bf16.gmra.mrb[216].mxu1 %vm512_vm2, %v14968_v2 }
 0xcc7   : > { %4882 = vmatprep.mubr.bf16.mxu1 %v14964_v5 }
 0xcce   : > { %6480 = vmatmul.mubr.msk.bf16.gmra.mrb[220].mxu1 %vm512_vm2, %v14969_v38 }
 0xccf   : > { %4892 = vmatprep.mubr.bf16.mxu1 %v14964_v5 }
 0xcd6   : > { %6481 = vmatmul.mubr.msk.bf16.gmra.mrb[224].mxu1 %vm512_vm2, %v14970_v59 }
 0xcd7   : > { %4902 = vmatprep.mubr.bf16.mxu1 %v14964_v5 }
 0xcde   : > { %6482 = vmatmul.mubr.msk.bf16.gmra.mrb[228].mxu1 %vm512_vm2, %v14971_v20 }
 0xcdf   : > { %4912 = vmatprep.mubr.bf16.mxu1 %v14964_v5 }
 0xce6   : > { %6483 = vmatmul.mubr.msk.bf16.gmra.mrb[232].mxu1 %vm512_vm2, %v14972_v0 }
 0xce7   : > { %4922 = vmatprep.mubr.bf16.mxu1 %v14964_v5 }
 0xcee   : > { %6484 = vmatmul.mubr.msk.bf16.gmra.mrb[236].mxu1 %vm512_vm2, %v4748_v13 }
 0xcef   : > { %4932 = vmatprep.mubr.bf16.mxu1 %v14964_v5 }
 0xcf6   : > { %6485 = vmatmul.mubr.msk.bf16.gmra.mrb[240].mxu1 %vm512_vm2, %v4749_v53 }
 0xcf7   : > { %4942 = vmatprep.mubr.bf16.mxu1 %v14964_v5 }
 0xcfe   : > { %6486 = vmatmul.mubr.msk.bf16.gmra.mrb[244].mxu1 %vm512_vm2, %v4750_v7 }
 0xcff   : > { %4952 = vmatprep.mubr.bf16.mxu1 %v14964_v5 }
 0xd06   : > { %6487 = vmatmul.mubr.msk.bf16.gmra.mrb[248].mxu1 %vm512_vm2, %v4751_v36 }
 0xd07   : > { %4962 = vmatprep.mubr.bf16.mxu1 %v14964_v5 }
 0xd0e   : > { %6488 = vmatmul.mubr.msk.bf16.gmra.mrb[252].mxu1 %vm512_vm2, %v4752_v30 }
 0xd0f   : > { %4972 = vmatprep.mubr.bf16.mxu1 %v14964_v5 }
 0xd16   : > { %6489 = vmatmul.mubr.msk.bf16.gmra.mrb[0].mxu1 %vm512_vm2, %v4753_v4 }
 0xd17   : > { %4982 = vmatprep.mubr.bf16.mxu1 %v14964_v5 }
 0xd1e   : > { %6490 = vmatmul.mubr.msk.bf16.gmra.mrb[4].mxu1 %vm512_vm2, %v4754_v8 }
 0xd1f   : > { %4992 = vmatprep.mubr.bf16.mxu1 %v14964_v5 }
 0xd26   : > { %6491 = vmatmul.mubr.msk.bf16.gmra.mrb[8].mxu1 %vm512_vm2, %v4755_v37 }
 0xd27   : > { %6119 = vmatprep.mubr.bf16.mxu1 %v6084_v32 }
 0xd79   : > { %v4707_v43 = vpop.f32.mrb[200].mxu1 }
 0xd7a   : > { %v4716_v60 = vmul.f32 %v7367_v9, %v4707_v43  ;;  %v4709_v56 = vpop.f32.mrb[201].mxu1 }
 0xd7b   : > { %v4717_v51 = vmul.f32 %v7369_v46, %v4709_v56  ;;  %v4711_v21 = vpop.f32.mrb[202].mxu1 }
 0xd7c   : > { %v6146_v42 = vrot.slane %v4716_v60, 4  ;;  %v4712_v6 = vpop.f32.mrb[203].mxu1 }
 0xd7d   : > { %v6147_v24 = vrot.slane %v4717_v51, 4 }
 0xd7e   : > { %v12346_v29 = vsel %vm6156_vm3, %v14974_v62, %v6146_v42 }
 0xd7f   : > { %14975 = vst [vmem:[#allocation99_spill] sm:$0xff] %v12346_v29  ;;  %v12350_v55 = vsel %vm6156_vm3, %v14976_v19, %v6147_v24 }
 0xd80   : > { %14977 = vst [vmem:[#allocation100_spill] sm:$0xff] %v12350_v55 }
 0xd81   : > { %v12352_v57 = vpop.f32.mrb[204].mxu1 }
 0xd82   : > { %v12354_v27 = vpop.f32.mrb[205].mxu1 }
 0xd83   : > { %v12356_v12 = vpop.f32.mrb[206].mxu1 }
 0xd84   : > { %v12358_v26 = vpop.f32.mrb[207].mxu1 }
 0xd89   : > { %v12360_v44 = vpop.f32.mrb[208].mxu1 }
 0xd8a   : > { %v5003_v22 = vmax.f32 %v12352_v57, %v12360_v44  ;;  %v12364_v10 = vpop.f32.mrb[209].mxu1 }
 0xd8b   : > { %v5040_v48 = vmax.f32 %v12354_v27, %v12364_v10  ;;  %v12368_v33 = vpop.f32.mrb[210].mxu1 }
 0xd8c   : > { %v5004_v25 = vmax.f32 %v12356_v12, %v12368_v33  ;;  %v12372_v49 = vpop.f32.mrb[211].mxu1 }
 0xd8d   : > { %v5041_v39 = vmax.f32 %v12358_v26, %v12372_v49 }
 0xd91   : > { %v12376_v45 = vpop.f32.mrb[212].mxu1 }
 0xd92   : > { %v5005_v34 = vmax.f32 %v5003_v22, %v12376_v45  ;;  %v12379_v16 = vpop.f32.mrb[213].mxu1 }
 0xd93   : > { %v5042_v41 = vmax.f32 %v5040_v48, %v12379_v16  ;;  %v12382_v35 = vpop.f32.mrb[214].mxu1 }
 0xd94   : > { %v5006_v14 = vmax.f32 %v5004_v25, %v12382_v35  ;;  %v12385_v63 = vpop.f32.mrb[215].mxu1 }
 0xd95   : > { %v5043_v50 = vmax.f32 %v5041_v39, %v12385_v63 }
 0xd99   : > { %v12388_v2 = vpop.f32.mrb[216].mxu1 }
 0xd9a   : > { %v5007_v38 = vmax.f32 %v5005_v34, %v12388_v2  ;;  %v12391_v59 = vpop.f32.mrb[217].mxu1 }
 0xd9b   : > { %v5044_v20 = vmax.f32 %v5042_v41, %v12391_v59  ;;  %v12394_v0 = vpop.f32.mrb[218].mxu1 }
 0xd9c   : > { %v5008_v13 = vmax.f32 %v5006_v14, %v12394_v0  ;;  %v12397_v53 = vpop.f32.mrb[219].mxu1 }
 0xd9d   : > { %v5045_v7 = vmax.f32 %v5043_v50, %v12397_v53 }
 0xda1   : > { %v12400_v36 = vpop.f32.mrb[220].mxu1 }
 0xda2   : > { %v5009_v30 = vmax.f32 %v5007_v38, %v12400_v36  ;;  %v12403_v4 = vpop.f32.mrb[221].mxu1 }
 0xda3   : > { %v5046_v8 = vmax.f32 %v5044_v20, %v12403_v4  ;;  %v12406_v37 = vpop.f32.mrb[222].mxu1 }
 0xda4   : > { %v5010_v1 = vmax.f32 %v5008_v13, %v12406_v37  ;;  %v12409_v32 = vpop.f32.mrb[223].mxu1 }
 0xda5   : > { %v5047_v58 = vmax.f32 %v5045_v7, %v12409_v32 }
 0xda9   : > { %v12412_v3 = vpop.f32.mrb[224].mxu1 }
 0xdaa   : > { %v5011_v31 = vmax.f32 %v5009_v30, %v12412_v3  ;;  %v12415_v15 = vpop.f32.mrb[225].mxu1 }
 0xdab   : > { %v5048_v28 = vmax.f32 %v5046_v8, %v12415_v15  ;;  %v12418_v54 = vpop.f32.mrb[226].mxu1 }
 0xdac   : > { %v5012_v52 = vmax.f32 %v5010_v1, %v12418_v54  ;;  %v12421_v40 = vpop.f32.mrb[227].mxu1 }
 0xdad   : > { %14978 = vst [vmem:[#allocation76_spill] sm:$0xff] %v12421_v40  ;;  %v5049_v61 = vmax.f32 %v5047_v58, %v12421_v40 }
 0xdb1   : > { %v12424_v11 = vpop.f32.mrb[228].mxu1 }
 0xdb2   : > { %v5013_v23 = vmax.f32 %v5011_v31, %v12424_v11  ;;  %v12427_v47 = vpop.f32.mrb[229].mxu1 }
 0xdb3   : > { %14979 = vst [vmem:[#allocation77_spill] sm:$0xff] %v12427_v47  ;;  %v5050_v9 = vmax.f32 %v5048_v28, %v12427_v47  ;;  %v12430_v43 = vpop.f32.mrb[230].mxu1 }
 0xdb4   : > { %v5014_v46 = vmax.f32 %v5012_v52, %v12430_v43  ;;  %v12433_v60 = vpop.f32.mrb[231].mxu1 }
 0xdb5   : > { %14980 = vst [vmem:[#allocation43_spill] sm:$0xff] %v12433_v60  ;;  %v5051_v56 = vmax.f32 %v5049_v61, %v12433_v60 }
 0xdb9   : > { %v12436_v51 = vpop.f32.mrb[232].mxu1 }
 0xdba   : > { %v5015_v21 = vmax.f32 %v5013_v23, %v12436_v51  ;;  %v12439_v42 = vpop.f32.mrb[233].mxu1 }
 0xdbb   : > { %14981 = vst [vmem:[#allocation75_spill] sm:$0xff] %v12439_v42  ;;  %v5052_v6 = vmax.f32 %v5050_v9, %v12439_v42  ;;  %v12442_v24 = vpop.f32.mrb[234].mxu1 }
 0xdbc   : > { %v5016_v62 = vmax.f32 %v5014_v46, %v12442_v24  ;;  %v12445_v19 = vpop.f32.mrb[235].mxu1 }
 0xdbd   : > { %14982 = vst [vmem:[#allocation79_spill] sm:$0xff] %v12445_v19  ;;  %v5053_v22 = vmax.f32 %v5051_v56, %v12445_v19 }
 0xdc1   : > { %v12448_v48 = vpop.f32.mrb[236].mxu1 }
 0xdc2   : > { %v5017_v25 = vmax.f32 %v5015_v21, %v12448_v48  ;;  %v12451_v39 = vpop.f32.mrb[237].mxu1 }
 0xdc3   : > { %14983 = vst [vmem:[#allocation81_spill] sm:$0xff] %v12451_v39  ;;  %v5054_v34 = vmax.f32 %v5052_v6, %v12451_v39  ;;  %v12454_v41 = vpop.f32.mrb[238].mxu1 }
 0xdc4   : > { %v5018_v14 = vmax.f32 %v5016_v62, %v12454_v41  ;;  %v12457_v50 = vpop.f32.mrb[239].mxu1 }
 0xdc5   : > { %14984 = vst [vmem:[#allocation84_spill] sm:$0xff] %v12457_v50  ;;  %v5055_v38 = vmax.f32 %v5053_v22, %v12457_v50 }
 0xdc9   : > { %v12460_v20 = vpop.f32.mrb[240].mxu1 }
 0xdca   : > { %v5019_v13 = vmax.f32 %v5017_v25, %v12460_v20  ;;  %v12463_v7 = vpop.f32.mrb[241].mxu1 }
 0xdcb   : > { %14985 = vst [vmem:[#allocation82_spill] sm:$0xff] %v12463_v7  ;;  %v5056_v30 = vmax.f32 %v5054_v34, %v12463_v7  ;;  %v12466_v8 = vpop.f32.mrb[242].mxu1 }
 0xdcc   : > { %v5020_v1 = vmax.f32 %v5018_v14, %v12466_v8  ;;  %v12469_v58 = vpop.f32.mrb[243].mxu1 }
 0xdcd   : > { %14986 = vst [vmem:[#allocation87_spill] sm:$0xff] %v12469_v58  ;;  %v5057_v31 = vmax.f32 %v5055_v38, %v12469_v58 }
 0xdd1   : > { %v12472_v28 = vpop.f32.mrb[244].mxu1 }
 0xdd2   : > { %v5021_v52 = vmax.f32 %v5019_v13, %v12472_v28  ;;  %v12475_v61 = vpop.f32.mrb[245].mxu1 }
 0xdd3   : > { %14987 = vst [vmem:[#allocation63_spill] sm:$0xff] %v12475_v61  ;;  %v5058_v23 = vmax.f32 %v5056_v30, %v12475_v61  ;;  %v12478_v9 = vpop.f32.mrb[246].mxu1 }
 0xdd4   : > { %v5022_v46 = vmax.f32 %v5020_v1, %v12478_v9  ;;  %v12481_v56 = vpop.f32.mrb[247].mxu1 }
 0xdd5   : > { %14988 = vst [vmem:[#allocation9_spill] sm:$0xff] %v12481_v56  ;;  %v5059_v21 = vmax.f32 %v5057_v31, %v12481_v56 }
 0xdd9   : > { %v12484_v6 = vpop.f32.mrb[248].mxu1 }
 0xdda   : > { %v5023_v62 = vmax.f32 %v5021_v52, %v12484_v6  ;;  %v12487_v22 = vpop.f32.mrb[249].mxu1 }
 0xddb   : > { %14989 = vst [vmem:[#allocation88_spill] sm:$0xff] %v12487_v22  ;;  %v5060_v25 = vmax.f32 %v5058_v23, %v12487_v22  ;;  %v12490_v34 = vpop.f32.mrb[250].mxu1 }
 0xddc   : > { %v5024_v14 = vmax.f32 %v5022_v46, %v12490_v34  ;;  %v12493_v38 = vpop.f32.mrb[251].mxu1 }
 0xddd   : > { %14990 = vst [vmem:[#allocation89_spill] sm:$0xff] %v12493_v38  ;;  %v5061_v13 = vmax.f32 %v5059_v21, %v12493_v38 }
 0xde1   : > { %v12496_v30 = vpop.f32.mrb[252].mxu1 }
 0xde2   : > { %v5025_v1 = vmax.f32 %v5023_v62, %v12496_v30  ;;  %v12499_v31 = vpop.f32.mrb[253].mxu1 }
 0xde3   : > { %14991 = vst [vmem:[#allocation58_spill] sm:$0xff] %v12499_v31  ;;  %v5062_v52 = vmax.f32 %v5060_v25, %v12499_v31  ;;  %v12502_v55 = vpop.f32.mrb[254].mxu1 }
 0xde4   : > { %v5026_v23 = vmax.f32 %v5024_v14, %v12502_v55  ;;  %v12505_v29 = vpop.f32.mrb[255].mxu1 }
 0xde5   : > { %14992 = vst [vmem:[#allocation60_spill] sm:$0xff] %v12505_v29  ;;  %v5063_v46 = vmax.f32 %v5061_v13, %v12505_v29 }
 0xde9   : > { %v12508_v5 = vpop.f32.mrb[0].mxu1 }
 0xdea   : > { %v5027_v21 = vmax.f32 %v5025_v1, %v12508_v5  ;;  %v12511_v18 = vpop.f32.mrb[1].mxu1 }
 0xdeb   : > { %14993 = vst [vmem:[#allocation61_spill] sm:$0xff] %v12511_v18  ;;  %v5064_v62 = vmax.f32 %v5062_v52, %v12511_v18  ;;  %v12514_v17 = vpop.f32.mrb[2].mxu1 }
 0xdec   : > { %v5028_v25 = vmax.f32 %v5026_v23, %v12514_v17  ;;  %v12517_v31 = vpop.f32.mrb[3].mxu1 }
 0xded   : > { %14994 = vst [vmem:[#allocation65_spill] sm:$0xff] %v12517_v31  ;;  %v5065_v14 = vmax.f32 %v5063_v46, %v12517_v31 }
 0xdf1   : > { %v12520_v38 = vpop.f32.mrb[4].mxu1 }
 0xdf2   : > { %v5029_v13 = vmax.f32 %v5027_v21, %v12520_v38  ;;  %v12523_v29 = vpop.f32.mrb[5].mxu1 }
 0xdf3   : > { %14995 = vst [vmem:[#allocation67_spill] sm:$0xff] %v12523_v29  ;;  %v5066_v1 = vmax.f32 %v5064_v62, %v12523_v29  ;;  %v12526_v22 = vpop.f32.mrb[6].mxu1 }
 0xdf4   : > { %v5030_v52 = vmax.f32 %v5028_v25, %v12526_v22  ;;  %v12529_v18 = vpop.f32.mrb[7].mxu1 }
 0xdf5   : > { %14996 = vst [vmem:[#allocation45_spill] sm:$0xff] %v12529_v18  ;;  %v5067_v23 = vmax.f32 %v5065_v14, %v12529_v18 }
 0xdf9   : > { %v12532_v56 = vpop.f32.mrb[8].mxu1 }
 0xdfa   : > { %v5031_v46 = vmax.f32 %v5029_v13, %v12532_v56  ;;  %v12535_v31 = vpop.f32.mrb[9].mxu1 }
 0xdfb   : > { %14997 = vst [vmem:[#allocation68_spill] sm:$0xff] %v12535_v31  ;;  %v5068_v21 = vmax.f32 %v5066_v1, %v12535_v31  ;;  %v12538_v61 = vpop.f32.mrb[10].mxu1 }
 0xdfc   : > { %v5032_v62 = vmax.f32 %v5030_v52, %v12538_v61  ;;  %v12541_v29 = vpop.f32.mrb[11].mxu1 }
 0xdfd   : > { %14998 = vst [vmem:[#allocation47_spill] sm:$0xff] %v12541_v29  ;;  %v5069_v25 = vmax.f32 %v5067_v23, %v12541_v29 }
 0xdfe   : > { %v5033_v58 = vmax.f32 %v5031_v46, %v5032_v62 }
 0xdff   : > { %v5070_v7 = vmax.f32 %v5068_v21, %v5069_v25 }
 0xe00   : > { %v5034_v50 = vrot.slane %v5033_v58, 4 }
 0xe01   : > { %v5071_v14 = vrot.slane %v5070_v7, 4 }
 0xe02   : > { %v5035_v18 = vmax.f32 %v5033_v58, %v5034_v50 }
 0xe03   : > { %v5072_v39 = vmax.f32 %v5070_v7, %v5071_v14 }
 0xe04   : > { %v5036_v19 = vrot.slane %v5035_v18, 2 }
 0xe05   : > { %v5073_v13 = vrot.slane %v5072_v39, 2 }
 0xe06   : > { %v5037_v42 = vmax.f32 %v5035_v18, %v5036_v19  ;;  %v15018_v19 = vld [vmem:[#allocation68_spill] sm:$0xff] }
 0xe07   : > { %v5074_v60 = vmax.f32 %v5072_v39, %v5073_v13 }
 0xe08   : > { %v5038_v47 = vrot.slane %v5037_v42, 1 }
 0xe09   : > { %v5075_v1 = vrot.slane %v5074_v60, 1 }
 0xe0a   : > { %v12544_v31 = vmax.f32 %v5037_v42, %v5038_v47 }
 0xe0b   : > { %v12546_v40 = vmax.f32 %v5074_v60, %v5075_v1 }
 0xe0c   : > { %v5077_v52 = vsub.f32 %v12352_v57, %v12544_v31  ;;  %v5079_v23 = vsub.f32 %v12356_v12, %v12544_v31  ;;  %v5081_v50 = vsub.f32 %v12360_v44, %v12544_v31  ;;  %v5083_v7 = vsub.f32 %v12368_v33, %v12544_v31 }
 0xe0d   : > { %v5085_v18 = vsub.f32 %v12376_v45, %v12544_v31  ;;  %v5087_v47 = vsub.f32 %v12382_v35, %v12544_v31  ;;  %v5089_v60 = vsub.f32 %v12388_v2, %v12544_v31  ;;  %v5091_v57 = vsub.f32 %v12394_v0, %v12544_v31 }
 0xe0e   : > { %v5093_v12 = vsub.f32 %v12400_v36, %v12544_v31  ;;  %v5095_v44 = vsub.f32 %v12406_v37, %v12544_v31  ;;  %v5097_v33 = vsub.f32 %v12412_v3, %v12544_v31  ;;  %v5099_v45 = vsub.f32 %v12418_v54, %v12544_v31 }
 0xe0f   : > { %v5101_v35 = vsub.f32 %v12424_v11, %v12544_v31  ;;  %v5103_v2 = vsub.f32 %v12430_v43, %v12544_v31  ;;  %v5105_v0 = vsub.f32 %v12436_v51, %v12544_v31  ;;  %v5107_v36 = vsub.f32 %v12442_v24, %v12544_v31 }
 0xe10   : > { %v5109_v37 = vsub.f32 %v12448_v48, %v12544_v31  ;;  %v5111_v3 = vsub.f32 %v12454_v41, %v12544_v31  ;;  %v5113_v54 = vsub.f32 %v12460_v20, %v12544_v31  ;;  %v5115_v11 = vsub.f32 %v12466_v8, %v12544_v31 }
 0xe11   : > { %v5117_v43 = vsub.f32 %v12472_v28, %v12544_v31  ;;  %v5119_v51 = vsub.f32 %v12478_v9, %v12544_v31  ;;  %v5121_v42 = vsub.f32 %v12484_v6, %v12544_v31  ;;  %v5123_v24 = vsub.f32 %v12490_v34, %v12544_v31 }
 0xe12   : > { %v5141_v9 = vmul.f32 1.442695, %v5077_v52  ;;  %v5145_v6 = vmul.f32 1.442695, %v5079_v23  ;;  %v5149_v34 = vmul.f32 1.442695, %v5081_v50 }
 0xe13   : > { %v5153_v21 = vmul.f32 1.442695, %v5083_v7  ;;  %v5157_v25 = vmul.f32 1.442695, %v5085_v18  ;;  %v5161_v14 = vmul.f32 1.442695, %v5087_v47 }
 0xe14   : > { %7370 = vpow2.f32 %v5141_v9  ;;  %v5165_v13 = vmul.f32 1.442695, %v5089_v60  ;;  %v5169_v1 = vmul.f32 1.442695, %v5091_v57  ;;  %v5173_v58 = vmul.f32 1.442695, %v5093_v12 }
 0xe15   : > { %7372 = vpow2.f32 %v5145_v6  ;;  %v5177_v28 = vmul.f32 1.442695, %v5095_v44  ;;  %v5181_v52 = vmul.f32 1.442695, %v5097_v33  ;;  %v5185_v23 = vmul.f32 1.442695, %v5099_v45 }
 0xe16   : > { %7374 = vpow2.f32 %v5149_v34  ;;  %v5189_v50 = vmul.f32 1.442695, %v5101_v35  ;;  %v5193_v46 = vmul.f32 1.442695, %v5103_v2  ;;  %v5197_v7 = vmul.f32 1.442695, %v5105_v0 }
 0xe17   : > { %7376 = vpow2.f32 %v5153_v21  ;;  %v5201_v8 = vmul.f32 1.442695, %v5107_v36  ;;  %v5205_v62 = vmul.f32 1.442695, %v5109_v37  ;;  %v5209_v9 = vmul.f32 1.442695, %v5111_v3 }
 0xe18   : > { %7378 = vpow2.f32 %v5157_v25  ;;  %v5213_v18 = vmul.f32 1.442695, %v5113_v54  ;;  %v5217_v47 = vmul.f32 1.442695, %v5115_v11  ;;  %v5221_v6 = vmul.f32 1.442695, %v5117_v43 }
 0xe19   : > { %7380 = vpow2.f32 %v5161_v14  ;;  %v12616_v60 = vmul.f32 1.442695, %v5119_v51  ;;  %v12618_v57 = vmul.f32 1.442695, %v5121_v42  ;;  %v12620_v12 = vmul.f32 1.442695, %v5123_v24 }
 0xe1a   : > { %7382 = vpow2.f32 %v5165_v13  ;;  %v14999_v43 = vld [vmem:[#allocation76_spill] sm:$0xff]  ;;  %v15001_v34 = vld [vmem:[#allocation43_spill] sm:$0xff]  ;;  %v15006_v54 = vld [vmem:[#allocation82_spill] sm:$0xff] }
 0xe1b   : > { %7384 = vpow2.f32 %v5169_v1  ;;  %v15002_v14 = vld [vmem:[#allocation75_spill] sm:$0xff]  ;;  %v15005_v11 = vld [vmem:[#allocation84_spill] sm:$0xff]  ;;  %v15009_v0 = vld [vmem:[#allocation9_spill] sm:$0xff] }
 0xe1c   : > { %7386 = vpow2.f32 %v5173_v58  ;;  %v15000_v58 = vld [vmem:[#allocation77_spill] sm:$0xff]  ;;  %v15003_v1 = vld [vmem:[#allocation79_spill] sm:$0xff]  ;;  %v15010_v21 = vld [vmem:[#allocation88_spill] sm:$0xff] }
 0xe1d   : > { %7388 = vpow2.f32 %v5177_v28  ;;  %v15007_v13 = vld [vmem:[#allocation87_spill] sm:$0xff]  ;;  %v15011_v45 = vld [vmem:[#allocation89_spill] sm:$0xff]  ;;  %v15013_v44 = vld [vmem:[#allocation60_spill] sm:$0xff] }
 0xe1e   : > { %v12630_v2 = vpop.eup %7370  ;;  %7390 = vpow2.f32 %v5181_v52  ;;  %v15008_v36 = vld [vmem:[#allocation63_spill] sm:$0xff]  ;;  %v15012_v52 = vld [vmem:[#allocation58_spill] sm:$0xff] }
 0xe1f   : > { %v12638_v3 = vpop.eup %7372  ;;  %7392 = vpow2.f32 %v5185_v23  ;;  %v15004_v23 = vld [vmem:[#allocation81_spill] sm:$0xff] }
 0xe20   : > { %v12646_v42 = vpop.eup %7374  ;;  %7394 = vpow2.f32 %v5189_v50  ;;  %v5269_v24 = vadd.f32 %v12638_v3, %v12630_v2  ;;  %v15017_v50 = vld [vmem:[#allocation45_spill] sm:$0xff] }
 0xe21   : > { %v12654_v25 = vpop.eup %7376  ;;  %7396 = vpow2.f32 %v5193_v46  ;;  %v15015_v46 = vld [vmem:[#allocation65_spill] sm:$0xff] }
 0xe22   : > { %v12662_v51 = vpop.eup %7378  ;;  %7398 = vpow2.f32 %v5197_v7  ;;  %v5270_v28 = vadd.f32 %v12646_v42, %v5269_v24 }
 0xe23   : > { %v12669_v37 = vpop.eup %7380  ;;  %7400 = vpow2.f32 %v5201_v8 }
 0xe24   : > { %v12677_v35 = vpop.eup %7382  ;;  %7402 = vpow2.f32 %v5205_v62  ;;  %v5271_v24 = vadd.f32 %v12654_v25, %v5270_v28 }
 0xe25   : > { %v12684_v33 = vpop.eup %7384  ;;  %7404 = vpow2.f32 %v5209_v9 }
 0xe26   : > { %v12692_v41 = vpop.eup %7386  ;;  %7406 = vpow2.f32 %v5213_v18  ;;  %v5272_v28 = vadd.f32 %v12662_v51, %v5271_v24  ;;  %v15019_v24 = vsub.f32 %v12496_v30, %v12544_v31 }
 0xe27   : > { %v12699_v48 = vpop.eup %7388  ;;  %7408 = vpow2.f32 %v5217_v47  ;;  %v15020_v47 = vsub.f32 %v12502_v55, %v12544_v31 }
 0xe28   : > { %v12707_v20 = vpop.eup %7390  ;;  %7410 = vpow2.f32 %v5221_v6  ;;  %v5237_v8 = vmul.f32 1.442695, %v15019_v24  ;;  %v5273_v9 = vadd.f32 %v12669_v37, %v5272_v28  ;;  %v15021_v6 = vsub.f32 %v12508_v5, %v12544_v31 }
 0xe29   : > { %v12713_v39 = vpop.eup %7392  ;;  %7412 = vpow2.f32 %v12616_v60  ;;  %v5241_v62 = vmul.f32 1.442695, %v15020_v47  ;;  %v15022_v60 = vsub.f32 %v12514_v17, %v12544_v31  ;;  %v15026_v17 = vsub.f32 %v12532_v56, %v12544_v31 }
 0xe2a   : > { %v12719_v7 = vpop.eup %7394  ;;  %7414 = vpow2.f32 %v12618_v57  ;;  %v5245_v18 = vmul.f32 1.442695, %v15021_v6  ;;  %v5274_v30 = vadd.f32 %v12677_v35, %v5273_v9  ;;  %v15023_v57 = vsub.f32 %v12520_v38, %v12544_v31 }
 0xe2b   : > { %v12726_v24 = vpop.eup %7396  ;;  %7416 = vpow2.f32 %v12620_v12  ;;  %v5249_v28 = vmul.f32 1.442695, %v15022_v60  ;;  %v15024_v9 = vsub.f32 %v12526_v22, %v12544_v31 }
 0xe2c   : > { %v12732_v55 = vpop.eup %7398  ;;  %7418 = vpow2.f32 %v5237_v8  ;;  %v5253_v47 = vmul.f32 1.442695, %v15023_v57  ;;  %v5275_v5 = vadd.f32 %v12684_v33, %v5274_v30  ;;  %v5261_v8 = vmul.f32 1.442695, %v15026_v17 }
 0xe2d   : > { %v12738_v6 = vpop.eup %7400  ;;  %7420 = vpow2.f32 %v5241_v62  ;;  %v5257_v12 = vmul.f32 1.442695, %v15024_v9  ;;  %v15027_v30 = vsub.f32 %v12538_v61, %v12544_v31  ;;  %v15030_v61 = vsub.f32 %v12364_v10, %v12546_v40 }
 0xe2e   : > { %v12743_v29 = vpop.eup %7402  ;;  %7422 = vpow2.f32 %v5245_v18  ;;  %v5276_v60 = vadd.f32 %v12692_v41, %v5275_v5  ;;  %v15028_v18 = vsub.f32 %v12354_v27, %v12546_v40  ;;  %v15029_v5 = vsub.f32 %v12358_v26, %v12546_v40 }
 0xe2f   : > { %15025 = vst [vmem:[#allocation49_spill] sm:$0xff] %v12743_v29  ;;  %v12749_v38 = vpop.eup %7404  ;;  %7424 = vpow2.f32 %v5249_v28  ;;  %v5265_v62 = vmul.f32 1.442695, %v15027_v30  ;;  %v5151_v31 = vmul.f32 1.442695, %v15030_v61  ;;  %v15031_v27 = vsub.f32 %v12372_v49, %v12546_v40 }
 0xe30   : > { %v12754_v57 = vpop.eup %7406  ;;  %7426 = vpow2.f32 %v5253_v47  ;;  %v5277_v22 = vadd.f32 %v12699_v48, %v5276_v60  ;;  %v5143_v9 = vmul.f32 1.442695, %v15028_v18  ;;  %v5147_v28 = vmul.f32 1.442695, %v15029_v5 }
 0xe31   : > { %v12760_v56 = vpop.eup %7408  ;;  %7428 = vpow2.f32 %v5257_v12  ;;  %v5155_v60 = vmul.f32 1.442695, %v15031_v27  ;;  %v15032_v12 = vsub.f32 %v12379_v16, %v12546_v40  ;;  %v15033_v26 = vsub.f32 %v12385_v63, %v12546_v40 }
 0xe32   : > { %v12768_v17 = vpop.eup %7410  ;;  %7430 = vpow2.f32 %v5261_v8  ;;  %v5278_v47 = vadd.f32 %v12707_v20, %v5277_v22  ;;  %v15034_v8 = vsub.f32 %v12391_v59, %v12546_v40  ;;  %v15035_v22 = vsub.f32 %v12397_v53, %v12546_v40 }
 0xe33   : > { %v5159_v30 = vmul.f32 1.442695, %v15032_v12  ;;  %v12777_v18 = vpop.eup %7412  ;;  %7432 = vpow2.f32 %v5265_v62  ;;  %v5163_v10 = vmul.f32 1.442695, %v15033_v26  ;;  %v15036_v62 = vsub.f32 %v12403_v4, %v12546_v40 }
 0xe34   : > { %v5167_v5 = vmul.f32 1.442695, %v15034_v8  ;;  %v5171_v49 = vmul.f32 1.442695, %v15035_v22  ;;  %v12788_v61 = vpop.eup %7414  ;;  %v5279_v16 = vadd.f32 %v12713_v39, %v5278_v47  ;;  %7434 = vpow2.f32 %v5143_v9 }
 0xe35   : > { %v5175_v27 = vmul.f32 1.442695, %v15036_v62  ;;  %v15037_v63 = vsub.f32 %v12409_v32, %v12546_v40  ;;  %v12797_v26 = vpop.eup %7416  ;;  %7436 = vpow2.f32 %v5147_v28 }
 0xe36   : > { %v12805_v47 = vpop.eup %7418  ;;  %v5280_v4 = vadd.f32 %v12719_v7, %v5279_v16  ;;  %7438 = vpow2.f32 %v5151_v31 }
 0xe37   : > { %v5179_v12 = vmul.f32 1.442695, %v15037_v63  ;;  %v12812_v8 = vpop.eup %7420  ;;  %7440 = vpow2.f32 %v5155_v60  ;;  %v15038_v60 = vsub.f32 %v12415_v15, %v12546_v40  ;;  %v15039_v63 = vsub.f32 %v14999_v43, %v12546_v40 }
 0xe38   : > { %v12820_v16 = vpop.eup %7422  ;;  %v5281_v31 = vadd.f32 %v12726_v24, %v5280_v4  ;;  %7442 = vpow2.f32 %v5159_v30 }
 0xe39   : > { %v12827_v32 = vpop.eup %7424  ;;  %7444 = vpow2.f32 %v5163_v10  ;;  %v5183_v28 = vmul.f32 1.442695, %v15038_v60  ;;  %v5187_v62 = vmul.f32 1.442695, %v15039_v63 }
 0xe3a   : > { %v12835_v4 = vpop.eup %7426  ;;  %v5282_v30 = vadd.f32 %v12732_v55, %v5281_v31  ;;  %7446 = vpow2.f32 %v5167_v5  ;;  %v15040_v5 = vsub.f32 %v15000_v58, %v12546_v40  ;;  %v15045_v58 = vsub.f32 %v15005_v11, %v12546_v40 }
 0xe3b   : > { %v12843_v9 = vpop.eup %7428  ;;  %7448 = vpow2.f32 %v5171_v49  ;;  %v15041_v49 = vsub.f32 %v15001_v34, %v12546_v40  ;;  %v15044_v34 = vsub.f32 %v15004_v23, %v12546_v40  ;;  %v15048_v11 = vsub.f32 %v15008_v36, %v12546_v40 }
 0xe3c   : > { %v12848_v22 = vpop.eup %7430  ;;  %v5283_v53 = vadd.f32 %v12738_v6, %v5282_v30  ;;  %7450 = vpow2.f32 %v5175_v27  ;;  %v5191_v15 = vmul.f32 1.442695, %v15040_v5  ;;  %v15042_v27 = vsub.f32 %v15002_v14, %v12546_v40 }
 0xe3d   : > { %v12856_v60 = vpop.eup %7432  ;;  %7452 = vpow2.f32 %v5179_v12  ;;  %v5195_v43 = vmul.f32 1.442695, %v15041_v49  ;;  %v15043_v12 = vsub.f32 %v15003_v1, %v12546_v40  ;;  %v5207_v49 = vmul.f32 1.442695, %v15044_v34 }
 0xe3e   : > { %v7435_v63 = vpop.eup %7434  ;;  %v5284_v10 = vadd.f32 %v12743_v29, %v5283_v53  ;;  %7454 = vpow2.f32 %v5183_v28  ;;  %v5199_v30 = vmul.f32 1.442695, %v15042_v27  ;;  %v15046_v1 = vsub.f32 %v15006_v54, %v12546_v40 }
 0xe3f   : > { %v7437_v5 = vpop.eup %7436  ;;  %7456 = vpow2.f32 %v5187_v62  ;;  %v5203_v31 = vmul.f32 1.442695, %v15043_v12  ;;  %v5211_v62 = vmul.f32 1.442695, %v15045_v58  ;;  %v5223_v58 = vmul.f32 1.442695, %v15048_v11 }
 0xe40   : > { %v7439_v59 = vpop.eup %7438  ;;  %v5285_v53 = vadd.f32 %v12749_v38, %v5284_v10  ;;  %7458 = vpow2.f32 %v5191_v15  ;;  %v5306_v28 = vadd.f32 %v7437_v5, %v7435_v63  ;;  %v5344_v14 = vpack.c.bf16 %v7437_v5, %v7435_v63 }
 0xe41   : > { %v7441_v27 = vpop.eup %7440  ;;  %7460 = vpow2.f32 %v5195_v43  ;;  %v5215_v12 = vmul.f32 1.442695, %v15046_v1  ;;  %v15047_v43 = vsub.f32 %v15007_v13, %v12546_v40  ;;  %v15049_v54 = vpack.c.bf16 %v12638_v3, %v12630_v2 }
 0xe42   : > { %v7443_v29 = vpop.eup %7442  ;;  %v5286_v23 = vadd.f32 %v12754_v57, %v5285_v53  ;;  %7462 = vpow2.f32 %v5199_v30  ;;  %v5307_v34 = vadd.f32 %v7439_v59, %v5306_v28  ;;  %5375 = vmatprep.subr.bf16.mxu0 %v5344_v14  ;;  %v5346_v10 = vpack.c.bf16 %v7441_v27, %v7439_v59 }
 0xe43   : > { %v7445_v15 = vpop.eup %7444  ;;  %7464 = vpow2.f32 %v5203_v31  ;;  %v5219_v63 = vmul.f32 1.442695, %v15047_v43  ;;  %5376 = vmatpush1.bf16.msra.mxu0 %v15049_v54  ;;  %v15050_v13 = vsub.f32 %v15009_v0, %v12546_v40  ;;  %v15051_v36 = vsub.f32 %v15010_v21, %v12546_v40  ;;  %v15056_v54 = vld [vmem:[#allocation61_spill] sm:$0xff] }
 0xe44   : > { %v7447_v5 = vpop.eup %7446  ;;  %v5287_v30 = vadd.f32 %v12760_v56, %v5286_v23  ;;  %7466 = vpow2.f32 %v5207_v49  ;;  %v5308_v53 = vadd.f32 %v7441_v27, %v5307_v34  ;;  %5377 = vmatprep.subr.bf16.mxu0 %v5346_v10  ;;  %v5348_v59 = vpack.c.bf16 %v7445_v15, %v7443_v29 }
 0xe45   : > { %v7449_v31 = vpop.eup %7448  ;;  %7468 = vpow2.f32 %v5211_v62  ;;  %v5227_v28 = vmul.f32 1.442695, %v15050_v13  ;;  %v5231_v14 = vmul.f32 1.442695, %v15051_v36  ;;  %v15052_v27 = vsub.f32 %v15011_v45, %v12546_v40 }
 0xe46   : > { %v7451_v1 = vpop.eup %7450  ;;  %v5288_v2 = vadd.f32 %v12768_v17, %v5287_v30  ;;  %7470 = vpow2.f32 %v5215_v12  ;;  %v5309_v3 = vadd.f32 %v7443_v29, %v5308_v53  ;;  %v5350_v23 = vpack.c.bf16 %v7449_v31, %v7447_v5 }
 0xe47   : > { %v7453_v49 = vpop.eup %7452  ;;  %7472 = vpow2.f32 %v5219_v63  ;;  %v5235_v62 = vmul.f32 1.442695, %v15052_v27  ;;  %v15053_v0 = vsub.f32 %v15012_v52, %v12546_v40  ;;  %v15054_v21 = vpack.c.bf16 %v12654_v25, %v12646_v42 }
 0xe48   : > { %v7455_v10 = vpop.eup %7454  ;;  %v5289_v43 = vadd.f32 %v12777_v18, %v5288_v2  ;;  %7474 = vpow2.f32 %v5223_v58  ;;  %v5310_v29 = vadd.f32 %v7445_v15, %v5309_v3  ;;  %v5352_v12 = vpack.c.bf16 %v7453_v49, %v7451_v1 }
 0xe49   : > { %v5239_v34 = vmul.f32 1.442695, %v15053_v0  ;;  %5378 = vmatpush1.bf16.msra.mxu0 %v15054_v21  ;;  %v7457_v63 = vpop.eup %7456  ;;  %7476 = vpow2.f32 %v5227_v28  ;;  %v15055_v45 = vsub.f32 %v15013_v44, %v12546_v40  ;;  %v15057_v52 = vsub.f32 %v15056_v54, %v12546_v40  ;;  %v15059_v28 = vld [vmem:[#allocation67_spill] sm:$0xff] }
 0xe4a   : > { %5379 = vmatprep.subr.bf16.mxu0 %v5348_v59  ;;  %v7459_v53 = vpop.eup %7458  ;;  %v5290_v42 = vadd.f32 %v12788_v61, %v5289_v43  ;;  %7478 = vpow2.f32 %v5231_v14  ;;  %v5311_v25 = vadd.f32 %v7447_v5, %v5310_v29  ;;  %v5354_v13 = vpack.c.bf16 %v7457_v63, %v7455_v10 }
 0xe4b   : > { %v5243_v11 = vmul.f32 1.442695, %v15055_v45  ;;  %v5247_v30 = vmul.f32 1.442695, %v15057_v52  ;;  %v7461_v58 = vpop.eup %7460  ;;  %7480 = vpow2.f32 %v5235_v62  ;;  %v15058_v15 = vsub.f32 %v15015_v46, %v12546_v40 }
 0xe4c   : > { %v15060_v44 = vsub.f32 %v15059_v28, %v12546_v40  ;;  %v15061_v2 = vpack.c.bf16 %v12669_v37, %v12662_v51  ;;  %v7463_v3 = vpop.eup %7462  ;;  %v5291_v27 = vadd.f32 %v12797_v26, %v5290_v42  ;;  %7482 = vpow2.f32 %v5239_v34 }
 0xe4d   : > { %v5251_v59 = vmul.f32 1.442695, %v15058_v15  ;;  %v5312_v5 = vadd.f32 %v7449_v31, %v5311_v25  ;;  %v5356_v14 = vpack.c.bf16 %v7461_v58, %v7459_v53  ;;  %v7465_v62 = vpop.eup %7464  ;;  %7484 = vpow2.f32 %v5243_v11  ;;  %v15064_v31 = vld [vmem:[#allocation47_spill] sm:$0xff] }
 0xe4e   : > { %v5255_v36 = vmul.f32 1.442695, %v15060_v44  ;;  %5380 = vmatpush1.bf16.msra.mxu0 %v15061_v2  ;;  %v15062_v46 = vsub.f32 %v15017_v50, %v12546_v40  ;;  %v15063_v21 = vsub.f32 %v15018_v19, %v12546_v40  ;;  %v7467_v29 = vpop.eup %7466  ;;  %v5292_v37 = vadd.f32 %v12805_v47, %v5291_v27 }
 0xe4f   : > { %5381 = vmatprep.subr.bf16.mxu0 %v5350_v23  ;;  %7486 = vpow2.f32 %v5247_v30  ;;  %v5313_v51 = vadd.f32 %v7451_v1, %v5312_v5  ;;  %v5358_v45 = vpack.c.bf16 %v7465_v62, %v7463_v3  ;;  %v7469_v34 = vpop.eup %7468  ;;  %v15065_v23 = vsub.f32 %v15064_v31, %v12546_v40 }
 0xe50   : > { %v5259_v0 = vmul.f32 1.442695, %v15062_v46  ;;  %v5263_v43 = vmul.f32 1.442695, %v15063_v21  ;;  %7488 = vpow2.f32 %v5251_v59  ;;  %v15066_v50 = vpack.c.bf16 %v12684_v33, %v12677_v35  ;;  %v7471_v54 = vpop.eup %7470 }
 0xe51   : > { %v5267_v11 = vmul.f32 1.442695, %v15065_v23  ;;  %v5293_v19 = vadd.f32 %v12812_v8, %v5292_v37  ;;  %7490 = vpow2.f32 %v5255_v36  ;;  %v5314_v52 = vadd.f32 %v7453_v49, %v5313_v51  ;;  %v7473_v30 = vpop.eup %7472 }
 0xe52   : > { %5382 = vmatpush1.bf16.msra.mxu0 %v15066_v50  ;;  %v5360_v42 = vpack.c.bf16 %v7469_v34, %v7467_v29  ;;  %7492 = vpow2.f32 %v5259_v0  ;;  %v7475_v1 = vpop.eup %7474  ;;  %v5362_v40 = vpack.c.bf16 %v7473_v30, %v7471_v54  ;;  %v15067_v33 = vpack.c.bf16 %v12699_v48, %v12692_v41 }
 0xe53   : > { %5383 = vmatprep.subr.bf16.mxu0 %v5352_v12  ;;  %v5294_v25 = vadd.f32 %v12820_v16, %v5293_v19  ;;  %7494 = vpow2.f32 %v5263_v43  ;;  %v5315_v15 = vadd.f32 %v7455_v10, %v5314_v52  ;;  %v7477_v59 = vpop.eup %7476  ;;  %v15068_v46 = vpack.c.bf16 %v12713_v39, %v12707_v20 }
 0xe54   : > { %7496 = vpow2.f32 %v5267_v11  ;;  %v7479_v35 = vpop.eup %7478  ;;  %v5364_v12 = vpack.c.bf16 %v7477_v59, %v7475_v1  ;;  %v15070_v19 = vpack.c.bf16 %v12738_v6, %v12732_v55  ;;  %v15074_v55 = vpack.c.bf16 %v12777_v18, %v12768_v17 }
 0xe55   : > { %v5295_v28 = vadd.f32 %v12827_v32, %v5294_v25  ;;  %v5316_v49 = vadd.f32 %v7457_v63, %v5315_v15  ;;  %v7481_v44 = vpop.eup %7480  ;;  %v15077_v17 = vpack.c.bf16 %v12827_v32, %v12820_v16  ;;  %v15084_v16 = vmov 0  }
 0xe56   : > { %5384 = vmatpush1.bf16.msra.mxu0 %v15067_v33  ;;  %v7483_v36 = vpop.eup %7482  ;;  %v5366_v5 = vpack.c.bf16 %v7481_v44, %v7479_v35  ;;  %v15081_v33 = vpack.c.bf16 %v12856_v60, %v12848_v22 }
 0xe57   : > { %5385 = vmatprep.subr.bf16.mxu0 %v5354_v13  ;;  %v5296_v2 = vadd.f32 %v12835_v4, %v5295_v28  ;;  %v5317_v27 = vadd.f32 %v7459_v53, %v5316_v49  ;;  %v7485_v10 = vpop.eup %7484  ;;  %v15069_v53 = vpack.c.bf16 %v12726_v24, %v12719_v7  ;;  %v15071_v7 = vld [vmem:[#allocation49_spill] sm:$0xff] }
 0xe58   : > { %v5368_v21 = vpack.c.bf16 %v7485_v10, %v7483_v36  ;;  %v15072_v24 = vpack.c.bf16 %v12749_v38, %v15071_v7  ;;  %v15075_v38 = vpack.c.bf16 %v12797_v26, %v12788_v61  ;;  %v15078_v61 = vpack.c.bf16 %v12843_v9, %v12835_v4  ;;  %v5434_v4 = vpop.trf.xlu1 }
 0xe59   : > { %v7487_v0 = vpop.eup %7486  ;;  %v5297_v48 = vadd.f32 %v12843_v9, %v5296_v2  ;;  %v5318_v41 = vadd.f32 %v7461_v58, %v5317_v27  ;;  %v5450_v2 = vpop.trf.xlu0 }
 0xe5a   : > { %5386 = vmatpush1.bf16.msra.mxu0 %v15068_v46  ;;  %v7489_v63 = vpop.eup %7488 }
 0xe5b   : > { %5387 = vmatprep.subr.bf16.mxu0 %v5356_v14  ;;  %v7491_v13 = vpop.eup %7490  ;;  %v5298_v43 = vadd.f32 %v12848_v22, %v5297_v48  ;;  %v5319_v37 = vadd.f32 %v7463_v3, %v5318_v41  ;;  %v5370_v51 = vpack.c.bf16 %v7489_v63, %v7487_v0 }
 0xe5c   : > { %v7493_v31 = vpop.eup %7492  ;;  %v5435_v22 = vpop.trf.xlu1 }
 0xe5d   : > { %v7495_v23 = vpop.eup %7494  ;;  %v12954_v39 = vadd.f32 %v12856_v60, %v5298_v43  ;;  %v5320_v20 = vadd.f32 %v7465_v62, %v5319_v37  ;;  %v5372_v58 = vpack.c.bf16 %v7493_v31, %v7491_v13  ;;  %v15073_v62 = vpack.c.bf16 %v12760_v56, %v12754_v57  ;;  %v5451_v27 = vpop.trf.xlu0 }
 0xe5e   : > { %5388 = vmatpush1.bf16.msra.mxu0 %v15069_v53  ;;  %v7497_v14 = vpop.eup %7496  ;;  %v15076_v57 = vpack.c.bf16 %v12812_v8, %v12805_v47  ;;  %v15080_v47 = vld [vmem:[#allocation96_spill] sm:$0xff] }
 0xe5f   : > { %5389 = vmatprep.subr.bf16.mxu0 %v5358_v45  ;;  %v5321_v11 = vadd.f32 %v7467_v29, %v5320_v20  ;;  %v5374_v50 = vpack.c.bf16 %v7497_v14, %v7495_v23  ;;  %v5461_v8 = vrot.slane %v15080_v47, 2 }
 0xe60   : > { %v5436_v60 = vpop.trf.xlu1 }
 0xe61   : > { %v5322_v3 = vadd.f32 %v7469_v34, %v5321_v11 }
 0xe62   : > { %5390 = vmatpush1.bf16.msra.mxu0 %v15070_v19 }
 0xe63   : > { %5391 = vmatprep.subr.bf16.mxu0 %v5360_v42  ;;  %v5323_v52 = vadd.f32 %v7471_v54, %v5322_v3 }
 0xe64   : > { %v5437_v28 = vpop.trf.xlu1 }
 0xe65   : > { %v5324_v25 = vadd.f32 %v7473_v30, %v5323_v52 }
 0xe66   : > { %5392 = vmatpush1.bf16.msra.mxu0 %v15072_v24 }
 0xe67   : > { %5393 = vmatprep.subr.bf16.mxu0 %v5362_v40  ;;  %v5325_v15 = vadd.f32 %v7475_v1, %v5324_v25  ;;  %v15079_v40 = vld [vmem:[#allocation94_spill] sm:$0xff] }
 0xe68   : > { %v5438_v49 = vpop.trf.xlu1 }
 0xe69   : > { %v5326_v29 = vadd.f32 %v7477_v59, %v5325_v15  ;;  %v5460_v59 = vrot.slane %v15079_v40, 2 }
 0xe6a   : > { %5394 = vmatpush1.bf16.msra.mxu0 %v15073_v62 }
 0xe6b   : > { %5395 = vmatprep.subr.bf16.mxu0 %v5364_v12  ;;  %v5327_v45 = vadd.f32 %v7479_v35, %v5326_v29  ;;  %v15082_v35 = vld [vmem:[#allocation23_spill] sm:$0xff]  ;;  %v5511_v9 = vsel %vm561_vm1, %v5460_v59, 0 }
 0xe6c   : > { %v12987_v32 = vpack.c.bf16 %v15082_v35, %v15082_v35  ;;  %v5439_v12 = vpop.trf.xlu1 }
 0xe6d   : > { %v5328_v6 = vadd.f32 %v7481_v44, %v5327_v45 }
 0xe6e   : > { %5396 = vmatpush1.bf16.msra.mxu0 %v15074_v55  ;;  %15083 = vst [vmem:[#allocation101_spill] sm:$0xff] %v12987_v32 }
 0xe6f   : > { %5397 = vmatprep.subr.bf16.mxu0 %v5366_v5  ;;  %v5329_v34 = vadd.f32 %v7483_v36, %v5328_v6  ;;  %v5452_v5 = vpop.trf.xlu0 }
 0xe70   : > { %v5440_v44 = vpop.trf.xlu1 }
 0xe71   : > { %v5330_v54 = vadd.f32 %v7485_v10, %v5329_v34 }
 0xe72   : > { %5398 = vmatpush1.bf16.msra.mxu0 %v15075_v38 }
 0xe73   : > { %5399 = vmatprep.subr.bf16.mxu0 %v5368_v21  ;;  %v5331_v42 = vadd.f32 %v7487_v0, %v5330_v54  ;;  %v5453_v10 = vpop.trf.xlu0  ;;  %v5300_v21 = vrot.slane %v12954_v39, 4 }
 0xe74   : > { %v5441_v36 = vpop.trf.xlu1 }
 0xe75   : > { %v5332_v56 = vadd.f32 %v7489_v63, %v5331_v42 }
 0xe76   : > { %5400 = vmatpush1.bf16.msra.mxu0 %v15076_v57 }
 0xe77   : > { %5401 = vmatprep.subr.bf16.mxu0 %v5370_v51  ;;  %v5333_v30 = vadd.f32 %v7491_v13, %v5332_v56  ;;  %v5454_v46 = vpop.trf.xlu0  ;;  %v5301_v13 = vadd.f32 %v5300_v21, %v12954_v39 }
 0xe79   : > { %v5334_v18 = vadd.f32 %v7493_v31, %v5333_v30  ;;  %v5302_v37 = vrot.slane %v5301_v13, 2 }
 0xe7a   : > { %5402 = vmatpush1.bf16.msra.mxu0 %v15077_v17 }
 0xe7b   : > { %5403 = vmatprep.subr.bf16.mxu0 %v5372_v58  ;;  %v5335_v1 = vadd.f32 %v7495_v23, %v5334_v18  ;;  %v5455_v0 = vpop.trf.xlu0  ;;  %v5303_v31 = vadd.f32 %v5302_v37, %v5301_v13 }
 0xe7d   : > { %v5336_v26 = vadd.f32 %v7497_v14, %v5335_v1  ;;  %v5304_v23 = vrot.slane %v5303_v31, 1 }
 0xe7e   : > { %5404 = vmatpush1.bf16.msra.mxu0 %v15078_v61 }
 0xe7f   : > { %5405 = vmatprep.subr.bf16.mxu0 %v5374_v50  ;;  %v5456_v48 = vpop.trf.xlu0  ;;  %v5337_v63 = vrot.slane %v5336_v26, 4  ;;  %v5305_v58 = vadd.f32 %v5304_v23, %v5303_v31 }
 0xe81   : > { %v5338_v43 = vadd.f32 %v5337_v63, %v5336_v26  ;;  %7498 = vrcp.f32 %v5305_v58 }
 0xe82   : > { %5406 = vmatpush1.bf16.msra.mxu0 %v15081_v33 }
 0xe83   : > { %6492 = vmatprep.subr.msk.bf16.mxu0 %vm561_vm1, %v5461_v8  ;;  %v5457_v41 = vpop.trf.xlu0  ;;  %v5339_v51 = vrot.slane %v5338_v43, 2 }
 0xe85   : > { %5408 = vmatmul.mubr.bf16.vlgmr.msra.gmra.mrb[228].mxu0 %v12987_v32  ;;  %v5340_v53 = vadd.f32 %v5339_v51, %v5338_v43 }
 0xe86   : > { %5517 = vmatpush1.bf16.msra.mxu0 %v5511_v9  ;;  %5548 = vmatprep.mubr.bf16.mxu0 %v15084_v16 }
 0xe87   : > { %v5341_v20 = vrot.slane %v5340_v53, 1 }
 0xe89   : > { %v5342_v14 = vadd.f32 %v5341_v20, %v5340_v53 }
 0xe8b   : > { %7500 = vrcp.f32 %v5342_v14  ;;  %v7499_v11 = vpop.eup %7498 }
 0xe8d   : > { %6493 = vmatmul.mubr.msk.bf16.vlgmr.msra.gmra.mrb[232].mxu0 %vm512_vm2, %v5434_v4 }
 0xe8e   : > { %5558 = vmatprep.mubr.bf16.mxu0 %v15084_v16 }
 0xe95   : > { %6494 = vmatmul.mubr.msk.bf16.gmra.mrb[236].mxu0 %vm512_vm2, %v5435_v22  ;;  %v7501_v19 = vpop.eup %7500 }
 0xe96   : > { %5568 = vmatprep.mubr.bf16.mxu0 %v15084_v16 }
 0xe9d   : > { %6495 = vmatmul.mubr.msk.bf16.gmra.mrb[240].mxu0 %vm512_vm2, %v5436_v60 }
 0xe9e   : > { %5578 = vmatprep.mubr.bf16.mxu0 %v15084_v16 }
 0xea5   : > { %6496 = vmatmul.mubr.msk.bf16.gmra.mrb[244].mxu0 %vm512_vm2, %v5437_v28 }
 0xea6   : > { %5588 = vmatprep.mubr.bf16.mxu0 %v15084_v16 }
 0xead   : > { %6497 = vmatmul.mubr.msk.bf16.gmra.mrb[248].mxu0 %vm512_vm2, %v5438_v49 }
 0xeae   : > { %5598 = vmatprep.mubr.bf16.mxu0 %v15084_v16 }
 0xeb5   : > { %6498 = vmatmul.mubr.msk.bf16.gmra.mrb[252].mxu0 %vm512_vm2, %v5439_v12 }
 0xeb6   : > { %5608 = vmatprep.mubr.bf16.mxu0 %v15084_v16 }
 0xebd   : > { %6499 = vmatmul.mubr.msk.bf16.gmra.mrb[0].mxu0 %vm512_vm2, %v5440_v44 }
 0xebe   : > { %5618 = vmatprep.mubr.bf16.mxu0 %v15084_v16 }
 0xec5   : > { %6500 = vmatmul.mubr.msk.bf16.gmra.mrb[4].mxu0 %vm512_vm2, %v5441_v36 }
 0xec6   : > { %5628 = vmatprep.mubr.bf16.mxu0 %v15084_v16 }
 0xecd   : > { %6501 = vmatmul.mubr.msk.bf16.gmra.mrb[8].mxu0 %vm512_vm2, %v5450_v2 }
 0xece   : > { %5638 = vmatprep.mubr.bf16.mxu0 %v15084_v16 }
 0xed5   : > { %6502 = vmatmul.mubr.msk.bf16.gmra.mrb[12].mxu0 %vm512_vm2, %v5451_v27 }
 0xed6   : > { %5648 = vmatprep.mubr.bf16.mxu0 %v15084_v16 }
 0xedd   : > { %6503 = vmatmul.mubr.msk.bf16.gmra.mrb[16].mxu0 %vm512_vm2, %v5452_v5 }
 0xede   : > { %5658 = vmatprep.mubr.bf16.mxu0 %v15084_v16 }
 0xee5   : > { %6504 = vmatmul.mubr.msk.bf16.gmra.mrb[20].mxu0 %vm512_vm2, %v5453_v10 }
 0xee6   : > { %5668 = vmatprep.mubr.bf16.mxu0 %v15084_v16 }
 0xeed   : > { %6505 = vmatmul.mubr.msk.bf16.gmra.mrb[24].mxu0 %vm512_vm2, %v5454_v46 }
 0xeee   : > { %5678 = vmatprep.mubr.bf16.mxu0 %v15084_v16 }
 0xef5   : > { %6506 = vmatmul.mubr.msk.bf16.gmra.mrb[28].mxu0 %vm512_vm2, %v5455_v0 }
 0xef6   : > { %5688 = vmatprep.mubr.bf16.mxu0 %v15084_v16 }
 0xefd   : > { %6507 = vmatmul.mubr.msk.bf16.gmra.mrb[32].mxu0 %vm512_vm2, %v5456_v48 }
 0xefe   : > { %5698 = vmatprep.mubr.bf16.mxu0 %v15084_v16 }
 0xf05   : > { %6508 = vmatmul.mubr.msk.bf16.gmra.mrb[36].mxu0 %vm512_vm2, %v5457_v41 }
 0xf58   : > { %v5409_v50 = vpop.f32.mrb[228].mxu0 }
 0xf59   : > { %v13026_v3 = vmul.f32 %v7499_v11, %v5409_v50  ;;  %v5411_v52 = vpop.f32.mrb[229].mxu0 }
 0xf5a   : > { %v13028_v7 = vmul.f32 %v7501_v19, %v5411_v52  ;;  %v5413_v39 = vpop.f32.mrb[230].mxu0 }
 0xf5b   : > { %15085 = vst [vmem:[#allocation103_spill] sm:$0xff] %v13026_v3  ;;  %v5414_v24 = vpop.f32.mrb[231].mxu0 }
 0xf5c   : > { %15086 = vst [vmem:[#allocation106_spill] sm:$0xff] %v13028_v7 }
 0xf60   : > { %v13030_v25 = vpop.f32.mrb[232].mxu0 }
 0xf61   : > { %v13032_v15 = vpop.f32.mrb[233].mxu0 }
 0xf62   : > { %v13034_v62 = vpop.f32.mrb[234].mxu0 }
 0xf63   : > { %v13036_v29 = vpop.f32.mrb[235].mxu0 }
 0xf68   : > { %v13038_v45 = vpop.f32.mrb[236].mxu0 }
 0xf69   : > { %v5709_v55 = vmax.f32 %v13030_v25, %v13038_v45  ;;  %v13042_v6 = vpop.f32.mrb[237].mxu0 }
 0xf6a   : > { %v5746_v34 = vmax.f32 %v13032_v15, %v13042_v6  ;;  %v13046_v38 = vpop.f32.mrb[238].mxu0 }
 0xf6b   : > { %v5710_v54 = vmax.f32 %v13034_v62, %v13046_v38  ;;  %v13050_v42 = vpop.f32.mrb[239].mxu0 }
 0xf6c   : > { %v5747_v57 = vmax.f32 %v13036_v29, %v13050_v42 }
 0xf70   : > { %v13054_v56 = vpop.f32.mrb[240].mxu0 }
 0xf71   : > { %v5711_v30 = vmax.f32 %v5709_v55, %v13054_v56  ;;  %v13057_v17 = vpop.f32.mrb[241].mxu0 }
 0xf72   : > { %v5748_v18 = vmax.f32 %v5746_v34, %v13057_v17  ;;  %v13060_v1 = vpop.f32.mrb[242].mxu0 }
 0xf73   : > { %v5712_v61 = vmax.f32 %v5710_v54, %v13060_v1  ;;  %v13063_v26 = vpop.f32.mrb[243].mxu0 }
 0xf74   : > { %v5749_v40 = vmax.f32 %v5747_v57, %v13063_v26 }
 0xf78   : > { %v13066_v59 = vpop.f32.mrb[244].mxu0 }
 0xf79   : > { %v5713_v47 = vmax.f32 %v5711_v30, %v13066_v59  ;;  %v13069_v8 = vpop.f32.mrb[245].mxu0 }
 0xf7a   : > { %v5750_v33 = vmax.f32 %v5748_v18, %v13069_v8  ;;  %v13072_v35 = vpop.f32.mrb[246].mxu0 }
 0xf7b   : > { %v5714_v9 = vmax.f32 %v5712_v61, %v13072_v35  ;;  %v13075_v4 = vpop.f32.mrb[247].mxu0 }
 0xf7c   : > { %v5751_v22 = vmax.f32 %v5749_v40, %v13075_v4 }
 0xf80   : > { %v13078_v60 = vpop.f32.mrb[248].mxu0 }
 0xf81   : > { %v5715_v28 = vmax.f32 %v5713_v47, %v13078_v60  ;;  %v13081_v49 = vpop.f32.mrb[249].mxu0 }
 0xf82   : > { %v5752_v12 = vmax.f32 %v5750_v33, %v13081_v49  ;;  %v13084_v44 = vpop.f32.mrb[250].mxu0 }
 0xf83   : > { %v5716_v36 = vmax.f32 %v5714_v9, %v13084_v44  ;;  %v13087_v2 = vpop.f32.mrb[251].mxu0 }
 0xf84   : > { %v5753_v27 = vmax.f32 %v5751_v22, %v13087_v2 }
 0xf88   : > { %v13090_v5 = vpop.f32.mrb[252].mxu0 }
 0xf89   : > { %v5717_v10 = vmax.f32 %v5715_v28, %v13090_v5  ;;  %v13093_v46 = vpop.f32.mrb[253].mxu0 }
 0xf8a   : > { %v5754_v0 = vmax.f32 %v5752_v12, %v13093_v46  ;;  %v13096_v48 = vpop.f32.mrb[254].mxu0 }
 0xf8b   : > { %v5718_v41 = vmax.f32 %v5716_v36, %v13096_v48  ;;  %v13099_v21 = vpop.f32.mrb[255].mxu0 }
 0xf8c   : > { %15087 = vst [vmem:[#allocation10_spill] sm:$0xff] %v13099_v21  ;;  %v5755_v63 = vmax.f32 %v5753_v27, %v13099_v21 }
 0xf90   : > { %v13102_v13 = vpop.f32.mrb[0].mxu0 }
 0xf91   : > { %v5719_v43 = vmax.f32 %v5717_v10, %v13102_v13  ;;  %v13105_v37 = vpop.f32.mrb[1].mxu0 }
 0xf92   : > { %15088 = vst [vmem:[#allocation35_spill] sm:$0xff] %v13105_v37  ;;  %v5756_v51 = vmax.f32 %v5754_v0, %v13105_v37  ;;  %v13108_v31 = vpop.f32.mrb[2].mxu0 }
 0xf93   : > { %v5720_v53 = vmax.f32 %v5718_v41, %v13108_v31  ;;  %v13111_v23 = vpop.f32.mrb[3].mxu0 }
 0xf94   : > { %15089 = vst [vmem:[#allocation26_spill] sm:$0xff] %v13111_v23  ;;  %v5757_v20 = vmax.f32 %v5755_v63, %v13111_v23 }
 0xf98   : > { %v13114_v58 = vpop.f32.mrb[4].mxu0 }
 0xf99   : > { %v5721_v14 = vmax.f32 %v5719_v43, %v13114_v58  ;;  %v13117_v11 = vpop.f32.mrb[5].mxu0 }
 0xf9a   : > { %15090 = vst [vmem:[#allocation30_spill] sm:$0xff] %v13117_v11  ;;  %v5758_v50 = vmax.f32 %v5756_v51, %v13117_v11  ;;  %v13120_v19 = vpop.f32.mrb[6].mxu0 }
 0xf9b   : > { %v5722_v52 = vmax.f32 %v5720_v53, %v13120_v19  ;;  %v13123_v39 = vpop.f32.mrb[7].mxu0 }
 0xf9c   : > { %15091 = vst [vmem:[#allocation37_spill] sm:$0xff] %v13123_v39  ;;  %v5759_v24 = vmax.f32 %v5757_v20, %v13123_v39 }
 0xfa0   : > { %v13126_v55 = vpop.f32.mrb[8].mxu0 }
 0xfa1   : > { %v5723_v34 = vmax.f32 %v5721_v14, %v13126_v55  ;;  %v13129_v54 = vpop.f32.mrb[9].mxu0 }
 0xfa2   : > { %15092 = vst [vmem:[#allocation41_spill] sm:$0xff] %v13129_v54  ;;  %v5760_v57 = vmax.f32 %v5758_v50, %v13129_v54  ;;  %v13132_v30 = vpop.f32.mrb[10].mxu0 }
 0xfa3   : > { %v5724_v18 = vmax.f32 %v5722_v52, %v13132_v30  ;;  %v13135_v61 = vpop.f32.mrb[11].mxu0 }
 0xfa4   : > { %15093 = vst [vmem:[#allocation27_spill] sm:$0xff] %v13135_v61  ;;  %v5761_v40 = vmax.f32 %v5759_v24, %v13135_v61 }
 0xfa8   : > { %v13138_v47 = vpop.f32.mrb[12].mxu0 }
 0xfa9   : > { %v5725_v33 = vmax.f32 %v5723_v34, %v13138_v47  ;;  %v13141_v9 = vpop.f32.mrb[13].mxu0 }
 0xfaa   : > { %15094 = vst [vmem:[#allocation53_spill] sm:$0xff] %v13141_v9  ;;  %v5762_v22 = vmax.f32 %v5760_v57, %v13141_v9  ;;  %v13144_v28 = vpop.f32.mrb[14].mxu0 }
 0xfab   : > { %v5726_v12 = vmax.f32 %v5724_v18, %v13144_v28  ;;  %v13147_v36 = vpop.f32.mrb[15].mxu0 }
 0xfac   : > { %15095 = vst [vmem:[#allocation52_spill] sm:$0xff] %v13147_v36  ;;  %v5763_v27 = vmax.f32 %v5761_v40, %v13147_v36 }
 0xfb0   : > { %v13150_v10 = vpop.f32.mrb[16].mxu0 }
 0xfb1   : > { %v5727_v0 = vmax.f32 %v5725_v33, %v13150_v10  ;;  %v13153_v41 = vpop.f32.mrb[17].mxu0 }
 0xfb2   : > { %15096 = vst [vmem:[#allocation44_spill] sm:$0xff] %v13153_v41  ;;  %v5764_v63 = vmax.f32 %v5762_v22, %v13153_v41  ;;  %v13156_v43 = vpop.f32.mrb[18].mxu0 }
 0xfb3   : > { %v5728_v51 = vmax.f32 %v5726_v12, %v13156_v43  ;;  %v13159_v53 = vpop.f32.mrb[19].mxu0 }
 0xfb4   : > { %15097 = vst [vmem:[#allocation46_spill] sm:$0xff] %v13159_v53  ;;  %v5765_v20 = vmax.f32 %v5763_v27, %v13159_v53 }
 0xfb8   : > { %v13162_v14 = vpop.f32.mrb[20].mxu0 }
 0xfb9   : > { %v5729_v50 = vmax.f32 %v5727_v0, %v13162_v14  ;;  %v13165_v52 = vpop.f32.mrb[21].mxu0 }
 0xfba   : > { %15098 = vst [vmem:[#allocation48_spill] sm:$0xff] %v13165_v52  ;;  %v5766_v24 = vmax.f32 %v5764_v63, %v13165_v52  ;;  %v13168_v34 = vpop.f32.mrb[22].mxu0 }
 0xfbb   : > { %v5730_v57 = vmax.f32 %v5728_v51, %v13168_v34  ;;  %v13171_v18 = vpop.f32.mrb[23].mxu0 }
 0xfbc   : > { %15099 = vst [vmem:[#allocation51_spill] sm:$0xff] %v13171_v18  ;;  %v5767_v40 = vmax.f32 %v5765_v20, %v13171_v18 }
 0xfc0   : > { %v13174_v33 = vpop.f32.mrb[24].mxu0 }
 0xfc1   : > { %v5731_v22 = vmax.f32 %v5729_v50, %v13174_v33  ;;  %v13177_v12 = vpop.f32.mrb[25].mxu0 }
 0xfc2   : > { %15100 = vst [vmem:[#allocation55_spill] sm:$0xff] %v13177_v12  ;;  %v5768_v27 = vmax.f32 %v5766_v24, %v13177_v12  ;;  %v13180_v0 = vpop.f32.mrb[26].mxu0 }
 0xfc3   : > { %v5732_v63 = vmax.f32 %v5730_v57, %v13180_v0  ;;  %v13183_v7 = vpop.f32.mrb[27].mxu0 }
 0xfc4   : > { %15101 = vst [vmem:[#allocation56_spill] sm:$0xff] %v13183_v7  ;;  %v5769_v51 = vmax.f32 %v5767_v40, %v13183_v7 }
 0xfc8   : > { %v13186_v3 = vpop.f32.mrb[28].mxu0 }
 0xfc9   : > { %v5733_v20 = vmax.f32 %v5731_v22, %v13186_v3  ;;  %v13189_v16 = vpop.f32.mrb[29].mxu0 }
 0xfca   : > { %15102 = vst [vmem:[#allocation50_spill] sm:$0xff] %v13189_v16  ;;  %v5770_v50 = vmax.f32 %v5768_v27, %v13189_v16  ;;  %v13192_v32 = vpop.f32.mrb[30].mxu0 }
 0xfcb   : > { %v5734_v24 = vmax.f32 %v5732_v63, %v13192_v32  ;;  %v13195_v12 = vpop.f32.mrb[31].mxu0 }
 0xfcc   : > { %15103 = vst [vmem:[#allocation54_spill] sm:$0xff] %v13195_v12  ;;  %v5771_v57 = vmax.f32 %v5769_v51, %v13195_v12 }
 0xfd0   : > { %v13198_v18 = vpop.f32.mrb[32].mxu0 }
 0xfd1   : > { %v5735_v40 = vmax.f32 %v5733_v20, %v13198_v18  ;;  %v13201_v7 = vpop.f32.mrb[33].mxu0 }
 0xfd2   : > { %15104 = vst [vmem:[#allocation57_spill] sm:$0xff] %v13201_v7  ;;  %v5772_v22 = vmax.f32 %v5770_v50, %v13201_v7  ;;  %v13204_v52 = vpop.f32.mrb[34].mxu0 }
 0xfd3   : > { %v5736_v27 = vmax.f32 %v5734_v24, %v13204_v52  ;;  %v13207_v16 = vpop.f32.mrb[35].mxu0 }
 0xfd4   : > { %15105 = vst [vmem:[#allocation59_spill] sm:$0xff] %v13207_v16  ;;  %v5773_v63 = vmax.f32 %v5771_v57, %v13207_v16 }
 0xfd8   : > { %v13210_v53 = vpop.f32.mrb[36].mxu0 }
 0xfd9   : > { %v5737_v51 = vmax.f32 %v5735_v40, %v13210_v53  ;;  %v13213_v12 = vpop.f32.mrb[37].mxu0 }
 0xfda   : > { %15106 = vst [vmem:[#allocation102_spill] sm:$0xff] %v13213_v12  ;;  %v5774_v20 = vmax.f32 %v5772_v22, %v13213_v12  ;;  %v13216_v41 = vpop.f32.mrb[38].mxu0 }
 0xfdb   : > { %v5738_v50 = vmax.f32 %v5736_v27, %v13216_v41  ;;  %v13219_v7 = vpop.f32.mrb[39].mxu0 }
 0xfdc   : > { %15107 = vst [vmem:[#allocation104_spill] sm:$0xff] %v13219_v7  ;;  %v5775_v24 = vmax.f32 %v5773_v63, %v13219_v7 }
 0xfdd   : > { %v5739_v36 = vmax.f32 %v5737_v51, %v5738_v50 }
 0xfde   : > { %v5776_v9 = vmax.f32 %v5774_v20, %v5775_v24 }
 0xfdf   : > { %v5740_v61 = vrot.slane %v5739_v36, 4 }
 0xfe0   : > { %v5777_v57 = vrot.slane %v5776_v9, 4 }
 0xfe1   : > { %v5741_v16 = vmax.f32 %v5739_v36, %v5740_v61 }
 0xfe2   : > { %v5778_v54 = vmax.f32 %v5776_v9, %v5777_v57 }
 0xfe3   : > { %v5742_v39 = vrot.slane %v5741_v16, 2 }
 0xfe4   : > { %v5779_v40 = vrot.slane %v5778_v54, 2 }
 0xfe5   : > { %v5743_v11 = vmax.f32 %v5741_v16, %v5742_v39  ;;  %v15127_v39 = vld [vmem:[#allocation102_spill] sm:$0xff] }
 0xfe6   : > { %v5780_v23 = vmax.f32 %v5778_v54, %v5779_v40 }
 0xfe7   : > { %v5744_v37 = vrot.slane %v5743_v11, 1 }
 0xfe8   : > { %v5781_v22 = vrot.slane %v5780_v23, 1 }
 0xfe9   : > { %v13222_v12 = vmax.f32 %v5743_v11, %v5744_v37 }
 0xfea   : > { %v13224_v21 = vmax.f32 %v5780_v23, %v5781_v22 }
 0xfeb   : > { %v5783_v27 = vsub.f32 %v13030_v25, %v13222_v12  ;;  %v5785_v63 = vsub.f32 %v13034_v62, %v13222_v12  ;;  %v5787_v61 = vsub.f32 %v13038_v45, %v13222_v12  ;;  %v5789_v9 = vsub.f32 %v13046_v38, %v13222_v12 }
 0xfec   : > { %v5791_v16 = vsub.f32 %v13054_v56, %v13222_v12  ;;  %v5793_v37 = vsub.f32 %v13060_v1, %v13222_v12  ;;  %v5795_v23 = vsub.f32 %v13066_v59, %v13222_v12  ;;  %v5797_v25 = vsub.f32 %v13072_v35, %v13222_v12 }
 0xfed   : > { %v5799_v62 = vsub.f32 %v13078_v60, %v13222_v12  ;;  %v5801_v45 = vsub.f32 %v13084_v44, %v13222_v12  ;;  %v5803_v38 = vsub.f32 %v13090_v5, %v13222_v12  ;;  %v5805_v56 = vsub.f32 %v13096_v48, %v13222_v12 }
 0xfee   : > { %v5807_v1 = vsub.f32 %v13102_v13, %v13222_v12  ;;  %v5809_v59 = vsub.f32 %v13108_v31, %v13222_v12  ;;  %v5811_v35 = vsub.f32 %v13114_v58, %v13222_v12  ;;  %v5813_v60 = vsub.f32 %v13120_v19, %v13222_v12 }
 0xfef   : > { %v5815_v44 = vsub.f32 %v13126_v55, %v13222_v12  ;;  %v5817_v5 = vsub.f32 %v13132_v30, %v13222_v12  ;;  %v5819_v48 = vsub.f32 %v13138_v47, %v13222_v12  ;;  %v5821_v13 = vsub.f32 %v13144_v28, %v13222_v12 }
 0xff0   : > { %v5823_v31 = vsub.f32 %v13150_v10, %v13222_v12  ;;  %v5825_v58 = vsub.f32 %v13156_v43, %v13222_v12  ;;  %v5827_v11 = vsub.f32 %v13162_v14, %v13222_v12  ;;  %v5829_v19 = vsub.f32 %v13168_v34, %v13222_v12 }
 0xff1   : > { %v5847_v43 = vmul.f32 1.442695, %v5783_v27  ;;  %v5851_v14 = vmul.f32 1.442695, %v5785_v63  ;;  %v5855_v34 = vmul.f32 1.442695, %v5787_v61 }
 0xff2   : > { %v5859_v20 = vmul.f32 1.442695, %v5789_v9  ;;  %v5863_v24 = vmul.f32 1.442695, %v5791_v16  ;;  %v5867_v57 = vmul.f32 1.442695, %v5793_v37 }
 0xff3   : > { %7502 = vpow2.f32 %v5847_v43  ;;  %v5871_v40 = vmul.f32 1.442695, %v5795_v23  ;;  %v5875_v22 = vmul.f32 1.442695, %v5797_v25  ;;  %v5879_v36 = vmul.f32 1.442695, %v5799_v62 }
 0xff4   : > { %7504 = vpow2.f32 %v5851_v14  ;;  %v5883_v10 = vmul.f32 1.442695, %v5801_v45  ;;  %v5887_v27 = vmul.f32 1.442695, %v5803_v38  ;;  %v5891_v63 = vmul.f32 1.442695, %v5805_v56 }
 0xff5   : > { %7506 = vpow2.f32 %v5855_v34  ;;  %v5895_v61 = vmul.f32 1.442695, %v5807_v1  ;;  %v5899_v51 = vmul.f32 1.442695, %v5809_v59  ;;  %v5903_v9 = vmul.f32 1.442695, %v5811_v35 }
 0xff6   : > { %7508 = vpow2.f32 %v5859_v20  ;;  %v5907_v28 = vmul.f32 1.442695, %v5813_v60  ;;  %v5911_v50 = vmul.f32 1.442695, %v5815_v44  ;;  %v5915_v43 = vmul.f32 1.442695, %v5817_v5 }
 0xff7   : > { %7510 = vpow2.f32 %v5863_v24  ;;  %v5919_v16 = vmul.f32 1.442695, %v5819_v48  ;;  %v5923_v37 = vmul.f32 1.442695, %v5821_v13  ;;  %v5927_v14 = vmul.f32 1.442695, %v5823_v31 }
 0xff8   : > { %7512 = vpow2.f32 %v5867_v57  ;;  %v13294_v23 = vmul.f32 1.442695, %v5825_v58  ;;  %v13296_v25 = vmul.f32 1.442695, %v5827_v11  ;;  %v13298_v62 = vmul.f32 1.442695, %v5829_v19 }
 0xff9   : > { %7514 = vpow2.f32 %v5871_v40  ;;  %v15108_v31 = vld [vmem:[#allocation10_spill] sm:$0xff]  ;;  %v15114_v13 = vld [vmem:[#allocation27_spill] sm:$0xff]  ;;  %v15115_v48 = vld [vmem:[#allocation53_spill] sm:$0xff] }
 0xffa   : > { %7516 = vpow2.f32 %v5875_v22  ;;  %v15110_v34 = vld [vmem:[#allocation26_spill] sm:$0xff]  ;;  %v15112_v22 = vld [vmem:[#allocation37_spill] sm:$0xff]  ;;  %v15116_v40 = vld [vmem:[#allocation52_spill] sm:$0xff] }
 0xffb   : > { %7518 = vpow2.f32 %v5879_v36  ;;  %v15109_v36 = vld [vmem:[#allocation35_spill] sm:$0xff]  ;;  %v15111_v57 = vld [vmem:[#allocation30_spill] sm:$0xff]  ;;  %v15117_v60 = vld [vmem:[#allocation44_spill] sm:$0xff] }
 0xffc   : > { %7520 = vpow2.f32 %v5883_v10  ;;  %v15118_v35 = vld [vmem:[#allocation46_spill] sm:$0xff]  ;;  %v15119_v20 = vld [vmem:[#allocation48_spill] sm:$0xff]  ;;  %v15120_v56 = vld [vmem:[#allocation51_spill] sm:$0xff] }
 0xffd   : > { %v13308_v59 = vpop.eup %7502  ;;  %7522 = vpow2.f32 %v5887_v27  ;;  %v15121_v27 = vld [vmem:[#allocation55_spill] sm:$0xff]  ;;  %v15122_v45 = vld [vmem:[#allocation56_spill] sm:$0xff] }
 0xffe   : > { %v13316_v5 = vpop.eup %7504  ;;  %7524 = vpow2.f32 %v5891_v63  ;;  %v15113_v63 = vld [vmem:[#allocation41_spill] sm:$0xff] }
 0xfff   : > { %v13324_v11 = vpop.eup %7506  ;;  %7526 = vpow2.f32 %v5895_v61  ;;  %v5975_v19 = vadd.f32 %v13316_v5, %v13308_v59  ;;  %v15126_v61 = vld [vmem:[#allocation59_spill] sm:$0xff] }
0x1000   : > { %v13332_v24 = vpop.eup %7508  ;;  %7528 = vpow2.f32 %v5899_v51  ;;  %v15124_v51 = vld [vmem:[#allocation54_spill] sm:$0xff] }
0x1001   : > { %v13340_v58 = vpop.eup %7510  ;;  %7530 = vpow2.f32 %v5903_v9  ;;  %v5976_v10 = vadd.f32 %v13324_v11, %v5975_v19 }
0x1002   : > { %v13347_v44 = vpop.eup %7512  ;;  %7532 = vpow2.f32 %v5907_v28 }
0x1003   : > { %v13355_v1 = vpop.eup %7514  ;;  %7534 = vpow2.f32 %v5911_v50  ;;  %v5977_v19 = vadd.f32 %v13332_v24, %v5976_v10 }
0x1004   : > { %v13362_v38 = vpop.eup %7516  ;;  %7536 = vpow2.f32 %v5915_v43 }
0x1005   : > { %v13370_v30 = vpop.eup %7518  ;;  %7538 = vpow2.f32 %v5919_v16  ;;  %v5978_v10 = vadd.f32 %v13340_v58, %v5977_v19  ;;  %v15128_v19 = vsub.f32 %v13174_v33, %v13222_v12 }
0x1006   : > { %v13377_v55 = vpop.eup %7520  ;;  %7540 = vpow2.f32 %v5923_v37  ;;  %v15129_v37 = vsub.f32 %v13180_v0, %v13222_v12 }
0x1007   : > { %v13385_v47 = vpop.eup %7522  ;;  %7542 = vpow2.f32 %v5927_v14  ;;  %v5943_v28 = vmul.f32 1.442695, %v15128_v19  ;;  %v5979_v43 = vadd.f32 %v13347_v44, %v5978_v10  ;;  %v15130_v14 = vsub.f32 %v13186_v3, %v13222_v12 }
0x1008   : > { %v13391_v54 = vpop.eup %7524  ;;  %7544 = vpow2.f32 %v13294_v23  ;;  %v5947_v50 = vmul.f32 1.442695, %v15129_v37  ;;  %v15131_v23 = vsub.f32 %v13192_v32, %v13222_v12  ;;  %v15135_v32 = vsub.f32 %v13210_v53, %v13222_v12 }
0x1009   : > { %v13397_v9 = vpop.eup %7526  ;;  %7546 = vpow2.f32 %v13296_v25  ;;  %v5951_v16 = vmul.f32 1.442695, %v15130_v14  ;;  %v5980_v33 = vadd.f32 %v13355_v1, %v5979_v43  ;;  %v15132_v25 = vsub.f32 %v13198_v18, %v13222_v12 }
0x100a   : > { %v13404_v19 = vpop.eup %7528  ;;  %7548 = vpow2.f32 %v13298_v62  ;;  %v5955_v10 = vmul.f32 1.442695, %v15131_v23  ;;  %v15133_v43 = vsub.f32 %v13204_v52, %v13222_v12 }
0x100b   : > { %v13410_v0 = vpop.eup %7530  ;;  %7550 = vpow2.f32 %v5943_v28  ;;  %v5959_v37 = vmul.f32 1.442695, %v15132_v25  ;;  %v5981_v3 = vadd.f32 %v13362_v38, %v5980_v33  ;;  %v5967_v28 = vmul.f32 1.442695, %v15135_v32 }
0x100c   : > { %v13416_v14 = vpop.eup %7532  ;;  %7552 = vpow2.f32 %v5947_v50  ;;  %v5963_v62 = vmul.f32 1.442695, %v15133_v43  ;;  %v15136_v33 = vsub.f32 %v13216_v41, %v13222_v12  ;;  %v15139_v41 = vsub.f32 %v13042_v6, %v13224_v21 }
0x100d   : > { %v13421_v7 = vpop.eup %7534  ;;  %7554 = vpow2.f32 %v5951_v16  ;;  %v5982_v23 = vadd.f32 %v13370_v30, %v5981_v3  ;;  %v15137_v16 = vsub.f32 %v13032_v15, %v13224_v21  ;;  %v15138_v3 = vsub.f32 %v13036_v29, %v13224_v21 }
0x100e   : > { %15134 = vst [vmem:[#allocation11_spill] sm:$0xff] %v13421_v7  ;;  %v13427_v18 = vpop.eup %7536  ;;  %7556 = vpow2.f32 %v5955_v10  ;;  %v5971_v50 = vmul.f32 1.442695, %v15136_v33  ;;  %v5857_v12 = vmul.f32 1.442695, %v15139_v41  ;;  %v15140_v15 = vsub.f32 %v13050_v42, %v13224_v21 }
0x100f   : > { %v13432_v25 = vpop.eup %7538  ;;  %7558 = vpow2.f32 %v5959_v37  ;;  %v5983_v52 = vadd.f32 %v13377_v55, %v5982_v23  ;;  %v5849_v43 = vmul.f32 1.442695, %v15137_v16  ;;  %v5853_v10 = vmul.f32 1.442695, %v15138_v3 }
0x1010   : > { %v13438_v53 = vpop.eup %7540  ;;  %7560 = vpow2.f32 %v5963_v62  ;;  %v5861_v23 = vmul.f32 1.442695, %v15140_v15  ;;  %v15141_v62 = vsub.f32 %v13057_v17, %v13224_v21  ;;  %v15142_v29 = vsub.f32 %v13063_v26, %v13224_v21 }
0x1011   : > { %v13446_v32 = vpop.eup %7542  ;;  %7562 = vpow2.f32 %v5967_v28  ;;  %v5984_v37 = vadd.f32 %v13385_v47, %v5983_v52  ;;  %v15143_v28 = vsub.f32 %v13069_v8, %v13224_v21  ;;  %v15144_v52 = vsub.f32 %v13075_v4, %v13224_v21 }
0x1012   : > { %v5865_v33 = vmul.f32 1.442695, %v15141_v62  ;;  %v13455_v16 = vpop.eup %7544  ;;  %7564 = vpow2.f32 %v5971_v50  ;;  %v5869_v6 = vmul.f32 1.442695, %v15142_v29  ;;  %v15145_v50 = vsub.f32 %v13081_v49, %v13224_v21 }
0x1013   : > { %v5873_v3 = vmul.f32 1.442695, %v15143_v28  ;;  %v5877_v42 = vmul.f32 1.442695, %v15144_v52  ;;  %v13466_v41 = vpop.eup %7546  ;;  %v5985_v17 = vadd.f32 %v13391_v54, %v5984_v37  ;;  %7566 = vpow2.f32 %v5849_v43 }
0x1014   : > { %v5881_v15 = vmul.f32 1.442695, %v15145_v50  ;;  %v15146_v26 = vsub.f32 %v13087_v2, %v13224_v21  ;;  %v13475_v29 = vpop.eup %7548  ;;  %7568 = vpow2.f32 %v5853_v10 }
0x1015   : > { %v13483_v37 = vpop.eup %7550  ;;  %v5986_v49 = vadd.f32 %v13397_v9, %v5985_v17  ;;  %7570 = vpow2.f32 %v5857_v12 }
0x1016   : > { %v5885_v62 = vmul.f32 1.442695, %v15146_v26  ;;  %v13490_v28 = vpop.eup %7552  ;;  %7572 = vpow2.f32 %v5861_v23  ;;  %v15147_v23 = vsub.f32 %v13093_v46, %v13224_v21  ;;  %v15148_v26 = vsub.f32 %v15108_v31, %v13224_v21 }
0x1017   : > { %v13498_v17 = vpop.eup %7554  ;;  %v5987_v12 = vadd.f32 %v13404_v19, %v5986_v49  ;;  %7574 = vpow2.f32 %v5865_v33 }
0x1018   : > { %v13505_v2 = vpop.eup %7556  ;;  %7576 = vpow2.f32 %v5869_v6  ;;  %v5889_v10 = vmul.f32 1.442695, %v15147_v23  ;;  %v5893_v50 = vmul.f32 1.442695, %v15148_v26 }
0x1019   : > { %v13513_v49 = vpop.eup %7558  ;;  %v5988_v33 = vadd.f32 %v13410_v0, %v5987_v12  ;;  %7578 = vpow2.f32 %v5873_v3  ;;  %v15149_v3 = vsub.f32 %v15109_v36, %v13224_v21  ;;  %v15154_v36 = vsub.f32 %v15114_v13, %v13224_v21 }
0x101a   : > { %v13521_v43 = vpop.eup %7560  ;;  %7580 = vpow2.f32 %v5877_v42  ;;  %v15150_v42 = vsub.f32 %v15110_v34, %v13224_v21  ;;  %v15153_v34 = vsub.f32 %v15113_v63, %v13224_v21  ;;  %v15157_v13 = vsub.f32 %v15117_v60, %v13224_v21 }
0x101b   : > { %v13526_v52 = vpop.eup %7562  ;;  %v5989_v4 = vadd.f32 %v13416_v14, %v5988_v33  ;;  %7582 = vpow2.f32 %v5881_v15  ;;  %v5897_v46 = vmul.f32 1.442695, %v15149_v3  ;;  %v15151_v15 = vsub.f32 %v15111_v57, %v13224_v21 }
0x101c   : > { %v13534_v23 = vpop.eup %7564  ;;  %7584 = vpow2.f32 %v5885_v62  ;;  %v5901_v31 = vmul.f32 1.442695, %v15150_v42  ;;  %v15152_v62 = vsub.f32 %v15112_v22, %v13224_v21  ;;  %v5913_v42 = vmul.f32 1.442695, %v15153_v34 }
0x101d   : > { %v7567_v26 = vpop.eup %7566  ;;  %v5990_v6 = vadd.f32 %v13421_v7, %v5989_v4  ;;  %7586 = vpow2.f32 %v5889_v10  ;;  %v5905_v33 = vmul.f32 1.442695, %v15151_v15  ;;  %v15155_v22 = vsub.f32 %v15115_v48, %v13224_v21 }
0x101e   : > { %v7569_v3 = vpop.eup %7568  ;;  %7588 = vpow2.f32 %v5893_v50  ;;  %v5909_v12 = vmul.f32 1.442695, %v15152_v62  ;;  %v5917_v50 = vmul.f32 1.442695, %v15154_v36  ;;  %v5929_v36 = vmul.f32 1.442695, %v15157_v13 }
0x101f   : > { %v7571_v8 = vpop.eup %7570  ;;  %v5991_v4 = vadd.f32 %v13427_v18, %v5990_v6  ;;  %7590 = vpow2.f32 %v5897_v46  ;;  %v6012_v10 = vadd.f32 %v7569_v3, %v7567_v26  ;;  %v6050_v57 = vpack.c.bf16 %v7569_v3, %v7567_v26 }
0x1020   : > { %v7573_v15 = vpop.eup %7572  ;;  %7592 = vpow2.f32 %v5901_v31  ;;  %v5921_v62 = vmul.f32 1.442695, %v15155_v22  ;;  %v15156_v31 = vsub.f32 %v15116_v40, %v13224_v21  ;;  %v15158_v48 = vpack.c.bf16 %v13316_v5, %v13308_v59 }
0x1021   : > { %v7575_v7 = vpop.eup %7574  ;;  %v5992_v63 = vadd.f32 %v13432_v25, %v5991_v4  ;;  %7594 = vpow2.f32 %v5905_v33  ;;  %v6013_v34 = vadd.f32 %v7571_v8, %v6012_v10  ;;  %6087 = vmatprep.subr.bf16.mxu1 %v6050_v57  ;;  %v6052_v6 = vpack.c.bf16 %v7573_v15, %v7571_v8 }
0x1022   : > { %v7577_v46 = vpop.eup %7576  ;;  %7596 = vpow2.f32 %v5909_v12  ;;  %v5925_v26 = vmul.f32 1.442695, %v15156_v31  ;;  %6088 = vmatpush1.bf16.msra.mxu1 %v15158_v48  ;;  %v15159_v40 = vsub.f32 %v15118_v35, %v13224_v21  ;;  %v15160_v60 = vsub.f32 %v15119_v20, %v13224_v21  ;;  %v15165_v48 = vld [vmem:[#allocation50_spill] sm:$0xff] }
0x1023   : > { %v7579_v3 = vpop.eup %7578  ;;  %v5993_v33 = vadd.f32 %v13438_v53, %v5992_v63  ;;  %7598 = vpow2.f32 %v5913_v42  ;;  %v6014_v4 = vadd.f32 %v7573_v15, %v6013_v34  ;;  %6089 = vmatprep.subr.bf16.mxu1 %v6052_v6  ;;  %v6054_v8 = vpack.c.bf16 %v7577_v46, %v7575_v7 }
0x1024   : > { %v7581_v12 = vpop.eup %7580  ;;  %7600 = vpow2.f32 %v5917_v50  ;;  %v5933_v10 = vmul.f32 1.442695, %v15159_v40  ;;  %v5937_v57 = vmul.f32 1.442695, %v15160_v60  ;;  %v15161_v15 = vsub.f32 %v15120_v56, %v13224_v21 }
0x1025   : > { %v7583_v22 = vpop.eup %7582  ;;  %v5994_v59 = vadd.f32 %v13446_v32, %v5993_v33  ;;  %7602 = vpow2.f32 %v5921_v62  ;;  %v6015_v5 = vadd.f32 %v7575_v7, %v6014_v4  ;;  %v6056_v63 = vpack.c.bf16 %v7581_v12, %v7579_v3 }
0x1026   : > { %v7585_v42 = vpop.eup %7584  ;;  %7604 = vpow2.f32 %v5925_v26  ;;  %v5941_v50 = vmul.f32 1.442695, %v15161_v15  ;;  %v15162_v35 = vsub.f32 %v15121_v27, %v13224_v21  ;;  %v15163_v20 = vpack.c.bf16 %v13332_v24, %v13324_v11 }
0x1027   : > { %v7587_v6 = vpop.eup %7586  ;;  %v5995_v31 = vadd.f32 %v13455_v16, %v5994_v59  ;;  %7606 = vpow2.f32 %v5929_v36  ;;  %v6016_v7 = vadd.f32 %v7577_v46, %v6015_v5  ;;  %v6058_v62 = vpack.c.bf16 %v7585_v42, %v7583_v22 }
0x1028   : > { %v5945_v34 = vmul.f32 1.442695, %v15162_v35  ;;  %6090 = vmatpush1.bf16.msra.mxu1 %v15163_v20  ;;  %v7589_v26 = vpop.eup %7588  ;;  %7608 = vpow2.f32 %v5933_v10  ;;  %v15164_v56 = vsub.f32 %v15122_v45, %v13224_v21  ;;  %v15166_v27 = vsub.f32 %v15165_v48, %v13224_v21  ;;  %v15168_v10 = vld [vmem:[#allocation57_spill] sm:$0xff] }
0x1029   : > { %6091 = vmatprep.subr.bf16.mxu1 %v6054_v8  ;;  %v7591_v4 = vpop.eup %7590  ;;  %v5996_v11 = vadd.f32 %v13466_v41, %v5995_v31  ;;  %7610 = vpow2.f32 %v5937_v57  ;;  %v6017_v24 = vadd.f32 %v7579_v3, %v6016_v7  ;;  %v6060_v40 = vpack.c.bf16 %v7589_v26, %v7587_v6 }
0x102a   : > { %v5949_v13 = vmul.f32 1.442695, %v15164_v56  ;;  %v5953_v33 = vmul.f32 1.442695, %v15166_v27  ;;  %v7593_v36 = vpop.eup %7592  ;;  %7612 = vpow2.f32 %v5941_v50  ;;  %v15167_v46 = vsub.f32 %v15124_v51, %v13224_v21 }
0x102b   : > { %v15169_v45 = vsub.f32 %v15168_v10, %v13224_v21  ;;  %v15170_v59 = vpack.c.bf16 %v13347_v44, %v13340_v58  ;;  %v7595_v5 = vpop.eup %7594  ;;  %v5997_v15 = vadd.f32 %v13475_v29, %v5996_v11  ;;  %7614 = vpow2.f32 %v5945_v34 }
0x102c   : > { %v5957_v8 = vmul.f32 1.442695, %v15167_v46  ;;  %v6018_v3 = vadd.f32 %v7581_v12, %v6017_v24  ;;  %v6062_v57 = vpack.c.bf16 %v7593_v36, %v7591_v4  ;;  %v7597_v50 = vpop.eup %7596  ;;  %7616 = vpow2.f32 %v5949_v13  ;;  %v15173_v12 = vld [vmem:[#allocation104_spill] sm:$0xff] }
0x102d   : > { %v5961_v60 = vmul.f32 1.442695, %v15169_v45  ;;  %6092 = vmatpush1.bf16.msra.mxu1 %v15170_v59  ;;  %v15171_v51 = vsub.f32 %v15126_v61, %v13224_v21  ;;  %v15172_v20 = vsub.f32 %v15127_v39, %v13224_v21  ;;  %v7599_v7 = vpop.eup %7598  ;;  %v5998_v44 = vadd.f32 %v13483_v37, %v5997_v15 }
0x102e   : > { %6093 = vmatprep.subr.bf16.mxu1 %v6056_v63  ;;  %7618 = vpow2.f32 %v5953_v33  ;;  %v6019_v58 = vadd.f32 %v7583_v22, %v6018_v3  ;;  %v6064_v56 = vpack.c.bf16 %v7597_v50, %v7595_v5  ;;  %v7601_v34 = vpop.eup %7600  ;;  %v15174_v63 = vsub.f32 %v15173_v12, %v13224_v21 }
0x102f   : > { %v5965_v35 = vmul.f32 1.442695, %v15171_v51  ;;  %v5969_v31 = vmul.f32 1.442695, %v15172_v20  ;;  %7620 = vpow2.f32 %v5957_v8  ;;  %v15175_v61 = vpack.c.bf16 %v13362_v38, %v13355_v1  ;;  %v7603_v48 = vpop.eup %7602 }
0x1030   : > { %v5973_v13 = vmul.f32 1.442695, %v15174_v63  ;;  %v5999_v39 = vadd.f32 %v13490_v28, %v5998_v44  ;;  %7622 = vpow2.f32 %v5961_v60  ;;  %v6020_v27 = vadd.f32 %v7585_v42, %v6019_v58  ;;  %v7605_v33 = vpop.eup %7604 }
0x1031   : > { %6094 = vmatpush1.bf16.msra.mxu1 %v15175_v61  ;;  %v6066_v11 = vpack.c.bf16 %v7601_v34, %v7599_v7  ;;  %7624 = vpow2.f32 %v5965_v35  ;;  %v7607_v22 = vpop.eup %7606  ;;  %v6068_v21 = vpack.c.bf16 %v7605_v33, %v7603_v48  ;;  %v15176_v38 = vpack.c.bf16 %v13377_v55, %v13370_v30 }
0x1032   : > { %6095 = vmatprep.subr.bf16.mxu1 %v6058_v62  ;;  %v6000_v24 = vadd.f32 %v13498_v17, %v5999_v39  ;;  %7626 = vpow2.f32 %v5969_v31  ;;  %v6021_v46 = vadd.f32 %v7587_v6, %v6020_v27  ;;  %v7609_v8 = vpop.eup %7608  ;;  %v15177_v51 = vpack.c.bf16 %v13391_v54, %v13385_v47 }
0x1033   : > { %7628 = vpow2.f32 %v5973_v13  ;;  %v7611_v1 = vpop.eup %7610  ;;  %v6070_v62 = vpack.c.bf16 %v7609_v8, %v7607_v22  ;;  %v15179_v39 = vpack.c.bf16 %v13416_v14, %v13410_v0  ;;  %v15183_v0 = vpack.c.bf16 %v13455_v16, %v13446_v32 }
0x1034   : > { %v6001_v10 = vadd.f32 %v13505_v2, %v6000_v24  ;;  %v6022_v42 = vadd.f32 %v7589_v26, %v6021_v46  ;;  %v7613_v45 = vpop.eup %7612  ;;  %v15180_v24 = vld [vmem:[#allocation11_spill] sm:$0xff]  ;;  %v15186_v32 = vpack.c.bf16 %v13505_v2, %v13498_v17  ;;  %v15193_v2 = vld [vmem:[#allocation105_spill] sm:$0xff]  ;;  %v15194_v17 = vld [vmem:[#allocation28_spill] sm:$0xff] }
0x1035   : > { %6096 = vmatpush1.bf16.msra.mxu1 %v15176_v38  ;;  %v7615_v60 = vpop.eup %7614  ;;  %v6072_v3 = vpack.c.bf16 %v7613_v45, %v7611_v1  ;;  %v15191_v38 = vld [vmem:[#allocation39_spill] sm:$0xff] }
0x1036   : > { %6097 = vmatprep.subr.bf16.mxu1 %v6060_v40  ;;  %v6002_v59 = vadd.f32 %v13513_v49, %v6001_v10  ;;  %v6023_v15 = vadd.f32 %v7591_v4, %v6022_v42  ;;  %v7617_v6 = vpop.eup %7616  ;;  %v15178_v4 = vpack.c.bf16 %v13404_v19, %v13397_v9  ;;  %v15181_v9 = vpack.c.bf16 %v13427_v18, %v15180_v24 }
0x1037   : > { %v6074_v20 = vpack.c.bf16 %v7617_v6, %v7615_v60  ;;  %v15184_v18 = vpack.c.bf16 %v13475_v29, %v13466_v41  ;;  %v15187_v41 = vpack.c.bf16 %v13521_v43, %v13513_v49  ;;  %v15195_v10 = vpack.c.bf16 %v15193_v2, %v15194_v17 }
0x1038   : > { %v7619_v35 = vpop.eup %7618  ;;  %v6003_v55 = vadd.f32 %v13521_v43, %v6002_v59  ;;  %v6024_v30 = vadd.f32 %v7593_v36, %v6023_v15  ;;  %v15196_v42 = vmov 0  }
0x1039   : > { %6098 = vmatpush1.bf16.msra.mxu1 %v15177_v51  ;;  %v7621_v26 = vpop.eup %7620 }
0x103a   : > { %6099 = vmatprep.subr.bf16.mxu1 %v6062_v57  ;;  %v7623_v40 = vpop.eup %7622  ;;  %v6004_v31 = vadd.f32 %v13526_v52, %v6003_v55  ;;  %v6025_v44 = vadd.f32 %v7595_v5, %v6024_v30  ;;  %v6076_v58 = vpack.c.bf16 %v7621_v26, %v7619_v35 }
0x103b   : > { %v7625_v12 = vpop.eup %7624 }
0x103c   : > { %v7627_v63 = vpop.eup %7626  ;;  %v6005_v54 = vadd.f32 %v13534_v23, %v6004_v31  ;;  %v6026_v47 = vadd.f32 %v7597_v50, %v6025_v44  ;;  %v6078_v13 = vpack.c.bf16 %v7625_v12, %v7623_v40  ;;  %v15182_v50 = vpack.c.bf16 %v13438_v53, %v13432_v25 }
0x103d   : > { %6100 = vmatpush1.bf16.msra.mxu1 %v15178_v4  ;;  %v7629_v36 = vpop.eup %7628  ;;  %v15185_v25 = vpack.c.bf16 %v13490_v28, %v13483_v37  ;;  %v15188_v37 = vpack.c.bf16 %v13534_v23, %v13526_v52  ;;  %v15189_v28 = vld [vmem:[#allocation101_spill] sm:$0xff]  ;;  %v15197_v4 = vld [vmem:[#allocation103_spill] sm:$0xff] }
0x103e   : > { %6101 = vmatprep.subr.bf16.mxu1 %v6064_v56  ;;  %v6027_v57 = vadd.f32 %v7599_v7, %v6026_v47  ;;  %v6080_v61 = vpack.c.bf16 %v7629_v36, %v7627_v63  ;;  %v6006_v43 = vrot.slane %v6005_v54, 4 }
0x1040   : > { %v6028_v5 = vadd.f32 %v7601_v34, %v6027_v57  ;;  %v15200_v57 = vld [vmem:[#allocation100_spill] sm:$0xff] }
0x1041   : > { %6102 = vmatpush1.bf16.msra.mxu1 %v15179_v39  ;;  %v6576_v39 = vld [vmem:[%s13739_s3] sm:$0xff]  }
0x1042   : > { %6103 = vmatprep.subr.bf16.mxu1 %v6066_v11  ;;  %v6029_v27 = vadd.f32 %v7603_v48, %v6028_v5  ;;  %v6577_v5 = vld [vmem:[%s13739_s3 + $0x8] sm:$0xff]  }
0x1044   : > { %v6030_v19 = vadd.f32 %v7605_v33, %v6029_v27  ;;  %v6180_v27 = vpop.permute.xlu1 %6179 }
0x1045   : > { %6104 = vmatpush1.bf16.msra.mxu1 %v15181_v9 }
0x1046   : > { %6105 = vmatprep.subr.bf16.mxu1 %v6068_v21  ;;  %v6031_v46 = vadd.f32 %v7607_v22, %v6030_v19  ;;  %v6083_v21 = vrot.slane %v15189_v28, 2 }
0x1048   : > { %v6032_v7 = vadd.f32 %v7609_v8, %v6031_v46  ;;  %v15190_v8 = vld [vmem:[#allocation29_spill] sm:$0xff]  ;;  %v6185_v46 = vpop.permute.xlu0 %6184 }
0x1049   : > { %6106 = vmatpush1.bf16.msra.mxu1 %v15182_v50 }
0x104a   : > { %6107 = vmatprep.subr.bf16.mxu1 %v6070_v62  ;;  %v6033_v56 = vadd.f32 %v7611_v1, %v6032_v7  ;;  %v15192_v1 = vpack.c.bf16 %v15190_v8, %v15191_v38  ;;  %v6007_v62 = vadd.f32 %v6006_v43, %v6005_v54  ;;  %v15198_v54 = vld [vmem:[#allocation99_spill] sm:$0xff] }
0x104c   : > { %v6034_v14 = vadd.f32 %v7613_v45, %v6033_v56 }
0x104d   : > { %6108 = vmatpush1.bf16.msra.mxu1 %v15183_v0 }
0x104e   : > { %6109 = vmatprep.subr.bf16.mxu1 %v6072_v3  ;;  %v6035_v34 = vadd.f32 %v7615_v60, %v6034_v14  ;;  %v6008_v60 = vrot.slane %v6007_v62, 2  ;;  %v6190_v14 = vpop.permute.xlu1 %6189 }
0x1050   : > { %v6036_v48 = vadd.f32 %v7617_v6, %v6035_v34  ;;  %v6009_v23 = vadd.f32 %v6008_v60, %v6007_v62 }
0x1051   : > { %6110 = vmatpush1.bf16.msra.mxu1 %v15184_v18 }
0x1052   : > { %6111 = vmatprep.subr.bf16.mxu1 %v6074_v20  ;;  %v6037_v11 = vadd.f32 %v7619_v35, %v6036_v48  ;;  %v6010_v15 = vrot.slane %v6009_v23, 1 }
0x1054   : > { %v6038_v53 = vadd.f32 %v7621_v26, %v6037_v11  ;;  %v6011_v6 = vadd.f32 %v6010_v15, %v6009_v23 }
0x1055   : > { %6112 = vmatpush1.bf16.msra.mxu1 %v15185_v25  ;;  %v6195_v25 = vpop.permute.xlu1 %6194 }
0x1056   : > { %6113 = vmatprep.subr.bf16.mxu1 %v6076_v58  ;;  %v6039_v33 = vadd.f32 %v7623_v40, %v6038_v53  ;;  %7630 = vrcp.f32 %v6011_v6 }
0x1058   : > { %v6040_v16 = vadd.f32 %v7625_v12, %v6039_v33 }
0x1059   : > { %6114 = vmatpush1.bf16.msra.mxu1 %v15186_v32 }
0x105a   : > { %6115 = vmatprep.subr.bf16.mxu1 %v6078_v13  ;;  %v6041_v22 = vadd.f32 %v7627_v63, %v6040_v16  ;;  %v15199_v13 = vld [vmem:[#allocation106_spill] sm:$0xff] }
0x105c   : > { %v6042_v29 = vadd.f32 %v7629_v36, %v6041_v22 }
0x105d   : > { %6116 = vmatpush1.bf16.msra.mxu1 %v15187_v41 }
0x105e   : > { %6117 = vmatprep.subr.bf16.mxu1 %v6080_v61  ;;  %v6043_v49 = vrot.slane %v6042_v29, 4 }
0x1060   : > { %v6044_v45 = vadd.f32 %v6043_v49, %v6042_v29  ;;  %v7631_v35 = vpop.eup %7630 }
0x1061   : > { %6118 = vmatpush1.bf16.msra.mxu1 %v15188_v37 }
0x1062   : > { %6213 = vmatprep.subr.bf16.mxu1 %v15192_v1  ;;  %v6045_v52 = vrot.slane %v6044_v45, 2 }
0x1064   : > { %6120 = vmatmul.mubr.bf16.vlgmr.msra.gmra.mrb[12].mxu1 %v6083_v21  ;;  %v6046_v59 = vadd.f32 %v6045_v52, %v6044_v45 }
0x1065   : > { %6214 = vmatpush1.bf16.msra.mxu1 %v15195_v10  ;;  %6245 = vmatprep.mubr.bf16.mxu1 %v15196_v42 }
0x1066   : > { %v6047_v3 = vrot.slane %v6046_v59, 1 }
0x1068   : > { %v6048_v51 = vadd.f32 %v6047_v3, %v6046_v59 }
0x106a   : > { %7632 = vrcp.f32 %v6048_v51 }
0x1074   : > { %v7633_v30 = vpop.eup %7632 }
0x1137   : > { %v6121_v55 = vpop.f32.mrb[12].mxu1 }
0x1138   : > { %v6130_v20 = vmul.f32 %v7631_v35, %v6121_v55  ;;  %v6123_v26 = vpop.f32.mrb[13].mxu1 }
0x1139   : > { %v6131_v40 = vmul.f32 %v7633_v30, %v6123_v26  ;;  %v6125_v31 = vpop.f32.mrb[14].mxu1 }
0x113a   : > { %v6152_v44 = vrot.slane %v6130_v20, 4  ;;  %v6126_v58 = vpop.f32.mrb[15].mxu1 }
0x113b   : > { %v6153_v12 = vrot.slane %v6131_v40, 4 }
0x113c   : > { %v6163_v63 = vsel %vm6156_vm3, %v15197_v4, %v6152_v44 }
0x113d   : > { %v6171_v47 = vpack.c.bf16 %v6163_v63, %v15198_v54  ;;  %v6164_v36 = vsel %vm6156_vm3, %v15199_v13, %v6153_v12 }
0x113e   : > { %v6172_v61 = vpack.c.bf16 %v6164_v36, %v15200_v57 }
0x1140   : > { %6215 = vmatprep.subr.bf16.mxu1 %v6172_v61 }
0x1141   : > { %6216 = vmatpush1.bf16.msra.mxu1 %v6171_v47 }
0x1144   : > { %6511 = vmatmul.mubr.msk.bf16.vlgmr.msra.gmra.mrb[16].mxu1 %vm362_vm0, %v6576_v39 }
0x1145   : > { %6255 = vmatprep.mubr.bf16.mxu1 %v15196_v42 }
0x114c   : > { %6512 = vmatmul.mubr.msk.bf16.gmra.mrb[20].mxu1 %vm362_vm0, %v6577_v5 }
0x1217   : > { %v6247_v24 = vpop.f32.mrb[16].mxu1 }
0x1218   : > { %v6248_v9 = vadd.f32 %v6247_v24, %v6180_v27  ;;  %v6249_v19 = vpop.f32.mrb[17].mxu1 }
0x1219   : > { %v6250_v50 = vadd.f32 %v6249_v19, %v6180_v27  ;;  %v6251_v7 = vpop.f32.mrb[18].mxu1 }
0x121a   : > { %6266 = vst [vmem:[%s217_s12] sm:$0xff] %v6248_v9  ;;  %v6252_v56 = vadd.f32 %v6251_v7, %v6185_v46  ;;  %v6253_v0 = vpop.f32.mrb[19].mxu1 }
0x121b   : > { %6267 = vst [vmem:[%s217_s12 + $0x8] sm:$0xff] %v6250_v50  ;;  %v6254_v34 = vadd.f32 %v6253_v0, %v6185_v46 }
0x121c   : > { %6268 = vst [vmem:[%s217_s12 + $0x10] sm:$0xff] %v6252_v56 }
0x121d   : > { %6269 = vst [vmem:[%s217_s12 + $0x18] sm:$0xff] %v6254_v34 }
0x121f   : > { %v6257_v18 = vpop.f32.mrb[20].mxu1 }
0x1220   : > { %v6258_v48 = vadd.f32 %v6257_v18, %v6190_v14  ;;  %v6259_v11 = vpop.f32.mrb[21].mxu1 }
0x1221   : > { %v6260_v53 = vadd.f32 %v6259_v11, %v6190_v14  ;;  %v6261_v33 = vpop.f32.mrb[22].mxu1 }
0x1222   : > { %6270 = vst [vmem:[%s217_s12 + $0x20] sm:$0xff] %v6258_v48  ;;  %v6262_v32 = vadd.f32 %v6261_v33, %v6195_v25  ;;  %v6263_v16 = vpop.f32.mrb[23].mxu1 }
0x1223   : > { %6271 = vst [vmem:[%s217_s12 + $0x28] sm:$0xff] %v6260_v53  ;;  %v6264_v22 = vadd.f32 %v6263_v16, %v6195_v25 }
0x1224   : > { %6272 = vst [vmem:[%s217_s12 + $0x30] sm:$0xff] %v6262_v32 }
0x1225   : > { %6273 = vst [vmem:[%s217_s12 + $0x38] sm:$0xff] %v6264_v22 }
0x1226   : > { %7647 = shalt.err (!%p7644_p3)
}
0x1227   : > { %s7648_s6 = scalar_lea.hbm %s13689_s17, 1024  ;;  %s7652_s9 = scalar_lea.hbm %s13741_s5, 2048 }
0x1228   : > { %p7649_p4 = scmp.ne.s32.totalorder %s13689_s17, %s7648_s6  ;;  %p7653_p9 = scmp.lt.u32.totalorder %s13689_s17, %s13741_s5 }
0x1229   : > { %p7654_p10 = scmp.lt.u32.totalorder %s7652_s9, %s7648_s6  ;;  %p7656_p12 = scmp.lt.u32.totalorder %s7648_s6, %s13689_s17 }
0x122a   : > { %p7650_p7 = pnand %p7649_p4, %p7770_p5 }
0x122b   : > { %p7655_p11 = por %p7654_p10, %p7653_p9 }
0x122c   : > { %p7651_p8 = pneg %p7650_p7 }
0x122d   : > { %p7657_p13 = por %p7656_p12, %p7655_p11 }
0x122f   : > { %p7658_p0 = pnand %p7657_p13, %p7651_p8 }
0x1231   : > { %7661 = shalt.err (!%p7658_p0)
}
0x1232   : > { %s7700_s12 = smov 256   ;;  %s7701_s13 = smov 16  }
0x1233   : > { %6520 = dma.vmem_to_hbm [thread:$0]  (%p7770_p5), %s13691_s14, 1024, %s13689_s17, %s13695_s22, %s7700_s12, %s7700_s12, %s7701_s13  }
0x1234 PF: > { %p6526_p1 = scmp.ge.s32.totalorder %s7696_s21, 2  ;;  %s6303_s15 = sand.u32 1, %s7684_s18  }
0x1235   : > { %s6304_s16 = scalar_lea.sflag [#allocation3], %s6303_s15 }
0x1236   : > { %p6523_p2 = pnand %p6526_p1, %p7774_p6 }
0x1238   : > { %7679 = dma.done.wait (!%p6523_p2), %s6304_s16, 1024  }
0x1239   : > { %7681 = vsyncadd (!%p6523_p2), %s6304_s16, 4294966272  ;;  %p15_p3 = scmp.ge.s32.totalorder %s7757_s24, 4   ;;  %s15201_s18 = smov %s7688_s19 }
0x123a   : > { %s15202_s19 = smov %s7692_s20  ;;  %s15203_s20 = smov %s7768_s27 }
0x123b   : > { %s15204_s21 = smov %s7757_s24  ;;  %17 = sbr.rel (!%p15_p3) target bundleno = 3 (0x3), region = 75 }
0x1242   :  { %6309 = vsyncpa [#allocation3], 1 }
0x1243   :  { %6311 = vsyncpa [#allocation3 + $0x1], 1 }

</bundles_post_ra>
